<compile_context>
chip_gen: v7x
topology: tpu7x:2x2x1
jax: 0.10.0
libtpu: 0.0.40
codegen_flags: <defaults>
</compile_context>

<pallas_src>
import functools

import jax
import jax.numpy as jnp
from jax import lax
from jax.experimental import pallas as pl
from jax.experimental.pallas import tpu as pltpu

NUM_GROUPS = 32
EPS = 1e-5
KV_CHUNK_MAX = 1024


@functools.lru_cache(maxsize=None)
def _vmem_limit_bytes():
    # ~75% of physical per-core VMEM: 96 MiB on v5e/v6e (128 MiB phys), 48 MiB on v7x
    # (64 MiB phys) -> leaves headroom for compiler scratch and double buffers.
    try:
        cap = int(pltpu.get_tpu_info().vmem_capacity_bytes)
    except Exception:
        cap = 64 * 1024 * 1024  # conservative fallback (v7x per-core size)
    return cap * 3 // 4


# ------------------------- GroupNorm helpers (in-kernel) ------------------------
@functools.lru_cache(maxsize=None)
def _group_selectors(C):
    """Block-diagonal selector mapping per-channel stats to/from groups."""
    G = NUM_GROUPS
    gsz = C // G
    ch = jnp.arange(C)
    msel = (ch[:, None] // gsz == jnp.arange(G)[None, :]).astype(jnp.float32)  # (C, G)
    return msel, jnp.transpose(msel)                                            # (G, C)


def _group_norm(x, gamma, beta, msel, mselT, inv_count):
    """Two-pass GroupNorm. x: (N, C) f32; gamma/beta: (1, C); msel: (C,G); mselT: (G,C)."""
    s = jnp.sum(x, axis=0, keepdims=True)                                        # (1, C)
    mean_g = jnp.dot(s, msel, preferred_element_type=jnp.float32) * inv_count    # (1, G)
    mean = jnp.dot(mean_g, mselT, preferred_element_type=jnp.float32)            # (1, C)
    xc = x - mean
    ss = jnp.sum(xc * xc, axis=0, keepdims=True)                                 # (1, C)
    var_g = jnp.dot(ss, msel, preferred_element_type=jnp.float32) * inv_count    # (1, G)
    var = jnp.dot(var_g, mselT, preferred_element_type=jnp.float32)              # (1, C)
    inv = lax.rsqrt(var + EPS)
    return xc * (inv * gamma) + beta


# ------------------ fused GroupNorm + SiLU + 3x3 conv (+bias +temb) -------------
def _conv_body(x_ref, gamma_ref, beta_ref, msel_ref, mselT_ref, w_ref, bias_ref,
               temb_row, o_ref, xh_ref, *, H, W, C, Cout, inv_count, out_scale):
    HW = H * W
    C3 = 3 * C

    x = x_ref[0].reshape(HW, C).astype(jnp.float32)
    y = _group_norm(x, gamma_ref[...], beta_ref[...], msel_ref[...], mselT_ref[...],
                    inv_count)
    y = y * jax.nn.sigmoid(y)                                   # SiLU (EUP)
    y3 = y.reshape(H, W, C).astype(jnp.bfloat16)

    # Halo/boundary zeros: only the thin strips (perimeter), NOT the whole buffer —
    # the interior is fully overwritten every grid step below.
    zrow = jnp.zeros((1, W, C3), jnp.bfloat16)
    xh_ref[0:1, :, :] = zrow                                    # top halo row (kh = 0)
    xh_ref[H + 1:H + 2, :, :] = zrow                            # bottom halo row (kh = 2)
    zcol = jnp.zeros((H, 1, C), jnp.bfloat16)
    xh_ref[1:H + 1, 0:1, 0:C] = zcol                            # left pad of kw=0 block
    xh_ref[1:H + 1, W - 1:W, 2 * C:C3] = zcol                   # right pad of kw=2 block

    # Three W-shifted copies of the activation, concatenated along lanes so that the
    # horizontal taps live in the MXU contraction dim:
    #   lanes [0:C)   = x[i, j-1]  (kw = 0)
    #   lanes [C:2C)  = x[i, j]    (kw = 1)
    #   lanes [2C:3C) = x[i, j+1]  (kw = 2)
    xh_ref[1:H + 1, 1:W, 0:C] = y3[:, 0:W - 1, :]
    xh_ref[1:H + 1, :, C:2 * C] = y3
    xh_ref[1:H + 1, 0:W - 1, 2 * C:C3] = y3[:, 1:W, :]

    # 3 vertical taps, each an ALIGNED whole-plane slice -> (HW, 3C) x (3C, Cout) dot
    # (weight is (kh, kw, cin)-major so rows [di*3C, (di+1)*3C) are exactly tap kh=di).
    acc = jnp.zeros((HW, Cout), jnp.float32)
    for di in range(3):
        patch = xh_ref[di:di + H].reshape(HW, C3)               # bf16, layout-preserving
        acc = acc + jnp.dot(patch, w_ref[di * C3:(di + 1) * C3, :],
                            preferred_element_type=jnp.float32)

    out = acc + bias_ref[...]
    if temb_row is not None:
        out = out + temb_row                                    # per-batch temb bias
    if out_scale != 1.0:
        out = out * out_scale                                   # fused residual (2*h)
    # TODO(synk): when Cout < 128 this store is lane-masked; for narrow-channel problems
    # repack the output block as (H, W*Cout) (>=128 lanes) before storing.
    o_ref[0] = out.reshape(H, W, Cout).astype(o_ref.dtype)


def _gn_silu_conv3x3_kernel(x_ref, gamma_ref, beta_ref, msel_ref, mselT_ref,
                            w_ref, bias_ref, o_ref, xh_ref, **kw):
    _conv_body(x_ref, gamma_ref, beta_ref, msel_ref, mselT_ref, w_ref, bias_ref,
               None, o_ref, xh_ref, **kw)


def _gn_silu_conv3x3_temb_kernel(x_ref, gamma_ref, beta_ref, msel_ref, mselT_ref,
                                 w_ref, bias_ref, temb_ref, o_ref, xh_ref, **kw):
    temb_row = temb_ref[pl.ds(pl.program_id(0), 1), :]          # (1, Cout) for this batch
    _conv_body(x_ref, gamma_ref, beta_ref, msel_ref, mselT_ref, w_ref, bias_ref,
               temb_row, o_ref, xh_ref, **kw)


def gn_silu_conv3x3(x_img, gamma, beta, w_flat_bf16, bias, temb_emb, *,
                    out_scale, out_dtype):
    """x_img: (B,H,W,C) bf16; w_flat_bf16: (9*C, Cout) bf16 tap-major; temb_emb: (B,Cout) or None."""
    B, H, W, C = x_img.shape
    assert W % 8 == 0, "W must be a multiple of 8 for free (H,W,C)<->(HW,C) reshapes"
    assert C % NUM_GROUPS == 0
    # TODO(synk): add a padding path for odd spatial sizes from UNet down/upsampling.
    Cout = w_flat_bf16.shape[1]
    G = NUM_GROUPS
    msel, mselT = _group_selectors(C)
    has_temb = temb_emb is not None

    kw = dict(H=H, W=W, C=C, Cout=Cout, inv_count=1.0 / (H * W * (C // G)),
              out_scale=float(out_scale))
    kern = functools.partial(
        _gn_silu_conv3x3_temb_kernel if has_temb else _gn_silu_conv3x3_kernel, **kw)

    # TODO(synk): constant-index operands (weights, selectors, gamma/beta, bias) still
    # get shadow double-buffers; single-buffer them (pipeline_mode) for very large Cout.
    # TODO(synk): add a spatial (H) tile axis with a 1-row halo for large H*W*C so the
    # per-step VMEM stays bounded and megacore gets >B parallel work units.
    in_specs = [
        pl.BlockSpec((1, H, W, C), lambda b: (b, 0, 0, 0)),
        pl.BlockSpec((1, C), lambda b: (0, 0)),
        pl.BlockSpec((1, C), lambda b: (0, 0)),
        pl.BlockSpec((C, G), lambda b: (0, 0)),
        pl.BlockSpec((G, C), lambda b: (0, 0)),
        pl.BlockSpec((9 * C, Cout), lambda b: (0, 0)),
        pl.BlockSpec((1, Cout), lambda b: (0, 0)),
    ]
    args = [x_img, gamma.reshape(1, C), beta.reshape(1, C), msel, mselT,
            w_flat_bf16, bias.reshape(1, Cout)]
    if has_temb:
        in_specs.append(pl.BlockSpec((B, Cout), lambda b: (0, 0)))  # fetched once
        args.append(temb_emb)

    return pl.pallas_call(
        kern,
        out_shape=jax.ShapeDtypeStruct((B, H, W, Cout), out_dtype),
        grid=(B,),
        in_specs=in_specs,
        out_specs=pl.BlockSpec((1, H, W, Cout), lambda b: (b, 0, 0, 0)),
        scratch_shapes=[pltpu.VMEM((H + 2, W, 3 * C), jnp.bfloat16)],
        compiler_params=pltpu.CompilerParams(
            dimension_semantics=("parallel",),
            vmem_limit_bytes=_vmem_limit_bytes()),
    )(*args)


# ---------------- fused attention (GN + qkv + online softmax + proj + residual) --------
def _attn_kernel(x_ref, gamma_ref, beta_ref, msel_ref, mselT_ref,
                 wqkv_ref, bqkv_ref, wp_ref, bp_ref, o_ref,
                 *, H, W, C, inv_count, scale, kv_chunk):
    HW = H * W
    x = x_ref[0].reshape(HW, C).astype(jnp.float32)
    h = _group_norm(x, gamma_ref[...], beta_ref[...], msel_ref[...], mselT_ref[...],
                    inv_count)
    hb = h.astype(jnp.bfloat16)
    # q/k/v fused into one (C, 3C) MXU dot; split by lane slices.
    qkv = jnp.dot(hb, wqkv_ref[...], preferred_element_type=jnp.float32) + bqkv_ref[...]
    q = (qkv[:, 0:C] * scale).astype(jnp.bfloat16)   # scale O(HW*C) instead of (HW,HW)
    k = qkv[:, C:2 * C].astype(jnp.bfloat16)
    v = qkv[:, 2 * C:3 * C].astype(jnp.bfloat16)

    # Online (KV-chunked) softmax: the (HW, HW) score matrix never materializes whole,
    # only (HW, kv_chunk) tiles -> fits v7x's 64 MiB VMEM at realistic resolutions.
    # TODO(synk): for very large HW move the KV loop onto a grid axis (flash-attention
    # style) instead of an unrolled in-kernel loop.
    m = jnp.full((HW, 1), -1e30, jnp.float32)
    l = jnp.zeros((HW, 1), jnp.float32)
    acc = jnp.zeros((HW, C), jnp.float32)
    for start in range(0, HW, kv_chunk):
        stop = min(start + kv_chunk, HW)
        kc = k[start:stop]
        vc = v[start:stop]
        # scores[i, j] = sum_c q[i, c] * k[j, c]   == torch einsum 'bci,bcj->bij'
        s = lax.dot_general(q, kc, (((1,), (1,)), ((), ())),
                            preferred_element_type=jnp.float32)          # (HW, chunk)
        m_new = jnp.maximum(m, jnp.max(s, axis=-1, keepdims=True))
        alpha = jnp.exp(m - m_new)
        p = jnp.exp(s - m_new)
        l = alpha * l + jnp.sum(p, axis=-1, keepdims=True)
        acc = alpha * acc + jnp.dot(p.astype(jnp.bfloat16), vc,
                                    preferred_element_type=jnp.float32)
        m = m_new

    o = acc * pl.reciprocal(l, approx=True)                               # EUP
    o = jnp.dot(o.astype(jnp.bfloat16), wp_ref[...],
                preferred_element_type=jnp.float32) + bp_ref[...]
    o_ref[0] = (x + o).reshape(H, W, C).astype(o_ref.dtype)               # residual


def attention_block(x_img, params, *, out_dtype=jnp.float32):
    B, H, W, C = x_img.shape
    assert W % 8 == 0 and C % NUM_GROUPS == 0
    HW = H * W
    G = NUM_GROUPS
    msel, mselT = _group_selectors(C)
    kern = functools.partial(_attn_kernel, H=H, W=W, C=C,
                             inv_count=1.0 / (HW * (C // G)),
                             scale=1.0 / (C ** 0.5),
                             kv_chunk=min(HW, KV_CHUNK_MAX))
    spec_img = pl.BlockSpec((1, H, W, C), lambda b: (b, 0, 0, 0))
    spec_1c = pl.BlockSpec((1, C), lambda b: (0, 0))
    return pl.pallas_call(
        kern,
        out_shape=jax.ShapeDtypeStruct((B, H, W, C), out_dtype),
        grid=(B,),
        in_specs=[spec_img, spec_1c, spec_1c,
                  pl.BlockSpec((C, G), lambda b: (0, 0)),
                  pl.BlockSpec((G, C), lambda b: (0, 0)),
                  pl.BlockSpec((C, 3 * C), lambda b: (0, 0)),
                  pl.BlockSpec((1, 3 * C), lambda b: (0, 0)),
                  pl.BlockSpec((C, C), lambda b: (0, 0)),
                  spec_1c],
        out_specs=spec_img,
        compiler_params=pltpu.CompilerParams(
            dimension_semantics=("parallel",),
            vmem_limit_bytes=_vmem_limit_bytes()),
    )(x_img,
      params["attn_gamma"].reshape(1, C), params["attn_beta"].reshape(1, C),
      msel, mselT,
      params["attn_wqkv"], params["attn_bqkv"],
      params["attn_wp"], params["attn_bp"].reshape(1, C))


# -------------------------------- forward pass ----------------------------------
def unet_block_forward(x_nchw, temb, params, apply_attention=True):
    B, Cin, H, W = x_nchw.shape
    Cout = params["conv1_b"].shape[0]
    if Cin != Cout:
        # TODO(synk): conv/1x1 shortcut path for in_channels != out_channels not implemented.
        raise NotImplementedError("in_channels != out_channels shortcut not implemented")
    # NCHW -> NHWC once at the module boundary (bf16 halves HBM traffic into conv1).
    # TODO(synk): keep NHWC between stacked UNet blocks; transpose only at model edges.
    x_img = jnp.transpose(x_nchw, (0, 2, 3, 1)).astype(jnp.bfloat16)      # (B, H, W, Cin)

    # temb SiLU + Linear: tiny (B,128)@(128,Cout) — plain JAX, XLA fuses it.
    t = temb.astype(jnp.float32)
    t = t * jax.nn.sigmoid(t)
    temb_emb = t @ params["temb_w"] + params["temb_b"]                    # (B, Cout) f32

    # conv1: GN + SiLU + 3x3 conv + bias + temb, fused. bf16 inter-kernel activation.
    h = gn_silu_conv3x3(x_img, params["norm1_gamma"], params["norm1_beta"],
                        params["conv1_w_flat"], params["conv1_b"], temb_emb,
                        out_scale=1.0, out_dtype=jnp.bfloat16)
    # conv2: GN + SiLU + (dropout p=0 eval -> identity) + 3x3 conv + bias. The reference
    # then does x = shortcut(h); h = h + x with Identity shortcut -> 2 * conv2_out, fused.
    h = gn_silu_conv3x3(h, params["norm2_gamma"], params["norm2_beta"],
                        params["conv2_w_flat"], params["conv2_b"], None,
                        out_scale=2.0,
                        out_dtype=jnp.bfloat16 if apply_attention else jnp.float32)

    if apply_attention:
        h = attention_block(h, params, out_dtype=jnp.float32)             # (B, H, W, Cout)

    return jnp.transpose(h, (0, 3, 1, 2))                                  # back to NCHW


# ------------------------------- parameter init ----------------------------------
def init_params(key, in_channels, out_channels, temb_channels=128):
    keys = jax.random.split(key, 20)

    def nrm(k, shape, scale=0.1):
        return scale * jax.random.normal(k, shape, jnp.float32)

    p = {}
    p["norm1_gamma"] = 1.0 + nrm(keys[0], (in_channels,))
    p["norm1_beta"] = nrm(keys[1], (in_channels,))
    conv1_w = nrm(keys[2], (out_channels, in_channels, 3, 3))              # torch layout
    p["conv1_w_flat"] = jnp.transpose(conv1_w, (2, 3, 1, 0)).reshape(
        9 * in_channels, out_channels).astype(jnp.bfloat16)                # (kh,kw,cin)-major
    p["conv1_b"] = nrm(keys[3], (out_channels,))
    temb_w = nrm(keys[4], (out_channels, temb_channels))                   # torch Linear layout
    p["temb_w"] = jnp.transpose(temb_w)                                    # (T, Cout)
    p["temb_b"] = nrm(keys[5], (out_channels,))
    p["norm2_gamma"] = 1.0 + nrm(keys[6], (out_channels,))
    p["norm2_beta"] = nrm(keys[7], (out_channels,))
    conv2_w = nrm(keys[8], (out_channels, out_channels, 3, 3))
    p["conv2_w_flat"] = jnp.transpose(conv2_w, (2, 3, 1, 0)).reshape(
        9 * out_channels, out_channels).astype(jnp.bfloat16)
    p["conv2_b"] = nrm(keys[9], (out_channels,))
    # attention (1x1 convs == channel matmuls); q/k/v fused into one (C, 3C) weight.
    p["attn_gamma"] = 1.0 + nrm(keys[10], (out_channels,))
    p["attn_beta"] = nrm(keys[11], (out_channels,))
    wq = jnp.transpose(nrm(keys[12], (out_channels, out_channels)))        # (Cin, Cout)
    wk = jnp.transpose(nrm(keys[13], (out_channels, out_channels)))
    wv = jnp.transpose(nrm(keys[14], (out_channels, out_channels)))
    p["attn_wqkv"] = jnp.concatenate([wq, wk, wv], axis=1).astype(jnp.bfloat16)   # (C, 3C)
    p["attn_bqkv"] = jnp.concatenate(
        [nrm(keys[15], (out_channels,)), nrm(keys[16], (out_channels,)),
         nrm(keys[17], (out_channels,))]).reshape(1, 3 * out_channels)
    p["attn_wp"] = jnp.transpose(nrm(keys[18], (out_channels, out_channels))).astype(jnp.bfloat16)
    p["attn_bp"] = nrm(keys[19], (out_channels,))
    return p


if __name__ == "__main__":
    key = jax.random.PRNGKey(0)
    kx, kt, kp = jax.random.split(key, 3)
    B, C, H, W = 2, 32, 16, 16          # GroupNorm(32, C) requires C % 32 == 0
    TEMB = 128
    x = jax.random.normal(kx, (B, C, H, W), jnp.float32)
    temb = jax.random.normal(kt, (B, TEMB), jnp.float32)
    params = init_params(kp, C, C, TEMB)

    fwd = jax.jit(functools.partial(unet_block_forward, apply_attention=True))
    out = jax.block_until_ready(fwd(x, temb, params))
    assert out.shape == (B, C, H, W), out.shape
    assert bool(jnp.all(jnp.isfinite(out)))
    print("KERNEL_OK")
</pallas_src>

<mosaic_0001>
module attributes {stable_mosaic.version = 11 : i64} {
  func.func @_attn_kernel(%arg0: i32, %arg1: memref<1x16x16x32xbf16, #tpu.memory_space<vmem>>, %arg2: memref<1x32xf32, #tpu.memory_space<vmem>>, %arg3: memref<1x32xf32, #tpu.memory_space<vmem>>, %arg4: memref<32x32xf32, #tpu.memory_space<vmem>>, %arg5: memref<32x32xf32, #tpu.memory_space<vmem>>, %arg6: memref<32x96xbf16, #tpu.memory_space<vmem>>, %arg7: memref<1x96xf32, #tpu.memory_space<vmem>>, %arg8: memref<32x32xbf16, #tpu.memory_space<vmem>>, %arg9: memref<1x32xf32, #tpu.memory_space<vmem>>, %arg10: memref<1x16x16x32xf32, #tpu.memory_space<vmem>>) attributes {dimension_semantics = [#tpu.dimension_semantics<parallel>], iteration_bounds = array<i64: 2>, scalar_prefetch = 0 : i64, scratch_operands = 0 : i64, tpu.core_type = #tpu.core_type<tc>, window_params = [{transform_indices = @transform_0, window_bounds = array<i64: 1, 16, 16, 32>}, {pipeline_mode = #tpu.pipeline_mode<synchronous>, transform_indices = @transform_1, window_bounds = array<i64: 1, 32>}, {pipeline_mode = #tpu.pipeline_mode<synchronous>, transform_indices = @transform_2, window_bounds = array<i64: 1, 32>}, {pipeline_mode = #tpu.pipeline_mode<synchronous>, transform_indices = @transform_3, window_bounds = array<i64: 32, 32>}, {pipeline_mode = #tpu.pipeline_mode<synchronous>, transform_indices = @transform_4, window_bounds = array<i64: 32, 32>}, {pipeline_mode = #tpu.pipeline_mode<synchronous>, transform_indices = @transform_5, window_bounds = array<i64: 32, 96>}, {pipeline_mode = #tpu.pipeline_mode<synchronous>, transform_indices = @transform_6, window_bounds = array<i64: 1, 96>}, {pipeline_mode = #tpu.pipeline_mode<synchronous>, transform_indices = @transform_7, window_bounds = array<i64: 32, 32>}, {pipeline_mode = #tpu.pipeline_mode<synchronous>, transform_indices = @transform_8, window_bounds = array<i64: 1, 32>}, {transform_indices = @transform_9, window_bounds = array<i64: 1, 16, 16, 32>}]} {
    %c0 = arith.constant 0 : index
    %c0_0 = arith.constant 0 : index
    %c0_1 = arith.constant 0 : index
    %c0_2 = arith.constant 0 : index
    %0 = vector.load %arg1[%c0, %c0_0, %c0_1, %c0_2] : memref<1x16x16x32xbf16, #tpu.memory_space<vmem>>, vector<1x16x16x32xbf16>
    %1 = vector.shape_cast %0 : vector<1x16x16x32xbf16> to vector<16x16x32xbf16>
    %2 = vector.shape_cast %1 : vector<16x16x32xbf16> to vector<256x32xbf16>
    %3 = arith.extf %2 : vector<256x32xbf16> to vector<256x32xf32>
    %c0_3 = arith.constant 0 : index
    %c0_4 = arith.constant 0 : index
    %4 = vector.load %arg2[%c0_3, %c0_4] : memref<1x32xf32, #tpu.memory_space<vmem>>, vector<1x32xf32>
    %c0_5 = arith.constant 0 : index
    %c0_6 = arith.constant 0 : index
    %5 = vector.load %arg3[%c0_5, %c0_6] : memref<1x32xf32, #tpu.memory_space<vmem>>, vector<1x32xf32>
    %c0_7 = arith.constant 0 : index
    %c0_8 = arith.constant 0 : index
    %6 = vector.load %arg4[%c0_7, %c0_8] : memref<32x32xf32, #tpu.memory_space<vmem>>, vector<32x32xf32>
    %c0_9 = arith.constant 0 : index
    %c0_10 = arith.constant 0 : index
    %7 = vector.load %arg5[%c0_9, %c0_10] : memref<32x32xf32, #tpu.memory_space<vmem>>, vector<32x32xf32>
    %cst = arith.constant dense<0.000000e+00> : vector<32xf32>
    %8 = vector.multi_reduction <add>, %3, %cst [0] : vector<256x32xf32> to vector<32xf32>
    %9 = vector.shape_cast %8 : vector<32xf32> to vector<1x32xf32>
    %cst_11 = arith.constant dense<0.000000e+00> : vector<1x32xf32>
    %10 = tpu.matmul %9, %6, %cst_11 {dimension_numbers = #tpu.dot_dimension_numbers<[1], [0], [0], [1], [0, 0, 1, 1], [], []>} : vector<1x32xf32>, vector<32x32xf32>, vector<1x32xf32> -> vector<1x32xf32>
    %cst_12 = arith.constant 3.906250e-03 : f32
    %11 = vector.broadcast %cst_12 : f32 to vector<1x32xf32>
    %12 = arith.mulf %10, %11 : vector<1x32xf32>
    %cst_13 = arith.constant dense<0.000000e+00> : vector<1x32xf32>
    %13 = tpu.matmul %12, %7, %cst_13 {dimension_numbers = #tpu.dot_dimension_numbers<[1], [0], [0], [1], [0, 0, 1, 1], [], []>} : vector<1x32xf32>, vector<32x32xf32>, vector<1x32xf32> -> vector<1x32xf32>
    %14 = vector.broadcast %13 : vector<1x32xf32> to vector<256x32xf32>
    %15 = arith.subf %3, %14 : vector<256x32xf32>
    %16 = arith.mulf %15, %15 : vector<256x32xf32>
    %cst_14 = arith.constant dense<0.000000e+00> : vector<32xf32>
    %17 = vector.multi_reduction <add>, %16, %cst_14 [0] : vector<256x32xf32> to vector<32xf32>
    %18 = vector.shape_cast %17 : vector<32xf32> to vector<1x32xf32>
    %cst_15 = arith.constant dense<0.000000e+00> : vector<1x32xf32>
    %19 = tpu.matmul %18, %6, %cst_15 {dimension_numbers = #tpu.dot_dimension_numbers<[1], [0], [0], [1], [0, 0, 1, 1], [], []>} : vector<1x32xf32>, vector<32x32xf32>, vector<1x32xf32> -> vector<1x32xf32>
    %cst_16 = arith.constant 3.906250e-03 : f32
    %20 = vector.broadcast %cst_16 : f32 to vector<1x32xf32>
    %21 = arith.mulf %19, %20 : vector<1x32xf32>
    %cst_17 = arith.constant dense<0.000000e+00> : vector<1x32xf32>
    %22 = tpu.matmul %21, %7, %cst_17 {dimension_numbers = #tpu.dot_dimension_numbers<[1], [0], [0], [1], [0, 0, 1, 1], [], []>} : vector<1x32xf32>, vector<32x32xf32>, vector<1x32xf32> -> vector<1x32xf32>
    %cst_18 = arith.constant 9.99999974E-6 : f32
    %23 = vector.broadcast %cst_18 : f32 to vector<1x32xf32>
    %24 = arith.addf %22, %23 : vector<1x32xf32>
    %25 = math.rsqrt %24 : vector<1x32xf32>
    %26 = arith.mulf %25, %4 : vector<1x32xf32>
    %27 = vector.broadcast %26 : vector<1x32xf32> to vector<256x32xf32>
    %28 = arith.mulf %15, %27 : vector<256x32xf32>
    %29 = vector.broadcast %5 : vector<1x32xf32> to vector<256x32xf32>
    %30 = arith.addf %28, %29 : vector<256x32xf32>
    %31 = arith.truncf %30 : vector<256x32xf32> to vector<256x32xbf16>
    %c0_19 = arith.constant 0 : index
    %c0_20 = arith.constant 0 : index
    %32 = vector.load %arg6[%c0_19, %c0_20] : memref<32x96xbf16, #tpu.memory_space<vmem>>, vector<32x96xbf16>
    %cst_21 = arith.constant dense<0.000000e+00> : vector<256x96xf32>
    %33 = tpu.matmul %31, %32, %cst_21 {dimension_numbers = #tpu.dot_dimension_numbers<[1], [0], [0], [1], [0, 0, 1, 1], [], []>} : vector<256x32xbf16>, vector<32x96xbf16>, vector<256x96xf32> -> vector<256x96xf32>
    %c0_22 = arith.constant 0 : index
    %c0_23 = arith.constant 0 : index
    %34 = vector.load %arg7[%c0_22, %c0_23] : memref<1x96xf32, #tpu.memory_space<vmem>>, vector<1x96xf32>
    %35 = vector.broadcast %34 : vector<1x96xf32> to vector<256x96xf32>
    %36 = arith.addf %33, %35 : vector<256x96xf32>
    %37 = vector.extract_strided_slice %36 {offsets = [0, 0], sizes = [256, 32], strides = [1, 1]} : vector<256x96xf32> to vector<256x32xf32>
    %cst_24 = arith.constant 0.176776692 : f32
    %38 = vector.broadcast %cst_24 : f32 to vector<256x32xf32>
    %39 = arith.mulf %37, %38 : vector<256x32xf32>
    %40 = arith.truncf %39 : vector<256x32xf32> to vector<256x32xbf16>
    %41 = vector.extract_strided_slice %36 {offsets = [0, 32], sizes = [256, 32], strides = [1, 1]} : vector<256x96xf32> to vector<256x32xf32>
    %42 = arith.truncf %41 : vector<256x32xf32> to vector<256x32xbf16>
    %43 = vector.extract_strided_slice %36 {offsets = [0, 64], sizes = [256, 32], strides = [1, 1]} : vector<256x96xf32> to vector<256x32xf32>
    %44 = arith.truncf %43 : vector<256x32xf32> to vector<256x32xbf16>
    %cst_25 = arith.constant -1.000000e+30 : f32
    %45 = vector.broadcast %cst_25 : f32 to vector<256x1xf32>
    %cst_26 = arith.constant 0.000000e+00 : f32
    %46 = vector.broadcast %cst_26 : f32 to vector<256x1xf32>
    %cst_27 = arith.constant 0.000000e+00 : f32
    %47 = vector.broadcast %cst_27 : f32 to vector<256x32xf32>
    %cst_28 = arith.constant dense<0.000000e+00> : vector<256x256xf32>
    %48 = tpu.matmul %40, %42, %cst_28 {dimension_numbers = #tpu.dot_dimension_numbers<[1], [1], [0], [0], [0, 0, 1, 0], [], []>} : vector<256x32xbf16>, vector<256x32xbf16>, vector<256x256xf32> -> vector<256x256xf32>
    %cst_29 = arith.constant dense<0xFF800000> : vector<256xf32>
    %49 = vector.multi_reduction <maximumf>, %48, %cst_29 [1] : vector<256x256xf32> to vector<256xf32>
    %50 = vector.shape_cast %49 : vector<256xf32> to vector<256x1xf32>
    %51 = arith.maximumf %45, %50 : vector<256x1xf32>
    %52 = arith.subf %45, %51 : vector<256x1xf32>
    %53 = math.exp %52 : vector<256x1xf32>
    %54 = vector.broadcast %51 : vector<256x1xf32> to vector<256x256xf32>
    %55 = arith.subf %48, %54 : vector<256x256xf32>
    %56 = math.exp %55 : vector<256x256xf32>
    %57 = arith.mulf %53, %46 : vector<256x1xf32>
    %cst_30 = arith.constant dense<0.000000e+00> : vector<256xf32>
    %58 = vector.multi_reduction <add>, %56, %cst_30 [1] : vector<256x256xf32> to vector<256xf32>
    %59 = vector.shape_cast %58 : vector<256xf32> to vector<256x1xf32>
    %60 = arith.addf %57, %59 : vector<256x1xf32>
    %61 = vector.broadcast %53 : vector<256x1xf32> to vector<256x32xf32>
    %62 = arith.mulf %61, %47 : vector<256x32xf32>
    %63 = arith.truncf %56 : vector<256x256xf32> to vector<256x256xbf16>
    %cst_31 = arith.constant dense<0.000000e+00> : vector<256x32xf32>
    %64 = tpu.matmul %63, %44, %cst_31 {dimension_numbers = #tpu.dot_dimension_numbers<[1], [0], [0], [1], [0, 0, 1, 1], [], []>} : vector<256x256xbf16>, vector<256x32xbf16>, vector<256x32xf32> -> vector<256x32xf32>
    %65 = arith.addf %62, %64 : vector<256x32xf32>
    %66 = tpu.reciprocal %60 {approx = true} : vector<256x1xf32> -> vector<256x1xf32>
    %67 = vector.broadcast %66 : vector<256x1xf32> to vector<256x32xf32>
    %68 = arith.mulf %65, %67 : vector<256x32xf32>
    %69 = arith.truncf %68 : vector<256x32xf32> to vector<256x32xbf16>
    %c0_32 = arith.constant 0 : index
    %c0_33 = arith.constant 0 : index
    %70 = vector.load %arg8[%c0_32, %c0_33] : memref<32x32xbf16, #tpu.memory_space<vmem>>, vector<32x32xbf16>
    %cst_34 = arith.constant dense<0.000000e+00> : vector<256x32xf32>
    %71 = tpu.matmul %69, %70, %cst_34 {dimension_numbers = #tpu.dot_dimension_numbers<[1], [0], [0], [1], [0, 0, 1, 1], [], []>} : vector<256x32xbf16>, vector<32x32xbf16>, vector<256x32xf32> -> vector<256x32xf32>
    %c0_35 = arith.constant 0 : index
    %c0_36 = arith.constant 0 : index
    %72 = vector.load %arg9[%c0_35, %c0_36] : memref<1x32xf32, #tpu.memory_space<vmem>>, vector<1x32xf32>
    %73 = vector.broadcast %72 : vector<1x32xf32> to vector<256x32xf32>
    %74 = arith.addf %71, %73 : vector<256x32xf32>
    %75 = arith.addf %3, %74 : vector<256x32xf32>
    %76 = vector.shape_cast %75 : vector<256x32xf32> to vector<16x16x32xf32>
    %c0_37 = arith.constant 0 : index
    %c0_38 = arith.constant 0 : index
    %c0_39 = arith.constant 0 : index
    %c0_40 = arith.constant 0 : index
    %77 = vector.load %arg10[%c0_37, %c0_38, %c0_39, %c0_40] : memref<1x16x16x32xf32, #tpu.memory_space<vmem>>, vector<1x16x16x32xf32>
    %78 = vector.shape_cast %77 : vector<1x16x16x32xf32> to vector<16x16x32xf32>
    %79 = vector.shape_cast %76 : vector<16x16x32xf32> to vector<1x16x16x32xf32>
    tpu.vector_store %arg10[%c0_37, %c0_38, %c0_39, %c0_40], %79 {strides = array<i32>} : memref<1x16x16x32xf32, #tpu.memory_space<vmem>>, vector<1x16x16x32xf32>,
    return
  }
  func.func @transform_0(%arg0: i32) -> (i32, i32, i32, i32) {
    %c0_i32 = arith.constant 0 : i32
    %c0_i32_0 = arith.constant 0 : i32
    %c0_i32_1 = arith.constant 0 : i32
    %c0_i32_2 = arith.constant 0 : i32
    return %arg0, %c0_i32, %c0_i32_0, %c0_i32_1 : i32, i32, i32, i32
  }
  func.func @transform_1(%arg0: i32) -> (i32, i32) {
    %c0_i32 = arith.constant 0 : i32
    %c0_i32_0 = arith.constant 0 : i32
    %c0_i32_1 = arith.constant 0 : i32
    return %c0_i32, %c0_i32_0 : i32, i32
  }
  func.func @transform_2(%arg0: i32) -> (i32, i32) {
    %c0_i32 = arith.constant 0 : i32
    %c0_i32_0 = arith.constant 0 : i32
    %c0_i32_1 = arith.constant 0 : i32
    return %c0_i32, %c0_i32_0 : i32, i32
  }
  func.func @transform_3(%arg0: i32) -> (i32, i32) {
    %c0_i32 = arith.constant 0 : i32
    %c0_i32_0 = arith.constant 0 : i32
    %c0_i32_1 = arith.constant 0 : i32
    return %c0_i32, %c0_i32_0 : i32, i32
  }
  func.func @transform_4(%arg0: i32) -> (i32, i32) {
    %c0_i32 = arith.constant 0 : i32
    %c0_i32_0 = arith.constant 0 : i32
    %c0_i32_1 = arith.constant 0 : i32
    return %c0_i32, %c0_i32_0 : i32, i32
  }
  func.func @transform_5(%arg0: i32) -> (i32, i32) {
    %c0_i32 = arith.constant 0 : i32
    %c0_i32_0 = arith.constant 0 : i32
    %c0_i32_1 = arith.constant 0 : i32
    return %c0_i32, %c0_i32_0 : i32, i32
  }
  func.func @transform_6(%arg0: i32) -> (i32, i32) {
    %c0_i32 = arith.constant 0 : i32
    %c0_i32_0 = arith.constant 0 : i32
    %c0_i32_1 = arith.constant 0 : i32
    return %c0_i32, %c0_i32_0 : i32, i32
  }
  func.func @transform_7(%arg0: i32) -> (i32, i32) {
    %c0_i32 = arith.constant 0 : i32
    %c0_i32_0 = arith.constant 0 : i32
    %c0_i32_1 = arith.constant 0 : i32
    return %c0_i32, %c0_i32_0 : i32, i32
  }
  func.func @transform_8(%arg0: i32) -> (i32, i32) {
    %c0_i32 = arith.constant 0 : i32
    %c0_i32_0 = arith.constant 0 : i32
    %c0_i32_1 = arith.constant 0 : i32
    return %c0_i32, %c0_i32_0 : i32, i32
  }
  func.func @transform_9(%arg0: i32) -> (i32, i32, i32, i32) {
    %c0_i32 = arith.constant 0 : i32
    %c0_i32_0 = arith.constant 0 : i32
    %c0_i32_1 = arith.constant 0 : i32
    %c0_i32_2 = arith.constant 0 : i32
    return %arg0, %c0_i32, %c0_i32_0, %c0_i32_1 : i32, i32, i32, i32
  }
}

module attributes {stable_mosaic.version = 11 : i64} {
  func.func @_gn_silu_conv3x3_temb_kernel(%arg0: i32, %arg1: memref<1x16x16x32xbf16, #tpu.memory_space<vmem>>, %arg2: memref<1x32xf32, #tpu.memory_space<vmem>>, %arg3: memref<1x32xf32, #tpu.memory_space<vmem>>, %arg4: memref<32x32xf32, #tpu.memory_space<vmem>>, %arg5: memref<32x32xf32, #tpu.memory_space<vmem>>, %arg6: memref<288x32xbf16, #tpu.memory_space<vmem>>, %arg7: memref<1x32xf32, #tpu.memory_space<vmem>>, %arg8: memref<2x32xf32, #tpu.memory_space<vmem>>, %arg9: memref<1x16x16x32xbf16, #tpu.memory_space<vmem>>, %arg10: memref<18x16x96xbf16, #tpu.memory_space<vmem>>) attributes {dimension_semantics = [#tpu.dimension_semantics<parallel>], iteration_bounds = array<i64: 2>, scalar_prefetch = 0 : i64, scratch_operands = 1 : i64, tpu.core_type = #tpu.core_type<tc>, window_params = [{transform_indices = @transform_0, window_bounds = array<i64: 1, 16, 16, 32>}, {pipeline_mode = #tpu.pipeline_mode<synchronous>, transform_indices = @transform_1, window_bounds = array<i64: 1, 32>}, {pipeline_mode = #tpu.pipeline_mode<synchronous>, transform_indices = @transform_2, window_bounds = array<i64: 1, 32>}, {pipeline_mode = #tpu.pipeline_mode<synchronous>, transform_indices = @transform_3, window_bounds = array<i64: 32, 32>}, {pipeline_mode = #tpu.pipeline_mode<synchronous>, transform_indices = @transform_4, window_bounds = array<i64: 32, 32>}, {pipeline_mode = #tpu.pipeline_mode<synchronous>, transform_indices = @transform_5, window_bounds = array<i64: 288, 32>}, {pipeline_mode = #tpu.pipeline_mode<synchronous>, transform_indices = @transform_6, window_bounds = array<i64: 1, 32>}, {pipeline_mode = #tpu.pipeline_mode<synchronous>, transform_indices = @transform_7, window_bounds = array<i64: 2, 32>}, {transform_indices = @transform_8, window_bounds = array<i64: 1, 16, 16, 32>}]} {
    %0 = arith.index_cast %arg0 : i32 to index
    %c0 = arith.constant 0 : index
    %1 = vector.load %arg8[%0, %c0] : memref<2x32xf32, #tpu.memory_space<vmem>>, vector<1x32xf32>
    %c0_0 = arith.constant 0 : index
    %c0_1 = arith.constant 0 : index
    %c0_2 = arith.constant 0 : index
    %c0_3 = arith.constant 0 : index
    %2 = vector.load %arg1[%c0_0, %c0_1, %c0_2, %c0_3] : memref<1x16x16x32xbf16, #tpu.memory_space<vmem>>, vector<1x16x16x32xbf16>
    %3 = vector.shape_cast %2 : vector<1x16x16x32xbf16> to vector<16x16x32xbf16>
    %4 = vector.shape_cast %3 : vector<16x16x32xbf16> to vector<256x32xbf16>
    %5 = arith.extf %4 : vector<256x32xbf16> to vector<256x32xf32>
    %c0_4 = arith.constant 0 : index
    %c0_5 = arith.constant 0 : index
    %6 = vector.load %arg2[%c0_4, %c0_5] : memref<1x32xf32, #tpu.memory_space<vmem>>, vector<1x32xf32>
    %c0_6 = arith.constant 0 : index
    %c0_7 = arith.constant 0 : index
    %7 = vector.load %arg3[%c0_6, %c0_7] : memref<1x32xf32, #tpu.memory_space<vmem>>, vector<1x32xf32>
    %c0_8 = arith.constant 0 : index
    %c0_9 = arith.constant 0 : index
    %8 = vector.load %arg4[%c0_8, %c0_9] : memref<32x32xf32, #tpu.memory_space<vmem>>, vector<32x32xf32>
    %c0_10 = arith.constant 0 : index
    %c0_11 = arith.constant 0 : index
    %9 = vector.load %arg5[%c0_10, %c0_11] : memref<32x32xf32, #tpu.memory_space<vmem>>, vector<32x32xf32>
    %cst = arith.constant dense<0.000000e+00> : vector<32xf32>
    %10 = vector.multi_reduction <add>, %5, %cst [0] : vector<256x32xf32> to vector<32xf32>
    %11 = vector.shape_cast %10 : vector<32xf32> to vector<1x32xf32>
    %cst_12 = arith.constant dense<0.000000e+00> : vector<1x32xf32>
    %12 = tpu.matmul %11, %8, %cst_12 {dimension_numbers = #tpu.dot_dimension_numbers<[1], [0], [0], [1], [0, 0, 1, 1], [], []>} : vector<1x32xf32>, vector<32x32xf32>, vector<1x32xf32> -> vector<1x32xf32>
    %cst_13 = arith.constant 3.906250e-03 : f32
    %13 = vector.broadcast %cst_13 : f32 to vector<1x32xf32>
    %14 = arith.mulf %12, %13 : vector<1x32xf32>
    %cst_14 = arith.constant dense<0.000000e+00> : vector<1x32xf32>
    %15 = tpu.matmul %14, %9, %cst_14 {dimension_numbers = #tpu.dot_dimension_numbers<[1], [0], [0], [1], [0, 0, 1, 1], [], []>} : vector<1x32xf32>, vector<32x32xf32>, vector<1x32xf32> -> vector<1x32xf32>
    %16 = vector.broadcast %15 : vector<1x32xf32> to vector<256x32xf32>
    %17 = arith.subf %5, %16 : vector<256x32xf32>
    %18 = arith.mulf %17, %17 : vector<256x32xf32>
    %cst_15 = arith.constant dense<0.000000e+00> : vector<32xf32>
    %19 = vector.multi_reduction <add>, %18, %cst_15 [0] : vector<256x32xf32> to vector<32xf32>
    %20 = vector.shape_cast %19 : vector<32xf32> to vector<1x32xf32>
    %cst_16 = arith.constant dense<0.000000e+00> : vector<1x32xf32>
    %21 = tpu.matmul %20, %8, %cst_16 {dimension_numbers = #tpu.dot_dimension_numbers<[1], [0], [0], [1], [0, 0, 1, 1], [], []>} : vector<1x32xf32>, vector<32x32xf32>, vector<1x32xf32> -> vector<1x32xf32>
    %cst_17 = arith.constant 3.906250e-03 : f32
    %22 = vector.broadcast %cst_17 : f32 to vector<1x32xf32>
    %23 = arith.mulf %21, %22 : vector<1x32xf32>
    %cst_18 = arith.constant dense<0.000000e+00> : vector<1x32xf32>
    %24 = tpu.matmul %23, %9, %cst_18 {dimension_numbers = #tpu.dot_dimension_numbers<[1], [0], [0], [1], [0, 0, 1, 1], [], []>} : vector<1x32xf32>, vector<32x32xf32>, vector<1x32xf32> -> vector<1x32xf32>
    %cst_19 = arith.constant 9.99999974E-6 : f32
    %25 = vector.broadcast %cst_19 : f32 to vector<1x32xf32>
    %26 = arith.addf %24, %25 : vector<1x32xf32>
    %27 = math.rsqrt %26 : vector<1x32xf32>
    %28 = arith.mulf %27, %6 : vector<1x32xf32>
    %29 = vector.broadcast %28 : vector<1x32xf32> to vector<256x32xf32>
    %30 = arith.mulf %17, %29 : vector<256x32xf32>
    %31 = vector.broadcast %7 : vector<1x32xf32> to vector<256x32xf32>
    %32 = arith.addf %30, %31 : vector<256x32xf32>
    %33 = arith.negf %32 : vector<256x32xf32>
    %34 = math.exp %33 : vector<256x32xf32>
    %cst_20 = arith.constant 1.000000e+00 : f32
    %35 = vector.broadcast %cst_20 : f32 to vector<256x32xf32>
    %36 = arith.addf %35, %34 : vector<256x32xf32>
    %37 = arith.divf %35, %36 : vector<256x32xf32>
    %38 = arith.mulf %32, %37 : vector<256x32xf32>
    %39 = vector.shape_cast %38 : vector<256x32xf32> to vector<16x16x32xf32>
    %40 = arith.truncf %39 : vector<16x16x32xf32> to vector<16x16x32xbf16>
    %cst_21 = arith.constant 0.000000e+00 : bf16
    %41 = vector.broadcast %cst_21 : bf16 to vector<1x16x96xbf16>
    %c0_22 = arith.constant 0 : index
    %c0_23 = arith.constant 0 : index
    %c0_24 = arith.constant 0 : index
    %42 = vector.load %arg10[%c0_22, %c0_23, %c0_24] : memref<18x16x96xbf16, #tpu.memory_space<vmem>>, vector<1x16x96xbf16>
    tpu.vector_store %arg10[%c0_22, %c0_23, %c0_24], %41 {strides = array<i32>} : memref<18x16x96xbf16, #tpu.memory_space<vmem>>, vector<1x16x96xbf16>,
    %c17 = arith.constant 17 : index
    %c0_25 = arith.constant 0 : index
    %c0_26 = arith.constant 0 : index
    %43 = vector.load %arg10[%c17, %c0_25, %c0_26] : memref<18x16x96xbf16, #tpu.memory_space<vmem>>, vector<1x16x96xbf16>
    tpu.vector_store %arg10[%c17, %c0_25, %c0_26], %41 {strides = array<i32>} : memref<18x16x96xbf16, #tpu.memory_space<vmem>>, vector<1x16x96xbf16>,
    %cst_27 = arith.constant 0.000000e+00 : bf16
    %44 = vector.broadcast %cst_27 : bf16 to vector<16x1x32xbf16>
    %c1 = arith.constant 1 : index
    %c0_28 = arith.constant 0 : index
    %c0_29 = arith.constant 0 : index
    %45 = vector.load %arg10[%c1, %c0_28, %c0_29] : memref<18x16x96xbf16, #tpu.memory_space<vmem>>, vector<16x1x32xbf16>
    tpu.vector_store %arg10[%c1, %c0_28, %c0_29], %44 {strides = array<i32>} : memref<18x16x96xbf16, #tpu.memory_space<vmem>>, vector<16x1x32xbf16>,
    %c1_30 = arith.constant 1 : index
    %c15 = arith.constant 15 : index
    %c64 = arith.constant 64 : index
    %46 = vector.load %arg10[%c1_30, %c15, %c64] : memref<18x16x96xbf16, #tpu.memory_space<vmem>>, vector<16x1x32xbf16>
    tpu.vector_store %arg10[%c1_30, %c15, %c64], %44 {strides = array<i32>} : memref<18x16x96xbf16, #tpu.memory_space<vmem>>, vector<16x1x32xbf16>,
    %47 = vector.extract_strided_slice %40 {offsets = [0, 0, 0], sizes = [16, 15, 32], strides = [1, 1, 1]} : vector<16x16x32xbf16> to vector<16x15x32xbf16>
    %c1_31 = arith.constant 1 : index
    %c1_32 = arith.constant 1 : index
    %c0_33 = arith.constant 0 : index
    %48 = vector.load %arg10[%c1_31, %c1_32, %c0_33] : memref<18x16x96xbf16, #tpu.memory_space<vmem>>, vector<16x15x32xbf16>
    tpu.vector_store %arg10[%c1_31, %c1_32, %c0_33], %47 {strides = array<i32>} : memref<18x16x96xbf16, #tpu.memory_space<vmem>>, vector<16x15x32xbf16>,
    %c1_34 = arith.constant 1 : index
    %c0_35 = arith.constant 0 : index
    %c32 = arith.constant 32 : index
    %49 = vector.load %arg10[%c1_34, %c0_35, %c32] : memref<18x16x96xbf16, #tpu.memory_space<vmem>>, vector<16x16x32xbf16>
    tpu.vector_store %arg10[%c1_34, %c0_35, %c32], %40 {strides = array<i32>} : memref<18x16x96xbf16, #tpu.memory_space<vmem>>, vector<16x16x32xbf16>,
    %50 = vector.extract_strided_slice %40 {offsets = [0, 1, 0], sizes = [16, 15, 32], strides = [1, 1, 1]} : vector<16x16x32xbf16> to vector<16x15x32xbf16>
    %c1_36 = arith.constant 1 : index
    %c0_37 = arith.constant 0 : index
    %c64_38 = arith.constant 64 : index
    %51 = vector.load %arg10[%c1_36, %c0_37, %c64_38] : memref<18x16x96xbf16, #tpu.memory_space<vmem>>, vector<16x15x32xbf16>
    tpu.vector_store %arg10[%c1_36, %c0_37, %c64_38], %50 {strides = array<i32>} : memref<18x16x96xbf16, #tpu.memory_space<vmem>>, vector<16x15x32xbf16>,
    %cst_39 = arith.constant 0.000000e+00 : f32
    %52 = vector.broadcast %cst_39 : f32 to vector<256x32xf32>
    %c0_40 = arith.constant 0 : index
    %c0_41 = arith.constant 0 : index
    %c0_42 = arith.constant 0 : index
    %53 = vector.load %arg10[%c0_40, %c0_41, %c0_42] : memref<18x16x96xbf16, #tpu.memory_space<vmem>>, vector<16x16x96xbf16>
    %54 = vector.shape_cast %53 : vector<16x16x96xbf16> to vector<256x96xbf16>
    %c0_43 = arith.constant 0 : index
    %c0_44 = arith.constant 0 : index
    %55 = vector.load %arg6[%c0_43, %c0_44] : memref<288x32xbf16, #tpu.memory_space<vmem>>, vector<96x32xbf16>
    %cst_45 = arith.constant dense<0.000000e+00> : vector<256x32xf32>
    %56 = tpu.matmul %54, %55, %cst_45 {dimension_numbers = #tpu.dot_dimension_numbers<[1], [0], [0], [1], [0, 0, 1, 1], [], []>} : vector<256x96xbf16>, vector<96x32xbf16>, vector<256x32xf32> -> vector<256x32xf32>
    %57 = arith.addf %52, %56 : vector<256x32xf32>
    %c1_46 = arith.constant 1 : index
    %c0_47 = arith.constant 0 : index
    %c0_48 = arith.constant 0 : index
    %58 = vector.load %arg10[%c1_46, %c0_47, %c0_48] : memref<18x16x96xbf16, #tpu.memory_space<vmem>>, vector<16x16x96xbf16>
    %59 = vector.shape_cast %58 : vector<16x16x96xbf16> to vector<256x96xbf16>
    %c96 = arith.constant 96 : index
    %c0_49 = arith.constant 0 : index
    %60 = vector.load %arg6[%c96, %c0_49] : memref<288x32xbf16, #tpu.memory_space<vmem>>, vector<96x32xbf16>
    %cst_50 = arith.constant dense<0.000000e+00> : vector<256x32xf32>
    %61 = tpu.matmul %59, %60, %cst_50 {dimension_numbers = #tpu.dot_dimension_numbers<[1], [0], [0], [1], [0, 0, 1, 1], [], []>} : vector<256x96xbf16>, vector<96x32xbf16>, vector<256x32xf32> -> vector<256x32xf32>
    %62 = arith.addf %57, %61 : vector<256x32xf32>
    %c2 = arith.constant 2 : index
    %c0_51 = arith.constant 0 : index
    %c0_52 = arith.constant 0 : index
    %63 = vector.load %arg10[%c2, %c0_51, %c0_52] : memref<18x16x96xbf16, #tpu.memory_space<vmem>>, vector<16x16x96xbf16>
    %64 = vector.shape_cast %63 : vector<16x16x96xbf16> to vector<256x96xbf16>
    %c192 = arith.constant 192 : index
    %c0_53 = arith.constant 0 : index
    %65 = vector.load %arg6[%c192, %c0_53] : memref<288x32xbf16, #tpu.memory_space<vmem>>, vector<96x32xbf16>
    %cst_54 = arith.constant dense<0.000000e+00> : vector<256x32xf32>
    %66 = tpu.matmul %64, %65, %cst_54 {dimension_numbers = #tpu.dot_dimension_numbers<[1], [0], [0], [1], [0, 0, 1, 1], [], []>} : vector<256x96xbf16>, vector<96x32xbf16>, vector<256x32xf32> -> vector<256x32xf32>
    %67 = arith.addf %62, %66 : vector<256x32xf32>
    %c0_55 = arith.constant 0 : index
    %c0_56 = arith.constant 0 : index
    %68 = vector.load %arg7[%c0_55, %c0_56] : memref<1x32xf32, #tpu.memory_space<vmem>>, vector<1x32xf32>
    %69 = vector.broadcast %68 : vector<1x32xf32> to vector<256x32xf32>
    %70 = arith.addf %67, %69 : vector<256x32xf32>
    %71 = vector.broadcast %1 : vector<1x32xf32> to vector<256x32xf32>
    %72 = arith.addf %70, %71 : vector<256x32xf32>
    %73 = vector.shape_cast %72 : vector<256x32xf32> to vector<16x16x32xf32>
    %74 = arith.truncf %73 : vector<16x16x32xf32> to vector<16x16x32xbf16>
    %c0_57 = arith.constant 0 : index
    %c0_58 = arith.constant 0 : index
    %c0_59 = arith.constant 0 : index
    %c0_60 = arith.constant 0 : index
    %75 = vector.load %arg9[%c0_57, %c0_58, %c0_59, %c0_60] : memref<1x16x16x32xbf16, #tpu.memory_space<vmem>>, vector<1x16x16x32xbf16>
    %76 = vector.shape_cast %75 : vector<1x16x16x32xbf16> to vector<16x16x32xbf16>
    %77 = vector.shape_cast %74 : vector<16x16x32xbf16> to vector<1x16x16x32xbf16>
    tpu.vector_store %arg9[%c0_57, %c0_58, %c0_59, %c0_60], %77 {strides = array<i32>} : memref<1x16x16x32xbf16, #tpu.memory_space<vmem>>, vector<1x16x16x32xbf16>,
    return
  }
  func.func @transform_0(%arg0: i32) -> (i32, i32, i32, i32) {
    %c0_i32 = arith.constant 0 : i32
    %c0_i32_0 = arith.constant 0 : i32
    %c0_i32_1 = arith.constant 0 : i32
    %c0_i32_2 = arith.constant 0 : i32
    return %arg0, %c0_i32, %c0_i32_0, %c0_i32_1 : i32, i32, i32, i32
  }
  func.func @transform_1(%arg0: i32) -> (i32, i32) {
    %c0_i32 = arith.constant 0 : i32
    %c0_i32_0 = arith.constant 0 : i32
    %c0_i32_1 = arith.constant 0 : i32
    return %c0_i32, %c0_i32_0 : i32, i32
  }
  func.func @transform_2(%arg0: i32) -> (i32, i32) {
    %c0_i32 = arith.constant 0 : i32
    %c0_i32_0 = arith.constant 0 : i32
    %c0_i32_1 = arith.constant 0 : i32
    return %c0_i32, %c0_i32_0 : i32, i32
  }
  func.func @transform_3(%arg0: i32) -> (i32, i32) {
    %c0_i32 = arith.constant 0 : i32
    %c0_i32_0 = arith.constant 0 : i32
    %c0_i32_1 = arith.constant 0 : i32
    return %c0_i32, %c0_i32_0 : i32, i32
  }
  func.func @transform_4(%arg0: i32) -> (i32, i32) {
    %c0_i32 = arith.constant 0 : i32
    %c0_i32_0 = arith.constant 0 : i32
    %c0_i32_1 = arith.constant 0 : i32
    return %c0_i32, %c0_i32_0 : i32, i32
  }
  func.func @transform_5(%arg0: i32) -> (i32, i32) {
    %c0_i32 = arith.constant 0 : i32
    %c0_i32_0 = arith.constant 0 : i32
    %c0_i32_1 = arith.constant 0 : i32
    return %c0_i32, %c0_i32_0 : i32, i32
  }
  func.func @transform_6(%arg0: i32) -> (i32, i32) {
    %c0_i32 = arith.constant 0 : i32
    %c0_i32_0 = arith.constant 0 : i32
    %c0_i32_1 = arith.constant 0 : i32
    return %c0_i32, %c0_i32_0 : i32, i32
  }
  func.func @transform_7(%arg0: i32) -> (i32, i32) {
    %c0_i32 = arith.constant 0 : i32
    %c0_i32_0 = arith.constant 0 : i32
    %c0_i32_1 = arith.constant 0 : i32
    return %c0_i32, %c0_i32_0 : i32, i32
  }
  func.func @transform_8(%arg0: i32) -> (i32, i32, i32, i32) {
    %c0_i32 = arith.constant 0 : i32
    %c0_i32_0 = arith.constant 0 : i32
    %c0_i32_1 = arith.constant 0 : i32
    %c0_i32_2 = arith.constant 0 : i32
    return %arg0, %c0_i32, %c0_i32_0, %c0_i32_1 : i32, i32, i32, i32
  }
}

module attributes {stable_mosaic.version = 11 : i64} {
  func.func @_gn_silu_conv3x3_kernel(%arg0: i32, %arg1: memref<1x16x16x32xbf16, #tpu.memory_space<vmem>>, %arg2: memref<1x32xf32, #tpu.memory_space<vmem>>, %arg3: memref<1x32xf32, #tpu.memory_space<vmem>>, %arg4: memref<32x32xf32, #tpu.memory_space<vmem>>, %arg5: memref<32x32xf32, #tpu.memory_space<vmem>>, %arg6: memref<288x32xbf16, #tpu.memory_space<vmem>>, %arg7: memref<1x32xf32, #tpu.memory_space<vmem>>, %arg8: memref<1x16x16x32xbf16, #tpu.memory_space<vmem>>, %arg9: memref<18x16x96xbf16, #tpu.memory_space<vmem>>) attributes {dimension_semantics = [#tpu.dimension_semantics<parallel>], iteration_bounds = array<i64: 2>, scalar_prefetch = 0 : i64, scratch_operands = 1 : i64, tpu.core_type = #tpu.core_type<tc>, window_params = [{transform_indices = @transform_0, window_bounds = array<i64: 1, 16, 16, 32>}, {pipeline_mode = #tpu.pipeline_mode<synchronous>, transform_indices = @transform_1, window_bounds = array<i64: 1, 32>}, {pipeline_mode = #tpu.pipeline_mode<synchronous>, transform_indices = @transform_2, window_bounds = array<i64: 1, 32>}, {pipeline_mode = #tpu.pipeline_mode<synchronous>, transform_indices = @transform_3, window_bounds = array<i64: 32, 32>}, {pipeline_mode = #tpu.pipeline_mode<synchronous>, transform_indices = @transform_4, window_bounds = array<i64: 32, 32>}, {pipeline_mode = #tpu.pipeline_mode<synchronous>, transform_indices = @transform_5, window_bounds = array<i64: 288, 32>}, {pipeline_mode = #tpu.pipeline_mode<synchronous>, transform_indices = @transform_6, window_bounds = array<i64: 1, 32>}, {transform_indices = @transform_7, window_bounds = array<i64: 1, 16, 16, 32>}]} {
    %c0 = arith.constant 0 : index
    %c0_0 = arith.constant 0 : index
    %c0_1 = arith.constant 0 : index
    %c0_2 = arith.constant 0 : index
    %0 = vector.load %arg1[%c0, %c0_0, %c0_1, %c0_2] : memref<1x16x16x32xbf16, #tpu.memory_space<vmem>>, vector<1x16x16x32xbf16>
    %1 = vector.shape_cast %0 : vector<1x16x16x32xbf16> to vector<16x16x32xbf16>
    %2 = vector.shape_cast %1 : vector<16x16x32xbf16> to vector<256x32xbf16>
    %3 = arith.extf %2 : vector<256x32xbf16> to vector<256x32xf32>
    %c0_3 = arith.constant 0 : index
    %c0_4 = arith.constant 0 : index
    %4 = vector.load %arg2[%c0_3, %c0_4] : memref<1x32xf32, #tpu.memory_space<vmem>>, vector<1x32xf32>
    %c0_5 = arith.constant 0 : index
    %c0_6 = arith.constant 0 : index
    %5 = vector.load %arg3[%c0_5, %c0_6] : memref<1x32xf32, #tpu.memory_space<vmem>>, vector<1x32xf32>
    %c0_7 = arith.constant 0 : index
    %c0_8 = arith.constant 0 : index
    %6 = vector.load %arg4[%c0_7, %c0_8] : memref<32x32xf32, #tpu.memory_space<vmem>>, vector<32x32xf32>
    %c0_9 = arith.constant 0 : index
    %c0_10 = arith.constant 0 : index
    %7 = vector.load %arg5[%c0_9, %c0_10] : memref<32x32xf32, #tpu.memory_space<vmem>>, vector<32x32xf32>
    %cst = arith.constant dense<0.000000e+00> : vector<32xf32>
    %8 = vector.multi_reduction <add>, %3, %cst [0] : vector<256x32xf32> to vector<32xf32>
    %9 = vector.shape_cast %8 : vector<32xf32> to vector<1x32xf32>
    %cst_11 = arith.constant dense<0.000000e+00> : vector<1x32xf32>
    %10 = tpu.matmul %9, %6, %cst_11 {dimension_numbers = #tpu.dot_dimension_numbers<[1], [0], [0], [1], [0, 0, 1, 1], [], []>} : vector<1x32xf32>, vector<32x32xf32>, vector<1x32xf32> -> vector<1x32xf32>
    %cst_12 = arith.constant 3.906250e-03 : f32
    %11 = vector.broadcast %cst_12 : f32 to vector<1x32xf32>
    %12 = arith.mulf %10, %11 : vector<1x32xf32>
    %cst_13 = arith.constant dense<0.000000e+00> : vector<1x32xf32>
    %13 = tpu.matmul %12, %7, %cst_13 {dimension_numbers = #tpu.dot_dimension_numbers<[1], [0], [0], [1], [0, 0, 1, 1], [], []>} : vector<1x32xf32>, vector<32x32xf32>, vector<1x32xf32> -> vector<1x32xf32>
    %14 = vector.broadcast %13 : vector<1x32xf32> to vector<256x32xf32>
    %15 = arith.subf %3, %14 : vector<256x32xf32>
    %16 = arith.mulf %15, %15 : vector<256x32xf32>
    %cst_14 = arith.constant dense<0.000000e+00> : vector<32xf32>
    %17 = vector.multi_reduction <add>, %16, %cst_14 [0] : vector<256x32xf32> to vector<32xf32>
    %18 = vector.shape_cast %17 : vector<32xf32> to vector<1x32xf32>
    %cst_15 = arith.constant dense<0.000000e+00> : vector<1x32xf32>
    %19 = tpu.matmul %18, %6, %cst_15 {dimension_numbers = #tpu.dot_dimension_numbers<[1], [0], [0], [1], [0, 0, 1, 1], [], []>} : vector<1x32xf32>, vector<32x32xf32>, vector<1x32xf32> -> vector<1x32xf32>
    %cst_16 = arith.constant 3.906250e-03 : f32
    %20 = vector.broadcast %cst_16 : f32 to vector<1x32xf32>
    %21 = arith.mulf %19, %20 : vector<1x32xf32>
    %cst_17 = arith.constant dense<0.000000e+00> : vector<1x32xf32>
    %22 = tpu.matmul %21, %7, %cst_17 {dimension_numbers = #tpu.dot_dimension_numbers<[1], [0], [0], [1], [0, 0, 1, 1], [], []>} : vector<1x32xf32>, vector<32x32xf32>, vector<1x32xf32> -> vector<1x32xf32>
    %cst_18 = arith.constant 9.99999974E-6 : f32
    %23 = vector.broadcast %cst_18 : f32 to vector<1x32xf32>
    %24 = arith.addf %22, %23 : vector<1x32xf32>
    %25 = math.rsqrt %24 : vector<1x32xf32>
    %26 = arith.mulf %25, %4 : vector<1x32xf32>
    %27 = vector.broadcast %26 : vector<1x32xf32> to vector<256x32xf32>
    %28 = arith.mulf %15, %27 : vector<256x32xf32>
    %29 = vector.broadcast %5 : vector<1x32xf32> to vector<256x32xf32>
    %30 = arith.addf %28, %29 : vector<256x32xf32>
    %31 = arith.negf %30 : vector<256x32xf32>
    %32 = math.exp %31 : vector<256x32xf32>
    %cst_19 = arith.constant 1.000000e+00 : f32
    %33 = vector.broadcast %cst_19 : f32 to vector<256x32xf32>
    %34 = arith.addf %33, %32 : vector<256x32xf32>
    %35 = arith.divf %33, %34 : vector<256x32xf32>
    %36 = arith.mulf %30, %35 : vector<256x32xf32>
    %37 = vector.shape_cast %36 : vector<256x32xf32> to vector<16x16x32xf32>
    %38 = arith.truncf %37 : vector<16x16x32xf32> to vector<16x16x32xbf16>
    %cst_20 = arith.constant 0.000000e+00 : bf16
    %39 = vector.broadcast %cst_20 : bf16 to vector<1x16x96xbf16>
    %c0_21 = arith.constant 0 : index
    %c0_22 = arith.constant 0 : index
    %c0_23 = arith.constant 0 : index
    %40 = vector.load %arg9[%c0_21, %c0_22, %c0_23] : memref<18x16x96xbf16, #tpu.memory_space<vmem>>, vector<1x16x96xbf16>
    tpu.vector_store %arg9[%c0_21, %c0_22, %c0_23], %39 {strides = array<i32>} : memref<18x16x96xbf16, #tpu.memory_space<vmem>>, vector<1x16x96xbf16>,
    %c17 = arith.constant 17 : index
    %c0_24 = arith.constant 0 : index
    %c0_25 = arith.constant 0 : index
    %41 = vector.load %arg9[%c17, %c0_24, %c0_25] : memref<18x16x96xbf16, #tpu.memory_space<vmem>>, vector<1x16x96xbf16>
    tpu.vector_store %arg9[%c17, %c0_24, %c0_25], %39 {strides = array<i32>} : memref<18x16x96xbf16, #tpu.memory_space<vmem>>, vector<1x16x96xbf16>,
    %cst_26 = arith.constant 0.000000e+00 : bf16
    %42 = vector.broadcast %cst_26 : bf16 to vector<16x1x32xbf16>
    %c1 = arith.constant 1 : index
    %c0_27 = arith.constant 0 : index
    %c0_28 = arith.constant 0 : index
    %43 = vector.load %arg9[%c1, %c0_27, %c0_28] : memref<18x16x96xbf16, #tpu.memory_space<vmem>>, vector<16x1x32xbf16>
    tpu.vector_store %arg9[%c1, %c0_27, %c0_28], %42 {strides = array<i32>} : memref<18x16x96xbf16, #tpu.memory_space<vmem>>, vector<16x1x32xbf16>,
    %c1_29 = arith.constant 1 : index
    %c15 = arith.constant 15 : index
    %c64 = arith.constant 64 : index
    %44 = vector.load %arg9[%c1_29, %c15, %c64] : memref<18x16x96xbf16, #tpu.memory_space<vmem>>, vector<16x1x32xbf16>
    tpu.vector_store %arg9[%c1_29, %c15, %c64], %42 {strides = array<i32>} : memref<18x16x96xbf16, #tpu.memory_space<vmem>>, vector<16x1x32xbf16>,
    %45 = vector.extract_strided_slice %38 {offsets = [0, 0, 0], sizes = [16, 15, 32], strides = [1, 1, 1]} : vector<16x16x32xbf16> to vector<16x15x32xbf16>
    %c1_30 = arith.constant 1 : index
    %c1_31 = arith.constant 1 : index
    %c0_32 = arith.constant 0 : index
    %46 = vector.load %arg9[%c1_30, %c1_31, %c0_32] : memref<18x16x96xbf16, #tpu.memory_space<vmem>>, vector<16x15x32xbf16>
    tpu.vector_store %arg9[%c1_30, %c1_31, %c0_32], %45 {strides = array<i32>} : memref<18x16x96xbf16, #tpu.memory_space<vmem>>, vector<16x15x32xbf16>,
    %c1_33 = arith.constant 1 : index
    %c0_34 = arith.constant 0 : index
    %c32 = arith.constant 32 : index
    %47 = vector.load %arg9[%c1_33, %c0_34, %c32] : memref<18x16x96xbf16, #tpu.memory_space<vmem>>, vector<16x16x32xbf16>
    tpu.vector_store %arg9[%c1_33, %c0_34, %c32], %38 {strides = array<i32>} : memref<18x16x96xbf16, #tpu.memory_space<vmem>>, vector<16x16x32xbf16>,
    %48 = vector.extract_strided_slice %38 {offsets = [0, 1, 0], sizes = [16, 15, 32], strides = [1, 1, 1]} : vector<16x16x32xbf16> to vector<16x15x32xbf16>
    %c1_35 = arith.constant 1 : index
    %c0_36 = arith.constant 0 : index
    %c64_37 = arith.constant 64 : index
    %49 = vector.load %arg9[%c1_35, %c0_36, %c64_37] : memref<18x16x96xbf16, #tpu.memory_space<vmem>>, vector<16x15x32xbf16>
    tpu.vector_store %arg9[%c1_35, %c0_36, %c64_37], %48 {strides = array<i32>} : memref<18x16x96xbf16, #tpu.memory_space<vmem>>, vector<16x15x32xbf16>,
    %cst_38 = arith.constant 0.000000e+00 : f32
    %50 = vector.broadcast %cst_38 : f32 to vector<256x32xf32>
    %c0_39 = arith.constant 0 : index
    %c0_40 = arith.constant 0 : index
    %c0_41 = arith.constant 0 : index
    %51 = vector.load %arg9[%c0_39, %c0_40, %c0_41] : memref<18x16x96xbf16, #tpu.memory_space<vmem>>, vector<16x16x96xbf16>
    %52 = vector.shape_cast %51 : vector<16x16x96xbf16> to vector<256x96xbf16>
    %c0_42 = arith.constant 0 : index
    %c0_43 = arith.constant 0 : index
    %53 = vector.load %arg6[%c0_42, %c0_43] : memref<288x32xbf16, #tpu.memory_space<vmem>>, vector<96x32xbf16>
    %cst_44 = arith.constant dense<0.000000e+00> : vector<256x32xf32>
    %54 = tpu.matmul %52, %53, %cst_44 {dimension_numbers = #tpu.dot_dimension_numbers<[1], [0], [0], [1], [0, 0, 1, 1], [], []>} : vector<256x96xbf16>, vector<96x32xbf16>, vector<256x32xf32> -> vector<256x32xf32>
    %55 = arith.addf %50, %54 : vector<256x32xf32>
    %c1_45 = arith.constant 1 : index
    %c0_46 = arith.constant 0 : index
    %c0_47 = arith.constant 0 : index
    %56 = vector.load %arg9[%c1_45, %c0_46, %c0_47] : memref<18x16x96xbf16, #tpu.memory_space<vmem>>, vector<16x16x96xbf16>
    %57 = vector.shape_cast %56 : vector<16x16x96xbf16> to vector<256x96xbf16>
    %c96 = arith.constant 96 : index
    %c0_48 = arith.constant 0 : index
    %58 = vector.load %arg6[%c96, %c0_48] : memref<288x32xbf16, #tpu.memory_space<vmem>>, vector<96x32xbf16>
    %cst_49 = arith.constant dense<0.000000e+00> : vector<256x32xf32>
    %59 = tpu.matmul %57, %58, %cst_49 {dimension_numbers = #tpu.dot_dimension_numbers<[1], [0], [0], [1], [0, 0, 1, 1], [], []>} : vector<256x96xbf16>, vector<96x32xbf16>, vector<256x32xf32> -> vector<256x32xf32>
    %60 = arith.addf %55, %59 : vector<256x32xf32>
    %c2 = arith.constant 2 : index
    %c0_50 = arith.constant 0 : index
    %c0_51 = arith.constant 0 : index
    %61 = vector.load %arg9[%c2, %c0_50, %c0_51] : memref<18x16x96xbf16, #tpu.memory_space<vmem>>, vector<16x16x96xbf16>
    %62 = vector.shape_cast %61 : vector<16x16x96xbf16> to vector<256x96xbf16>
    %c192 = arith.constant 192 : index
    %c0_52 = arith.constant 0 : index
    %63 = vector.load %arg6[%c192, %c0_52] : memref<288x32xbf16, #tpu.memory_space<vmem>>, vector<96x32xbf16>
    %cst_53 = arith.constant dense<0.000000e+00> : vector<256x32xf32>
    %64 = tpu.matmul %62, %63, %cst_53 {dimension_numbers = #tpu.dot_dimension_numbers<[1], [0], [0], [1], [0, 0, 1, 1], [], []>} : vector<256x96xbf16>, vector<96x32xbf16>, vector<256x32xf32> -> vector<256x32xf32>
    %65 = arith.addf %60, %64 : vector<256x32xf32>
    %c0_54 = arith.constant 0 : index
    %c0_55 = arith.constant 0 : index
    %66 = vector.load %arg7[%c0_54, %c0_55] : memref<1x32xf32, #tpu.memory_space<vmem>>, vector<1x32xf32>
    %67 = vector.broadcast %66 : vector<1x32xf32> to vector<256x32xf32>
    %68 = arith.addf %65, %67 : vector<256x32xf32>
    %cst_56 = arith.constant 2.000000e+00 : f32
    %69 = vector.broadcast %cst_56 : f32 to vector<256x32xf32>
    %70 = arith.mulf %68, %69 : vector<256x32xf32>
    %71 = vector.shape_cast %70 : vector<256x32xf32> to vector<16x16x32xf32>
    %72 = arith.truncf %71 : vector<16x16x32xf32> to vector<16x16x32xbf16>
    %c0_57 = arith.constant 0 : index
    %c0_58 = arith.constant 0 : index
    %c0_59 = arith.constant 0 : index
    %c0_60 = arith.constant 0 : index
    %73 = vector.load %arg8[%c0_57, %c0_58, %c0_59, %c0_60] : memref<1x16x16x32xbf16, #tpu.memory_space<vmem>>, vector<1x16x16x32xbf16>
    %74 = vector.shape_cast %73 : vector<1x16x16x32xbf16> to vector<16x16x32xbf16>
    %75 = vector.shape_cast %72 : vector<16x16x32xbf16> to vector<1x16x16x32xbf16>
    tpu.vector_store %arg8[%c0_57, %c0_58, %c0_59, %c0_60], %75 {strides = array<i32>} : memref<1x16x16x32xbf16, #tpu.memory_space<vmem>>, vector<1x16x16x32xbf16>,
    return
  }
  func.func @transform_0(%arg0: i32) -> (i32, i32, i32, i32) {
    %c0_i32 = arith.constant 0 : i32
    %c0_i32_0 = arith.constant 0 : i32
    %c0_i32_1 = arith.constant 0 : i32
    %c0_i32_2 = arith.constant 0 : i32
    return %arg0, %c0_i32, %c0_i32_0, %c0_i32_1 : i32, i32, i32, i32
  }
  func.func @transform_1(%arg0: i32) -> (i32, i32) {
    %c0_i32 = arith.constant 0 : i32
    %c0_i32_0 = arith.constant 0 : i32
    %c0_i32_1 = arith.constant 0 : i32
    return %c0_i32, %c0_i32_0 : i32, i32
  }
  func.func @transform_2(%arg0: i32) -> (i32, i32) {
    %c0_i32 = arith.constant 0 : i32
    %c0_i32_0 = arith.constant 0 : i32
    %c0_i32_1 = arith.constant 0 : i32
    return %c0_i32, %c0_i32_0 : i32, i32
  }
  func.func @transform_3(%arg0: i32) -> (i32, i32) {
    %c0_i32 = arith.constant 0 : i32
    %c0_i32_0 = arith.constant 0 : i32
    %c0_i32_1 = arith.constant 0 : i32
    return %c0_i32, %c0_i32_0 : i32, i32
  }
  func.func @transform_4(%arg0: i32) -> (i32, i32) {
    %c0_i32 = arith.constant 0 : i32
    %c0_i32_0 = arith.constant 0 : i32
    %c0_i32_1 = arith.constant 0 : i32
    return %c0_i32, %c0_i32_0 : i32, i32
  }
  func.func @transform_5(%arg0: i32) -> (i32, i32) {
    %c0_i32 = arith.constant 0 : i32
    %c0_i32_0 = arith.constant 0 : i32
    %c0_i32_1 = arith.constant 0 : i32
    return %c0_i32, %c0_i32_0 : i32, i32
  }
  func.func @transform_6(%arg0: i32) -> (i32, i32) {
    %c0_i32 = arith.constant 0 : i32
    %c0_i32_0 = arith.constant 0 : i32
    %c0_i32_1 = arith.constant 0 : i32
    return %c0_i32, %c0_i32_0 : i32, i32
  }
  func.func @transform_7(%arg0: i32) -> (i32, i32, i32, i32) {
    %c0_i32 = arith.constant 0 : i32
    %c0_i32_0 = arith.constant 0 : i32
    %c0_i32_1 = arith.constant 0 : i32
    %c0_i32_2 = arith.constant 0 : i32
    return %arg0, %c0_i32, %c0_i32_0, %c0_i32_1 : i32, i32, i32, i32
  }
}

</mosaic_0001>

<bundles_post_ra>
// kernel: unet_block_forward.5
= control target key start
LH: loop header
LB: loop body
LE: loop exit
PB: predicated region body
PF: predicated region fallthrough
CT: control target
= control target key end

     0   :  { %14 = vsyncpa [#allocation3], 0  ;;  %s5468_s0 = inlined_call_operand.vmem [shape: bf16[2,16,16,32], index: 0, kind: input, shape index: {}]   ;;  %s5469_s1 = inlined_call_operand.vmem [shape: f32[1,32], index: 1, kind: input, shape index: {}]   ;;  %s5470_s2 = inlined_call_operand.vmem [shape: f32[1,32], index: 2, kind: input, shape index: {}]   ;;  %s5471_s3 = inlined_call_operand.vmem [shape: f32[32,32], index: 3, kind: input, shape index: {}]   ;;  %s5472_s4 = inlined_call_operand.vmem [shape: f32[32,32], index: 4, kind: input, shape index: {}]   ;;  %s5473_s5 = inlined_call_operand.vmem [shape: bf16[32,96], index: 5, kind: input, shape index: {}]   ;;  %s5474_s6 = inlined_call_operand.vmem [shape: f32[1,96], index: 6, kind: input, shape index: {}]   ;;  %s5475_s7 = inlined_call_operand.vmem [shape: bf16[32,32], index: 7, kind: input, shape index: {}]   ;;  %s5476_s8 = inlined_call_operand.vmem [shape: f32[1,32], index: 8, kind: input, shape index: {}]   ;;  %s5477_s9 = inlined_call_operand.hbm [shape: f32[2,16,16,32], index: 9, kind: output, shape index: {}]  }
   0x1   :  { %16 = vsyncpa [#allocation3 + $0x1], 0  ;;  %s3883_s30 = smov 0   ;;  %s3885_s10 = smov 0  }
   0x2   :  { %s3887_s11 = smov 0   ;;  %s3889_s12 = smov 0  }
   0x3 LB: > { %s3904_s13 = sadd.s32 4294967295, %s3823_s12   ;;  %s2933_s14 = sadd.s32 4294967294, %s3823_s12   ;;  %s3823_s12 = sphi %s3889_s12, %s5626_s12   ;;  %s3819_s11 = sphi %s3887_s11, %s5625_s11   ;;  %s3815_s10 = sphi %s3885_s10, %s5624_s10   ;;  %s3811_s30 = sphi %s3883_s30, %s5623_s30  }
   0x4   : > { %s3908_s15 = sadd.s32 1, %s3823_s12   ;;  %s223_s16 = sadd.s32 1, %s3819_s11 }
   0x5   : > { %s220_s17 = ssub.s32 %s3823_s12, %s3908_s15  ;;  %p233_p0 = scmp.ne.s32.totalorder %s3819_s11, %s3815_s10 }
   0x6   : > { %p221_p1 = scmp.eq.s32.totalorder %s220_s17, 0  ;;  %p234_p2 = scmp.eq.s32.totalorder %s3904_s13, 1 }
   0x7   : > { %p239_p3 = scmp.ne.s32.totalorder %s3815_s10, %s3811_s30  ;;  %p240_p4 = scmp.eq.s32.totalorder %s2933_s14, 1 }
   0x8   : > { %s3919_s18 = scalar_select %p221_p1, %s3819_s11, %s223_s16  }
   0x9   : > { %p3921_p5 = por %p234_p2, %p233_p0  ;;  %p3925_p6 = por %p240_p4, %p239_p3 }
   0xa   : > { %p2936_p7 = scmp.ge.s32.totalorder %s3823_s12, 1  ;;  %p290_p8 = scmp.lt.s32.totalorder %s3823_s12, 3 }
   0xc   : > { %p291_p9 = pnand %p2936_p7, %p290_p8 }
   0xe   : > { %294 = sbr.rel (%p291_p9) target bundleno = 2499 (0x9c3), region = 56 }
  0x15   : > { %v398_v0 = vld [vmem:[%s5471_s3] sm:$0xff]  ;;  %v399_v1 = vld [vmem:[%s5471_s3 + $0x8] sm:$0xff]  ;;  %v400_v2 = vld [vmem:[%s5471_s3 + $0x10] sm:$0xff]  ;;  %v3825_v3 = vmov 0.0|0.0   ;;  %vm3826_vm0 = vmmov 0   ;;  %v3827_v6 = vmov 0.0  }
  0x16   : > { %3417 = vmatprep.subr.bf16.mxu0 %v3825_v3  ;;  %v3941_v4 = vpack.c.bf16 %v399_v1, %v398_v0  ;;  %v401_v5 = vld [vmem:[%s5471_s3 + $0x18] sm:$0xff]  ;;  %3309 = vmatprep.mubr.msk.f32.mxu0 %vm3826_vm0, %v3827_v6  ;;  %p326_p10 = scmp.lt.s32.totalorder %s3904_s13, 1  ;;  %v402_v7 = vld [vmem:[%s5472_s4] sm:$0xff]  ;;  %v403_v8 = vld [vmem:[%s5472_s4 + $0x8] sm:$0xff]  ;;  %vm406_vm1 = vcmask 261120   ;;  %s3828_s28 = smov 96  }
  0x17   : > { %3423 = vmatprep.subr.bf16.mxu1 %v3825_v3  ;;  %v3956_v9 = vpack.c.bf16 %v403_v8, %v402_v7  ;;  %3320 = vmatprep.mubr.msk.f32.mxu1 %vm3826_vm0, %v3827_v6  ;;  %v3961_v10 = vpack.c.bf16 %v401_v5, %v400_v2  ;;  %s3829_s29 = smov 64   ;;  %s3005_s27 = sshll.u32 %s3904_s13, 12 }
  0x18   : > { %3419 = vmatpush3.bf16.msra.mxu0 %v3941_v4  ;;  %s327_s21 = scalar_select %p326_p10, %s3904_s13, 1 }
  0x19   : > { %3420 = vmatprep.subr.bf16.mxu0 %v3825_v3  ;;  %3425 = vmatpush3.bf16.msra.mxu1 %v3956_v9  ;;  %s5414_s16 = scalar_lea.hbm %s5477_s9, %s3005_s27 }
  0x1a   : > { %s3004_s22 = sshll.u32 %s327_s21, 7  ;;  %3426 = vmatprep.subr.bf16.mxu1 %v3825_v3  ;;  %s3830_s21 = smov [#allocation2]  }
  0x1b   : > { %s3970_s25 = scalar_lea.vmem %s5468_s0, %s3004_s22  ;;  %s323_s22 = sand.u32 1, %s3815_s10  }
  0x1c   : > { %3422 = vmatpush3.bf16.msra.mxu0 %v3961_v10  ;;  %v3007_v11 = vld [vmem:[%s3970_s25] sm:$0xff]   ;;  %v3070_v12 = vld [vmem:[%s3970_s25 + $0x8] sm:$0xff]   ;;  %v3071_v16 = vld [vmem:[%s3970_s25 + $0x10] sm:$0xff]   ;;  %s5427_s13 = scalar_lea.sflag [#allocation3], %s323_s22  ;;  %s3765_s23 = sshll.u32 %s3830_s21, 4  ;;  %s3766_s23 = int_to_ptr.vmem [resolvable:$false] %s3765_s23 }
  0x1d   : > { %3429 = vmatprep.subr.bf16.mxu0 %v3825_v3  ;;  %v3976_v13 = vunpack.c.l.bf16 %v3007_v11  ;;  %v3978_v14 = vunpack.c.h.bf16 %v3007_v11  ;;  %v3980_v15 = vunpack.c.l.bf16 %v3070_v12  ;;  %v3983_v17 = vunpack.c.h.bf16 %v3070_v12  ;;  %v3072_v22 = vld [vmem:[%s3970_s25 + $0x18] sm:$0xff]   ;;  %v3073_v29 = vld [vmem:[%s3970_s25 + $0x20] sm:$0xff]   ;;  %v3074_v36 = vld [vmem:[%s3970_s25 + $0x28] sm:$0xff]   ;;  %s3767_s24 = scalar_lea.vmem %s3766_s23, 8192 }
  0x1e   : > { %v3985_v18 = vunpack.c.l.bf16 %v3071_v16  ;;  %v3994_v24 = vunpack.c.h.bf16 %v3071_v16  ;;  %v3998_v27 = vunpack.c.l.bf16 %v3072_v22  ;;  %v4003_v31 = vunpack.c.h.bf16 %v3072_v22  ;;  %v3075_v43 = vld [vmem:[%s3970_s25 + $0x30] sm:$0xff]   ;;  %v3076_v50 = vld [vmem:[%s3970_s25 + $0x38] sm:$0xff]   ;;  %v3077_v57 = vld [vmem:[%s3970_s25 + $0x40] sm:$0xff]  }
  0x1f   : > { %5528 = vst [vmem:[#allocation5_spill] sm:$0xff] %v3976_v13  ;;  %5529 = vst [vmem:[#allocation6_spill] sm:$0xff] %v3978_v14  ;;  %v407_v19 = vsel %vm406_vm1, %v3976_v13, 0.0  ;;  %v408_v20 = vsel %vm406_vm1, %v3978_v14, 0.0  ;;  %v410_v21 = vsel %vm406_vm1, %v3980_v15, 0.0  ;;  %v412_v25 = vsel %vm406_vm1, %v3983_v17, 0.0 }
  0x20   : > { %5530 = vst [vmem:[#allocation7_spill] sm:$0xff] %v3980_v15  ;;  %5531 = vst [vmem:[#allocation8_spill] sm:$0xff] %v3983_v17  ;;  %v409_v23 = vadd.f32 %v408_v20, %v407_v19  ;;  %v414_v28 = vsel %vm406_vm1, %v3985_v18, 0.0  ;;  %v416_v32 = vsel %vm406_vm1, %v3994_v24, 0.0  ;;  %v4007_v34 = vunpack.c.l.bf16 %v3073_v29  ;;  %v3078_v0 = vld [vmem:[%s3970_s25 + $0x48] sm:$0xff]   ;;  %v3079_v12 = vld [vmem:[%s3970_s25 + $0x50] sm:$0xff]  }
  0x21   : > { %5532 = vst [vmem:[#allocation9_spill] sm:$0xff] %v3985_v18  ;;  %5533 = vst [vmem:[#allocation10_spill] sm:$0xff] %v3994_v24  ;;  %v418_v35 = vsel %vm406_vm1, %v3998_v27, 0.0  ;;  %v4012_v38 = vunpack.c.h.bf16 %v3073_v29  ;;  %v420_v39 = vsel %vm406_vm1, %v4003_v31, 0.0  ;;  %v4016_v41 = vunpack.c.l.bf16 %v3074_v36 }
  0x22   : > { %v411_v26 = vadd.f32 %v410_v21, %v409_v23  ;;  %5534 = vst [vmem:[#allocation11_spill] sm:$0xff] %v3998_v27  ;;  %5535 = vst [vmem:[#allocation12_spill] sm:$0xff] %v4003_v31  ;;  %v422_v42 = vsel %vm406_vm1, %v4007_v34, 0.0  ;;  %v4021_v45 = vunpack.c.h.bf16 %v3074_v36  ;;  %v4025_v48 = vunpack.c.l.bf16 %v3075_v43 }
  0x23   : > { %5536 = vst [vmem:[#allocation13_spill] sm:$0xff] %v4007_v34  ;;  %5537 = vst [vmem:[#allocation14_spill] sm:$0xff] %v4012_v38  ;;  %v424_v46 = vsel %vm406_vm1, %v4012_v38, 0.0  ;;  %v426_v49 = vsel %vm406_vm1, %v4016_v41, 0.0  ;;  %v4030_v52 = vunpack.c.h.bf16 %v3075_v43  ;;  %v4034_v55 = vunpack.c.l.bf16 %v3076_v50 }
  0x24   : > { %v413_v30 = vadd.f32 %v412_v25, %v411_v26  ;;  %5538 = vst [vmem:[#allocation15_spill] sm:$0xff] %v4016_v41  ;;  %5539 = vst [vmem:[#allocation16_spill] sm:$0xff] %v4021_v45  ;;  %v428_v53 = vsel %vm406_vm1, %v4021_v45, 0.0  ;;  %v430_v56 = vsel %vm406_vm1, %v4025_v48, 0.0  ;;  %v4039_v59 = vunpack.c.h.bf16 %v3076_v50  ;;  %v3080_v25 = vld [vmem:[%s3970_s25 + $0x58] sm:$0xff]  }
  0x25   : > { %5540 = vst [vmem:[#allocation17_spill] sm:$0xff] %v4025_v48  ;;  %5541 = vst [vmem:[#allocation18_spill] sm:$0xff] %v4030_v52  ;;  %v432_v60 = vsel %vm406_vm1, %v4030_v52, 0.0  ;;  %v4043_v62 = vunpack.c.l.bf16 %v3077_v57  ;;  %v434_v63 = vsel %vm406_vm1, %v4034_v55, 0.0  ;;  %v4048_v2 = vunpack.c.h.bf16 %v3077_v57 }
  0x26   : > { %v415_v33 = vadd.f32 %v414_v28, %v413_v30  ;;  %5542 = vst [vmem:[#allocation19_spill] sm:$0xff] %v4034_v55  ;;  %5543 = vst [vmem:[#allocation20_spill] sm:$0xff] %v4039_v59  ;;  %v436_v5 = vsel %vm406_vm1, %v4039_v59, 0.0  ;;  %v4052_v8 = vunpack.c.l.bf16 %v3078_v0  ;;  %v4057_v19 = vunpack.c.h.bf16 %v3078_v0  ;;  %v3084_v0 = vld [vmem:[%s3970_s25 + $0x78] sm:$0xff]  }
  0x27   : > { %5544 = vst [vmem:[#allocation21_spill] sm:$0xff] %v4043_v62  ;;  %5545 = vst [vmem:[#allocation22_spill] sm:$0xff] %v4048_v2  ;;  %v438_v11 = vsel %vm406_vm1, %v4043_v62, 0.0  ;;  %v440_v20 = vsel %vm406_vm1, %v4048_v2, 0.0  ;;  %v4061_v22 = vunpack.c.l.bf16 %v3079_v12  ;;  %v4066_v28 = vunpack.c.h.bf16 %v3079_v12 }
  0x28   : > { %v417_v37 = vadd.f32 %v416_v32, %v415_v33  ;;  %5546 = vst [vmem:[#allocation23_spill] sm:$0xff] %v4052_v8  ;;  %5547 = vst [vmem:[#allocation24_spill] sm:$0xff] %v4057_v19  ;;  %v442_v23 = vsel %vm406_vm1, %v4052_v8, 0.0  ;;  %v444_v29 = vsel %vm406_vm1, %v4057_v19, 0.0  ;;  %v4070_v32 = vunpack.c.l.bf16 %v3080_v25 }
  0x29   : > { %5548 = vst [vmem:[#allocation25_spill] sm:$0xff] %v4061_v22  ;;  %5549 = vst [vmem:[#allocation26_spill] sm:$0xff] %v4066_v28  ;;  %v446_v33 = vsel %vm406_vm1, %v4061_v22, 0.0  ;;  %v4106_v12 = vunpack.c.l.bf16 %v3084_v0 }
  0x2a   : > { %v419_v40 = vadd.f32 %v418_v35, %v417_v37  ;;  %5550 = vst [vmem:[#allocation27_spill] sm:$0xff] %v4070_v32  ;;  %v3081_v35 = vld [vmem:[%s3970_s25 + $0x60] sm:$0xff]   ;;  %v4075_v37 = vunpack.c.h.bf16 %v3080_v25  ;;  %v450_v43 = vsel %vm406_vm1, %v4070_v32, 0.0 }
  0x2b   : > { %5558 = vst [vmem:[#allocation35_spill] sm:$0xff] %v4106_v12 }
  0x2c   : > { %v421_v44 = vadd.f32 %v420_v39, %v419_v40  ;;  %5551 = vst [vmem:[#allocation28_spill] sm:$0xff] %v4075_v37  ;;  %v448_v39 = vsel %vm406_vm1, %v4066_v28, 0.0 }
  0x2e   : > { %v423_v47 = vadd.f32 %v422_v42, %v421_v44  ;;  %v4079_v42 = vunpack.c.l.bf16 %v3081_v35  ;;  %v3082_v44 = vld [vmem:[%s3970_s25 + $0x68] sm:$0xff]  }
  0x2f   : > { %v4093_v57 = vunpack.c.h.bf16 %v3082_v44 }
  0x30   : > { %v425_v51 = vadd.f32 %v424_v46, %v423_v47  ;;  %5552 = vst [vmem:[#allocation29_spill] sm:$0xff] %v4079_v42  ;;  %v4084_v47 = vunpack.c.h.bf16 %v3081_v35 }
  0x31   : > { %5555 = vst [vmem:[#allocation32_spill] sm:$0xff] %v4093_v57 }
  0x32   : > { %v427_v54 = vadd.f32 %v426_v49, %v425_v51  ;;  %5553 = vst [vmem:[#allocation30_spill] sm:$0xff] %v4084_v47  ;;  %v452_v49 = vsel %vm406_vm1, %v4075_v37, 0.0  ;;  %v4088_v51 = vunpack.c.l.bf16 %v3082_v44 }
  0x34   : > { %v429_v58 = vadd.f32 %v428_v53, %v427_v54  ;;  %5554 = vst [vmem:[#allocation31_spill] sm:$0xff] %v4088_v51  ;;  %v454_v53 = vsel %vm406_vm1, %v4079_v42, 0.0  ;;  %v3083_v54 = vld [vmem:[%s3970_s25 + $0x70] sm:$0xff]   ;;  %s2937_s25 = sshll.u32 %s323_s22, 8 }
  0x35   : > { %s5292_s26 = scalar_lea.vmem [#allocation2], %s2937_s25 }
  0x36   : > { %v431_v61 = vadd.f32 %v430_v56, %v429_v58  ;;  %v456_v58 = vsel %vm406_vm1, %v4084_v47, 0.0 }
  0x38   : > { %v433_v1 = vadd.f32 %v432_v60, %v431_v61  ;;  %v4097_v61 = vunpack.c.l.bf16 %v3083_v54 }
  0x3a   : > { %v435_v7 = vadd.f32 %v434_v63, %v433_v1  ;;  %5556 = vst [vmem:[#allocation33_spill] sm:$0xff] %v4097_v61  ;;  %v458_v63 = vsel %vm406_vm1, %v4088_v51, 0.0 }
  0x3c   : > { %v437_v16 = vadd.f32 %v436_v5, %v435_v7  ;;  %v4102_v5 = vunpack.c.h.bf16 %v3083_v54  ;;  %v460_v7 = vsel %vm406_vm1, %v4093_v57, 0.0 }
  0x3e   : > { %v439_v21 = vadd.f32 %v438_v11, %v437_v16  ;;  %5557 = vst [vmem:[#allocation34_spill] sm:$0xff] %v4102_v5  ;;  %v462_v16 = vsel %vm406_vm1, %v4097_v61, 0.0 }
  0x40   : > { %v441_v26 = vadd.f32 %v440_v20, %v439_v21  ;;  %v4110_v21 = vunpack.c.h.bf16 %v3084_v0 }
  0x42   : > { %v443_v30 = vadd.f32 %v442_v23, %v441_v26  ;;  %5559 = vst [vmem:[#allocation36_spill] sm:$0xff] %v4110_v21  ;;  %v464_v23 = vsel %vm406_vm1, %v4102_v5, 0.0  ;;  %v466_v26 = vsel %vm406_vm1, %v4106_v12, 0.0 }
  0x44   : > { %v445_v36 = vadd.f32 %v444_v29, %v443_v30  ;;  %v468_v30 = vsel %vm406_vm1, %v4110_v21, 0.0 }
  0x46   : > { %v447_v40 = vadd.f32 %v446_v33, %v445_v36 }
  0x48   : > { %v449_v46 = vadd.f32 %v448_v39, %v447_v40 }
  0x4a   : > { %v451_v50 = vadd.f32 %v450_v43, %v449_v46 }
  0x4c   : > { %v453_v56 = vadd.f32 %v452_v49, %v451_v50  ;;  %v404_v49 = vld [vmem:[%s5472_s4 + $0x10] sm:$0xff]  ;;  %v405_v50 = vld [vmem:[%s5472_s4 + $0x18] sm:$0xff] }
  0x4e   : > { %v455_v60 = vadd.f32 %v454_v53, %v453_v56  ;;  %v3427_v53 = vpack.c.bf16 %v405_v50, %v404_v49 }
  0x50   : > { %v457_v1 = vadd.f32 %v456_v58, %v455_v60  ;;  %3428 = vmatpush3.bf16.msra.mxu1 %v3427_v53 }
  0x51   : > { %3435 = vmatprep.subr.bf16.mxu1 %v3825_v3 }
  0x52   : > { %v459_v11 = vadd.f32 %v458_v63, %v457_v1 }
  0x54   : > { %v461_v20 = vadd.f32 %v460_v7, %v459_v11 }
  0x56   : > { %v463_v25 = vadd.f32 %v462_v16, %v461_v20 }
  0x58   : > { %v465_v29 = vadd.f32 %v464_v23, %v463_v25 }
  0x5a   : > { %v467_v33 = vadd.f32 %v466_v26, %v465_v29 }
  0x5c   : > { %v469_v35 = vadd.f32 %v468_v30, %v467_v33 }
  0x5e   : > { %v470_v36 = vrot.slane %v469_v35, 4 }
  0x60   : > { %v471_v39 = vadd.f32 %v470_v36, %v469_v35 }
  0x62   : > { %v472_v40 = vrot.slane %v471_v39, 2 }
  0x64   : > { %v473_v43 = vadd.f32 %v472_v40, %v471_v39 }
  0x66   : > { %v474_v44 = vrot.slane %v473_v43, 1 }
  0x68   : > { %v475_v46 = vadd.f32 %v474_v44, %v473_v43 }
  0x6a   : > { %3310 = vmatmul.mubr.msk.f32.vlgmr.msra.gmra.mrb[0].mxu0 %vm406_vm1, %v475_v46 }
  0x6b   : > { %3431 = vmatpush3.bf16.msra.mxu0 %v3941_v4  ;;  %3331 = vmatprep.mubr.msk.f32.mxu0 %vm3826_vm0, %v3827_v6 }
  0x6c   : > { %3432 = vmatprep.subr.bf16.mxu0 %v3825_v3 }
  0x6f   : > { %3434 = vmatpush3.bf16.msra.mxu0 %v3961_v10  ;;  %v623_v10 = vlaneseq }
  0x71   : > { %v4136_v58 = vshrl.u32 %v623_v10, 7 }
  0x73   : > { %v5478_v0 = vsub.s32 0, %v4136_v58 }
 0x13d   : > { %v545_v4 = vpop.f32.mrb[0].mxu0 }
 0x13e   : > { %v549_v54 = vmul.f32 0.00390625, %v545_v4  ;;  %v3311_v56 = vpop.f32.mrb[1].mxu0 }
 0x140   : > { %3321 = vmatmul.mubr.msk.f32.vlgmr.msra.gmra.mrb[0].mxu1 %vm406_vm1, %v549_v54 }
 0x141   : > { %3437 = vmatpush3.bf16.msra.mxu1 %v3956_v9  ;;  %3342 = vmatprep.mubr.msk.f32.mxu1 %vm3826_vm0, %v3827_v6 }
 0x142   : > { %3438 = vmatprep.subr.bf16.mxu1 %v3825_v3 }
 0x145   : > { %3440 = vmatpush3.bf16.msra.mxu1 %v3427_v53 }
 0x213   : > { %v619_v60 = vpop.f32.mrb[0].mxu1 }
 0x214   : > { %v3322_v63 = vpop.f32.mrb[1].mxu1  ;;  %v4141_v1 = vrot.slane %v619_v60, %v5478_v0 }
 0x216   : > { %v4145_v9 = vsub.f32 %v3976_v13, %v4141_v1  ;;  %v4149_v6 = vsub.f32 %v3978_v14, %v4141_v1  ;;  %v4153_v3 = vsub.f32 %v3980_v15, %v4141_v1  ;;  %v4157_v7 = vsub.f32 %v3983_v17, %v4141_v1 }
 0x217   : > { %v4165_v20 = vsub.f32 %v3985_v18, %v4141_v1  ;;  %v4171_v25 = vsub.f32 %v3994_v24, %v4141_v1  ;;  %v4179_v35 = vsub.f32 %v3998_v27, %v4141_v1  ;;  %v4186_v43 = vsub.f32 %v4003_v31, %v4141_v1 }
 0x218   : > { %v659_v11 = vmul.f32 %v4145_v9, %v4145_v9  ;;  %v660_v16 = vmul.f32 %v4149_v6, %v4149_v6  ;;  %v661_v23 = vmul.f32 %v4153_v3, %v4153_v3  ;;  %v662_v26 = vmul.f32 %v4157_v7, %v4157_v7 }
 0x219   : > { %v663_v36 = vmul.f32 %v4165_v20, %v4165_v20  ;;  %v664_v44 = vmul.f32 %v4171_v25, %v4171_v25  ;;  %v4193_v50 = vsub.f32 %v4007_v34, %v4141_v1  ;;  %v665_v53 = vmul.f32 %v4179_v35, %v4179_v35 }
 0x21a   : > { %v691_v29 = vsel %vm406_vm1, %v659_v11, 0.0  ;;  %v692_v30 = vsel %vm406_vm1, %v660_v16, 0.0  ;;  %v694_v39 = vsel %vm406_vm1, %v661_v23, 0.0  ;;  %v696_v46 = vsel %vm406_vm1, %v662_v26, 0.0 }
 0x21b   : > { %v693_v33 = vadd.f32 %v692_v30, %v691_v29  ;;  %v698_v4 = vsel %vm406_vm1, %v663_v36, 0.0  ;;  %v4200_v56 = vsub.f32 %v4012_v38, %v4141_v1  ;;  %v666_v10 = vmul.f32 %v4186_v43, %v4186_v43 }
 0x21c   : > { %v700_v60 = vsel %vm406_vm1, %v664_v44, 0.0  ;;  %v4207_v11 = vsub.f32 %v4016_v41, %v4141_v1  ;;  %v667_v16 = vmul.f32 %v4193_v50, %v4193_v50  ;;  %v702_v23 = vsel %vm406_vm1, %v665_v53, 0.0 }
 0x21d   : > { %v695_v40 = vadd.f32 %v694_v39, %v693_v33  ;;  %v4214_v29 = vsub.f32 %v4021_v45, %v4141_v1  ;;  %v668_v30 = vmul.f32 %v4200_v56, %v4200_v56  ;;  %v704_v33 = vsel %vm406_vm1, %v666_v10, 0.0 }
 0x21e   : > { %v4221_v39 = vsub.f32 %v4025_v48, %v4141_v1  ;;  %v706_v44 = vsel %vm406_vm1, %v667_v16, 0.0  ;;  %v4235_v10 = vsub.f32 %v4034_v55, %v4141_v1 }
 0x21f   : > { %v697_v49 = vadd.f32 %v696_v46, %v695_v40  ;;  %v669_v40 = vmul.f32 %v4207_v11, %v4207_v11  ;;  %v670_v53 = vmul.f32 %v4214_v29, %v4214_v29 }
 0x221   : > { %v699_v54 = vadd.f32 %v698_v4, %v697_v49  ;;  %v4228_v49 = vsub.f32 %v4030_v52, %v4141_v1  ;;  %v708_v4 = vsel %vm406_vm1, %v668_v30, 0.0  ;;  %v712_v30 = vsel %vm406_vm1, %v670_v53, 0.0 }
 0x223   : > { %v701_v63 = vadd.f32 %v700_v60, %v699_v54  ;;  %v671_v60 = vmul.f32 %v4221_v39, %v4221_v39 }
 0x225   : > { %v703_v26 = vadd.f32 %v702_v23, %v701_v63  ;;  %v710_v63 = vsel %vm406_vm1, %v669_v40, 0.0  ;;  %v4242_v23 = vsub.f32 %v4039_v59, %v4141_v1  ;;  %v714_v40 = vsel %vm406_vm1, %v671_v60, 0.0 }
 0x227   : > { %v705_v36 = vadd.f32 %v704_v33, %v703_v26  ;;  %v672_v26 = vmul.f32 %v4228_v49, %v4228_v49 }
 0x229   : > { %v707_v46 = vadd.f32 %v706_v44, %v705_v36  ;;  %v4249_v36 = vsub.f32 %v4043_v62, %v4141_v1  ;;  %v673_v44 = vmul.f32 %v4235_v10, %v4235_v10  ;;  %v716_v53 = vsel %vm406_vm1, %v672_v26, 0.0 }
 0x22b   : > { %v709_v54 = vadd.f32 %v708_v4, %v707_v46  ;;  %v4256_v4 = vsub.f32 %v4048_v2, %v4141_v1  ;;  %v718_v60 = vsel %vm406_vm1, %v673_v44, 0.0 }
 0x22d   : > { %v711_v16 = vadd.f32 %v710_v63, %v709_v54  ;;  %v674_v54 = vmul.f32 %v4242_v23, %v4242_v23  ;;  %v676_v0 = vmul.f32 %v4256_v4, %v4256_v4 }
 0x22f   : > { %v713_v33 = vadd.f32 %v712_v30, %v711_v16  ;;  %v4263_v16 = vsub.f32 %v4052_v8, %v4141_v1  ;;  %v675_v30 = vmul.f32 %v4249_v36, %v4249_v36  ;;  %v720_v26 = vsel %vm406_vm1, %v674_v54, 0.0 }
 0x230   : > { %v724_v54 = vsel %vm406_vm1, %v676_v0, 0.0 }
 0x231   : > { %v715_v46 = vadd.f32 %v714_v40, %v713_v33  ;;  %v4270_v40 = vsub.f32 %v4057_v19, %v4141_v1  ;;  %v677_v2 = vmul.f32 %v4263_v16, %v4263_v16  ;;  %v722_v44 = vsel %vm406_vm1, %v675_v30, 0.0 }
 0x233   : > { %v717_v63 = vadd.f32 %v716_v53, %v715_v46  ;;  %v4277_v53 = vsub.f32 %v4061_v22, %v4141_v1  ;;  %v678_v19 = vmul.f32 %v4270_v40, %v4270_v40  ;;  %v726_v30 = vsel %vm406_vm1, %v677_v2, 0.0 }
 0x235   : > { %v719_v33 = vadd.f32 %v718_v60, %v717_v63  ;;  %v4284_v60 = vsub.f32 %v4066_v28, %v4141_v1  ;;  %v679_v22 = vmul.f32 %v4277_v53, %v4277_v53  ;;  %v728_v0 = vsel %vm406_vm1, %v678_v19, 0.0 }
 0x237   : > { %v721_v46 = vadd.f32 %v720_v26, %v719_v33  ;;  %v4291_v26 = vsub.f32 %v4070_v32, %v4141_v1  ;;  %v680_v28 = vmul.f32 %v4284_v60, %v4284_v60  ;;  %v730_v2 = vsel %vm406_vm1, %v679_v22, 0.0 }
 0x239   : > { %v723_v63 = vadd.f32 %v722_v44, %v721_v46  ;;  %v4298_v44 = vsub.f32 %v4075_v37, %v4141_v1  ;;  %v681_v32 = vmul.f32 %v4291_v26, %v4291_v26  ;;  %v732_v19 = vsel %vm406_vm1, %v680_v28, 0.0 }
 0x23b   : > { %v725_v33 = vadd.f32 %v724_v54, %v723_v63  ;;  %v4305_v54 = vsub.f32 %v4079_v42, %v4141_v1  ;;  %v682_v37 = vmul.f32 %v4298_v44, %v4298_v44  ;;  %v734_v22 = vsel %vm406_vm1, %v681_v32, 0.0 }
 0x23d   : > { %v727_v46 = vadd.f32 %v726_v30, %v725_v33  ;;  %v4312_v30 = vsub.f32 %v4084_v47, %v4141_v1  ;;  %v683_v42 = vmul.f32 %v4305_v54, %v4305_v54  ;;  %v736_v28 = vsel %vm406_vm1, %v682_v37, 0.0 }
 0x23f   : > { %v729_v63 = vadd.f32 %v728_v0, %v727_v46  ;;  %v4319_v0 = vsub.f32 %v4088_v51, %v4141_v1  ;;  %v684_v47 = vmul.f32 %v4312_v30, %v4312_v30  ;;  %v738_v32 = vsel %vm406_vm1, %v683_v42, 0.0 }
 0x241   : > { %v731_v33 = vadd.f32 %v730_v2, %v729_v63  ;;  %v4326_v2 = vsub.f32 %v4093_v57, %v4141_v1  ;;  %v685_v51 = vmul.f32 %v4319_v0, %v4319_v0  ;;  %v740_v37 = vsel %vm406_vm1, %v684_v47, 0.0 }
 0x243   : > { %v733_v46 = vadd.f32 %v732_v19, %v731_v33  ;;  %v4333_v19 = vsub.f32 %v4097_v61, %v4141_v1  ;;  %v686_v57 = vmul.f32 %v4326_v2, %v4326_v2  ;;  %v742_v42 = vsel %vm406_vm1, %v685_v51, 0.0 }
 0x245   : > { %v735_v63 = vadd.f32 %v734_v22, %v733_v46  ;;  %v4340_v22 = vsub.f32 %v4102_v5, %v4141_v1  ;;  %v687_v61 = vmul.f32 %v4333_v19, %v4333_v19  ;;  %v744_v47 = vsel %vm406_vm1, %v686_v57, 0.0 }
 0x247   : > { %v737_v33 = vadd.f32 %v736_v28, %v735_v63  ;;  %v4347_v28 = vsub.f32 %v4106_v12, %v4141_v1  ;;  %v688_v5 = vmul.f32 %v4340_v22, %v4340_v22  ;;  %v746_v12 = vsel %vm406_vm1, %v687_v61, 0.0 }
 0x249   : > { %v739_v46 = vadd.f32 %v738_v32, %v737_v33  ;;  %v4354_v32 = vsub.f32 %v4110_v21, %v4141_v1 }
 0x24b   : > { %v741_v63 = vadd.f32 %v740_v37, %v739_v46  ;;  %v689_v37 = vmul.f32 %v4347_v28, %v4347_v28  ;;  %v690_v51 = vmul.f32 %v4354_v32, %v4354_v32 }
 0x24d   : > { %v743_v33 = vadd.f32 %v742_v42, %v741_v63  ;;  %v748_v63 = vsel %vm406_vm1, %v688_v5, 0.0  ;;  %v750_v1 = vsel %vm406_vm1, %v689_v37, 0.0  ;;  %v752_v8 = vsel %vm406_vm1, %v690_v51, 0.0 }
 0x24e   : > { %v5560_v37 = vsub.s32 0, %v4136_v58 }
 0x24f   : > { %v745_v46 = vadd.f32 %v744_v47, %v743_v33 }
 0x251   : > { %v747_v62 = vadd.f32 %v746_v12, %v745_v46 }
 0x253   : > { %v749_v42 = vadd.f32 %v748_v63, %v747_v62  ;;  %v3499_v62 = vld [vmem:[%s5473_s5] sm:$0xff]  }
 0x254   : > { %3345 = vmatprep.subr.bf16.mxu0 %v3499_v62  ;;  %v4385_v63 = vld [vmem:[%s5470_s2] ss:$0 sm:$0xff] }
 0x255   : > { %v751_v21 = vadd.f32 %v750_v1, %v749_v42 }
 0x257   : > { %v753_v52 = vadd.f32 %v752_v8, %v751_v21  ;;  %v3500_v8 = vld [vmem:[%s5473_s5 + $0x8] sm:$0xff]  }
 0x259   : > { %v754_v57 = vrot.slane %v753_v52, 4 }
 0x25b   : > { %v755_v33 = vadd.f32 %v754_v57, %v753_v52 }
 0x25d   : > { %v756_v47 = vrot.slane %v755_v33, 2 }
 0x25f   : > { %v757_v59 = vadd.f32 %v756_v47, %v755_v33 }
 0x261   : > { %v758_v48 = vrot.slane %v757_v59, 1 }
 0x263   : > { %v759_v55 = vadd.f32 %v758_v48, %v757_v59  ;;  %v396_v59 = vld [vmem:[%s5469_s1] sm:$0x1] }
 0x265   : > { %3332 = vmatmul.mubr.msk.f32.vlgmr.msra.gmra.mrb[2].mxu0 %vm406_vm1, %v759_v55 }
 0x266   : > { %3346 = vmatpush3.bf16.msra.mxu0 %v3499_v62 }
 0x267   : > { %3347 = vmatprep.subr.bf16.mxu0 %v3500_v8 }
 0x26a   : > { %3348 = vmatpush3.bf16.msra.mxu0 %v3500_v8 }
 0x338   : > { %v829_v61 = vpop.f32.mrb[2].mxu0 }
 0x339   : > { %v833_v12 = vmul.f32 0.00390625, %v829_v61  ;;  %v3333_v46 = vpop.f32.mrb[3].mxu0 }
 0x33b   : > { %3343 = vmatmul.mubr.msk.f32.vlgmr.msra.gmra.mrb[2].mxu1 %vm406_vm1, %v833_v12 }
 0x40e   : > { %v903_v48 = vpop.f32.mrb[2].mxu1 }
 0x40f   : > { %v904_v52 = vadd.f32 1e-05, %v903_v48  ;;  %v3344_v55 = vpop.f32.mrb[3].mxu1 }
 0x411   : > { %3503 = vrsqrt.f32 %v904_v52 }
 0x41b   : > { %v3504_v5 = vpop.eup %3503 }
 0x41c   : > { %v908_v21 = vmul.f32 %v3504_v5, %v396_v59 }
 0x41e   : > { %v4380_v51 = vrot.slane %v908_v21, %v5560_v37 }
 0x420   : > { %v913_v42 = vmul.f32 %v4380_v51, %v4145_v9  ;;  %v914_v1 = vmul.f32 %v4380_v51, %v4149_v6  ;;  %v915_v57 = vmul.f32 %v4380_v51, %v4153_v3  ;;  %v916_v33 = vmul.f32 %v4380_v51, %v4157_v7 }
 0x421   : > { %v917_v58 = vmul.f32 %v4380_v51, %v4165_v20  ;;  %v918_v47 = vmul.f32 %v4380_v51, %v4171_v25  ;;  %v919_v20 = vmul.f32 %v4380_v51, %v4179_v35  ;;  %v920_v25 = vmul.f32 %v4380_v51, %v4186_v43 }
 0x422   : > { %v951_v61 = vadd.f32 %v4385_v63, %v913_v42  ;;  %v952_v12 = vadd.f32 %v4385_v63, %v914_v1  ;;  %v953_v9 = vadd.f32 %v4385_v63, %v915_v57  ;;  %v954_v6 = vadd.f32 %v4385_v63, %v916_v33 }
 0x423   : > { %v955_v46 = vadd.f32 %v4385_v63, %v917_v58  ;;  %v956_v3 = vadd.f32 %v4385_v63, %v918_v47  ;;  %v921_v48 = vmul.f32 %v4380_v51, %v4193_v50  ;;  %v922_v52 = vmul.f32 %v4380_v51, %v4200_v56 }
 0x424   : > { %v983_v62 = vpack.c.bf16 %v952_v12, %v951_v61  ;;  %v984_v7 = vpack.c.bf16 %v954_v6, %v953_v9  ;;  %v957_v55 = vadd.f32 %v4385_v63, %v919_v20  ;;  %v958_v35 = vadd.f32 %v4385_v63, %v920_v25 }
 0x425   : > { %v985_v8 = vpack.c.bf16 %v956_v3, %v955_v46  ;;  %v959_v59 = vadd.f32 %v4385_v63, %v921_v48  ;;  %v960_v43 = vadd.f32 %v4385_v63, %v922_v52  ;;  %v923_v21 = vmul.f32 %v4380_v51, %v4207_v11 }
 0x426   : > { %3349 = vmatprep.mubr.msk.bf16.mxu0 %vm406_vm1, %v983_v62  ;;  %v986_v5 = vpack.c.bf16 %v958_v35, %v957_v55  ;;  %v924_v50 = vmul.f32 %v4380_v51, %v4214_v29  ;;  %v925_v37 = vmul.f32 %v4380_v51, %v4221_v39  ;;  %v926_v42 = vmul.f32 %v4380_v51, %v4228_v49 }
 0x427   : > { %3350 = vmatmul.mubr.msk.bf16.vlgmr.msra.gmra.mrb[4].mxu0 %vm406_vm1, %v984_v7  ;;  %v987_v56 = vpack.c.bf16 %v960_v43, %v959_v59  ;;  %v961_v1 = vadd.f32 %v4385_v63, %v923_v21  ;;  %v927_v58 = vmul.f32 %v4380_v51, %v4235_v10  ;;  %v928_v39 = vmul.f32 %v4380_v51, %v4242_v23 }
 0x428   : > { %3353 = vmatprep.mubr.msk.bf16.mxu0 %vm406_vm1, %v985_v8  ;;  %v962_v57 = vadd.f32 %v4385_v63, %v924_v50  ;;  %v963_v11 = vadd.f32 %v4385_v63, %v925_v37  ;;  %v964_v33 = vadd.f32 %v4385_v63, %v926_v42  ;;  %v929_v47 = vmul.f32 %v4380_v51, %v4249_v36 }
 0x429   : > { %v930_v61 = vmul.f32 %v4380_v51, %v4256_v4  ;;  %v965_v12 = vadd.f32 %v4385_v63, %v927_v58  ;;  %v966_v9 = vadd.f32 %v4385_v63, %v928_v39  ;;  %v931_v46 = vmul.f32 %v4380_v51, %v4263_v16 }
 0x42a   : > { %v988_v29 = vpack.c.bf16 %v962_v57, %v961_v1  ;;  %v989_v49 = vpack.c.bf16 %v964_v33, %v963_v11  ;;  %v967_v10 = vadd.f32 %v4385_v63, %v929_v47  ;;  %v932_v36 = vmul.f32 %v4380_v51, %v4270_v40  ;;  %v4502_v33 = vld [vmem:[%s5474_s6] ss:$0 sm:$0xff] }
 0x42b   : > { %v968_v6 = vadd.f32 %v4385_v63, %v930_v61  ;;  %v990_v23 = vpack.c.bf16 %v966_v9, %v965_v12  ;;  %v933_v3 = vmul.f32 %v4380_v51, %v4277_v53  ;;  %v934_v62 = vmul.f32 %v4380_v51, %v4284_v60 }
 0x42c   : > { %v969_v7 = vadd.f32 %v4385_v63, %v931_v46  ;;  %v970_v20 = vadd.f32 %v4385_v63, %v932_v36  ;;  %v935_v8 = vmul.f32 %v4380_v51, %v4291_v26  ;;  %v936_v53 = vmul.f32 %v4380_v51, %v4298_v44 }
 0x42d   : > { %v991_v4 = vpack.c.bf16 %v968_v6, %v967_v10  ;;  %v971_v16 = vadd.f32 %v4385_v63, %v933_v3  ;;  %v972_v25 = vadd.f32 %v4385_v63, %v934_v62  ;;  %v937_v48 = vmul.f32 %v4380_v51, %v4305_v54 }
 0x42e   : > { %v992_v40 = vpack.c.bf16 %v970_v20, %v969_v7  ;;  %v938_v52 = vmul.f32 %v4380_v51, %v4312_v30  ;;  %v973_v55 = vadd.f32 %v4385_v63, %v935_v8  ;;  %v974_v35 = vadd.f32 %v4385_v63, %v936_v53 }
 0x42f   : > { %3354 = vmatmul.mubr.msk.bf16.gmra.mrb[8].mxu0 %vm406_vm1, %v986_v5  ;;  %v993_v60 = vpack.c.bf16 %v972_v25, %v971_v16  ;;  %v975_v26 = vadd.f32 %v4385_v63, %v937_v48  ;;  %v939_v43 = vmul.f32 %v4380_v51, %v4319_v0  ;;  %v940_v54 = vmul.f32 %v4380_v51, %v4326_v2 }
 0x430   : > { %3357 = vmatprep.mubr.msk.bf16.mxu0 %vm406_vm1, %v987_v56  ;;  %v976_v59 = vadd.f32 %v4385_v63, %v938_v52  ;;  %v994_v44 = vpack.c.bf16 %v974_v35, %v973_v55  ;;  %v941_v5 = vmul.f32 %v4380_v51, %v4333_v19  ;;  %v942_v21 = vmul.f32 %v4380_v51, %v4340_v22 }
 0x431   : > { %v977_v50 = vadd.f32 %v4385_v63, %v939_v43  ;;  %v978_v56 = vadd.f32 %v4385_v63, %v940_v54  ;;  %v943_v42 = vmul.f32 %v4380_v51, %v4347_v28  ;;  %v944_v19 = vmul.f32 %v4380_v51, %v4354_v32 }
 0x432   : > { %v995_v30 = vpack.c.bf16 %v976_v59, %v975_v26  ;;  %v979_v0 = vadd.f32 %v4385_v63, %v941_v5  ;;  %v980_v37 = vadd.f32 %v4385_v63, %v942_v21 }
 0x433   : > { %v996_v2 = vpack.c.bf16 %v978_v56, %v977_v50  ;;  %v981_v1 = vadd.f32 %v4385_v63, %v943_v42  ;;  %v982_v57 = vadd.f32 %v4385_v63, %v944_v19 }
 0x434   : > { %v997_v22 = vpack.c.bf16 %v980_v37, %v979_v0 }
 0x435   : > { %v998_v11 = vpack.c.bf16 %v982_v57, %v981_v1 }
 0x437   : > { %3358 = vmatmul.mubr.msk.bf16.gmra.mrb[12].mxu0 %vm406_vm1, %v988_v29 }
 0x438   : > { %3361 = vmatprep.mubr.msk.bf16.mxu0 %vm406_vm1, %v989_v49 }
 0x43f   : > { %3362 = vmatmul.mubr.msk.bf16.gmra.mrb[16].mxu0 %vm406_vm1, %v990_v23 }
 0x440   : > { %3365 = vmatprep.mubr.msk.bf16.mxu0 %vm406_vm1, %v991_v4 }
 0x447   : > { %3366 = vmatmul.mubr.msk.bf16.gmra.mrb[20].mxu0 %vm406_vm1, %v992_v40 }
 0x448   : > { %3369 = vmatprep.mubr.msk.bf16.mxu0 %vm406_vm1, %v993_v60 }
 0x44f   : > { %3370 = vmatmul.mubr.msk.bf16.gmra.mrb[24].mxu0 %vm406_vm1, %v994_v44 }
 0x450   : > { %3373 = vmatprep.mubr.msk.bf16.mxu0 %vm406_vm1, %v995_v30 }
 0x457   : > { %3374 = vmatmul.mubr.msk.bf16.gmra.mrb[28].mxu0 %vm406_vm1, %v996_v2 }
 0x458   : > { %3377 = vmatprep.mubr.msk.bf16.mxu0 %vm406_vm1, %v997_v22 }
 0x45f   : > { %3378 = vmatmul.mubr.msk.bf16.gmra.mrb[32].mxu0 %vm406_vm1, %v998_v11 }
 0x4fa   : > { %v3351_v28 = vpop.f32.mrb[4].mxu0 }
 0x4fb   : > { %v1113_v32 = vadd.f32 %v3351_v28, %v4502_v33  ;;  %v1104_v51 = vpop.f32.mrb[5].mxu0 }
 0x4fc   : > { %v1105_v29 = vadd.f32 %v4502_v33, %v1104_v51  ;;  %v3352_v58 = vpop.f32.mrb[6].mxu0 }
 0x4fd   : > { %v1116_v39 = vadd.f32 %v3352_v58, %v4502_v33  ;;  %v1107_v49 = vpop.f32.mrb[7].mxu0  ;;  %v1233_v47 = vmul.f32 0.17677669, %v1113_v32 }
 0x4fe   : > { %v1108_v63 = vadd.f32 %v4502_v33, %v1107_v49  ;;  %v1231_v9 = vmul.f32 0.17677669, %v1105_v29 }
 0x4ff   : > { %v1234_v61 = vmul.f32 0.17677669, %v1116_v39  ;;  %v4508_v12 = vpack.c.bf16 %v1116_v39, %v1113_v32 }
 0x500   : > { %v1232_v10 = vmul.f32 0.17677669, %v1108_v63  ;;  %v4510_v6 = vpack.c.bf16 %v1108_v63, %v1105_v29 }
 0x501   : > { %v4512_v23 = vpack.c.bf16 %v1234_v61, %v1233_v47  ;;  %1313 = vrot.lane.b32.xlu1 %v4508_v12, %s3828_s28 }
 0x502   : > { %v4516_v46 = vpack.c.bf16 %v1232_v10, %v1231_v9  ;;  %v3355_v36 = vpop.f32.mrb[8].mxu0  ;;  %1311 = vrot.lane.b32.xlu0 %v4510_v6, %s3828_s28 }
 0x503   : > { %v1129_v4 = vadd.f32 %v3355_v36, %v4502_v33  ;;  %v1120_v3 = vpop.f32.mrb[9].mxu0 }
 0x504   : > { %v1121_v62 = vadd.f32 %v4502_v33, %v1120_v3  ;;  %v3356_v7 = vpop.f32.mrb[10].mxu0  ;;  %3139 = vmatprep.mubr.msk.bf16.mxu1 %vm406_vm1, %v4516_v46 }
 0x505   : > { %v1132_v20 = vadd.f32 %v3356_v7, %v4502_v33  ;;  %v1123_v16 = vpop.f32.mrb[11].mxu0  ;;  %v1237_v40 = vmul.f32 0.17677669, %v1129_v4 }
 0x506   : > { %v1124_v25 = vadd.f32 %v4502_v33, %v1123_v16  ;;  %v1235_v60 = vmul.f32 0.17677669, %v1121_v62 }
 0x507   : > { %v1238_v8 = vmul.f32 0.17677669, %v1132_v20  ;;  %v4526_v53 = vpack.c.bf16 %v1132_v20, %v1129_v4 }
 0x508   : > { %v1236_v48 = vmul.f32 0.17677669, %v1124_v25  ;;  %v4528_v52 = vpack.c.bf16 %v1124_v25, %v1121_v62 }
 0x509   : > { %v4530_v55 = vpack.c.bf16 %v1238_v8, %v1237_v40 }
 0x50a   : > { %v4532_v35 = vpack.c.bf16 %v1236_v48, %v1235_v60  ;;  %v3359_v26 = vpop.f32.mrb[12].mxu0 }
 0x50b   : > { %v1145_v59 = vadd.f32 %v3359_v26, %v4502_v33  ;;  %v1136_v44 = vpop.f32.mrb[13].mxu0 }
 0x50c   : > { %v1137_v43 = vadd.f32 %v4502_v33, %v1136_v44  ;;  %v3360_v54 = vpop.f32.mrb[14].mxu0 }
 0x50d   : > { %v1148_v30 = vadd.f32 %v3360_v54, %v4502_v33  ;;  %v1139_v5 = vpop.f32.mrb[15].mxu0  ;;  %v1241_v50 = vmul.f32 0.17677669, %v1145_v59 }
 0x50e   : > { %v1140_v21 = vadd.f32 %v4502_v33, %v1139_v5  ;;  %v1239_v37 = vmul.f32 0.17677669, %v1137_v43 }
 0x50f   : > { %v1242_v56 = vmul.f32 0.17677669, %v1148_v30  ;;  %v4538_v0 = vpack.c.bf16 %v1148_v30, %v1145_v59 }
 0x510   : > { %v1240_v2 = vmul.f32 0.17677669, %v1140_v21  ;;  %v4540_v42 = vpack.c.bf16 %v1140_v21, %v1137_v43 }
 0x511   : > { %v4542_v19 = vpack.c.bf16 %v1242_v56, %v1241_v50 }
 0x512   : > { %v4544_v22 = vpack.c.bf16 %v1240_v2, %v1239_v37  ;;  %v3363_v1 = vpop.f32.mrb[16].mxu0 }
 0x513   : > { %v1161_v57 = vadd.f32 %v3363_v1, %v4502_v33  ;;  %v1152_v11 = vpop.f32.mrb[17].mxu0 }
 0x514   : > { %v1153_v28 = vadd.f32 %v4502_v33, %v1152_v11  ;;  %v3364_v32 = vpop.f32.mrb[18].mxu0 }
 0x515   : > { %v1164_v51 = vadd.f32 %v3364_v32, %v4502_v33  ;;  %v1155_v29 = vpop.f32.mrb[19].mxu0  ;;  %v1245_v39 = vmul.f32 0.17677669, %v1161_v57 }
 0x516   : > { %v1156_v58 = vadd.f32 %v4502_v33, %v1155_v29  ;;  %v1243_v47 = vmul.f32 0.17677669, %v1153_v28 }
 0x517   : > { %v1246_v49 = vmul.f32 0.17677669, %v1164_v51  ;;  %v4550_v63 = vpack.c.bf16 %v1164_v51, %v1161_v57 }
 0x518   : > { %v1244_v61 = vmul.f32 0.17677669, %v1156_v58  ;;  %v4552_v9 = vpack.c.bf16 %v1156_v58, %v1153_v28 }
 0x519   : > { %v4554_v10 = vpack.c.bf16 %v1246_v49, %v1245_v39 }
 0x51a   : > { %v4556_v36 = vpack.c.bf16 %v1244_v61, %v1243_v47  ;;  %v3367_v4 = vpop.f32.mrb[20].mxu0 }
 0x51b   : > { %v1177_v3 = vadd.f32 %v3367_v4, %v4502_v33  ;;  %v1168_v62 = vpop.f32.mrb[21].mxu0 }
 0x51c   : > { %v1169_v7 = vadd.f32 %v4502_v33, %v1168_v62  ;;  %v3368_v20 = vpop.f32.mrb[22].mxu0 }
 0x51d   : > { %v1180_v16 = vadd.f32 %v3368_v20, %v4502_v33  ;;  %v1171_v25 = vpop.f32.mrb[23].mxu0  ;;  %v1249_v8 = vmul.f32 0.17677669, %v1177_v3 }
 0x51e   : > { %v1172_v40 = vadd.f32 %v4502_v33, %v1171_v25  ;;  %v1247_v26 = vmul.f32 0.17677669, %v1169_v7 }
 0x51f   : > { %v1250_v60 = vmul.f32 0.17677669, %v1180_v16  ;;  %v4562_v48 = vpack.c.bf16 %v1180_v16, %v1177_v3 }
 0x520   : > { %v1248_v59 = vmul.f32 0.17677669, %v1172_v40  ;;  %v4564_v44 = vpack.c.bf16 %v1172_v40, %v1169_v7 }
 0x521   : > { %v4566_v43 = vpack.c.bf16 %v1250_v60, %v1249_v8  ;;  %1329 = vrot.lane.b32.xlu1 %v4562_v48, %s3828_s28 }
 0x522   : > { %v4570_v54 = vpack.c.bf16 %v1248_v59, %v1247_v26  ;;  %v3371_v30 = vpop.f32.mrb[24].mxu0  ;;  %1327 = vrot.lane.b32.xlu0 %v4564_v44, %s3828_s28 }
 0x523   : > { %v1193_v5 = vadd.f32 %v3371_v30, %v4502_v33  ;;  %v1184_v21 = vpop.f32.mrb[25].mxu0 }
 0x524   : > { %v1185_v50 = vadd.f32 %v4502_v33, %v1184_v21  ;;  %v3372_v56 = vpop.f32.mrb[26].mxu0 }
 0x525   : > { %v1196_v37 = vadd.f32 %v3372_v56, %v4502_v33  ;;  %v1187_v2 = vpop.f32.mrb[27].mxu0  ;;  %v1253_v57 = vmul.f32 0.17677669, %v1193_v5 }
 0x526   : > { %v1188_v1 = vadd.f32 %v4502_v33, %v1187_v2  ;;  %1315 = vrot.lane.b32.xlu0 %v4528_v52, %s3828_s28  ;;  %v1251_v32 = vmul.f32 0.17677669, %v1185_v50 }
 0x527   : > { %v1254_v11 = vmul.f32 0.17677669, %v1196_v37  ;;  %v1290_v28 = vpack.c.bf16 %v1196_v37, %v1193_v5 }
 0x528   : > { %v1252_v51 = vmul.f32 0.17677669, %v1188_v1  ;;  %v1289_v29 = vpack.c.bf16 %v1188_v1, %v1185_v50 }
 0x529   : > { %v4580_v58 = vpack.c.bf16 %v1254_v11, %v1253_v57 }
 0x52a   : > { %v4582_v39 = vpack.c.bf16 %v1252_v51, %v1251_v32  ;;  %v3375_v49 = vpop.f32.mrb[28].mxu0  ;;  %1331 = vrot.lane.b32.xlu1 %v1289_v29, %s3828_s28  ;;  %1317 = vrot.lane.b32.xlu0 %v4526_v53, %s3828_s28 }
 0x52b   : > { %v1209_v47 = vadd.f32 %v3375_v49, %v4502_v33  ;;  %v1200_v61 = vpop.f32.mrb[29].mxu0 }
 0x52c   : > { %v1201_v4 = vadd.f32 %v4502_v33, %v1200_v61  ;;  %v3376_v3 = vpop.f32.mrb[30].mxu0 }
 0x52d   : > { %v1212_v62 = vadd.f32 %v3376_v3, %v4502_v33  ;;  %v1203_v7 = vpop.f32.mrb[31].mxu0  ;;  %v1257_v16 = vmul.f32 0.17677669, %v1209_v47 }
 0x52e   : > { %v1204_v20 = vadd.f32 %v4502_v33, %v1203_v7  ;;  %1333 = vrot.lane.b32.xlu1 %v1290_v28, %s3828_s28  ;;  %1319 = vrot.lane.b32.xlu0 %v4540_v42, %s3828_s28  ;;  %v1255_v8 = vmul.f32 0.17677669, %v1201_v4 }
 0x52f   : > { %v1258_v25 = vmul.f32 0.17677669, %v1212_v62  ;;  %v1292_v40 = vpack.c.bf16 %v1212_v62, %v1209_v47 }
 0x530   : > { %v1256_v60 = vmul.f32 0.17677669, %v1204_v20  ;;  %v1291_v26 = vpack.c.bf16 %v1204_v20, %v1201_v4 }
 0x531   : > { %v4594_v59 = vpack.c.bf16 %v1258_v25, %v1257_v16 }
 0x532   : > { %v4596_v30 = vpack.c.bf16 %v1256_v60, %v1255_v8  ;;  %v3379_v5 = vpop.f32.mrb[32].mxu0  ;;  %1335 = vrot.lane.b32.xlu1 %v1291_v26, %s3828_s28  ;;  %1321 = vrot.lane.b32.xlu0 %v4538_v0, %s3828_s28 }
 0x533   : > { %v1225_v21 = vadd.f32 %v3379_v5, %v4502_v33  ;;  %v1216_v50 = vpop.f32.mrb[33].mxu0 }
 0x534   : > { %v1217_v56 = vadd.f32 %v4502_v33, %v1216_v50  ;;  %v3380_v37 = vpop.f32.mrb[34].mxu0 }
 0x535   : > { %v1228_v2 = vadd.f32 %v3380_v37, %v4502_v33  ;;  %v1219_v1 = vpop.f32.mrb[35].mxu0  ;;  %v1261_v11 = vmul.f32 0.17677669, %v1225_v21 }
 0x536   : > { %v1220_v57 = vadd.f32 %v4502_v33, %v1219_v1  ;;  %1337 = vrot.lane.b32.xlu1 %v1292_v40, %s3828_s28  ;;  %1323 = vrot.lane.b32.xlu0 %v4552_v9, %s3828_s28  ;;  %v1259_v49 = vmul.f32 0.17677669, %v1217_v56 }
 0x537   : > { %v1262_v32 = vmul.f32 0.17677669, %v1228_v2  ;;  %v4608_v51 = vpack.c.bf16 %v1228_v2, %v1225_v21 }
 0x538   : > { %v1260_v47 = vmul.f32 0.17677669, %v1220_v57  ;;  %v1293_v61 = vpack.c.bf16 %v1220_v57, %v1217_v56 }
 0x539   : > { %v4610_v4 = vpack.c.bf16 %v1262_v32, %v1261_v11 }
 0x53a   : > { %v4612_v3 = vpack.c.bf16 %v1260_v47, %v1259_v49  ;;  %1339 = vrot.lane.b32.xlu1 %v1293_v61, %s3828_s28  ;;  %1325 = vrot.lane.b32.xlu0 %v4550_v63, %s3828_s28 }
 0x53e   : > { %1341 = vrot.lane.b32.xlu1 %v4608_v51, %s3828_s28  ;;  %2256 = vrot.lane.b32.xlu0 %v4564_v44, %s3829_s29  ;;  %s2871_s28 = sshll.u32 %s5292_s26, 4  ;;  %s5416_s28 = int_to_ptr.vmem [resolvable:$true] %s2871_s28 }
 0x53f   : > { %s3761_s17 = scalar_lea.vmem %s5416_s28, 4096  ;;  %p3768_p0 = scmp.lt.s32.totalorder %s5416_s28, %s3766_s23 }
 0x540   : > { %p3762_p11 = scmp.ne.s32.totalorder %s5416_s28, %s3761_s17  ;;  %p3769_p1 = scmp.lt.s32.totalorder %s3767_s24, %s3761_s17 }
 0x542   : > { %2240 = vrot.lane.b32.xlu1 %v4510_v6, %s3829_s29  ;;  %2258 = vrot.lane.b32.xlu0 %v4562_v48, %s3829_s29  ;;  %p3763_p12 = pnand %p3762_p11, %p3921_p5  ;;  %p3770_p2 = por %p3769_p1, %p3768_p0 }
 0x544   : > { %p3764_p13 = pneg %p3763_p12 }
 0x546   : > { %2242 = vrot.lane.b32.xlu1 %v4508_v12, %s3829_s29  ;;  %2260 = vrot.lane.b32.xlu0 %v1289_v29, %s3829_s29  ;;  %p3771_p3 = pnand %p3770_p2, %p3764_p13 }
 0x54a   : > { %2244 = vrot.lane.b32.xlu1 %v4528_v52, %s3829_s29  ;;  %2262 = vrot.lane.b32.xlu0 %v1290_v28, %s3829_s29 }
 0x54e   : > { %2246 = vrot.lane.b32.xlu1 %v4526_v53, %s3829_s29  ;;  %2264 = vrot.lane.b32.xlu0 %v1291_v26, %s3829_s29 }
 0x552   : > { %2248 = vrot.lane.b32.xlu1 %v4540_v42, %s3829_s29  ;;  %2266 = vrot.lane.b32.xlu0 %v1292_v40, %s3829_s29 }
 0x556   : > { %2250 = vrot.lane.b32.xlu1 %v4538_v0, %s3829_s29  ;;  %2268 = vrot.lane.b32.xlu0 %v1293_v61, %s3829_s29 }
 0x55a   : > { %2252 = vrot.lane.b32.xlu1 %v4552_v9, %s3829_s29 }
 0x573   : > { %v1314_v12 = vpop.permute.xlu1 %1313 }
 0x574   : > { %v1312_v33 = vpop.permute.xlu0 %1311  ;;  %v1395_v0 = vsel %vm406_vm1, %v1314_v12, 0 }
 0x575   : > { %v1392_v53 = vsel %vm406_vm1, %v1312_v33, 0 }
 0x593   : > { %v1330_v52 = vpop.permute.xlu1 %1329 }
 0x594   : > { %v1328_v6 = vpop.permute.xlu0 %1327 }
 0x595   : > { %3445 = vmatprep.subr.msk.bf16.mxu1 %vm406_vm1, %v1328_v6 }
 0x596   : > { %3124 = vmatpush3.bf16.xpose.msra.mxu1 %v1392_v53 }
 0x597   : > { %3446 = vmatprep.subr.msk.bf16.mxu1 %vm406_vm1, %v1330_v52 }
 0x598   : > { %v1316_v42 = vpop.permute.xlu0 %1315 }
 0x599   : > { %v1398_v7 = vsel %vm406_vm1, %v1316_v42, 0 }
 0x59c   : > { %v1332_v48 = vpop.permute.xlu1 %1331  ;;  %v1318_v44 = vpop.permute.xlu0 %1317 }
 0x59d   : > { %v1401_v8 = vsel %vm406_vm1, %v1318_v44, 0 }
 0x59e   : > { %3126 = vmatpush3.bf16.xpose.msra.mxu1 %v1395_v0 }
 0x59f   : > { %3447 = vmatprep.subr.msk.bf16.mxu1 %vm406_vm1, %v1332_v48 }
 0x5a0   : > { %v1334_v9 = vpop.permute.xlu1 %1333  ;;  %v1320_v28 = vpop.permute.xlu0 %1319 }
 0x5a1   : > { %v1404_v50 = vsel %vm406_vm1, %v1320_v28, 0 }
 0x5a4   : > { %v1336_v29 = vpop.permute.xlu1 %1335  ;;  %v1322_v62 = vpop.permute.xlu0 %1321 }
 0x5a5   : > { %v1407_v57 = vsel %vm406_vm1, %v1322_v62, 0 }
 0x5a6   : > { %3128 = vmatpush3.bf16.xpose.msra.mxu1 %v1398_v7 }
 0x5a7   : > { %3448 = vmatprep.subr.msk.bf16.mxu1 %vm406_vm1, %v1334_v9 }
 0x5a8   : > { %v1338_v20 = vpop.permute.xlu1 %1337  ;;  %v1324_v16 = vpop.permute.xlu0 %1323 }
 0x5a9   : > { %v1410_v61 = vsel %vm406_vm1, %v1324_v16, 0 }
 0x5ac   : > { %v1340_v25 = vpop.permute.xlu1 %1339  ;;  %v1326_v40 = vpop.permute.xlu0 %1325 }
 0x5ad   : > { %v1413_v53 = vsel %vm406_vm1, %v1326_v40, 0 }
 0x5ae   : > { %3130 = vmatpush3.bf16.xpose.msra.mxu1 %v1401_v8 }
 0x5af   : > { %3449 = vmatprep.subr.msk.bf16.mxu1 %vm406_vm1, %v1336_v29 }
 0x5b0   : > { %v1342_v60 = vpop.permute.xlu1 %1341  ;;  %v2257_v26 = vpop.permute.xlu0 %2256 }
 0x5b1   : > { %3171 = vmatprep.subr.bf16.mxu0 %v2257_v26 }
 0x5b4   : > { %v2241_v5 = vpop.permute.xlu1 %2240  ;;  %v2259_v21 = vpop.permute.xlu0 %2258 }
 0x5b5   : > { %3172 = vmatpush3.bf16.msra.mxu0 %v2241_v5 }
 0x5b6   : > { %3132 = vmatpush3.bf16.xpose.msra.mxu1 %v1404_v50  ;;  %3173 = vmatprep.subr.bf16.mxu0 %v2259_v21 }
 0x5b7   : > { %3450 = vmatprep.subr.msk.bf16.mxu1 %vm406_vm1, %v1338_v20 }
 0x5b8   : > { %v2243_v56 = vpop.permute.xlu1 %2242  ;;  %v2261_v37 = vpop.permute.xlu0 %2260 }
 0x5b9   : > { %3174 = vmatpush3.bf16.msra.mxu0 %v2243_v56 }
 0x5ba   : > { %3175 = vmatprep.subr.bf16.mxu0 %v2261_v37 }
 0x5bc   : > { %v2245_v2 = vpop.permute.xlu1 %2244  ;;  %v2263_v1 = vpop.permute.xlu0 %2262 }
 0x5bd   : > { %3176 = vmatpush3.bf16.msra.mxu0 %v2245_v2 }
 0x5be   : > { %3134 = vmatpush3.bf16.xpose.msra.mxu1 %v1407_v57  ;;  %3177 = vmatprep.subr.bf16.mxu0 %v2263_v1 }
 0x5bf   : > { %3451 = vmatprep.subr.msk.bf16.mxu1 %vm406_vm1, %v1340_v25 }
 0x5c0   : > { %v2247_v11 = vpop.permute.xlu1 %2246  ;;  %v2265_v32 = vpop.permute.xlu0 %2264 }
 0x5c1   : > { %3178 = vmatpush3.bf16.msra.mxu0 %v2247_v11 }
 0x5c2   : > { %3179 = vmatprep.subr.bf16.mxu0 %v2265_v32 }
 0x5c4   : > { %v2249_v49 = vpop.permute.xlu1 %2248  ;;  %v2267_v47 = vpop.permute.xlu0 %2266 }
 0x5c5   : > { %3180 = vmatpush3.bf16.msra.mxu0 %v2249_v49 }
 0x5c6   : > { %3136 = vmatpush3.bf16.xpose.msra.mxu1 %v1410_v61  ;;  %3181 = vmatprep.subr.bf16.mxu0 %v2267_v47 }
 0x5c7   : > { %3452 = vmatprep.subr.msk.bf16.mxu1 %vm406_vm1, %v1342_v60 }
 0x5c8   : > { %v2251_v33 = vpop.permute.xlu1 %2250  ;;  %v2269_v12 = vpop.permute.xlu0 %2268 }
 0x5c9   : > { %3182 = vmatpush3.bf16.msra.mxu0 %v2251_v33 }
 0x5ca   : > { %3183 = vmatprep.subr.bf16.mxu0 %v2269_v12 }
 0x5cc   : > { %v2253_v6 = vpop.permute.xlu1 %2252 }
 0x5cd   : > { %3184 = vmatpush3.bf16.msra.mxu0 %v2253_v6 }
 0x5ce   : > { %3138 = vmatpush3.bf16.xpose.msra.mxu1 %v1413_v53 }
 0x5d5   : > { %3140 = vmatmul.mubr.msk.bf16.vlgmr.msra.gmra.mrb[4].mxu1 %vm406_vm1, %v4516_v46 }
 0x5d6   : > { %3141 = vmatprep.mubr.msk.bf16.mxu1 %vm406_vm1, %v4512_v23 }
 0x5dd   : > { %3142 = vmatmul.mubr.msk.bf16.gmra.mrb[8].mxu1 %vm406_vm1, %v4512_v23 }
 0x5de   : > { %3143 = vmatprep.mubr.msk.bf16.mxu1 %vm406_vm1, %v4532_v35 }
 0x5e5   : > { %3144 = vmatmul.mubr.msk.bf16.gmra.mrb[12].mxu1 %vm406_vm1, %v4532_v35 }
 0x5e6   : > { %3145 = vmatprep.mubr.msk.bf16.mxu1 %vm406_vm1, %v4530_v55 }
 0x5ed   : > { %3146 = vmatmul.mubr.msk.bf16.gmra.mrb[16].mxu1 %vm406_vm1, %v4530_v55 }
 0x5ee   : > { %3147 = vmatprep.mubr.msk.bf16.mxu1 %vm406_vm1, %v4544_v22 }
 0x5f5   : > { %3148 = vmatmul.mubr.msk.bf16.gmra.mrb[20].mxu1 %vm406_vm1, %v4544_v22 }
 0x5f6   : > { %3149 = vmatprep.mubr.msk.bf16.mxu1 %vm406_vm1, %v4542_v19 }
 0x5fd   : > { %3150 = vmatmul.mubr.msk.bf16.gmra.mrb[24].mxu1 %vm406_vm1, %v4542_v19 }
 0x5fe   : > { %3151 = vmatprep.mubr.msk.bf16.mxu1 %vm406_vm1, %v4556_v36 }
 0x605   : > { %3152 = vmatmul.mubr.msk.bf16.gmra.mrb[28].mxu1 %vm406_vm1, %v4556_v36 }
 0x606   : > { %3153 = vmatprep.mubr.msk.bf16.mxu1 %vm406_vm1, %v4554_v10 }
 0x60d   : > { %3154 = vmatmul.mubr.msk.bf16.gmra.mrb[32].mxu1 %vm406_vm1, %v4554_v10 }
 0x60e   : > { %3155 = vmatprep.mubr.msk.bf16.mxu1 %vm406_vm1, %v4570_v54 }
 0x615   : > { %3156 = vmatmul.mubr.msk.bf16.gmra.mrb[36].mxu1 %vm406_vm1, %v4570_v54 }
 0x616   : > { %3157 = vmatprep.mubr.msk.bf16.mxu1 %vm406_vm1, %v4566_v43 }
 0x61d   : > { %3158 = vmatmul.mubr.msk.bf16.gmra.mrb[40].mxu1 %vm406_vm1, %v4566_v43 }
 0x61e   : > { %3159 = vmatprep.mubr.msk.bf16.mxu1 %vm406_vm1, %v4582_v39 }
 0x625   : > { %3160 = vmatmul.mubr.msk.bf16.gmra.mrb[44].mxu1 %vm406_vm1, %v4582_v39 }
 0x626   : > { %3161 = vmatprep.mubr.msk.bf16.mxu1 %vm406_vm1, %v4580_v58 }
 0x62d   : > { %3162 = vmatmul.mubr.msk.bf16.gmra.mrb[48].mxu1 %vm406_vm1, %v4580_v58 }
 0x62e   : > { %3163 = vmatprep.mubr.msk.bf16.mxu1 %vm406_vm1, %v4596_v30 }
 0x635   : > { %3164 = vmatmul.mubr.msk.bf16.gmra.mrb[52].mxu1 %vm406_vm1, %v4596_v30 }
 0x636   : > { %3165 = vmatprep.mubr.msk.bf16.mxu1 %vm406_vm1, %v4594_v59 }
 0x63d   : > { %3166 = vmatmul.mubr.msk.bf16.gmra.mrb[56].mxu1 %vm406_vm1, %v4594_v59 }
 0x63e   : > { %3167 = vmatprep.mubr.msk.bf16.mxu1 %vm406_vm1, %v4612_v3 }
 0x645   : > { %3168 = vmatmul.mubr.msk.bf16.gmra.mrb[60].mxu1 %vm406_vm1, %v4612_v3 }
 0x646   : > { %3169 = vmatprep.mubr.msk.bf16.mxu1 %vm406_vm1, %v4610_v4 }
 0x64d   : > { %3170 = vmatmul.mubr.msk.bf16.gmra.mrb[64].mxu1 %vm406_vm1, %v4610_v4 }
 0x6a8   : > { %v4720_v23 = vpop.f32.mrb[4].mxu1 }
 0x6a9   : > { %v4722_v46 = vpop.f32.mrb[5].mxu1 }
 0x6aa   : > { %v4724_v55 = vpop.f32.mrb[6].mxu1  ;;  %v1632_v35 = vmax.f32 %v4720_v23, %v4722_v46 }
 0x6ab   : > { %v4728_v19 = vpop.f32.mrb[7].mxu1 }
 0x6ac   : > { %1633 = vmax.xlane.f32.xlu0 %v1632_v35  ;;  %v1635_v22 = vmax.f32 %v4724_v55, %v4728_v19 }
 0x6ae   : > { %1636 = vmax.xlane.f32.xlu1 %v1635_v22 }
 0x6b0   : > { %v4732_v10 = vpop.f32.mrb[8].mxu1 }
 0x6b1   : > { %v4734_v36 = vpop.f32.mrb[9].mxu1 }
 0x6b2   : > { %v4736_v43 = vpop.f32.mrb[10].mxu1  ;;  %v1638_v54 = vmax.f32 %v4732_v10, %v4734_v36 }
 0x6b3   : > { %v4740_v58 = vpop.f32.mrb[11].mxu1 }
 0x6b4   : > { %1639 = vmax.xlane.f32.xlu0 %v1638_v54  ;;  %v1641_v39 = vmax.f32 %v4736_v43, %v4740_v58 }
 0x6b6   : > { %1642 = vmax.xlane.f32.xlu1 %v1641_v39 }
 0x6b8   : > { %v4744_v59 = vpop.f32.mrb[12].mxu1 }
 0x6b9   : > { %v4746_v30 = vpop.f32.mrb[13].mxu1 }
 0x6ba   : > { %v4748_v4 = vpop.f32.mrb[14].mxu1  ;;  %v1644_v3 = vmax.f32 %v4744_v59, %v4746_v30 }
 0x6bb   : > { %v4752_v52 = vpop.f32.mrb[15].mxu1 }
 0x6bc   : > { %1645 = vmax.xlane.f32.xlu0 %v1644_v3  ;;  %v1647_v42 = vmax.f32 %v4748_v4, %v4752_v52 }
 0x6be   : > { %1648 = vmax.xlane.f32.xlu1 %v1647_v42 }
 0x6c0   : > { %v4756_v48 = vpop.f32.mrb[16].mxu1 }
 0x6c1   : > { %v4758_v44 = vpop.f32.mrb[17].mxu1 }
 0x6c2   : > { %v4760_v0 = vpop.f32.mrb[18].mxu1  ;;  %v1650_v9 = vmax.f32 %v4756_v48, %v4758_v44 }
 0x6c3   : > { %v4764_v28 = vpop.f32.mrb[19].mxu1 }
 0x6c4   : > { %1651 = vmax.xlane.f32.xlu0 %v1650_v9  ;;  %v1653_v29 = vmax.f32 %v4760_v0, %v4764_v28 }
 0x6c6   : > { %1654 = vmax.xlane.f32.xlu1 %v1653_v29 }
 0x6c8   : > { %v4768_v62 = vpop.f32.mrb[20].mxu1 }
 0x6c9   : > { %v4770_v7 = vpop.f32.mrb[21].mxu1 }
 0x6ca   : > { %v4772_v20 = vpop.f32.mrb[22].mxu1  ;;  %v1656_v16 = vmax.f32 %v4768_v62, %v4770_v7 }
 0x6cb   : > { %v4776_v25 = vpop.f32.mrb[23].mxu1 }
 0x6cc   : > { %v1659_v40 = vmax.f32 %v4772_v20, %v4776_v25 }
 0x6d0   : > { %v4780_v8 = vpop.f32.mrb[24].mxu1 }
 0x6d1   : > { %v4782_v60 = vpop.f32.mrb[25].mxu1 }
 0x6d2   : > { %v4784_v26 = vpop.f32.mrb[26].mxu1  ;;  %v1662_v5 = vmax.f32 %v4780_v8, %v4782_v60 }
 0x6d3   : > { %v4788_v21 = vpop.f32.mrb[27].mxu1 }
 0x6d4   : > { %v1665_v50 = vmax.f32 %v4784_v26, %v4788_v21 }
 0x6d7   : > { %2254 = vrot.lane.b32.xlu1 %v4550_v63, %s3829_s29 }
 0x6d8   : > { %v4794_v56 = vpop.f32.mrb[28].mxu1 }
 0x6d9   : > { %v4796_v37 = vpop.f32.mrb[29].mxu1 }
 0x6da   : > { %2270 = vrot.lane.b32.xlu0 %v4608_v51, %s3829_s29  ;;  %v4800_v2 = vpop.f32.mrb[30].mxu1  ;;  %v1668_v1 = vmax.f32 %v4794_v56, %v4796_v37 }
 0x6db   : > { %v4804_v57 = vpop.f32.mrb[31].mxu1 }
 0x6dc   : > { %v1671_v11 = vmax.f32 %v4800_v2, %v4804_v57 }
 0x6e0   : > { %v4808_v32 = vpop.f32.mrb[32].mxu1 }
 0x6e1   : > { %v4810_v63 = vpop.f32.mrb[33].mxu1 }
 0x6e2   : > { %v4812_v49 = vpop.f32.mrb[34].mxu1  ;;  %v1674_v47 = vmax.f32 %v4808_v32, %v4810_v63 }
 0x6e3   : > { %v4816_v51 = vpop.f32.mrb[35].mxu1 }
 0x6e4   : > { %v1677_v61 = vmax.f32 %v4812_v49, %v4816_v51 }
 0x6e8   : > { %v4820_v33 = vpop.f32.mrb[36].mxu1 }
 0x6e9   : > { %v4822_v12 = vpop.f32.mrb[37].mxu1 }
 0x6ea   : > { %v4824_v6 = vpop.f32.mrb[38].mxu1  ;;  %v1680_v53 = vmax.f32 %v4820_v33, %v4822_v12 }
 0x6eb   : > { %v4828_v35 = vpop.f32.mrb[39].mxu1 }
 0x6ec   : > { %v1683_v22 = vmax.f32 %v4824_v6, %v4828_v35 }
 0x6f0   : > { %v4832_v54 = vpop.f32.mrb[40].mxu1 }
 0x6f1   : > { %v4834_v39 = vpop.f32.mrb[41].mxu1 }
 0x6f2   : > { %v4836_v3 = vpop.f32.mrb[42].mxu1  ;;  %v1686_v42 = vmax.f32 %v4832_v54, %v4834_v39 }
 0x6f3   : > { %v4840_v9 = vpop.f32.mrb[43].mxu1 }
 0x6f4   : > { %v1689_v29 = vmax.f32 %v4836_v3, %v4840_v9 }
 0x6f8   : > { %v4844_v38 = vpop.f32.mrb[44].mxu1 }
 0x6f9   : > { %1657 = vmax.xlane.f32.xlu0 %v1656_v16  ;;  %v4846_v45 = vpop.f32.mrb[45].mxu1 }
 0x6fa   : > { %v4848_v34 = vpop.f32.mrb[46].mxu1  ;;  %v1692_v41 = vmax.f32 %v4844_v38, %v4846_v45 }
 0x6fb   : > { %1660 = vmax.xlane.f32.xlu1 %v1659_v40  ;;  %v4852_v24 = vpop.f32.mrb[47].mxu1 }
 0x6fc   : > { %v1695_v31 = vmax.f32 %v4848_v34, %v4852_v24 }
 0x6fd   : > { %1663 = vmax.xlane.f32.xlu0 %v1662_v5 }
 0x6ff   : > { %1669 = vmax.xlane.f32.xlu1 %v1668_v1 }
 0x700   : > { %v4856_v18 = vpop.f32.mrb[48].mxu1 }
 0x701   : > { %1666 = vmax.xlane.f32.xlu0 %v1665_v50  ;;  %v4858_v27 = vpop.f32.mrb[49].mxu1 }
 0x702   : > { %v4860_v16 = vpop.f32.mrb[50].mxu1  ;;  %v1698_v14 = vmax.f32 %v4856_v18, %v4858_v27 }
 0x703   : > { %5561 = vst [vmem:[#allocation37_spill] sm:$0xff] %v4860_v16  ;;  %1675 = vmax.xlane.f32.xlu1 %v1674_v47  ;;  %v4864_v17 = vpop.f32.mrb[51].mxu1 }
 0x704   : > { %5562 = vst [vmem:[#allocation38_spill] sm:$0xff] %v4864_v17  ;;  %v1701_v40 = vmax.f32 %v4860_v16, %v4864_v17 }
 0x705   : > { %1672 = vmax.xlane.f32.xlu0 %v1671_v11 }
 0x707   : > { %1681 = vmax.xlane.f32.xlu1 %v1680_v53 }
 0x708   : > { %v4868_v5 = vpop.f32.mrb[52].mxu1 }
 0x709   : > { %1678 = vmax.xlane.f32.xlu0 %v1677_v61  ;;  %v4870_v1 = vpop.f32.mrb[53].mxu1 }
 0x70a   : > { %v4872_v50 = vpop.f32.mrb[54].mxu1  ;;  %v1704_v13 = vmax.f32 %v4868_v5, %v4870_v1 }
 0x70b   : > { %5563 = vst [vmem:[#allocation39_spill] sm:$0xff] %v4872_v50  ;;  %1687 = vmax.xlane.f32.xlu1 %v1686_v42  ;;  %v4876_v15 = vpop.f32.mrb[55].mxu1 }
 0x70c   : > { %5564 = vst [vmem:[#allocation40_spill] sm:$0xff] %v4876_v15  ;;  %v1707_v47 = vmax.f32 %v4872_v50, %v4876_v15 }
 0x70d   : > { %1684 = vmax.xlane.f32.xlu0 %v1683_v22 }
 0x70f   : > { %1693 = vmax.xlane.f32.xlu1 %v1692_v41 }
 0x710   : > { %v4880_v11 = vpop.f32.mrb[56].mxu1 }
 0x711   : > { %1690 = vmax.xlane.f32.xlu0 %v1689_v29  ;;  %v4882_v53 = vpop.f32.mrb[57].mxu1 }
 0x712   : > { %v4884_v61 = vpop.f32.mrb[58].mxu1  ;;  %v1710_v17 = vmax.f32 %v4880_v11, %v4882_v53 }
 0x713   : > { %5565 = vst [vmem:[#allocation41_spill] sm:$0xff] %v4884_v61  ;;  %1699 = vmax.xlane.f32.xlu1 %v1698_v14  ;;  %v4888_v16 = vpop.f32.mrb[59].mxu1 }
 0x714   : > { %5566 = vst [vmem:[#allocation42_spill] sm:$0xff] %v4888_v16  ;;  %v1713_v42 = vmax.f32 %v4884_v61, %v4888_v16 }
 0x715   : > { %1696 = vmax.xlane.f32.xlu0 %v1695_v31 }
 0x717   : > { %1705 = vmax.xlane.f32.xlu1 %v1704_v13 }
 0x718   : > { %v4892_v22 = vpop.f32.mrb[60].mxu1 }
 0x719   : > { %1702 = vmax.xlane.f32.xlu0 %v1701_v40  ;;  %v4894_v41 = vpop.f32.mrb[61].mxu1 }
 0x71a   : > { %5567 = vst [vmem:[#allocation43_spill] sm:$0xff] %v4894_v41  ;;  %v4896_v29 = vpop.f32.mrb[62].mxu1  ;;  %v1716_v15 = vmax.f32 %v4892_v22, %v4894_v41 }
 0x71b   : > { %5568 = vst [vmem:[#allocation44_spill] sm:$0xff] %v4896_v29  ;;  %1711 = vmax.xlane.f32.xlu1 %v1710_v17  ;;  %v4900_v50 = vpop.f32.mrb[63].mxu1 }
 0x71c   : > { %5569 = vst [vmem:[#allocation45_spill] sm:$0xff] %v4900_v50  ;;  %v1719_v14 = vmax.f32 %v4896_v29, %v4900_v50 }
 0x71d   : > { %1708 = vmax.xlane.f32.xlu0 %v1707_v47 }
 0x71f   : > { %1717 = vmax.xlane.f32.xlu1 %v1716_v15 }
 0x720   : > { %v4904_v31 = vpop.f32.mrb[64].mxu1 }
 0x721   : > { %5570 = vst [vmem:[#allocation46_spill] sm:$0xff] %v4904_v31  ;;  %1714 = vmax.xlane.f32.xlu0 %v1713_v42  ;;  %v4906_v13 = vpop.f32.mrb[65].mxu1 }
 0x722   : > { %5571 = vst [vmem:[#allocation47_spill] sm:$0xff] %v4906_v13  ;;  %v4908_v40 = vpop.f32.mrb[66].mxu1  ;;  %v1722_v16 = vmax.f32 %v4904_v31, %v4906_v13 }
 0x723   : > { %v4912_v61 = vpop.f32.mrb[67].mxu1 }
 0x724   : > { %5572 = vst [vmem:[#allocation48_spill] sm:$0xff] %v4912_v61  ;;  %1723 = vmax.xlane.f32.xlu1 %v1722_v16  ;;  %v1725_v17 = vmax.f32 %v4908_v40, %v4912_v61 }
 0x725   : > { %1720 = vmax.xlane.f32.xlu0 %v1719_v14 }
 0x729   : > { %1726 = vmax.xlane.f32.xlu0 %v1725_v17 }
 0x739   : > { %v1634_v47 = vpop.xlane.xlu0 %1633 }
 0x73a   : > { %v4916_v15 = vmax.f32 %v1634_v47, -1e+30 }
 0x73b   : > { %v1637_v50 = vpop.xlane.xlu1 %1636 }
 0x73c   : > { %v1856_v42 = vsub.f32 %v4720_v23, %v4916_v15  ;;  %v1857_v29 = vsub.f32 %v4722_v46, %v4916_v15  ;;  %v4922_v41 = vmax.f32 %v1637_v50, -1e+30 }
 0x73e   : > { %v1920_v13 = vmul.f32 1.442695, %v1856_v42  ;;  %v1922_v31 = vmul.f32 1.442695, %v1857_v29  ;;  %v1858_v16 = vsub.f32 %v4724_v55, %v4922_v41  ;;  %v1859_v14 = vsub.f32 %v4728_v19, %v4922_v41 }
 0x740   : > { %3505 = vpow2.f32 %v1920_v13  ;;  %v1924_v17 = vmul.f32 1.442695, %v1858_v16  ;;  %v1926_v47 = vmul.f32 1.442695, %v1859_v14 }
 0x741   : > { %3507 = vpow2.f32 %v1922_v31  ;;  %v1640_v61 = vpop.xlane.xlu0 %1639 }
 0x742   : > { %3509 = vpow2.f32 %v1924_v17  ;;  %v4928_v23 = vmax.f32 %v1640_v61, -1e+30 }
 0x743   : > { %3511 = vpow2.f32 %v1926_v47  ;;  %v1643_v46 = vpop.xlane.xlu1 %1642 }
 0x744   : > { %v1860_v50 = vsub.f32 %v4732_v10, %v4928_v23  ;;  %v1861_v29 = vsub.f32 %v4734_v36, %v4928_v23  ;;  %v4934_v55 = vmax.f32 %v1643_v46, -1e+30 }
 0x746   : > { %5573 = vst [vmem:[#allocation49_spill] sm:$0xff] %v4934_v55  ;;  %v1928_v42 = vmul.f32 1.442695, %v1860_v50  ;;  %v1930_v19 = vmul.f32 1.442695, %v1861_v29  ;;  %v1862_v31 = vsub.f32 %v4736_v43, %v4934_v55  ;;  %v1863_v13 = vsub.f32 %v4740_v58, %v4934_v55 }
 0x748   : > { %3513 = vpow2.f32 %v1928_v42  ;;  %v1932_v61 = vmul.f32 1.442695, %v1862_v31  ;;  %v1934_v16 = vmul.f32 1.442695, %v1863_v13 }
 0x749   : > { %3515 = vpow2.f32 %v1930_v19  ;;  %v1646_v14 = vpop.xlane.xlu0 %1645 }
 0x74a   : > { %v3506_v17 = vpop.eup %3505  ;;  %3517 = vpow2.f32 %v1932_v61  ;;  %v4940_v10 = vmax.f32 %v1646_v14, -1e+30 }
 0x74b   : > { %v3508_v36 = vpop.eup %3507  ;;  %3519 = vpow2.f32 %v1934_v16  ;;  %v1649_v47 = vpop.xlane.xlu1 %1648 }
 0x74c   : > { %5574 = vst [vmem:[#allocation50_spill] sm:$0xff] %v4940_v10  ;;  %v3510_v46 = vpop.eup %3509  ;;  %v1864_v50 = vsub.f32 %v4744_v59, %v4940_v10  ;;  %v1865_v43 = vsub.f32 %v4746_v30, %v4940_v10  ;;  %v4946_v58 = vmax.f32 %v1649_v47, -1e+30  ;;  %v2080_v42 = vadd.f32 %v3508_v36, %v3506_v17 }
 0x74d   : > { %v3512_v29 = vpop.eup %3511  ;;  %v2208_v19 = vpack.c.bf16 %v3510_v46, %v3506_v17 }
 0x74e   : > { %v1936_v31 = vmul.f32 1.442695, %v1864_v50  ;;  %v1938_v13 = vmul.f32 1.442695, %v1865_v43  ;;  %v1866_v61 = vsub.f32 %v4748_v4, %v4946_v58  ;;  %v1867_v16 = vsub.f32 %v4752_v52, %v4946_v58  ;;  %2081 = vadd.xlane.f32.xlu1 %v2080_v42 }
 0x74f   : > { %v2209_v14 = vpack.c.bf16 %v3512_v29, %v3508_v36  ;;  %v2083_v55 = vadd.f32 %v3512_v29, %v3510_v46 }
 0x750   : > { %3521 = vpow2.f32 %v1936_v31  ;;  %v1940_v59 = vmul.f32 1.442695, %v1866_v61  ;;  %v1942_v30 = vmul.f32 1.442695, %v1867_v16 }
 0x751   : > { %3523 = vpow2.f32 %v1938_v13  ;;  %2320 = vmatprep.mubr.bf16.mxu0 %v2209_v14  ;;  %2084 = vadd.xlane.f32.xlu0 %v2083_v55  ;;  %v1652_v47 = vpop.xlane.xlu0 %1651 }
 0x752   : > { %v3514_v10 = vpop.eup %3513  ;;  %3525 = vpow2.f32 %v1940_v59  ;;  %v4952_v17 = vmax.f32 %v1652_v47, -1e+30 }
 0x753   : > { %v3516_v50 = vpop.eup %3515  ;;  %3527 = vpow2.f32 %v1942_v30  ;;  %v1655_v4 = vpop.xlane.xlu1 %1654 }
 0x754   : > { %v3518_v43 = vpop.eup %3517  ;;  %v1868_v52 = vsub.f32 %v4756_v48, %v4952_v17  ;;  %v1869_v36 = vsub.f32 %v4758_v44, %v4952_v17  ;;  %v4958_v46 = vmax.f32 %v1655_v4, -1e+30  ;;  %v2086_v55 = vadd.f32 %v3516_v50, %v3514_v10 }
 0x755   : > { %v3520_v29 = vpop.eup %3519  ;;  %v2271_v42 = vpop.permute.xlu0 %2270  ;;  %v2210_v31 = vpack.c.bf16 %v3518_v43, %v3514_v10 }
 0x756   : > { %v1944_v13 = vmul.f32 1.442695, %v1868_v52  ;;  %v1946_v61 = vmul.f32 1.442695, %v1869_v36  ;;  %v1870_v16 = vsub.f32 %v4760_v0, %v4958_v46  ;;  %3185 = vmatprep.subr.bf16.mxu0 %v2271_v42  ;;  %v1871_v14 = vsub.f32 %v4764_v28, %v4958_v46  ;;  %2087 = vadd.xlane.f32.xlu1 %v2086_v55 }
 0x757   : > { %v2255_v48 = vpop.permute.xlu1 %2254  ;;  %v2089_v59 = vadd.f32 %v3520_v29, %v3518_v43  ;;  %v2211_v30 = vpack.c.bf16 %v3520_v29, %v3516_v50 }
 0x758   : > { %3529 = vpow2.f32 %v1944_v13  ;;  %v1948_v44 = vmul.f32 1.442695, %v1870_v16  ;;  %3186 = vmatpush3.bf16.msra.mxu0 %v2255_v48  ;;  %v1950_v47 = vmul.f32 1.442695, %v1871_v14 }
 0x759   : > { %3531 = vpow2.f32 %v1946_v61  ;;  %2090 = vadd.xlane.f32.xlu0 %v2089_v59 }
 0x75a   : > { %v3522_v10 = vpop.eup %3521  ;;  %3533 = vpow2.f32 %v1948_v44 }
 0x75b   : > { %v3524_v4 = vpop.eup %3523  ;;  %3535 = vpow2.f32 %v1950_v47  ;;  %2321 = vmatmul.mubr.bf16.vlgmr.msra.gmra.mrb[36].mxu0 %v2208_v19 }
 0x75c   : > { %v3526_v0 = vpop.eup %3525  ;;  %2328 = vmatprep.mubr.bf16.mxu0 %v2211_v30  ;;  %v2092_v52 = vadd.f32 %v3524_v4, %v3522_v10 }
 0x75d   : > { %v3528_v36 = vpop.eup %3527  ;;  %v2212_v28 = vpack.c.bf16 %v3526_v0, %v3522_v10 }
 0x75e   : > { %2093 = vadd.xlane.f32.xlu1 %v2092_v52  ;;  %v2095_v42 = vadd.f32 %v3528_v36, %v3526_v0  ;;  %v2213_v43 = vpack.c.bf16 %v3528_v36, %v3524_v4 }
 0x760   : > { %2096 = vadd.xlane.f32.xlu0 %v2095_v42 }
 0x762   : > { %v3530_v50 = vpop.eup %3529 }
 0x763   : > { %v3532_v29 = vpop.eup %3531  ;;  %2329 = vmatmul.mubr.bf16.gmra.mrb[40].mxu0 %v2210_v31 }
 0x764   : > { %v3534_v55 = vpop.eup %3533  ;;  %2336 = vmatprep.mubr.bf16.mxu0 %v2213_v43  ;;  %v2098_v13 = vadd.f32 %v3532_v29, %v3530_v50 }
 0x765   : > { %v3536_v61 = vpop.eup %3535  ;;  %v2214_v16 = vpack.c.bf16 %v3534_v55, %v3530_v50 }
 0x766   : > { %2099 = vadd.xlane.f32.xlu1 %v2098_v13  ;;  %v2101_v14 = vadd.f32 %v3536_v61, %v3534_v55  ;;  %v2215_v19 = vpack.c.bf16 %v3536_v61, %v3532_v29 }
 0x768   : > { %2102 = vadd.xlane.f32.xlu0 %v2101_v14 }
 0x76b   : > { %2337 = vmatmul.mubr.bf16.gmra.mrb[44].mxu0 %v2212_v28 }
 0x76c   : > { %2344 = vmatprep.mubr.bf16.mxu0 %v2215_v19 }
 0x773   : > { %2345 = vmatmul.mubr.bf16.gmra.mrb[48].mxu0 %v2214_v16 }
 0x786   : > { %v1658_v48 = vpop.xlane.xlu0 %1657 }
 0x787   : > { %v4964_v59 = vmax.f32 %v1658_v48, -1e+30 }
 0x788   : > { %v1661_v30 = vpop.xlane.xlu1 %1660 }
 0x789   : > { %v1872_v44 = vsub.f32 %v4768_v62, %v4964_v59  ;;  %v4968_v31 = vmax.f32 %v1661_v30, -1e+30  ;;  %v1873_v47 = vsub.f32 %v4770_v7, %v4964_v59 }
 0x78a   : > { %v1664_v10 = vpop.xlane.xlu0 %1663 }
 0x78b   : > { %v1874_v4 = vsub.f32 %v4772_v20, %v4968_v31  ;;  %v1875_v0 = vsub.f32 %v4776_v25, %v4968_v31  ;;  %v4976_v52 = vmax.f32 %v1664_v10, -1e+30  ;;  %v1952_v28 = vmul.f32 1.442695, %v1872_v44 }
 0x78c   : > { %v1670_v36 = vpop.xlane.xlu1 %1669  ;;  %v1954_v43 = vmul.f32 1.442695, %v1873_v47 }
 0x78d   : > { %v4978_v42 = vmax.f32 %v1670_v36, -1e+30  ;;  %v1958_v50 = vmul.f32 1.442695, %v1875_v0  ;;  %v1876_v29 = vsub.f32 %v4780_v8, %v4976_v52  ;;  %v1877_v7 = vsub.f32 %v4782_v60, %v4976_v52 }
 0x78e   : > { %v1667_v62 = vpop.xlane.xlu0 %1666  ;;  %v1956_v55 = vmul.f32 1.442695, %v1874_v4  ;;  %3537 = vpow2.f32 %v1952_v28 }
 0x78f   : > { %v1880_v20 = vsub.f32 %v4794_v56, %v4978_v42  ;;  %v1960_v13 = vmul.f32 1.442695, %v1876_v29  ;;  %v1881_v61 = vsub.f32 %v4796_v37, %v4978_v42  ;;  %3539 = vpow2.f32 %v1954_v43 }
 0x790   : > { %v1676_v25 = vpop.xlane.xlu1 %1675  ;;  %v1962_v16 = vmul.f32 1.442695, %v1877_v7  ;;  %v4988_v14 = vmax.f32 %v1667_v62, -1e+30  ;;  %3541 = vpow2.f32 %v1958_v50 }
 0x791   : > { %v1968_v8 = vmul.f32 1.442695, %v1880_v20  ;;  %v4990_v48 = vmax.f32 %v1676_v25, -1e+30  ;;  %3543 = vpow2.f32 %v1956_v55  ;;  %v1970_v37 = vmul.f32 1.442695, %v1881_v61 }
 0x792   : > { %v1673_v19 = vpop.xlane.xlu0 %1672  ;;  %v1878_v60 = vsub.f32 %v4784_v26, %v4988_v14  ;;  %v1879_v56 = vsub.f32 %v4788_v21, %v4988_v14  ;;  %3545 = vpow2.f32 %v1960_v13 }
 0x793   : > { %v4996_v30 = vmax.f32 %v1673_v19, -1e+30  ;;  %v1884_v47 = vsub.f32 %v4808_v32, %v4990_v48  ;;  %v1885_v10 = vsub.f32 %v4810_v63, %v4990_v48  ;;  %3547 = vpow2.f32 %v1962_v16 }
 0x794   : > { %v1682_v44 = vpop.xlane.xlu1 %1681  ;;  %v1964_v4 = vmul.f32 1.442695, %v1878_v60  ;;  %3549 = vpow2.f32 %v1968_v8  ;;  %v1966_v36 = vmul.f32 1.442695, %v1879_v56 }
 0x795   : > { %v1976_v26 = vmul.f32 1.442695, %v1884_v47  ;;  %v1882_v21 = vsub.f32 %v4800_v2, %v4996_v30  ;;  %v1883_v28 = vsub.f32 %v4804_v57, %v4996_v30  ;;  %v5006_v43 = vmax.f32 %v1682_v44, -1e+30 }
 0x796   : > { %v1679_v0 = vpop.xlane.xlu0 %1678  ;;  %3551 = vpow2.f32 %v1970_v37  ;;  %v1978_v32 = vmul.f32 1.442695, %v1885_v10 }
 0x797   : > { %v5008_v50 = vmax.f32 %v1679_v0, -1e+30  ;;  %3553 = vpow2.f32 %v1964_v4  ;;  %v1974_v63 = vmul.f32 1.442695, %v1883_v28  ;;  %v1888_v55 = vsub.f32 %v4820_v33, %v5006_v43 }
 0x798   : > { %v1688_v62 = vpop.xlane.xlu1 %1687  ;;  %v3538_v7 = vpop.eup %3537  ;;  %3555 = vpow2.f32 %v1966_v36  ;;  %v1889_v2 = vsub.f32 %v4822_v12, %v5006_v43  ;;  %v1972_v25 = vmul.f32 1.442695, %v1882_v21 }
 0x799   : > { %v5014_v20 = vmax.f32 %v1688_v62, -1e+30  ;;  %v3540_v57 = vpop.eup %3539  ;;  %3557 = vpow2.f32 %v1976_v26  ;;  %v1886_v13 = vsub.f32 %v4812_v49, %v5008_v50  ;;  %v1887_v61 = vsub.f32 %v4816_v51, %v5008_v50 }
 0x79a   : > { %v1685_v29 = vpop.xlane.xlu0 %1684  ;;  %v3542_v19 = vpop.eup %3541  ;;  %3559 = vpow2.f32 %v1978_v32  ;;  %v1984_v8 = vmul.f32 1.442695, %v1888_v55  ;;  %v1986_v33 = vmul.f32 1.442695, %v1889_v2  ;;  %v2104_v49 = vadd.f32 %v3540_v57, %v3538_v7 }
 0x79b   : > { %v3544_v60 = vpop.eup %3543  ;;  %3561 = vpow2.f32 %v1974_v63  ;;  %v1980_v44 = vmul.f32 1.442695, %v1886_v13  ;;  %v1892_v37 = vsub.f32 %v4832_v54, %v5014_v20  ;;  %v5024_v47 = vmax.f32 %v1685_v29, -1e+30 }
 0x79c   : > { %v1694_v16 = vpop.xlane.xlu1 %1693  ;;  %v5020_v12 = vpop.eup %3545  ;;  %3563 = vpow2.f32 %v1972_v25  ;;  %v1982_v51 = vmul.f32 1.442695, %v1887_v61  ;;  %v1893_v4 = vsub.f32 %v4834_v39, %v5014_v20  ;;  %v2217_v0 = vpack.c.bf16 %v3542_v19, %v3540_v57  ;;  %2105 = vadd.xlane.f32.xlu1 %v2104_v49 }
 0x79d   : > { %v3548_v10 = vpop.eup %3547  ;;  %3565 = vpow2.f32 %v1984_v8  ;;  %v1890_v21 = vsub.f32 %v4824_v6, %v5024_v47  ;;  %v1891_v54 = vsub.f32 %v4828_v35, %v5024_v47  ;;  %v5034_v28 = vmax.f32 %v1694_v16, -1e+30 }
 0x79e   : > { %v1691_v56 = vpop.xlane.xlu0 %1690  ;;  %v5028_v26 = vpop.eup %3549  ;;  %3567 = vpow2.f32 %v1986_v33  ;;  %2352 = vmatprep.mubr.bf16.mxu0 %v2217_v0  ;;  %v2107_v62 = vadd.f32 %v3544_v60, %v3542_v19  ;;  %v1992_v39 = vmul.f32 1.442695, %v1892_v37  ;;  %v2216_v29 = vpack.c.bf16 %v3544_v60, %v3538_v7 }
 0x79f   : > { %3569 = vpow2.f32 %v1980_v44  ;;  %v1994_v2 = vmul.f32 1.442695, %v1893_v4  ;;  %v1988_v57 = vmul.f32 1.442695, %v1890_v21  ;;  %v1896_v25 = vsub.f32 %v4844_v38, %v5034_v28 }
 0x7a0   : > { %v1700_v36 = vpop.xlane.xlu1 %1699  ;;  %v5036_v63 = vpop.eup %3551  ;;  %3571 = vpow2.f32 %v1982_v51  ;;  %2108 = vadd.xlane.f32.xlu0 %v2107_v62  ;;  %2353 = vmatmul.mubr.bf16.gmra.mrb[52].mxu0 %v2216_v29  ;;  %v5040_v35 = vmax.f32 %v1691_v56, -1e+30  ;;  %v2110_v13 = vadd.f32 %v3548_v10, %v5020_v12  ;;  %v1990_v19 = vmul.f32 1.442695, %v1891_v54 }
 0x7a1   : > { %v3554_v55 = vpop.eup %3553  ;;  %v1897_v7 = vsub.f32 %v4846_v45, %v5034_v28  ;;  %v5047_v8 = vmax.f32 %v1700_v36, -1e+30  ;;  %3573 = vpow2.f32 %v1992_v39  ;;  %v2000_v37 = vmul.f32 1.442695, %v1896_v25 }
 0x7a2   : > { %v1697_v32 = vpop.xlane.xlu0 %1696  ;;  %v3556_v6 = vpop.eup %3555  ;;  %v1894_v38 = vsub.f32 %v4836_v3, %v5040_v35  ;;  %2111 = vadd.xlane.f32.xlu1 %v2110_v13  ;;  %3575 = vpow2.f32 %v1994_v2  ;;  %v1895_v44 = vsub.f32 %v4840_v9, %v5040_v35  ;;  %v2116_v9 = vadd.f32 %v5036_v63, %v5028_v26 }
 0x7a3   : > { %v5043_v16 = vpop.eup %3557  ;;  %3577 = vpow2.f32 %v1988_v57  ;;  %v1900_v45 = vsub.f32 %v4856_v18, %v5047_v8  ;;  %v2002_v51 = vmul.f32 1.442695, %v1897_v7  ;;  %v1901_v4 = vsub.f32 %v4858_v27, %v5047_v8 }
 0x7a4   : > { %v1706_v61 = vpop.xlane.xlu1 %1705  ;;  %v5049_v60 = vpop.eup %3559  ;;  %3579 = vpow2.f32 %v1990_v19  ;;  %v2219_v3 = vpack.c.bf16 %v3556_v6, %v3548_v10  ;;  %v1996_v36 = vmul.f32 1.442695, %v1894_v38  ;;  %v5063_v21 = vmax.f32 %v1697_v32, -1e+30 }
 0x7a5   : > { %v3562_v56 = vpop.eup %3561  ;;  %v2113_v54 = vadd.f32 %v3556_v6, %v3554_v55  ;;  %v1998_v18 = vmul.f32 1.442695, %v1895_v44  ;;  %v5069_v29 = vmax.f32 %v1706_v61, -1e+30  ;;  %v2218_v2 = vpack.c.bf16 %v3554_v55, %v5020_v12 }
 0x7a6   : > { %v1703_v33 = vpop.xlane.xlu0 %1702  ;;  %v5057_v49 = vpop.eup %3563  ;;  %2360 = vmatprep.mubr.bf16.mxu0 %v2219_v3  ;;  %v2221_v27 = vpack.c.bf16 %v3562_v56, %v5036_v63  ;;  %3581 = vpow2.f32 %v2000_v37  ;;  %v2008_v32 = vmul.f32 1.442695, %v1900_v45  ;;  %v1898_v57 = vsub.f32 %v4848_v34, %v5063_v21  ;;  %2117 = vadd.xlane.f32.xlu1 %v2116_v9  ;;  %v5576_v9 = vld [vmem:[#allocation38_spill] sm:$0xff] }
 0x7a7   : > { %v5061_v0 = vpop.eup %3565  ;;  %v1899_v6 = vsub.f32 %v4852_v24, %v5063_v21  ;;  %2114 = vadd.xlane.f32.xlu0 %v2113_v54  ;;  %3583 = vpow2.f32 %v2002_v51  ;;  %v2010_v61 = vmul.f32 1.442695, %v1901_v4  ;;  %v1904_v12 = vsub.f32 %v4868_v5, %v5069_v29 }
 0x7a8   : > { %v1712_v62 = vpop.xlane.xlu1 %1711  ;;  %v5067_v39 = vpop.eup %3567  ;;  %v1905_v63 = vsub.f32 %v4870_v1, %v5069_v29  ;;  %2361 = vmatmul.mubr.bf16.gmra.mrb[56].mxu0 %v2218_v2  ;;  %3585 = vpow2.f32 %v1996_v36  ;;  %v2004_v55 = vmul.f32 1.442695, %v1898_v57  ;;  %v2122_v24 = vadd.f32 %v5049_v60, %v5043_v16 }
 0x7a9   : > { %v5073_v10 = vpop.eup %3569  ;;  %2368 = vmatprep.mubr.bf16.mxu0 %v2221_v27  ;;  %3587 = vpow2.f32 %v1998_v18  ;;  %v2006_v34 = vmul.f32 1.442695, %v1899_v6  ;;  %v2016_v19 = vmul.f32 1.442695, %v1904_v12  ;;  %v2119_v7 = vadd.f32 %v5057_v49, %v3562_v56 }
 0x7aa   : > { %v1709_v25 = vpop.xlane.xlu0 %1708  ;;  %v5079_v13 = vpop.eup %3571  ;;  %3589 = vpow2.f32 %v2008_v32  ;;  %v5090_v44 = vmax.f32 %v1703_v33, -1e+30  ;;  %2123 = vadd.xlane.f32.xlu1 %v2122_v24  ;;  %v5092_v5 = vmax.f32 %v1712_v62, -1e+30  ;;  %v2018_v51 = vmul.f32 1.442695, %v1905_v63 }
 0x7ab   : > { %v5088_v38 = vpop.eup %3573  ;;  %v5094_v1 = vmax.f32 %v1709_v25, -1e+30  ;;  %3591 = vpow2.f32 %v2010_v61  ;;  %2120 = vadd.xlane.f32.xlu0 %v2119_v7  ;;  %v2128_v4 = vadd.f32 %v5067_v39, %v5061_v0  ;;  %v2125_v56 = vadd.f32 %v5079_v13, %v5073_v10  ;;  %v5575_v33 = vld [vmem:[#allocation37_spill] sm:$0xff]  ;;  %v5577_v25 = vld [vmem:[#allocation39_spill] sm:$0xff] }
 0x7ac   : > { %v1718_v37 = vpop.xlane.xlu1 %1717  ;;  %v5096_v45 = vpop.eup %3575  ;;  %3593 = vpow2.f32 %v2004_v55  ;;  %v1902_v36 = vsub.f32 %v5575_v33, %v5090_v44  ;;  %v1903_v54 = vsub.f32 %v5576_v9, %v5090_v44  ;;  %v1908_v2 = vsub.f32 %v4880_v11, %v5092_v5  ;;  %v5578_v55 = vld [vmem:[#allocation40_spill] sm:$0xff] }
 0x7ad   : > { %v5102_v3 = vpop.eup %3577  ;;  %3595 = vpow2.f32 %v2006_v34  ;;  %v1909_v27 = vsub.f32 %v4882_v53, %v5092_v5  ;;  %v5114_v32 = vmax.f32 %v1718_v37, -1e+30  ;;  %v1906_v61 = vsub.f32 %v5577_v25, %v5094_v1  ;;  %v5579_v37 = vld [vmem:[#allocation43_spill] sm:$0xff] }
 0x7ae   : > { %v1715_v62 = vpop.xlane.xlu0 %1714  ;;  %v5108_v18 = vpop.eup %3579  ;;  %3597 = vpow2.f32 %v2016_v19  ;;  %v2012_v57 = vmul.f32 1.442695, %v1902_v36  ;;  %v2014_v6 = vmul.f32 1.442695, %v1903_v54  ;;  %2129 = vadd.xlane.f32.xlu1 %v2128_v4  ;;  %v2024_v12 = vmul.f32 1.442695, %v1908_v2 }
 0x7af   : > { %3599 = vpow2.f32 %v2018_v51  ;;  %v2026_v63 = vmul.f32 1.442695, %v1909_v27  ;;  %v1907_v24 = vsub.f32 %v5578_v55, %v5094_v1  ;;  %2126 = vadd.xlane.f32.xlu0 %v2125_v56  ;;  %v2020_v53 = vmul.f32 1.442695, %v1906_v61 }
 0x7b0   : > { %v5120_v11 = vpop.eup %3581  ;;  %3601 = vpow2.f32 %v2012_v57  ;;  %v1912_v7 = vsub.f32 %v4892_v22, %v5114_v32  ;;  %v1913_v51 = vsub.f32 %v5579_v37, %v5114_v32  ;;  %v2220_v56 = vpack.c.bf16 %v5057_v49, %v5028_v26 }
 0x7b1   : > { %v5122_v34 = vpop.eup %3583  ;;  %3603 = vpow2.f32 %v2014_v6  ;;  %v2022_v19 = vmul.f32 1.442695, %v1907_v24  ;;  %v1724_v33 = vpop.xlane.xlu1 %1723  ;;  %v2223_v27 = vpack.c.bf16 %v5079_v13, %v5049_v60  ;;  %v5138_v57 = vmax.f32 %v1715_v62, -1e+30  ;;  %v5581_v62 = vld [vmem:[#allocation41_spill] sm:$0xff] }
 0x7b2   : > { %v5128_v4 = vpop.eup %3585  ;;  %3605 = vpow2.f32 %v2024_v12  ;;  %v1721_v36 = vpop.xlane.xlu0 %1720  ;;  %v2032_v54 = vmul.f32 1.442695, %v1912_v7  ;;  %v2034_v2 = vmul.f32 1.442695, %v1913_v51  ;;  %2369 = vmatmul.mubr.bf16.gmra.mrb[60].mxu0 %v2220_v56  ;;  %v2134_v6 = vadd.f32 %v5096_v45, %v5088_v38  ;;  %v5584_v7 = vld [vmem:[#allocation47_spill] sm:$0xff]  ;;  %v3501_v51 = vld [vmem:[%s5475_s7] sm:$0xff]  }
 0x7b3   : > { %v5132_v9 = vpop.eup %3587  ;;  %3607 = vpow2.f32 %v2026_v63  ;;  %v2131_v26 = vadd.f32 %v5108_v18, %v5102_v3  ;;  %2376 = vmatprep.mubr.bf16.mxu0 %v2223_v27  ;;  %v5146_v25 = vmax.f32 %v1724_v33, -1e+30  ;;  %v5148_v61 = vmax.f32 %v1721_v36, -1e+30  ;;  %v5582_v63 = vld [vmem:[#allocation42_spill] sm:$0xff]  ;;  %3441 = vmatprep.subr.bf16.mxu1 %v3501_v51 }
 0x7b4   : > { %v5136_v22 = vpop.eup %3589  ;;  %3609 = vpow2.f32 %v2020_v53  ;;  %v2140_v60 = vadd.f32 %v5122_v34, %v5120_v11  ;;  %v1910_v12 = vsub.f32 %v5581_v62, %v5138_v57  ;;  %v1911_v55 = vsub.f32 %v5582_v63, %v5138_v57  ;;  %2135 = vadd.xlane.f32.xlu1 %v2134_v6  ;;  %v5583_v53 = vld [vmem:[#allocation46_spill] sm:$0xff]  ;;  %v5586_v62 = vld [vmem:[#allocation45_spill] sm:$0xff]  ;;  %3381 = vmatprep.subr.bf16.mxu0 %v3501_v51 }
 0x7b5   : > { %v5144_v49 = vpop.eup %3591  ;;  %3611 = vpow2.f32 %v2022_v19  ;;  %5580 = vst [vmem:[#allocation37_spill] sm:$0xff] %v5146_v25  ;;  %2132 = vadd.xlane.f32.xlu0 %v2131_v26  ;;  %v1916_v19 = vsub.f32 %v5583_v53, %v5146_v25  ;;  %v1917_v37 = vsub.f32 %v5584_v7, %v5146_v25  ;;  %v1915_v63 = vsub.f32 %v5586_v62, %v5148_v61 }
 0x7b6   : > { %v5152_v13 = vpop.eup %3593  ;;  %3613 = vpow2.f32 %v2032_v54  ;;  %v2028_v33 = vmul.f32 1.442695, %v1910_v12  ;;  %v2030_v36 = vmul.f32 1.442695, %v1911_v55  ;;  %v5585_v54 = vld [vmem:[#allocation44_spill] sm:$0xff]  ;;  %v2137_v12 = vadd.f32 %v5132_v9, %v5128_v4  ;;  %v1727_v55 = vpop.xlane.xlu0 %1726  ;;  %3443 = vmatpush3.bf16.msra.mxu1 %v3501_v51  ;;  %3382 = vmatpush3.bf16.msra.mxu0 %v3501_v51 }
 0x7b7   : > { %v5158_v24 = vpop.eup %3595  ;;  %3615 = vpow2.f32 %v2034_v2  ;;  %v1914_v27 = vsub.f32 %v5585_v54, %v5148_v61  ;;  %v2040_v2 = vmul.f32 1.442695, %v1916_v19  ;;  %v2042_v26 = vmul.f32 1.442695, %v1917_v37 }
 0x7b8   : > { %v5167_v56 = vpop.eup %3597  ;;  %3617 = vpow2.f32 %v2028_v33  ;;  %2141 = vadd.xlane.f32.xlu1 %v2140_v60  ;;  %v2038_v19 = vmul.f32 1.442695, %v1915_v63  ;;  %v2222_v37 = vpack.c.bf16 %v5073_v10, %v5043_v16  ;;  %v2225_v62 = vpack.c.bf16 %v5108_v18, %v5067_v39 }
 0x7b9   : > { %v5171_v6 = vpop.eup %3599  ;;  %v2036_v7 = vmul.f32 1.442695, %v1914_v27  ;;  %3619 = vpow2.f32 %v2030_v36  ;;  %2138 = vadd.xlane.f32.xlu0 %v2137_v12  ;;  %v2146_v60 = vadd.f32 %v5144_v49, %v5136_v22  ;;  %v2143_v33 = vadd.f32 %v5158_v24, %v5152_v13  ;;  %v5587_v12 = vld [vmem:[#allocation48_spill] sm:$0xff] }
 0x7ba   : > { %v5175_v53 = vpop.eup %3601  ;;  %3621 = vpow2.f32 %v2040_v2  ;;  %2377 = vmatmul.mubr.bf16.gmra.mrb[64].mxu0 %v2222_v37  ;;  %v5193_v36 = vmax.f32 %v1727_v55, -1e+30  ;;  %v2152_v16 = vadd.f32 %v5171_v6, %v5167_v56  ;;  %v2224_v18 = vpack.c.bf16 %v5102_v3, %v5061_v0 }
 0x7bb   : > { %v5179_v54 = vpop.eup %3603  ;;  %3623 = vpow2.f32 %v2042_v26  ;;  %2384 = vmatprep.mubr.bf16.mxu0 %v2225_v62  ;;  %v2227_v51 = vpack.c.bf16 %v5132_v9, %v5096_v45  ;;  %v2226_v0 = vpack.c.bf16 %v5128_v4, %v5088_v38  ;;  %v2229_v45 = vpack.c.bf16 %v5158_v24, %v5122_v34 }
 0x7bc   : > { %v5185_v25 = vpop.eup %3605  ;;  %v2149_v39 = vadd.f32 %v5179_v54, %v5175_v53  ;;  %3625 = vpow2.f32 %v2036_v7  ;;  %2147 = vadd.xlane.f32.xlu1 %v2146_v60  ;;  %v1918_v63 = vsub.f32 %v4908_v40, %v5193_v36  ;;  %v1919_v55 = vsub.f32 %v5587_v12, %v5193_v36 }
 0x7bd   : > { %v5191_v27 = vpop.eup %3607  ;;  %3627 = vpow2.f32 %v2038_v19  ;;  %2144 = vadd.xlane.f32.xlu0 %v2143_v33  ;;  %v2228_v3 = vpack.c.bf16 %v5152_v13, %v5120_v11  ;;  %v2231_v40 = vpack.c.bf16 %v5179_v54, %v5144_v49  ;;  %v2230_v33 = vpack.c.bf16 %v5175_v53, %v5136_v22 }
 0x7be   : > { %v5199_v10 = vpop.eup %3609  ;;  %v2158_v2 = vadd.f32 %v5191_v27, %v5185_v25  ;;  %v2044_v19 = vmul.f32 1.442695, %v1918_v63  ;;  %v2046_v62 = vmul.f32 1.442695, %v1919_v55  ;;  %v1761_v63 = vsub.f32 -1e+30, %v4922_v41 }
 0x7bf   : > { %v3612_v26 = vpop.eup %3611  ;;  %v2232_v38 = vpack.c.bf16 %v5199_v10, %v5167_v56 }
 0x7c0   : > { %v3614_v7 = vpop.eup %3613  ;;  %v2155_v37 = vadd.f32 %v3612_v26, %v5199_v10  ;;  %2153 = vadd.xlane.f32.xlu1 %v2152_v16  ;;  %v2233_v12 = vpack.c.bf16 %v3612_v26, %v5171_v6  ;;  %3629 = vpow2.f32 %v2044_v19  ;;  %v3502_v6 = vld [vmem:[%s5475_s7 + $0x8] sm:$0xff]   ;;  %v1760_v26 = vsub.f32 -1e+30, %v4916_v15 }
 0x7c1   : > { %v3616_v9 = vpop.eup %3615  ;;  %3631 = vpow2.f32 %v2046_v62  ;;  %2150 = vadd.xlane.f32.xlu0 %v2149_v39  ;;  %3383 = vmatprep.subr.bf16.mxu0 %v3502_v6  ;;  %v5589_v19 = vld [vmem:[#allocation50_spill] sm:$0xff] }
 0x7c2   : > { %v2164_v60 = vadd.f32 %v3616_v9, %v3614_v7  ;;  %v3618_v34 = vpop.eup %3617  ;;  %2385 = vmatmul.mubr.bf16.gmra.mrb[68].mxu0 %v2224_v18  ;;  %3442 = vmatprep.subr.bf16.mxu1 %v3502_v6  ;;  %v1792_v55 = vmul.f32 1.442695, %v1760_v26  ;;  %v1764_v62 = vsub.f32 -1e+30, %v5589_v19 }
 0x7c3   : > { %v3620_v11 = vpop.eup %3619  ;;  %v2234_v4 = vpack.c.bf16 %v3618_v34, %v5185_v25  ;;  %2392 = vmatprep.mubr.bf16.mxu0 %v2227_v51  ;;  %3384 = vmatpush3.bf16.msra.mxu0 %v3502_v6 }
 0x7c4   : > { %v3622_v13 = vpop.eup %3621  ;;  %2159 = vadd.xlane.f32.xlu1 %v2158_v2  ;;  %v2161_v49 = vadd.f32 %v3620_v11, %v3618_v34  ;;  %v2235_v24 = vpack.c.bf16 %v3620_v11, %v5191_v27  ;;  %3444 = vmatpush3.bf16.msra.mxu1 %v3502_v6  ;;  %3633 = vpow2.f32 %v1792_v55 }
 0x7c5   : > { %v3624_v22 = vpop.eup %3623  ;;  %2156 = vadd.xlane.f32.xlu0 %v2155_v37  ;;  %v1762_v37 = vsub.f32 -1e+30, %v4928_v23 }
 0x7c6   : > { %v3626_v56 = vpop.eup %3625  ;;  %v2170_v53 = vadd.f32 %v3624_v22, %v3622_v13 }
 0x7c7   : > { %v3628_v54 = vpop.eup %3627  ;;  %v2236_v16 = vpack.c.bf16 %v3626_v56, %v3614_v7  ;;  %v1794_v7 = vmul.f32 1.442695, %v1761_v63 }
 0x7c8   : > { %2165 = vadd.xlane.f32.xlu1 %v2164_v60  ;;  %v2167_v25 = vadd.f32 %v3628_v54, %v3626_v56  ;;  %v2237_v39 = vpack.c.bf16 %v3628_v54, %v3616_v9  ;;  %v1765_v60 = vsub.f32 -1e+30, %v4946_v58 }
 0x7c9   : > { %2162 = vadd.xlane.f32.xlu0 %v2161_v49  ;;  %3635 = vpow2.f32 %v1794_v7 }
 0x7ca   : > { %v3630_v10 = vpop.eup %3629  ;;  %2393 = vmatmul.mubr.bf16.gmra.mrb[72].mxu0 %v2226_v0  ;;  %v5588_v0 = vld [vmem:[#allocation49_spill] sm:$0xff] }
 0x7cb   : > { %v3632_v27 = vpop.eup %3631  ;;  %2400 = vmatprep.mubr.bf16.mxu0 %v2229_v45  ;;  %v2238_v18 = vpack.c.bf16 %v3630_v10, %v3622_v13  ;;  %v1763_v45 = vsub.f32 -1e+30, %v5588_v0 }
 0x7cc   : > { %2171 = vadd.xlane.f32.xlu1 %v2170_v53  ;;  %v2173_v51 = vadd.f32 %v3632_v27, %v3630_v10  ;;  %v2239_v2 = vpack.c.bf16 %v3632_v27, %v3624_v22 }
 0x7cd   : > { %2168 = vadd.xlane.f32.xlu0 %v2167_v25  ;;  %v1798_v9 = vmul.f32 1.442695, %v1763_v45 }
 0x7d1   : > { %2174 = vadd.xlane.f32.xlu0 %v2173_v51 }
 0x7d2   : > { %2401 = vmatmul.mubr.bf16.gmra.mrb[76].mxu0 %v2228_v3  ;;  %v1796_v3 = vmul.f32 1.442695, %v1762_v37 }
 0x7d3   : > { %2408 = vmatprep.mubr.bf16.mxu0 %v2231_v40  ;;  %v3634_v40 = vpop.eup %3633 }
 0x7d4   : > { %3637 = vpow2.f32 %v1796_v3  ;;  %v3636_v15 = vpop.eup %3635 }
 0x7d5   : > { %3639 = vpow2.f32 %v1798_v9  ;;  %v2049_v11 = vmul.f32 0.0, %v3636_v15 }
 0x7da   : > { %2409 = vmatmul.mubr.bf16.gmra.mrb[80].mxu0 %v2230_v33  ;;  %v1800_v33 = vmul.f32 1.442695, %v1764_v62 }
 0x7db   : > { %2416 = vmatprep.mubr.bf16.mxu0 %v2233_v12  ;;  %v2082_v41 = vpop.xlane.xlu1 %2081  ;;  %v2048_v12 = vmul.f32 0.0, %v3634_v40 }
 0x7dc   : > { %3641 = vpow2.f32 %v1800_v33 }
 0x7dd   : > { %v2176_v23 = vadd.f32 %v2082_v41, %v2048_v12 }
 0x7de   : > { %v2085_v34 = vpop.xlane.xlu0 %2084  ;;  %v3638_v49 = vpop.eup %3637 }
 0x7df   : > { %v2177_v13 = vadd.f32 %v2085_v34, %v2049_v11  ;;  %v3640_v22 = vpop.eup %3639  ;;  %v2050_v56 = vmul.f32 0.0, %v3638_v49 }
 0x7e0   : > { %v2051_v25 = vmul.f32 0.0, %v3640_v22 }
 0x7e2   : > { %2417 = vmatmul.mubr.bf16.gmra.mrb[84].mxu0 %v2232_v38  ;;  %v1802_v38 = vmul.f32 1.442695, %v1765_v60 }
 0x7e3   : > { %2424 = vmatprep.mubr.bf16.mxu0 %v2235_v24  ;;  %v1767_v24 = vsub.f32 -1e+30, %v4958_v46  ;;  %v2088_v6 = vpop.xlane.xlu1 %2087 }
 0x7e4   : > { %3643 = vpow2.f32 %v1802_v38 }
 0x7e5   : > { %3645 = vrcp.f32 %v2176_v23  ;;  %v1806_v53 = vmul.f32 1.442695, %v1767_v24 }
 0x7e6   : > { %3647 = vrcp.f32 %v2177_v13  ;;  %v2091_v54 = vpop.xlane.xlu0 %2090  ;;  %v3642_v27 = vpop.eup %3641 }
 0x7e7   : > { %v2179_v10 = vadd.f32 %v2091_v54, %v2051_v25  ;;  %v2052_v37 = vmul.f32 0.0, %v3642_v27 }
 0x7ea   : > { %2425 = vmatmul.mubr.bf16.gmra.mrb[88].mxu0 %v2234_v4  ;;  %v1766_v4 = vsub.f32 -1e+30, %v4952_v17 }
 0x7eb   : > { %2432 = vmatprep.mubr.bf16.mxu0 %v2237_v39  ;;  %v2094_v26 = vpop.xlane.xlu1 %2093 }
 0x7ec   : > { %v1804_v58 = vmul.f32 1.442695, %v1766_v4  ;;  %v2180_v19 = vadd.f32 %v2094_v26, %v2052_v37 }
 0x7ed   : > { %v2097_v0 = vpop.xlane.xlu0 %2096 }
 0x7ee   : > { %3649 = vpow2.f32 %v1804_v58 }
 0x7ef   : > { %3651 = vpow2.f32 %v1806_v53 }
 0x7f2   : > { %2433 = vmatmul.mubr.bf16.gmra.mrb[92].mxu0 %v2236_v16  ;;  %v2178_v16 = vadd.f32 %v2088_v6, %v2050_v56 }
 0x7f3   : > { %2440 = vmatprep.mubr.bf16.mxu0 %v2239_v2  ;;  %v3644_v2 = vpop.eup %3643  ;;  %v2100_v13 = vpop.xlane.xlu1 %2099 }
 0x7f4   : > { %3653 = vrcp.f32 %v2178_v16  ;;  %v3646_v7 = vpop.eup %3645  ;;  %v2053_v62 = vmul.f32 0.0, %v3644_v2 }
 0x7f5   : > { %3655 = vrcp.f32 %v2179_v10  ;;  %v3648_v9 = vpop.eup %3647  ;;  %v2103_v58 = vpop.xlane.xlu0 %2102 }
 0x7f6   : > { %v2181_v15 = vadd.f32 %v2097_v0, %v2053_v62  ;;  %3657 = vrcp.f32 %v2180_v19 }
 0x7f8   : > { %v3650_v41 = vpop.eup %3649  ;;  %3659 = vrcp.f32 %v2181_v15 }
 0x7f9   : > { %v3652_v4 = vpop.eup %3651  ;;  %v2054_v22 = vmul.f32 0.0, %v3650_v41 }
 0x7fa   : > { %2441 = vmatmul.mubr.bf16.gmra.mrb[96].mxu0 %v2238_v18 }
 0x7fb   : > { %v2182_v16 = vadd.f32 %v2100_v13, %v2054_v22  ;;  %v1769_v13 = vsub.f32 -1e+30, %v4968_v31 }
 0x7fd   : > { %3661 = vrcp.f32 %v2182_v16 }
 0x829   : > { %v2106_v16 = vpop.xlane.xlu1 %2105 }
 0x82e   : > { %v3187_v39 = vpop.f32.mrb[36].mxu0 }
 0x82f   : > { %v3188_v17 = vpop.f32.mrb[37].mxu0 }
 0x830   : > { %v3189_v18 = vadd.f32 %v3188_v17, %v3187_v39  ;;  %v3190_v51 = vpop.f32.mrb[38].mxu0  ;;  %v2055_v39 = vmul.f32 0.0, %v3652_v4 }
 0x831   : > { %v3191_v46 = vpop.f32.mrb[39].mxu0 }
 0x832   : > { %v2449_v63 = vadd.f32 %v3189_v18, %v2048_v12  ;;  %v3192_v55 = vadd.f32 %v3191_v46, %v3190_v51  ;;  %v2183_v27 = vadd.f32 %v2103_v58, %v2055_v39 }
 0x834   : > { %v2513_v45 = vmul.f32 %v3646_v7, %v2449_v63  ;;  %v2450_v3 = vadd.f32 %v3192_v55, %v2049_v11  ;;  %v3654_v11 = vpop.eup %3653  ;;  %3663 = vrcp.f32 %v2183_v27  ;;  %v1773_v27 = vsub.f32 -1e+30, %v4996_v30 }
 0x835   : > { %v3656_v54 = vpop.eup %3655 }
 0x836   : > { %v2514_v40 = vmul.f32 %v3648_v9, %v2450_v3  ;;  %v3193_v60 = vpop.f32.mrb[40].mxu0  ;;  %v3658_v55 = vpop.eup %3657 }
 0x837   : > { %v3194_v33 = vpop.f32.mrb[41].mxu0  ;;  %v3660_v0 = vpop.eup %3659 }
 0x838   : > { %v2545_v38 = vpack.c.bf16 %v2514_v40, %v2513_v45  ;;  %v3195_v34 = vadd.f32 %v3194_v33, %v3193_v60  ;;  %v3196_v23 = vpop.f32.mrb[42].mxu0 }
 0x839   : > { %v3197_v12 = vpop.f32.mrb[43].mxu0 }
 0x83a   : > { %v2451_v49 = vadd.f32 %v3195_v34, %v2050_v56  ;;  %v3198_v24 = vadd.f32 %v3197_v12, %v3196_v23  ;;  %3385 = vmatprep.mubr.msk.bf16.mxu0 %vm406_vm1, %v2545_v38 }
 0x83c   : > { %v2515_v6 = vmul.f32 %v3654_v11, %v2451_v49  ;;  %v2452_v53 = vadd.f32 %v3198_v24, %v2051_v25  ;;  %v1810_v24 = vmul.f32 1.442695, %v1769_v13  ;;  %v1770_v11 = vsub.f32 -1e+30, %v4976_v52 }
 0x83e   : > { %v2516_v10 = vmul.f32 %v3656_v54, %v2452_v53  ;;  %v3199_v17 = vpop.f32.mrb[44].mxu0  ;;  %v1812_v58 = vmul.f32 1.442695, %v1770_v11 }
 0x83f   : > { %v3200_v18 = vpop.f32.mrb[45].mxu0 }
 0x840   : > { %v2546_v51 = vpack.c.bf16 %v2516_v10, %v2515_v6  ;;  %v3201_v46 = vadd.f32 %v3200_v18, %v3199_v17  ;;  %v3202_v2 = vpop.f32.mrb[46].mxu0  ;;  %v2109_v10 = vpop.xlane.xlu0 %2108 }
 0x841   : > { %v3203_v56 = vpop.f32.mrb[47].mxu0 }
 0x842   : > { %v2453_v26 = vadd.f32 %v3201_v46, %v2052_v37  ;;  %v3204_v63 = vadd.f32 %v3203_v56, %v3202_v2  ;;  %3386 = vmatmul.mubr.msk.bf16.vlgmr.msra.gmra.mrb[100].mxu0 %vm406_vm1, %v2546_v51  ;;  %v3662_v37 = vpop.eup %3661  ;;  %v2112_v2 = vpop.xlane.xlu1 %2111 }
 0x843   : > { %v3664_v23 = vpop.eup %3663 }
 0x844   : > { %v2517_v7 = vmul.f32 %v3658_v55, %v2453_v26  ;;  %v2454_v25 = vadd.f32 %v3204_v63, %v2053_v62  ;;  %v1768_v62 = vsub.f32 -1e+30, %v4964_v59  ;;  %v1772_v59 = vsub.f32 -1e+30, %v4978_v42  ;;  %v2115_v63 = vpop.xlane.xlu0 %2114 }
 0x845   : > { %v1774_v26 = vsub.f32 -1e+30, %v4990_v48 }
 0x846   : > { %v2518_v45 = vmul.f32 %v3660_v0, %v2454_v25  ;;  %v3205_v3 = vpop.f32.mrb[48].mxu0  ;;  %v1808_v49 = vmul.f32 1.442695, %v1768_v62  ;;  %v1816_v52 = vmul.f32 1.442695, %v1772_v59  ;;  %v2118_v62 = vpop.xlane.xlu1 %2117 }
 0x847   : > { %v3206_v9 = vpop.f32.mrb[49].mxu0  ;;  %v1775_v25 = vsub.f32 -1e+30, %v5008_v50  ;;  %v1777_v50 = vsub.f32 -1e+30, %v5024_v47 }
 0x848   : > { %v2547_v19 = vpack.c.bf16 %v2518_v45, %v2517_v7  ;;  %v3207_v40 = vadd.f32 %v3206_v9, %v3205_v3  ;;  %v3208_v60 = vpop.f32.mrb[50].mxu0  ;;  %3665 = vpow2.f32 %v1808_v49  ;;  %v1820_v9 = vmul.f32 1.442695, %v1774_v26 }
 0x849   : > { %v3209_v15 = vpop.f32.mrb[51].mxu0  ;;  %3667 = vpow2.f32 %v1810_v24 }
 0x84a   : > { %v2455_v33 = vadd.f32 %v3207_v40, %v2054_v22  ;;  %v3210_v41 = vadd.f32 %v3209_v15, %v3208_v60  ;;  %3389 = vmatprep.mubr.msk.bf16.mxu0 %vm406_vm1, %v2547_v19  ;;  %v1771_v22 = vsub.f32 -1e+30, %v4988_v14  ;;  %3669 = vpow2.f32 %v1812_v58  ;;  %v2124_v26 = vpop.xlane.xlu1 %2123 }
 0x84b   : > { %v1818_v14 = vmul.f32 1.442695, %v1773_v27 }
 0x84c   : > { %v2519_v38 = vmul.f32 %v3662_v37, %v2455_v33  ;;  %v2456_v34 = vadd.f32 %v3210_v41, %v2055_v39  ;;  %v1814_v6 = vmul.f32 1.442695, %v1771_v22  ;;  %v1822_v33 = vmul.f32 1.442695, %v1775_v25 }
 0x84e   : > { %v2520_v12 = vmul.f32 %v3664_v23, %v2456_v34  ;;  %3671 = vpow2.f32 %v1814_v6  ;;  %v1826_v6 = vmul.f32 1.442695, %v1777_v50 }
 0x850   : > { %v2548_v4 = vpack.c.bf16 %v2520_v12, %v2519_v38  ;;  %v1776_v38 = vsub.f32 -1e+30, %v5006_v43 }
 0x852   : > { %3390 = vmatmul.mubr.msk.bf16.gmra.mrb[104].mxu0 %vm406_vm1, %v2548_v4  ;;  %v3666_v53 = vpop.eup %3665  ;;  %v1824_v24 = vmul.f32 1.442695, %v1776_v38 }
 0x853   : > { %v3668_v54 = vpop.eup %3667  ;;  %v2056_v39 = vmul.f32 0.0, %v3666_v53  ;;  %v2121_v53 = vpop.xlane.xlu0 %2120 }
 0x854   : > { %v2057_v17 = vmul.f32 0.0, %v3668_v54  ;;  %v3670_v51 = vpop.eup %3669 }
 0x855   : > { %v2184_v31 = vadd.f32 %v2106_v16, %v2056_v39  ;;  %v2058_v56 = vmul.f32 0.0, %v3670_v51  ;;  %v1779_v51 = vsub.f32 -1e+30, %v5040_v35 }
 0x856   : > { %v2185_v18 = vadd.f32 %v2109_v10, %v2057_v17  ;;  %v1778_v10 = vsub.f32 -1e+30, %v5014_v20 }
 0x857   : > { %3673 = vrcp.f32 %v2184_v31  ;;  %v2186_v55 = vadd.f32 %v2112_v2, %v2058_v56 }
 0x858   : > { %v3672_v46 = vpop.eup %3671  ;;  %3675 = vrcp.f32 %v2185_v18  ;;  %v1828_v2 = vmul.f32 1.442695, %v1778_v10 }
 0x859   : > { %3677 = vpow2.f32 %v1816_v52  ;;  %v2059_v42 = vmul.f32 0.0, %v3672_v46 }
 0x85a   : > { %3679 = vpow2.f32 %v1818_v14 }
 0x85b   : > { %v2187_v0 = vadd.f32 %v2115_v63, %v2059_v42  ;;  %3681 = vrcp.f32 %v2186_v55  ;;  %v1830_v55 = vmul.f32 1.442695, %v1779_v51 }
 0x85d   : > { %3683 = vrcp.f32 %v2187_v0 }
 0x85e   : > { %3685 = vpow2.f32 %v1820_v9 }
 0x85f   : > { %3687 = vpow2.f32 %v1822_v33 }
 0x860   : > { %3689 = vpow2.f32 %v1824_v24 }
 0x861   : > { %v3674_v15 = vpop.eup %3673  ;;  %3691 = vpow2.f32 %v1826_v6  ;;  %v1783_v6 = vsub.f32 -1e+30, %v5090_v44 }
 0x862   : > { %v3676_v37 = vpop.eup %3675 }
 0x863   : > { %v3678_v34 = vpop.eup %3677 }
 0x864   : > { %v3680_v4 = vpop.eup %3679  ;;  %v2060_v11 = vmul.f32 0.0, %v3678_v34 }
 0x865   : > { %v2061_v16 = vmul.f32 0.0, %v3680_v4  ;;  %v3682_v59 = vpop.eup %3681 }
 0x866   : > { %v2188_v43 = vadd.f32 %v2118_v62, %v2060_v11 }
 0x867   : > { %v2189_v31 = vadd.f32 %v2121_v53, %v2061_v16  ;;  %v3684_v18 = vpop.eup %3683 }
 0x868   : > { %v3686_v52 = vpop.eup %3685  ;;  %3693 = vrcp.f32 %v2188_v43 }
 0x869   : > { %v3688_v46 = vpop.eup %3687  ;;  %3695 = vrcp.f32 %v2189_v31  ;;  %v2062_v63 = vmul.f32 0.0, %v3686_v52 }
 0x86a   : > { %v2063_v25 = vmul.f32 0.0, %v3688_v46  ;;  %3697 = vpow2.f32 %v1828_v2  ;;  %v3690_v9 = vpop.eup %3689  ;;  %v1784_v46 = vsub.f32 -1e+30, %v5069_v29 }
 0x86b   : > { %v2190_v20 = vadd.f32 %v2124_v26, %v2062_v63  ;;  %3699 = vpow2.f32 %v1830_v55  ;;  %v2064_v38 = vmul.f32 0.0, %v3690_v9 }
 0x86d   : > { %3701 = vrcp.f32 %v2190_v20 }
 0x873   : > { %v3211_v7 = vpop.f32.mrb[52].mxu0 }
 0x874   : > { %v3212_v30 = vpop.f32.mrb[53].mxu0 }
 0x875   : > { %v3213_v45 = vadd.f32 %v3212_v30, %v3211_v7  ;;  %v3214_v3 = vpop.f32.mrb[54].mxu0  ;;  %v2127_v7 = vpop.xlane.xlu0 %2126  ;;  %v1780_v30 = vsub.f32 -1e+30, %v5034_v28 }
 0x876   : > { %v3215_v19 = vpop.f32.mrb[55].mxu0  ;;  %v2191_v35 = vadd.f32 %v2127_v7, %v2063_v25 }
 0x877   : > { %v2457_v40 = vadd.f32 %v3213_v45, %v2056_v39  ;;  %v3216_v60 = vadd.f32 %v3215_v19, %v3214_v3  ;;  %v1781_v19 = vsub.f32 -1e+30, %v5063_v21  ;;  %v1782_v21 = vsub.f32 -1e+30, %v5047_v8 }
 0x878   : > { %3703 = vrcp.f32 %v2191_v35  ;;  %v1840_v35 = vmul.f32 1.442695, %v1784_v46 }
 0x879   : > { %v2521_v48 = vmul.f32 %v3674_v15, %v2457_v40  ;;  %v2458_v41 = vadd.f32 %v3216_v60, %v2057_v17  ;;  %v3692_v60 = vpop.eup %3691 }
 0x87a   : > { %v2065_v62 = vmul.f32 0.0, %v3692_v60 }
 0x87b   : > { %v2522_v23 = vmul.f32 %v3676_v37, %v2458_v41  ;;  %v3217_v12 = vpop.f32.mrb[56].mxu0  ;;  %v1832_v41 = vmul.f32 1.442695, %v1780_v30  ;;  %v2130_v37 = vpop.xlane.xlu1 %2129 }
 0x87c   : > { %v3218_v49 = vpop.f32.mrb[57].mxu0  ;;  %v2192_v4 = vadd.f32 %v2130_v37, %v2064_v38  ;;  %v1786_v37 = vsub.f32 -1e+30, %v5092_v5 }
 0x87d   : > { %v2549_v13 = vpack.c.bf16 %v2522_v23, %v2521_v48  ;;  %v3219_v22 = vadd.f32 %v3218_v49, %v3217_v12  ;;  %v3220_v58 = vpop.f32.mrb[58].mxu0  ;;  %v3694_v48 = vpop.eup %3693  ;;  %v1834_v23 = vmul.f32 1.442695, %v1781_v19  ;;  %3705 = vpow2.f32 %v1832_v41 }
 0x87e   : > { %v3221_v54 = vpop.f32.mrb[59].mxu0  ;;  %v3696_v50 = vpop.eup %3695 }
 0x87f   : > { %3393 = vmatprep.mubr.msk.bf16.mxu0 %vm406_vm1, %v2549_v13  ;;  %v2459_v39 = vadd.f32 %v3219_v22, %v2058_v56  ;;  %v3222_v47 = vadd.f32 %v3221_v54, %v3220_v58  ;;  %v2133_v12 = vpop.xlane.xlu0 %2132  ;;  %v3698_v58 = vpop.eup %3697  ;;  %3707 = vpow2.f32 %v1834_v23 }
 0x880   : > { %v2193_v24 = vadd.f32 %v2133_v12, %v2065_v62  ;;  %3709 = vrcp.f32 %v2192_v4  ;;  %v2066_v31 = vmul.f32 0.0, %v3698_v58  ;;  %v1787_v12 = vsub.f32 -1e+30, %v5138_v57 }
 0x881   : > { %v2523_v17 = vmul.f32 %v3682_v59, %v2459_v39  ;;  %v2460_v27 = vadd.f32 %v3222_v47, %v2059_v42  ;;  %v1836_v39 = vmul.f32 1.442695, %v1782_v21  ;;  %v2136_v47 = vpop.xlane.xlu1 %2135 }
 0x882   : > { %3711 = vrcp.f32 %v2193_v24  ;;  %v2194_v51 = vadd.f32 %v2136_v47, %v2066_v31  ;;  %v1844_v24 = vmul.f32 1.442695, %v1786_v37 }
 0x883   : > { %v2524_v14 = vmul.f32 %v3684_v18, %v2460_v27  ;;  %v2139_v27 = vpop.xlane.xlu0 %2138  ;;  %3713 = vpow2.f32 %v1836_v39 }
 0x885   : > { %v2550_v56 = vpack.c.bf16 %v2524_v14, %v2523_v17  ;;  %v3223_v42 = vpop.f32.mrb[60].mxu0  ;;  %v1838_v17 = vmul.f32 1.442695, %v1783_v6 }
 0x886   : > { %v3224_v0 = vpop.f32.mrb[61].mxu0 }
 0x887   : > { %3394 = vmatmul.mubr.msk.bf16.gmra.mrb[108].mxu0 %vm406_vm1, %v2550_v56  ;;  %v3225_v45 = vadd.f32 %v3224_v0, %v3223_v42  ;;  %v3226_v3 = vpop.f32.mrb[62].mxu0  ;;  %3715 = vpow2.f32 %v1838_v17  ;;  %v2145_v60 = vpop.xlane.xlu0 %2144 }
 0x888   : > { %v3227_v40 = vpop.f32.mrb[63].mxu0  ;;  %3717 = vrcp.f32 %v2194_v51 }
 0x889   : > { %v2461_v15 = vadd.f32 %v3225_v45, %v2060_v11  ;;  %v3228_v33 = vadd.f32 %v3227_v40, %v3226_v3  ;;  %v2142_v45 = vpop.xlane.xlu1 %2141 }
 0x88b   : > { %v2525_v28 = vmul.f32 %v3694_v48, %v2461_v15  ;;  %v2462_v34 = vadd.f32 %v3228_v33, %v2061_v16  ;;  %v3700_v16 = vpop.eup %3699 }
 0x88c   : > { %v3702_v10 = vpop.eup %3701  ;;  %v2067_v14 = vmul.f32 0.0, %v3700_v16 }
 0x88d   : > { %v2526_v13 = vmul.f32 %v3696_v50, %v2462_v34  ;;  %v3229_v49 = vpop.f32.mrb[64].mxu0  ;;  %v3704_v44 = vpop.eup %3703 }
 0x88e   : > { %v3230_v22 = vpop.f32.mrb[65].mxu0  ;;  %v2195_v56 = vadd.f32 %v2139_v27, %v2067_v14  ;;  %v3706_v7 = vpop.eup %3705 }
 0x88f   : > { %v2551_v11 = vpack.c.bf16 %v2526_v13, %v2525_v28  ;;  %v3231_v53 = vadd.f32 %v3230_v22, %v3229_v49  ;;  %v3232_v54 = vpop.f32.mrb[66].mxu0  ;;  %v2068_v19 = vmul.f32 0.0, %v3706_v7 }
 0x890   : > { %v3233_v43 = vpop.f32.mrb[67].mxu0  ;;  %3719 = vrcp.f32 %v2195_v56 }
 0x891   : > { %3397 = vmatprep.mubr.msk.bf16.mxu1 %vm406_vm1, %v2551_v11  ;;  %v2463_v59 = vadd.f32 %v3231_v53, %v2062_v63  ;;  %v3234_v8 = vadd.f32 %v3233_v43, %v3232_v54  ;;  %v1785_v63 = vsub.f32 -1e+30, %v5094_v1  ;;  %v2196_v48 = vadd.f32 %v2142_v45, %v2068_v19  ;;  %v2148_v11 = vpop.xlane.xlu1 %2147  ;;  %v2151_v54 = vpop.xlane.xlu0 %2150 }
 0x892   : > { %3721 = vpow2.f32 %v1840_v35  ;;  %v1846_v53 = vmul.f32 1.442695, %v1787_v12  ;;  %v5590_v35 = vld [vmem:[#allocation37_spill] sm:$0xff] }
 0x893   : > { %v2527_v18 = vmul.f32 %v3702_v10, %v2463_v59  ;;  %v2464_v52 = vadd.f32 %v3234_v8, %v2063_v25  ;;  %v3708_v25 = vpop.eup %3707  ;;  %v1842_v40 = vmul.f32 1.442695, %v1785_v63  ;;  %v1788_v59 = vsub.f32 -1e+30, %v5114_v32 }
 0x894   : > { %v3710_v29 = vpop.eup %3709  ;;  %v2069_v41 = vmul.f32 0.0, %v3708_v25  ;;  %v1790_v45 = vsub.f32 -1e+30, %v5590_v35 }
 0x895   : > { %v2528_v2 = vmul.f32 %v3704_v44, %v2464_v52  ;;  %v3235_v26 = vpop.f32.mrb[68].mxu0  ;;  %v3712_v33 = vpop.eup %3711  ;;  %3723 = vpow2.f32 %v1842_v40 }
 0x896   : > { %v3236_v55 = vpop.f32.mrb[69].mxu0  ;;  %v2197_v50 = vadd.f32 %v2145_v60, %v2069_v41  ;;  %v3714_v23 = vpop.eup %3713  ;;  %3725 = vrcp.f32 %v2196_v48  ;;  %v1791_v60 = vsub.f32 -1e+30, %v5193_v36  ;;  %v1852_v37 = vmul.f32 1.442695, %v1790_v45 }
 0x897   : > { %v2552_v20 = vpack.c.bf16 %v2528_v2, %v2527_v18  ;;  %v3237_v42 = vadd.f32 %v3236_v55, %v3235_v26  ;;  %v3238_v30 = vpop.f32.mrb[70].mxu0  ;;  %v2070_v6 = vmul.f32 0.0, %v3714_v23  ;;  %v1789_v18 = vsub.f32 -1e+30, %v5148_v61  ;;  %v2154_v26 = vpop.xlane.xlu1 %2153 }
 0x898   : > { %v3239_v0 = vpop.f32.mrb[71].mxu0  ;;  %3727 = vrcp.f32 %v2197_v50  ;;  %v1848_v2 = vmul.f32 1.442695, %v1788_v59  ;;  %v1854_v12 = vmul.f32 1.442695, %v1791_v60 }
 0x899   : > { %v2465_v3 = vadd.f32 %v3237_v42, %v2064_v38  ;;  %v3240_v9 = vadd.f32 %v3239_v0, %v3238_v30  ;;  %3398 = vmatmul.mubr.msk.bf16.vlgmr.msra.gmra.mrb[68].mxu1 %vm406_vm1, %v2552_v20  ;;  %v2198_v39 = vadd.f32 %v2148_v11, %v2070_v6  ;;  %3729 = vpow2.f32 %v1844_v24  ;;  %v2157_v20 = vpop.xlane.xlu0 %2156 }
 0x89a   : > { %3731 = vpow2.f32 %v1846_v53  ;;  %v1850_v63 = vmul.f32 1.442695, %v1789_v18 }
 0x89b   : > { %v2529_v15 = vmul.f32 %v3710_v29, %v2465_v3  ;;  %v2466_v1 = vadd.f32 %v3240_v9, %v2065_v62  ;;  %v3716_v62 = vpop.eup %3715  ;;  %3733 = vrcp.f32 %v2198_v39 }
 0x89c   : > { %v3718_v5 = vpop.eup %3717  ;;  %v2071_v47 = vmul.f32 0.0, %v3716_v62 }
 0x89d   : > { %v2530_v28 = vmul.f32 %v3712_v33, %v2466_v1  ;;  %v3241_v34 = vpop.f32.mrb[72].mxu0  ;;  %v3720_v16 = vpop.eup %3719 }
 0x89e   : > { %v3242_v38 = vpop.f32.mrb[73].mxu0  ;;  %v2199_v17 = vadd.f32 %v2151_v54, %v2071_v47  ;;  %v3722_v27 = vpop.eup %3721 }
 0x89f   : > { %v2553_v4 = vpack.c.bf16 %v2530_v28, %v2529_v15  ;;  %v3243_v13 = vadd.f32 %v3242_v38, %v3241_v34  ;;  %v3244_v21 = vpop.f32.mrb[74].mxu0  ;;  %v2072_v7 = vmul.f32 0.0, %v3722_v27  ;;  %v2160_v28 = vpop.xlane.xlu1 %2159 }
 0x8a0   : > { %v3245_v49 = vpop.f32.mrb[75].mxu0  ;;  %3735 = vrcp.f32 %v2199_v17 }
 0x8a1   : > { %v2467_v22 = vadd.f32 %v3243_v13, %v2066_v31  ;;  %v3246_v58 = vadd.f32 %v3245_v49, %v3244_v21  ;;  %3401 = vmatprep.mubr.msk.bf16.mxu1 %vm406_vm1, %v2553_v4  ;;  %v2200_v0 = vadd.f32 %v2154_v26, %v2072_v7  ;;  %3737 = vpow2.f32 %v1848_v2  ;;  %v2163_v4 = vpop.xlane.xlu0 %2162 }
 0x8a2   : > { %3739 = vpow2.f32 %v1850_v63 }
 0x8a3   : > { %v2531_v43 = vmul.f32 %v3718_v5, %v2467_v22  ;;  %v2468_v57 = vadd.f32 %v3246_v58, %v2067_v14  ;;  %v3724_v14 = vpop.eup %3723  ;;  %3741 = vrcp.f32 %v2200_v0 }
 0x8a4   : > { %v3726_v32 = vpop.eup %3725  ;;  %v2073_v25 = vmul.f32 0.0, %v3724_v14 }
 0x8a5   : > { %v2532_v8 = vmul.f32 %v3720_v16, %v2468_v57  ;;  %v3247_v10 = vpop.f32.mrb[76].mxu0  ;;  %v3728_v30 = vpop.eup %3727 }
 0x8a6   : > { %v3248_v31 = vpop.f32.mrb[77].mxu0  ;;  %v2201_v29 = vadd.f32 %v2157_v20, %v2073_v25  ;;  %v3730_v40 = vpop.eup %3729 }
 0x8a7   : > { %v2554_v52 = vpack.c.bf16 %v2532_v8, %v2531_v43  ;;  %v3249_v44 = vadd.f32 %v3248_v31, %v3247_v10  ;;  %v3250_v51 = vpop.f32.mrb[78].mxu0  ;;  %v2074_v23 = vmul.f32 0.0, %v3730_v40  ;;  %v2166_v16 = vpop.xlane.xlu1 %2165 }
 0x8a8   : > { %v3251_v46 = vpop.f32.mrb[79].mxu0  ;;  %3743 = vrcp.f32 %v2201_v29  ;;  %v2169_v10 = vpop.xlane.xlu0 %2168 }
 0x8a9   : > { %v2469_v56 = vadd.f32 %v3249_v44, %v2068_v19  ;;  %v3252_v55 = vadd.f32 %v3251_v46, %v3250_v51  ;;  %3402 = vmatmul.mubr.msk.bf16.gmra.mrb[72].mxu1 %vm406_vm1, %v2554_v52  ;;  %v2202_v49 = vadd.f32 %v2160_v28, %v2074_v23  ;;  %3745 = vpow2.f32 %v1852_v37 }
 0x8aa   : > { %3747 = vpow2.f32 %v1854_v12 }
 0x8ab   : > { %v2533_v42 = vmul.f32 %v3726_v32, %v2469_v56  ;;  %v2470_v61 = vadd.f32 %v3252_v55, %v2069_v41  ;;  %v3732_v41 = vpop.eup %3731  ;;  %3749 = vrcp.f32 %v2202_v49  ;;  %v2172_v63 = vpop.xlane.xlu1 %2171 }
 0x8ac   : > { %v3734_v38 = vpop.eup %3733  ;;  %v2075_v62 = vmul.f32 0.0, %v3732_v41  ;;  %v2175_v0 = vpop.xlane.xlu0 %2174 }
 0x8ad   : > { %v2534_v3 = vmul.f32 %v3728_v30, %v2470_v61  ;;  %v3253_v9 = vpop.f32.mrb[80].mxu0  ;;  %v3736_v21 = vpop.eup %3735 }
 0x8ae   : > { %v3254_v19 = vpop.f32.mrb[81].mxu0  ;;  %v2203_v22 = vadd.f32 %v2163_v4, %v2075_v62  ;;  %v3738_v5 = vpop.eup %3737 }
 0x8af   : > { %v2555_v15 = vpack.c.bf16 %v2534_v3, %v2533_v42  ;;  %v3255_v1 = vadd.f32 %v3254_v19, %v3253_v9  ;;  %v3256_v33 = vpop.f32.mrb[82].mxu0  ;;  %v3740_v57 = vpop.eup %3739  ;;  %v2076_v8 = vmul.f32 0.0, %v3738_v5 }
 0x8b0   : > { %v3257_v48 = vpop.f32.mrb[83].mxu0  ;;  %3751 = vrcp.f32 %v2203_v22  ;;  %v2077_v52 = vmul.f32 0.0, %v3740_v57 }
 0x8b1   : > { %v2471_v34 = vadd.f32 %v3255_v1, %v2070_v6  ;;  %v3258_v50 = vadd.f32 %v3257_v48, %v3256_v33  ;;  %3405 = vmatprep.mubr.msk.bf16.mxu1 %vm406_vm1, %v2555_v15  ;;  %v2204_v18 = vadd.f32 %v2166_v16, %v2076_v8 }
 0x8b2   : > { %v2205_v46 = vadd.f32 %v2169_v10, %v2077_v52 }
 0x8b3   : > { %v2535_v13 = vmul.f32 %v3734_v38, %v2471_v34  ;;  %v2472_v36 = vadd.f32 %v3258_v50, %v2071_v47  ;;  %v3742_v47 = vpop.eup %3741  ;;  %3753 = vrcp.f32 %v2204_v18 }
 0x8b4   : > { %v3744_v27 = vpop.eup %3743  ;;  %3755 = vrcp.f32 %v2205_v46 }
 0x8b5   : > { %v2536_v24 = vmul.f32 %v3736_v21, %v2472_v36  ;;  %v3259_v11 = vpop.f32.mrb[84].mxu0  ;;  %v3746_v2 = vpop.eup %3745 }
 0x8b6   : > { %v3260_v58 = vpop.f32.mrb[85].mxu0  ;;  %v2078_v30 = vmul.f32 0.0, %v3746_v2 }
 0x8b7   : > { %v2556_v6 = vpack.c.bf16 %v2536_v24, %v2535_v13  ;;  %v3261_v53 = vadd.f32 %v3260_v58, %v3259_v11  ;;  %v3262_v54 = vpop.f32.mrb[86].mxu0 }
 0x8b8   : > { %v3263_v43 = vpop.f32.mrb[87].mxu0  ;;  %v2206_v3 = vadd.f32 %v2172_v63, %v2078_v30 }
 0x8b9   : > { %v2473_v39 = vadd.f32 %v3261_v53, %v2072_v7  ;;  %v3264_v59 = vadd.f32 %v3263_v43, %v3262_v54  ;;  %3406 = vmatmul.mubr.msk.bf16.gmra.mrb[76].mxu1 %vm406_vm1, %v2556_v6  ;;  %v3748_v7 = vpop.eup %3747  ;;  %v5282_v54 = vld [vmem:[%s5476_s8] ss:$0 sm:$0xff] }
 0x8ba   : > { %v3750_v61 = vpop.eup %3749  ;;  %v2079_v9 = vmul.f32 0.0, %v3748_v7  ;;  %3757 = vrcp.f32 %v2206_v3 }
 0x8bb   : > { %v2537_v17 = vmul.f32 %v3742_v47, %v2473_v39  ;;  %v2474_v31 = vadd.f32 %v3264_v59, %v2073_v25  ;;  %v3752_v45 = vpop.eup %3751  ;;  %v5591_v47 = vld [vmem:[#allocation7_spill] sm:$0xff] }
 0x8bc   : > { %v2207_v40 = vadd.f32 %v2175_v0, %v2079_v9  ;;  %v5597_v0 = vld [vmem:[#allocation12_spill] sm:$0xff] }
 0x8bd   : > { %v2538_v44 = vmul.f32 %v3744_v27, %v2474_v31  ;;  %v3265_v51 = vpop.f32.mrb[88].mxu0  ;;  %v3754_v28 = vpop.eup %3753  ;;  %v5592_v31 = vld [vmem:[#allocation5_spill] sm:$0xff] }
 0x8be   : > { %v3266_v14 = vpop.f32.mrb[89].mxu0  ;;  %3759 = vrcp.f32 %v2207_v40  ;;  %v3756_v38 = vpop.eup %3755 }
 0x8bf   : > { %v2557_v26 = vpack.c.bf16 %v2538_v44, %v2537_v17  ;;  %v3267_v56 = vadd.f32 %v3266_v14, %v3265_v51  ;;  %v3268_v55 = vpop.f32.mrb[90].mxu0  ;;  %v5594_v51 = vld [vmem:[#allocation6_spill] sm:$0xff] }
 0x8c0   : > { %v3269_v32 = vpop.f32.mrb[91].mxu0 }
 0x8c1   : > { %v2475_v20 = vadd.f32 %v3267_v56, %v2074_v23  ;;  %v3270_v42 = vadd.f32 %v3269_v32, %v3268_v55  ;;  %3409 = vmatprep.mubr.msk.bf16.mxu1 %vm406_vm1, %v2557_v26  ;;  %v5595_v32 = vld [vmem:[#allocation11_spill] sm:$0xff] }
 0x8c3   : > { %v2539_v25 = vmul.f32 %v3750_v61, %v2475_v20  ;;  %v2476_v35 = vadd.f32 %v3270_v42, %v2075_v62  ;;  %v5596_v42 = vld [vmem:[#allocation9_spill] sm:$0xff] }
 0x8c4   : > { %v3758_v11 = vpop.eup %3757 }
 0x8c5   : > { %v2540_v29 = vmul.f32 %v3752_v45, %v2476_v35  ;;  %v3271_v19 = vpop.f32.mrb[92].mxu0  ;;  %v5598_v35 = vld [vmem:[#allocation10_spill] sm:$0xff] }
 0x8c6   : > { %v3272_v60 = vpop.f32.mrb[93].mxu0 }
 0x8c7   : > { %v2558_v15 = vpack.c.bf16 %v2540_v29, %v2539_v25  ;;  %v3273_v1 = vadd.f32 %v3272_v60, %v3271_v19  ;;  %v3274_v33 = vpop.f32.mrb[94].mxu0  ;;  %v5599_v60 = vld [vmem:[#allocation15_spill] sm:$0xff] }
 0x8c8   : > { %v3275_v48 = vpop.f32.mrb[95].mxu0  ;;  %v3760_v5 = vpop.eup %3759 }
 0x8c9   : > { %v2477_v41 = vadd.f32 %v3273_v1, %v2076_v8  ;;  %v3276_v37 = vadd.f32 %v3275_v48, %v3274_v33  ;;  %3410 = vmatmul.mubr.msk.bf16.gmra.mrb[80].mxu1 %vm406_vm1, %v2558_v15  ;;  %v5600_v48 = vld [vmem:[#allocation13_spill] sm:$0xff] }
 0x8cb   : > { %v2541_v34 = vmul.f32 %v3754_v28, %v2477_v41  ;;  %v2478_v50 = vadd.f32 %v3276_v37, %v2077_v52  ;;  %v5593_v52 = vld [vmem:[#allocation8_spill] sm:$0xff] }
 0x8cc   : > { %v5601_v28 = vld [vmem:[#allocation16_spill] sm:$0xff] }
 0x8cd   : > { %v2542_v23 = vmul.f32 %v3756_v38, %v2478_v50  ;;  %v3277_v12 = vpop.f32.mrb[96].mxu0  ;;  %v5602_v50 = vld [vmem:[#allocation14_spill] sm:$0xff] }
 0x8ce   : > { %v3278_v4 = vpop.f32.mrb[97].mxu0 }
 0x8cf   : > { %v2559_v13 = vpack.c.bf16 %v2542_v23, %v2541_v34  ;;  %v3279_v36 = vadd.f32 %v3278_v4, %v3277_v12  ;;  %v3280_v21 = vpop.f32.mrb[98].mxu0 }
 0x8d0   : > { %v3281_v49 = vpop.f32.mrb[99].mxu0 }
 0x8d1   : > { %v2479_v62 = vadd.f32 %v3279_v36, %v2078_v30  ;;  %v3282_v24 = vadd.f32 %v3281_v49, %v3280_v21  ;;  %3413 = vmatprep.mubr.msk.bf16.mxu1 %vm406_vm1, %v2559_v13  ;;  %v5603_v21 = vld [vmem:[#allocation19_spill] sm:$0xff] }
 0x8d3   : > { %v2543_v22 = vmul.f32 %v3758_v11, %v2479_v62  ;;  %v2480_v58 = vadd.f32 %v3282_v24, %v2079_v9  ;;  %v5604_v11 = vld [vmem:[#allocation17_spill] sm:$0xff] }
 0x8d5   : > { %v2544_v6 = vmul.f32 %v3760_v5, %v2480_v58  ;;  %v5605_v5 = vld [vmem:[#allocation20_spill] sm:$0xff] }
 0x8d7   : > { %v2560_v53 = vpack.c.bf16 %v2544_v6, %v2543_v22 }
 0x8d9   : > { %3414 = vmatmul.mubr.msk.bf16.gmra.mrb[84].mxu1 %vm406_vm1, %v2560_v53  ;;  %v5606_v53 = vld [vmem:[#allocation18_spill] sm:$0xff] }
 0x915   : > { %v3387_v43 = vpop.f32.mrb[100].mxu0 }
 0x916   : > { %v2675_v57 = vadd.f32 %v3387_v43, %v5282_v54  ;;  %v2666_v16 = vpop.f32.mrb[101].mxu0 }
 0x917   : > { %v2667_v39 = vadd.f32 %v5282_v54, %v2666_v16  ;;  %v3388_v59 = vpop.f32.mrb[102].mxu0 }
 0x918   : > { %v2795_v8 = vadd.f32 %v5591_v47, %v2675_v57  ;;  %v2678_v10 = vadd.f32 %v3388_v59, %v5282_v54  ;;  %v2669_v17 = vpop.f32.mrb[103].mxu0 }
 0x919   : > { %v2793_v27 = vadd.f32 %v5592_v31, %v2667_v39  ;;  %v2670_v18 = vadd.f32 %v5282_v54, %v2669_v17 }
 0x91a   : > { %2827 = vst.msk [vmem:[%s5292_s26 + $0x10] sm:$0xff] %vm406_vm1, %v2795_v8  ;;  %v2796_v44 = vadd.f32 %v5593_v52, %v2678_v10  ;;  %v5607_v8 = vld [vmem:[#allocation23_spill] sm:$0xff] }
 0x91b   : > { %2825 = vst.msk [vmem:[%s5292_s26] sm:$0xff] %vm406_vm1, %v2793_v27  ;;  %v2794_v46 = vadd.f32 %v5594_v51, %v2670_v18  ;;  %v5608_v27 = vld [vmem:[#allocation21_spill] sm:$0xff] }
 0x91c   : > { %2828 = vst.msk [vmem:[%s5292_s26 + $0x18] sm:$0xff] %vm406_vm1, %v2796_v44  ;;  %v5609_v44 = vld [vmem:[#allocation24_spill] sm:$0xff] }
 0x91d   : > { %2826 = vst.msk [vmem:[%s5292_s26 + $0x8] sm:$0xff] %vm406_vm1, %v2794_v46  ;;  %v5610_v46 = vld [vmem:[#allocation22_spill] sm:$0xff] }
 0x925   : > { %v3391_v14 = vpop.f32.mrb[104].mxu0 }
 0x926   : > { %v2691_v2 = vadd.f32 %v3391_v14, %v5282_v54  ;;  %v2682_v26 = vpop.f32.mrb[105].mxu0 }
 0x927   : > { %v2683_v56 = vadd.f32 %v5282_v54, %v2682_v26  ;;  %v3392_v55 = vpop.f32.mrb[106].mxu0 }
 0x928   : > { %v2799_v7 = vadd.f32 %v5595_v32, %v2691_v2  ;;  %v2694_v63 = vadd.f32 %v3392_v55, %v5282_v54  ;;  %v2685_v20 = vpop.f32.mrb[107].mxu0 }
 0x929   : > { %v2797_v61 = vadd.f32 %v5596_v42, %v2683_v56  ;;  %v2686_v30 = vadd.f32 %v5282_v54, %v2685_v20 }
 0x92a   : > { %2831 = vst.msk [vmem:[%s5292_s26 + $0x30] sm:$0xff] %vm406_vm1, %v2799_v7  ;;  %v2800_v25 = vadd.f32 %v5597_v0, %v2694_v63  ;;  %v5611_v7 = vld [vmem:[#allocation27_spill] sm:$0xff] }
 0x92b   : > { %2829 = vst.msk [vmem:[%s5292_s26 + $0x20] sm:$0xff] %vm406_vm1, %v2797_v61  ;;  %v2798_v45 = vadd.f32 %v5598_v35, %v2686_v30  ;;  %v5612_v61 = vld [vmem:[#allocation25_spill] sm:$0xff] }
 0x92c   : > { %2832 = vst.msk [vmem:[%s5292_s26 + $0x38] sm:$0xff] %vm406_vm1, %v2800_v25  ;;  %v5613_v25 = vld [vmem:[#allocation28_spill] sm:$0xff] }
 0x92d   : > { %2830 = vst.msk [vmem:[%s5292_s26 + $0x28] sm:$0xff] %vm406_vm1, %v2798_v45  ;;  %v5614_v45 = vld [vmem:[#allocation26_spill] sm:$0xff] }
 0x95a   : > { %v3395_v3 = vpop.f32.mrb[108].mxu0 }
 0x95b   : > { %v2707_v9 = vadd.f32 %v3395_v3, %v5282_v54  ;;  %v2698_v29 = vpop.f32.mrb[109].mxu0 }
 0x95c   : > { %v2699_v19 = vadd.f32 %v5282_v54, %v2698_v29  ;;  %v3396_v40 = vpop.f32.mrb[110].mxu0 }
 0x95d   : > { %v2803_v15 = vadd.f32 %v5599_v60, %v2707_v9  ;;  %v2710_v1 = vadd.f32 %v3396_v40, %v5282_v54  ;;  %v2701_v33 = vpop.f32.mrb[111].mxu0 }
 0x95e   : > { %v2801_v41 = vadd.f32 %v5600_v48, %v2699_v19  ;;  %v2702_v37 = vadd.f32 %v5282_v54, %v2701_v33 }
 0x95f   : > { %2835 = vst.msk [vmem:[%s5292_s26 + $0x50] sm:$0xff] %vm406_vm1, %v2803_v15  ;;  %v2804_v34 = vadd.f32 %v5601_v28, %v2710_v1  ;;  %v5615_v15 = vld [vmem:[#allocation31_spill] sm:$0xff] }
 0x960   : > { %2833 = vst.msk [vmem:[%s5292_s26 + $0x40] sm:$0xff] %vm406_vm1, %v2801_v41  ;;  %v2802_v38 = vadd.f32 %v5602_v50, %v2702_v37  ;;  %v5616_v41 = vld [vmem:[#allocation29_spill] sm:$0xff] }
 0x961   : > { %2836 = vst.msk [vmem:[%s5292_s26 + $0x58] sm:$0xff] %vm406_vm1, %v2804_v34  ;;  %v5617_v34 = vld [vmem:[#allocation32_spill] sm:$0xff] }
 0x962   : > { %2834 = vst.msk [vmem:[%s5292_s26 + $0x48] sm:$0xff] %vm406_vm1, %v2802_v38  ;;  %v5618_v38 = vld [vmem:[#allocation30_spill] sm:$0xff] }
 0x96c   : > { %v3399_v23 = vpop.f32.mrb[68].mxu1 }
 0x96d   : > { %v2723_v12 = vadd.f32 %v3399_v23, %v5282_v54  ;;  %v2714_v4 = vpop.f32.mrb[69].mxu1 }
 0x96e   : > { %v2715_v13 = vadd.f32 %v5282_v54, %v2714_v4  ;;  %v3400_v36 = vpop.f32.mrb[70].mxu1 }
 0x96f   : > { %v2807_v49 = vadd.f32 %v5603_v21, %v2723_v12  ;;  %v2726_v62 = vadd.f32 %v3400_v36, %v5282_v54  ;;  %v2717_v24 = vpop.f32.mrb[71].mxu1 }
 0x970   : > { %v2805_v22 = vadd.f32 %v5604_v11, %v2715_v13  ;;  %v2718_v58 = vadd.f32 %v5282_v54, %v2717_v24 }
 0x971   : > { %2839 = vst.msk [vmem:[%s5292_s26 + $0x70] sm:$0xff] %vm406_vm1, %v2807_v49  ;;  %v2808_v6 = vadd.f32 %v5605_v5, %v2726_v62  ;;  %v5619_v49 = vld [vmem:[#allocation35_spill] sm:$0xff] }
 0x972   : > { %2837 = vst.msk [vmem:[%s5292_s26 + $0x60] sm:$0xff] %vm406_vm1, %v2805_v22  ;;  %v2806_v43 = vadd.f32 %v5606_v53, %v2718_v58  ;;  %v5620_v22 = vld [vmem:[#allocation33_spill] sm:$0xff] }
 0x973   : > { %2840 = vst.msk [vmem:[%s5292_s26 + $0x78] sm:$0xff] %vm406_vm1, %v2808_v6  ;;  %v5621_v6 = vld [vmem:[#allocation36_spill] sm:$0xff] }
 0x974   : > { %2838 = vst.msk [vmem:[%s5292_s26 + $0x68] sm:$0xff] %vm406_vm1, %v2806_v43  ;;  %v5622_v43 = vld [vmem:[#allocation34_spill] sm:$0xff] }
 0x97c   : > { %v3403_v57 = vpop.f32.mrb[72].mxu1 }
 0x97d   : > { %v2739_v16 = vadd.f32 %v3403_v57, %v5282_v54  ;;  %v2730_v39 = vpop.f32.mrb[73].mxu1 }
 0x97e   : > { %v2731_v59 = vadd.f32 %v5282_v54, %v2730_v39  ;;  %v3404_v47 = vpop.f32.mrb[74].mxu1 }
 0x97f   : > { %v2811_v10 = vadd.f32 %v5607_v8, %v2739_v16  ;;  %v2742_v17 = vadd.f32 %v3404_v47, %v5282_v54  ;;  %v2733_v31 = vpop.f32.mrb[75].mxu1 }
 0x980   : > { %v2809_v18 = vadd.f32 %v5608_v27, %v2731_v59  ;;  %v2734_v52 = vadd.f32 %v5282_v54, %v2733_v31 }
 0x981   : > { %2843 = vst.msk [vmem:[%s5292_s26 + $0x90] sm:$0xff] %vm406_vm1, %v2811_v10  ;;  %v2812_v51 = vadd.f32 %v5609_v44, %v2742_v17 }
 0x982   : > { %2841 = vst.msk [vmem:[%s5292_s26 + $0x80] sm:$0xff] %vm406_vm1, %v2809_v18  ;;  %v2810_v14 = vadd.f32 %v5610_v46, %v2734_v52 }
 0x983   : > { %2844 = vst.msk [vmem:[%s5292_s26 + $0x98] sm:$0xff] %vm406_vm1, %v2812_v51 }
 0x984   : > { %2842 = vst.msk [vmem:[%s5292_s26 + $0x88] sm:$0xff] %vm406_vm1, %v2810_v14 }
 0x98c   : > { %v3407_v2 = vpop.f32.mrb[76].mxu1 }
 0x98d   : > { %v2755_v26 = vadd.f32 %v3407_v2, %v5282_v54  ;;  %v2746_v56 = vpop.f32.mrb[77].mxu1 }
 0x98e   : > { %v2747_v55 = vadd.f32 %v5282_v54, %v2746_v56  ;;  %v3408_v32 = vpop.f32.mrb[78].mxu1 }
 0x98f   : > { %v2815_v63 = vadd.f32 %v5611_v7, %v2755_v26  ;;  %v2758_v20 = vadd.f32 %v3408_v32, %v5282_v54  ;;  %v2749_v42 = vpop.f32.mrb[79].mxu1 }
 0x990   : > { %v2813_v30 = vadd.f32 %v5612_v61, %v2747_v55  ;;  %v2750_v0 = vadd.f32 %v5282_v54, %v2749_v42 }
 0x991   : > { %2847 = vst.msk [vmem:[%s5292_s26 + $0xb0] sm:$0xff] %vm406_vm1, %v2815_v63  ;;  %v2816_v35 = vadd.f32 %v5613_v25, %v2758_v20 }
 0x992   : > { %2845 = vst.msk [vmem:[%s5292_s26 + $0xa0] sm:$0xff] %vm406_vm1, %v2813_v30  ;;  %v2814_v3 = vadd.f32 %v5614_v45, %v2750_v0 }
 0x993   : > { %2848 = vst.msk [vmem:[%s5292_s26 + $0xb8] sm:$0xff] %vm406_vm1, %v2816_v35 }
 0x994   : > { %2846 = vst.msk [vmem:[%s5292_s26 + $0xa8] sm:$0xff] %vm406_vm1, %v2814_v3 }
 0x99c   : > { %v3411_v9 = vpop.f32.mrb[80].mxu1 }
 0x99d   : > { %v2771_v29 = vadd.f32 %v3411_v9, %v5282_v54  ;;  %v2762_v19 = vpop.f32.mrb[81].mxu1 }
 0x99e   : > { %v2763_v40 = vadd.f32 %v5282_v54, %v2762_v19  ;;  %v3412_v60 = vpop.f32.mrb[82].mxu1 }
 0x99f   : > { %v2819_v1 = vadd.f32 %v5615_v15, %v2771_v29  ;;  %v2774_v33 = vadd.f32 %v3412_v60, %v5282_v54  ;;  %v2765_v48 = vpop.f32.mrb[83].mxu1 }
 0x9a0   : > { %v2817_v37 = vadd.f32 %v5616_v41, %v2763_v40  ;;  %v2766_v28 = vadd.f32 %v5282_v54, %v2765_v48 }
 0x9a1   : > { %2851 = vst.msk [vmem:[%s5292_s26 + $0xd0] sm:$0xff] %vm406_vm1, %v2819_v1  ;;  %v2820_v50 = vadd.f32 %v5617_v34, %v2774_v33 }
 0x9a2   : > { %2849 = vst.msk [vmem:[%s5292_s26 + $0xc0] sm:$0xff] %vm406_vm1, %v2817_v37  ;;  %v2818_v23 = vadd.f32 %v5618_v38, %v2766_v28 }
 0x9a3   : > { %2852 = vst.msk [vmem:[%s5292_s26 + $0xd8] sm:$0xff] %vm406_vm1, %v2820_v50 }
 0x9a4   : > { %2850 = vst.msk [vmem:[%s5292_s26 + $0xc8] sm:$0xff] %vm406_vm1, %v2818_v23 }
 0x9ac   : > { %v3415_v12 = vpop.f32.mrb[84].mxu1 }
 0x9ad   : > { %v2787_v4 = vadd.f32 %v3415_v12, %v5282_v54  ;;  %v2778_v13 = vpop.f32.mrb[85].mxu1 }
 0x9ae   : > { %v2779_v36 = vadd.f32 %v5282_v54, %v2778_v13  ;;  %v3416_v21 = vpop.f32.mrb[86].mxu1 }
 0x9af   : > { %v2823_v62 = vadd.f32 %v5619_v49, %v2787_v4  ;;  %v2790_v24 = vadd.f32 %v3416_v21, %v5282_v54  ;;  %v2781_v11 = vpop.f32.mrb[87].mxu1 }
 0x9b0   : > { %v2821_v58 = vadd.f32 %v5620_v22, %v2779_v36  ;;  %v2782_v5 = vadd.f32 %v5282_v54, %v2781_v11 }
 0x9b1   : > { %2855 = vst.msk [vmem:[%s5292_s26 + $0xf0] sm:$0xff] %vm406_vm1, %v2823_v62  ;;  %v2824_v53 = vadd.f32 %v5621_v6, %v2790_v24 }
 0x9b2   : > { %2853 = vst.msk [vmem:[%s5292_s26 + $0xe0] sm:$0xff] %vm406_vm1, %v2821_v58  ;;  %v2822_v57 = vadd.f32 %v5622_v43, %v2782_v5 }
 0x9b3   : > { %2856 = vst.msk [vmem:[%s5292_s26 + $0xf8] sm:$0xff] %vm406_vm1, %v2824_v53 }
 0x9b4   : > { %2854 = vst.msk [vmem:[%s5292_s26 + $0xe8] sm:$0xff] %vm406_vm1, %v2822_v57 }
 0x9b5   : > { %3774 = shalt.err (!%p3771_p3)
}
 0x9b6   : > { %s3775_s22 = scalar_lea.hbm %s5414_s16, 4096  ;;  %s3779_s27 = scalar_lea.hbm %s5477_s9, 8192 }
 0x9b7   : > { %p3776_p4 = scmp.ne.s32.totalorder %s5414_s16, %s3775_s22  ;;  %p3780_p9 = scmp.lt.u32.totalorder %s5414_s16, %s5477_s9 }
 0x9b8   : > { %p3781_p10 = scmp.lt.u32.totalorder %s3779_s27, %s3775_s22  ;;  %p3783_p12 = scmp.lt.u32.totalorder %s3775_s22, %s5414_s16 }
 0x9b9   : > { %p3777_p7 = pnand %p3776_p4, %p3921_p5 }
 0x9ba   : > { %p3782_p11 = por %p3781_p10, %p3780_p9 }
 0x9bb   : > { %p3778_p8 = pneg %p3777_p7 }
 0x9bc   : > { %p3784_p13 = por %p3783_p12, %p3782_p11 }
 0x9be   : > { %p3785_p0 = pnand %p3784_p13, %p3778_p8 }
 0x9c0   : > { %3788 = shalt.err (!%p3785_p0)
}
 0x9c1   : > { %s3831_s17 = smov 128   ;;  %s3832_s21 = smov 8  }
 0x9c2   : > { %3453 = dma.vmem_to_hbm [thread:$0]  (%p3921_p5), %s5416_s28, 4096, %s5414_s16, %s5427_s13, %s3831_s17, %s3831_s17, %s3832_s21  }
 0x9c3 PF: > { %p3459_p1 = scmp.ge.s32.totalorder %s3823_s12, 2  ;;  %s2886_s23 = sand.u32 1, %s3811_s30  }
 0x9c4   : > { %s2887_s24 = scalar_lea.sflag [#allocation3], %s2886_s23 }
 0x9c5   : > { %p3456_p2 = pnand %p3459_p1, %p3925_p6 }
 0x9c7   : > { %3806 = dma.done.wait (!%p3456_p2), %s2887_s24, 4096  }
 0x9c8   : > { %3808 = vsyncadd (!%p3456_p2), %s2887_s24, 4294963200  ;;  %p19_p3 = scmp.ge.s32.totalorder %s3908_s15, 4   ;;  %s5623_s30 = smov %s3815_s10 }
 0x9c9   : > { %s5624_s10 = smov %s3819_s11  ;;  %s5625_s11 = smov %s3919_s18 }
 0x9ca   : > { %s5626_s12 = smov %s3908_s15  ;;  %21 = sbr.rel (!%p19_p3) target bundleno = 3 (0x3), region = 91 }
 0x9d1   :  { %2892 = vsyncpa [#allocation3], 1 }
 0x9d2   :  { %2894 = vsyncpa [#allocation3 + $0x1], 1 }

// kernel: unet_block_forward.4
= control target key start
LH: loop header
LB: loop body
LE: loop exit
PB: predicated region body
PF: predicated region fallthrough
CT: control target
= control target key end

     0   :  { %s3648_s24 = smov 0   ;;  %s4958_s0 = inlined_call_operand.vmem [shape: bf16[2,16,16,32], index: 0, kind: input, shape index: {}]   ;;  %s4959_s1 = inlined_call_operand.vmem [shape: f32[1,32], index: 1, kind: input, shape index: {}]   ;;  %s4960_s2 = inlined_call_operand.vmem [shape: f32[1,32], index: 2, kind: input, shape index: {}]   ;;  %s4961_s3 = inlined_call_operand.vmem [shape: f32[32,32], index: 3, kind: input, shape index: {}]   ;;  %s4962_s4 = inlined_call_operand.vmem [shape: f32[32,32], index: 4, kind: input, shape index: {}]   ;;  %s4963_s5 = inlined_call_operand.vmem [shape: bf16[288,32], index: 5, kind: input, shape index: {}]   ;;  %s4964_s6 = inlined_call_operand.vmem [shape: f32[1,32], index: 6, kind: input, shape index: {}]   ;;  %s4965_s7 = inlined_call_operand.vmem [shape: bf16[2,16,16,32], index: 7, kind: output, shape index: {}]  }
   0x1 LB: > { %s2808_s25 = sadd.s32 4294967295, %s3600_s24   ;;  %p2812_p0 = scmp.ge.s32.totalorder %s3600_s24, 1  ;;  %s3600_s24 = sphi %s3648_s24, %s17_s24  }
   0x2   : > { %p237_p1 = scmp.lt.s32.totalorder %s3600_s24, 3 }
   0x4   : > { %p238_p2 = pnand %p2812_p0, %p237_p1 }
   0x5   : > { %v346_v0 = vld [vmem:[%s4961_s3] sm:$0xff] (!%p238_p2)  ;;  %v347_v1 = vld [vmem:[%s4961_s3 + $0x8] sm:$0xff] (!%p238_p2)  ;;  %v348_v2 = vld [vmem:[%s4961_s3 + $0x10] sm:$0xff] (!%p238_p2)  ;;  %v3602_v3 = vmov (!%p238_p2), 0.0|0.0   ;;  %vm3603_vm0 = vmmov (!%p238_p2), 0   ;;  %v3604_v6 = vmov (!%p238_p2), 0.0  }
   0x6   : > { %241 = sbr.rel (%p238_p2) target bundleno = 1530 (0x5fa), region = 48  ;;  %3330 = vmatprep.subr.bf16.mxu0 (!%p238_p2), %v3602_v3  ;;  %v3666_v4 = vpack.c.bf16 (!%p238_p2), %v347_v1, %v346_v0  ;;  %v349_v5 = vld [vmem:[%s4961_s3 + $0x18] sm:$0xff] (!%p238_p2)  ;;  %3162 = vmatprep.mubr.msk.f32.mxu0 (!%p238_p2), %vm3603_vm0, %v3604_v6  ;;  %p269_p3 = scmp.lt.s32.totalorder (!%p238_p2), %s2808_s25, 1  ;;  %v350_v7 = vld [vmem:[%s4962_s4] sm:$0xff] (!%p238_p2)  ;;  %v351_v8 = vld [vmem:[%s4962_s4 + $0x8] sm:$0xff] (!%p238_p2)  ;;  %vm354_vm1 = vcmask (!%p238_p2), 261120  }
   0x7   : > { %3336 = vmatprep.subr.bf16.mxu1 (!%p238_p2), %v3602_v3  ;;  %v3680_v9 = vpack.c.bf16 (!%p238_p2), %v351_v8, %v350_v7  ;;  %3173 = vmatprep.mubr.msk.f32.mxu1 (!%p238_p2), %vm3603_vm0, %v3604_v6  ;;  %v3685_v10 = vpack.c.bf16 (!%p238_p2), %v349_v5, %v348_v2  ;;  %vm1176_vm2 = vcmask (!%p238_p2), 253952   ;;  %vm1177_vm3 = vsmask.f32 (!%p238_p2), 256  ;;  %s3605_s27 = smov (!%p238_p2), 32   ;;  %s3606_s11 = smov (!%p238_p2), 64  }
   0x8   : > { %3332 = vmatpush3.bf16.msra.mxu0 (!%p238_p2), %v3666_v4  ;;  %vm1227_vm4 = vcmask (!%p238_p2), 785927   ;;  %vm1228_vm5 = vsmask.f32 (!%p238_p2), 7966  ;;  %vm4161_vm6 = vmand (!%p238_p2), %vm1176_vm2, %vm1177_vm3  ;;  %vm1407_vm8 = vsmask.f32 (!%p238_p2), 7938  ;;  %vm1171_vm10 = vcmask (!%p238_p2), 785408  }
   0x9   : > { %3333 = vmatprep.subr.bf16.mxu0 (!%p238_p2), %v3602_v3  ;;  %3338 = vmatpush3.bf16.msra.mxu1 (!%p238_p2), %v3680_v9  ;;  %vm4167_vm7 = vmand (!%p238_p2), %vm1227_vm4, %vm1228_vm5  ;;  %vm1521_vm11 = vcmask (!%p238_p2), 523520   ;;  %vm1618_vm12 = vcmask (!%p238_p2), 785920   ;;  %vm1619_vm13 = vsmask.f32 (!%p238_p2), 7424  ;;  %vm2720_vm15 = vcmask (!%p238_p2), 257024  }
   0xa   : > { %3339 = vmatprep.subr.bf16.mxu1 (!%p238_p2), %v3602_v3  ;;  %vm4565_vm9 = vmand (!%p238_p2), %vm354_vm1, %vm1407_vm8 }
   0xb   : > { %vm4682_vm14 = vmand (!%p238_p2), %vm1618_vm12, %vm1619_vm13 }
   0xc   : > { %3335 = vmatpush3.bf16.msra.mxu0 (!%p238_p2), %v3685_v10 }
   0xd   : > { %s4987_s25 = smov (!%p269_p3, %s2808_s25), 1  ;;  %3342 = vmatprep.subr.bf16.mxu0 %v3602_v3 }
   0xe   : > { %s2955_s15 = sshll.u32 %s4987_s25, 7 }
   0xf   : > { %s3698_s18 = scalar_lea.vmem %s4958_s0, %s2955_s15  ;;  %s4855_s12 = scalar_lea.vmem %s4965_s7, %s2955_s15 }
  0x10   : > { %v3703_v11 = vld [vmem:[%s3698_s18] sm:$0xff]   ;;  %v3706_v12 = vld [vmem:[%s3698_s18 + $0x8] sm:$0xff]   ;;  %v3712_v16 = vld [vmem:[%s3698_s18 + $0x10] sm:$0xff]  }
  0x11   : > { %v2991_v13 = vunpack.c.l.bf16 %v3703_v11  ;;  %v2992_v14 = vunpack.c.h.bf16 %v3703_v11  ;;  %v2995_v15 = vunpack.c.l.bf16 %v3706_v12  ;;  %v2996_v17 = vunpack.c.h.bf16 %v3706_v12  ;;  %v3726_v22 = vld [vmem:[%s3698_s18 + $0x18] sm:$0xff]   ;;  %v3737_v29 = vld [vmem:[%s3698_s18 + $0x20] sm:$0xff]   ;;  %v3745_v35 = vld [vmem:[%s3698_s18 + $0x28] sm:$0xff]  }
  0x12   : > { %v2999_v18 = vunpack.c.l.bf16 %v3712_v16  ;;  %v3000_v24 = vunpack.c.h.bf16 %v3712_v16  ;;  %v3003_v27 = vunpack.c.l.bf16 %v3726_v22  ;;  %v3004_v31 = vunpack.c.h.bf16 %v3726_v22  ;;  %v3759_v43 = vld [vmem:[%s3698_s18 + $0x30] sm:$0xff]   ;;  %v3770_v50 = vld [vmem:[%s3698_s18 + $0x38] sm:$0xff]   ;;  %v3781_v57 = vld [vmem:[%s3698_s18 + $0x40] sm:$0xff]  }
  0x13   : > { %v355_v19 = vsel %vm354_vm1, %v2991_v13, 0.0  ;;  %v356_v20 = vsel %vm354_vm1, %v2992_v14, 0.0  ;;  %v358_v21 = vsel %vm354_vm1, %v2995_v15, 0.0  ;;  %v360_v25 = vsel %vm354_vm1, %v2996_v17, 0.0  ;;  %v3792_v0 = vld [vmem:[%s3698_s18 + $0x48] sm:$0xff]  }
  0x14   : > { %v357_v23 = vadd.f32 %v356_v20, %v355_v19  ;;  %v362_v28 = vsel %vm354_vm1, %v2999_v18, 0.0  ;;  %v364_v32 = vsel %vm354_vm1, %v3000_v24, 0.0  ;;  %v3007_v34 = vunpack.c.l.bf16 %v3737_v29  ;;  %v3803_v20 = vld [vmem:[%s3698_s18 + $0x50] sm:$0xff]  }
  0x15   : > { %v366_v36 = vsel %vm354_vm1, %v3003_v27, 0.0  ;;  %v3008_v38 = vunpack.c.h.bf16 %v3737_v29  ;;  %v368_v39 = vsel %vm354_vm1, %v3004_v31, 0.0  ;;  %v3011_v41 = vunpack.c.l.bf16 %v3745_v35 }
  0x16   : > { %v359_v26 = vadd.f32 %v358_v21, %v357_v23  ;;  %v370_v42 = vsel %vm354_vm1, %v3007_v34, 0.0  ;;  %v3012_v45 = vunpack.c.h.bf16 %v3745_v35  ;;  %v3015_v48 = vunpack.c.l.bf16 %v3759_v43 }
  0x17   : > { %v372_v46 = vsel %vm354_vm1, %v3008_v38, 0.0  ;;  %v374_v49 = vsel %vm354_vm1, %v3011_v41, 0.0  ;;  %v3016_v52 = vunpack.c.h.bf16 %v3759_v43  ;;  %v3019_v55 = vunpack.c.l.bf16 %v3770_v50 }
  0x18   : > { %v361_v30 = vadd.f32 %v360_v25, %v359_v26  ;;  %v376_v53 = vsel %vm354_vm1, %v3012_v45, 0.0  ;;  %v378_v56 = vsel %vm354_vm1, %v3015_v48, 0.0  ;;  %v3020_v59 = vunpack.c.h.bf16 %v3770_v50 }
  0x19   : > { %v380_v60 = vsel %vm354_vm1, %v3016_v52, 0.0  ;;  %v3023_v62 = vunpack.c.l.bf16 %v3781_v57  ;;  %v382_v63 = vsel %vm354_vm1, %v3019_v55, 0.0  ;;  %v3024_v2 = vunpack.c.h.bf16 %v3781_v57 }
  0x1a   : > { %v363_v33 = vadd.f32 %v362_v28, %v361_v30  ;;  %v384_v5 = vsel %vm354_vm1, %v3020_v59, 0.0  ;;  %v3027_v8 = vunpack.c.l.bf16 %v3792_v0  ;;  %v3028_v23 = vunpack.c.h.bf16 %v3792_v0 }
  0x1b   : > { %v386_v19 = vsel %vm354_vm1, %v3023_v62, 0.0  ;;  %v388_v25 = vsel %vm354_vm1, %v3024_v2, 0.0  ;;  %v3031_v28 = vunpack.c.l.bf16 %v3803_v20 }
  0x1c   : > { %v365_v37 = vadd.f32 %v364_v32, %v363_v33  ;;  %v390_v30 = vsel %vm354_vm1, %v3027_v8, 0.0  ;;  %v3814_v32 = vld [vmem:[%s3698_s18 + $0x58] sm:$0xff]  }
  0x1e   : > { %v367_v40 = vadd.f32 %v366_v36, %v365_v37  ;;  %v3032_v36 = vunpack.c.h.bf16 %v3803_v20  ;;  %v392_v37 = vsel %vm354_vm1, %v3028_v23, 0.0 }
  0x20   : > { %v369_v44 = vadd.f32 %v368_v39, %v367_v40  ;;  %v3035_v40 = vunpack.c.l.bf16 %v3814_v32 }
  0x22   : > { %v371_v47 = vadd.f32 %v370_v42, %v369_v44  ;;  %v394_v42 = vsel %vm354_vm1, %v3031_v28, 0.0  ;;  %v3825_v44 = vld [vmem:[%s3698_s18 + $0x60] sm:$0xff]  }
  0x24   : > { %v373_v51 = vadd.f32 %v372_v46, %v371_v47  ;;  %v3036_v47 = vunpack.c.h.bf16 %v3814_v32  ;;  %v4972_v32 = vunpack.c.h.bf16 %v3825_v44 }
  0x26   : > { %v375_v54 = vadd.f32 %v374_v49, %v373_v51  ;;  %v396_v49 = vsel %vm354_vm1, %v3032_v36, 0.0 }
  0x28   : > { %v377_v58 = vadd.f32 %v376_v53, %v375_v54  ;;  %v3039_v53 = vunpack.c.l.bf16 %v3825_v44  ;;  %v398_v54 = vsel %vm354_vm1, %v3035_v40, 0.0 }
  0x2a   : > { %v379_v61 = vadd.f32 %v378_v56, %v377_v58  ;;  %v3836_v56 = vld [vmem:[%s3698_s18 + $0x68] sm:$0xff]  }
  0x2c   : > { %v381_v1 = vadd.f32 %v380_v60, %v379_v61  ;;  %v4969_v60 = vunpack.c.h.bf16 %v3825_v44  ;;  %v400_v61 = vsel %vm354_vm1, %v3036_v47, 0.0  ;;  %v4974_v44 = vunpack.c.h.bf16 %v3836_v56 }
  0x2e   : > { %v383_v7 = vadd.f32 %v382_v63, %v381_v1  ;;  %v4968_v1 = vunpack.c.l.bf16 %v3836_v56 }
  0x30   : > { %v385_v21 = vadd.f32 %v384_v5, %v383_v7  ;;  %v402_v5 = vsel %vm354_vm1, %v3039_v53, 0.0  ;;  %v3847_v7 = vld [vmem:[%s3698_s18 + $0x70] sm:$0xff]  }
  0x32   : > { %v387_v26 = vadd.f32 %v386_v19, %v385_v21  ;;  %v4967_v21 = vunpack.c.h.bf16 %v3836_v56 }
  0x34   : > { %v389_v33 = vadd.f32 %v388_v25, %v387_v26  ;;  %v404_v25 = vsel %vm354_vm1, %v4969_v60, 0.0 }
  0x36   : > { %v391_v39 = vadd.f32 %v390_v30, %v389_v33  ;;  %v4966_v30 = vunpack.c.l.bf16 %v3847_v7  ;;  %v406_v33 = vsel %vm354_vm1, %v4968_v1, 0.0 }
  0x38   : > { %v393_v46 = vadd.f32 %v392_v37, %v391_v39  ;;  %v3858_v37 = vld [vmem:[%s3698_s18 + $0x78] sm:$0xff]  }
  0x3a   : > { %v395_v51 = vadd.f32 %v394_v42, %v393_v46  ;;  %v3048_v42 = vunpack.c.h.bf16 %v3847_v7  ;;  %v408_v46 = vsel %vm354_vm1, %v4967_v21, 0.0 }
  0x3c   : > { %v397_v58 = vadd.f32 %v396_v49, %v395_v51  ;;  %v3051_v51 = vunpack.c.l.bf16 %v3858_v37 }
  0x3e   : > { %v399_v63 = vadd.f32 %v398_v54, %v397_v58  ;;  %v410_v54 = vsel %vm354_vm1, %v4966_v30, 0.0 }
  0x40   : > { %v401_v19 = vadd.f32 %v400_v61, %v399_v63  ;;  %v3052_v61 = vunpack.c.h.bf16 %v3858_v37  ;;  %v412_v63 = vsel %vm354_vm1, %v3048_v42, 0.0 }
  0x42   : > { %v403_v26 = vadd.f32 %v402_v5, %v401_v19  ;;  %v414_v19 = vsel %vm354_vm1, %v3051_v51, 0.0 }
  0x44   : > { %v405_v39 = vadd.f32 %v404_v25, %v403_v26  ;;  %v416_v26 = vsel %vm354_vm1, %v3052_v61, 0.0 }
  0x46   : > { %v407_v49 = vadd.f32 %v406_v33, %v405_v39 }
  0x48   : > { %v409_v58 = vadd.f32 %v408_v46, %v407_v49 }
  0x4a   : > { %v411_v5 = vadd.f32 %v410_v54, %v409_v58  ;;  %v352_v54 = vld [vmem:[%s4962_s4 + $0x10] sm:$0xff] }
  0x4c   : > { %v413_v25 = vadd.f32 %v412_v63, %v411_v5 }
  0x4e   : > { %v415_v33 = vadd.f32 %v414_v19, %v413_v25 }
  0x50   : > { %v417_v39 = vadd.f32 %v416_v26, %v415_v33 }
  0x52   : > { %v418_v30 = vrot.slane %v417_v39, 4 }
  0x54   : > { %v419_v46 = vadd.f32 %v418_v30, %v417_v39  ;;  %v353_v30 = vld [vmem:[%s4962_s4 + $0x18] sm:$0xff] }
  0x56   : > { %v420_v49 = vrot.slane %v419_v46, 2 }
  0x58   : > { %v421_v21 = vadd.f32 %v420_v49, %v419_v46 }
  0x5a   : > { %v422_v1 = vrot.slane %v421_v21, 1 }
  0x5c   : > { %v423_v60 = vadd.f32 %v422_v1, %v421_v21  ;;  %v3340_v1 = vpack.c.bf16 %v353_v30, %v352_v54 }
  0x5e   : > { %3163 = vmatmul.mubr.msk.f32.vlgmr.msra.gmra.mrb[0].mxu0 %vm354_vm1, %v423_v60  ;;  %3341 = vmatpush3.bf16.msra.mxu1 %v3340_v1 }
  0x5f   : > { %3344 = vmatpush3.bf16.msra.mxu0 %v3666_v4  ;;  %3184 = vmatprep.mubr.msk.f32.mxu0 %vm3603_vm0, %v3604_v6 }
  0x60   : > { %3345 = vmatprep.subr.bf16.mxu0 %v3602_v3  ;;  %3348 = vmatprep.subr.bf16.mxu1 %v3602_v3 }
  0x63   : > { %3347 = vmatpush3.bf16.msra.mxu0 %v3685_v10  ;;  %v571_v10 = vlaneseq }
  0x65   : > { %v3896_v58 = vshrl.u32 %v571_v10, 7 }
  0x67   : > { %v573_v19 = vsub.s32 0, %v3896_v58 }
 0x131   : > { %v493_v4 = vpop.f32.mrb[0].mxu0 }
 0x132   : > { %v497_v60 = vmul.f32 0.00390625, %v493_v4  ;;  %v3164_v21 = vpop.f32.mrb[1].mxu0 }
 0x134   : > { %3174 = vmatmul.mubr.msk.f32.vlgmr.msra.gmra.mrb[0].mxu1 %vm354_vm1, %v497_v60 }
 0x135   : > { %3350 = vmatpush3.bf16.msra.mxu1 %v3680_v9  ;;  %3195 = vmatprep.mubr.msk.f32.mxu1 %vm3603_vm0, %v3604_v6 }
 0x136   : > { %3351 = vmatprep.subr.bf16.mxu1 %v3602_v3 }
 0x139   : > { %3353 = vmatpush3.bf16.msra.mxu1 %v3340_v1 }
 0x207   : > { %v567_v63 = vpop.f32.mrb[0].mxu1 }
 0x208   : > { %v3175_v5 = vpop.f32.mrb[1].mxu1  ;;  %v3901_v25 = vrot.slane %v567_v63, %v573_v19 }
 0x20a   : > { %v3906_v9 = vsub.f32 %v2991_v13, %v3901_v25  ;;  %v3911_v3 = vsub.f32 %v2992_v14, %v3901_v25  ;;  %v3916_v6 = vsub.f32 %v2995_v15, %v3901_v25  ;;  %v3921_v26 = vsub.f32 %v2996_v17, %v3901_v25 }
 0x20b   : > { %v3930_v11 = vsub.f32 %v2999_v18, %v3901_v25  ;;  %v3937_v12 = vsub.f32 %v3000_v24, %v3901_v25  ;;  %v3946_v18 = vsub.f32 %v3003_v27, %v3901_v25  ;;  %v3954_v54 = vsub.f32 %v3004_v31, %v3901_v25 }
 0x20c   : > { %v607_v33 = vmul.f32 %v3906_v9, %v3906_v9  ;;  %v608_v13 = vmul.f32 %v3911_v3, %v3911_v3  ;;  %v609_v14 = vmul.f32 %v3916_v6, %v3916_v6  ;;  %v610_v15 = vmul.f32 %v3921_v26, %v3921_v26 }
 0x20d   : > { %v611_v49 = vmul.f32 %v3930_v11, %v3930_v11  ;;  %v612_v30 = vmul.f32 %v3937_v12, %v3937_v12  ;;  %v3962_v27 = vsub.f32 %v3007_v34, %v3901_v25  ;;  %v613_v60 = vmul.f32 %v3946_v18, %v3946_v18 }
 0x20e   : > { %v639_v17 = vsel %vm354_vm1, %v607_v33, 0.0  ;;  %v640_v39 = vsel %vm354_vm1, %v608_v13, 0.0  ;;  %v642_v16 = vsel %vm354_vm1, %v609_v14, 0.0  ;;  %v644_v1 = vsel %vm354_vm1, %v610_v15, 0.0 }
 0x20f   : > { %v641_v46 = vadd.f32 %v640_v39, %v639_v17  ;;  %v646_v21 = vsel %vm354_vm1, %v611_v49, 0.0  ;;  %v3970_v22 = vsub.f32 %v3008_v38, %v3901_v25  ;;  %v614_v31 = vmul.f32 %v3954_v54, %v3954_v54 }
 0x210   : > { %v648_v63 = vsel %vm354_vm1, %v612_v30, 0.0  ;;  %v3978_v34 = vsub.f32 %v3011_v41, %v3901_v25  ;;  %v615_v33 = vmul.f32 %v3962_v27, %v3962_v27  ;;  %v650_v13 = vsel %vm354_vm1, %v613_v60, 0.0 }
 0x211   : > { %v643_v24 = vadd.f32 %v642_v16, %v641_v46  ;;  %v3986_v29 = vsub.f32 %v3012_v45, %v3901_v25  ;;  %v616_v38 = vmul.f32 %v3970_v22, %v3970_v22  ;;  %v652_v15 = vsel %vm354_vm1, %v614_v31, 0.0 }
 0x212   : > { %v3994_v41 = vsub.f32 %v3015_v48, %v3901_v25  ;;  %v617_v39 = vmul.f32 %v3978_v34, %v3978_v34  ;;  %v654_v46 = vsel %vm354_vm1, %v615_v33, 0.0  ;;  %v4002_v35 = vsub.f32 %v3016_v52, %v3901_v25 }
 0x213   : > { %v645_v4 = vadd.f32 %v644_v1, %v643_v24  ;;  %v618_v45 = vmul.f32 %v3986_v29, %v3986_v29  ;;  %v656_v16 = vsel %vm354_vm1, %v616_v38, 0.0  ;;  %v4010_v48 = vsub.f32 %v3019_v55, %v3901_v25 }
 0x214   : > { %v619_v30 = vmul.f32 %v3994_v41, %v3994_v41  ;;  %v658_v1 = vsel %vm354_vm1, %v617_v39, 0.0  ;;  %v4018_v43 = vsub.f32 %v3020_v59, %v3901_v25  ;;  %v620_v52 = vmul.f32 %v4002_v35, %v4002_v35 }
 0x215   : > { %v647_v10 = vadd.f32 %v646_v21, %v645_v4  ;;  %v660_v60 = vsel %vm354_vm1, %v618_v45, 0.0  ;;  %v4026_v55 = vsub.f32 %v3023_v62, %v3901_v25  ;;  %v4034_v50 = vsub.f32 %v3024_v2, %v3901_v25 }
 0x216   : > { %v662_v31 = vsel %vm354_vm1, %v619_v30, 0.0  ;;  %v622_v59 = vmul.f32 %v4018_v43, %v4018_v43  ;;  %v4042_v62 = vsub.f32 %v3027_v8, %v3901_v25  ;;  %v4050_v57 = vsub.f32 %v3028_v23, %v3901_v25 }
 0x217   : > { %v649_v5 = vadd.f32 %v648_v63, %v647_v10  ;;  %v621_v10 = vmul.f32 %v4010_v48, %v4010_v48  ;;  %v624_v2 = vmul.f32 %v4034_v50, %v4034_v50  ;;  %v4058_v8 = vsub.f32 %v3031_v28, %v3901_v25 }
 0x218   : > { %v625_v39 = vmul.f32 %v4042_v62, %v4042_v62  ;;  %v4066_v0 = vsub.f32 %v3032_v36, %v3901_v25  ;;  %v626_v23 = vmul.f32 %v4050_v57, %v4050_v57  ;;  %v4074_v28 = vsub.f32 %v3035_v40, %v3901_v25 }
 0x219   : > { %v651_v14 = vadd.f32 %v650_v13, %v649_v5  ;;  %v664_v5 = vsel %vm354_vm1, %v620_v52, 0.0  ;;  %v623_v13 = vmul.f32 %v4026_v55, %v4026_v55  ;;  %v672_v45 = vsel %vm354_vm1, %v624_v2, 0.0 }
 0x21a   : > { %v674_v30 = vsel %vm354_vm1, %v625_v39, 0.0  ;;  %v4082_v20 = vsub.f32 %v3036_v47, %v3901_v25  ;;  %v628_v36 = vmul.f32 %v4066_v0, %v4066_v0  ;;  %v4090_v40 = vsub.f32 %v3039_v53, %v3901_v25 }
 0x21b   : > { %v653_v17 = vadd.f32 %v652_v15, %v651_v14  ;;  %v666_v14 = vsel %vm354_vm1, %v621_v10, 0.0  ;;  %v668_v15 = vsel %vm354_vm1, %v622_v59, 0.0  ;;  %v4098_v47 = vsub.f32 %v4972_v32, %v3901_v25 }
 0x21c   : > { %v4973_v53 = vunpack.c.l.bf16 %v3836_v56  ;;  %v4975_v39 = vunpack.c.l.bf16 %v3847_v7  ;;  %v4130_v56 = vsub.f32 %v3048_v42, %v3901_v25  ;;  %v4146_v7 = vsub.f32 %v3052_v61, %v3901_v25 }
 0x21d   : > { %v655_v49 = vadd.f32 %v654_v46, %v653_v17  ;;  %v670_v46 = vsel %vm354_vm1, %v623_v13, 0.0  ;;  %v632_v2 = vmul.f32 %v4098_v47, %v4098_v47 }
 0x21e   : > { %v636_v42 = vmul.f32 %v4130_v56, %v4130_v56 }
 0x21f   : > { %v657_v24 = vadd.f32 %v656_v16, %v655_v49 }
 0x221   : > { %v659_v4 = vadd.f32 %v658_v1, %v657_v24  ;;  %v627_v24 = vmul.f32 %v4058_v8, %v4058_v8 }
 0x223   : > { %v661_v21 = vadd.f32 %v660_v60, %v659_v4  ;;  %v676_v4 = vsel %vm354_vm1, %v626_v23, 0.0  ;;  %v629_v60 = vmul.f32 %v4074_v28, %v4074_v28 }
 0x225   : > { %v663_v63 = vadd.f32 %v662_v31, %v661_v21  ;;  %v678_v21 = vsel %vm354_vm1, %v627_v24, 0.0  ;;  %v630_v31 = vmul.f32 %v4082_v20, %v4082_v20  ;;  %v682_v13 = vsel %vm354_vm1, %v629_v60, 0.0 }
 0x226   : > { %v688_v24 = vsel %vm354_vm1, %v632_v2, 0.0 }
 0x227   : > { %v665_v33 = vadd.f32 %v664_v5, %v663_v63  ;;  %v680_v63 = vsel %vm354_vm1, %v628_v36, 0.0  ;;  %v4106_v5 = vsub.f32 %v4973_v53, %v3901_v25 }
 0x229   : > { %v667_v38 = vadd.f32 %v666_v14, %v665_v33  ;;  %v631_v33 = vmul.f32 %v4090_v40, %v4090_v40 }
 0x22b   : > { %v669_v17 = vadd.f32 %v668_v15, %v667_v38  ;;  %v4114_v38 = vsub.f32 %v4974_v44, %v3901_v25  ;;  %v684_v15 = vsel %vm354_vm1, %v630_v31, 0.0  ;;  %v686_v23 = vsel %vm354_vm1, %v631_v33, 0.0 }
 0x22c   : > { %v638_v31 = vmul.f32 %v4146_v7, %v4146_v7 }
 0x22d   : > { %v671_v49 = vadd.f32 %v670_v46, %v669_v17  ;;  %v4122_v46 = vsub.f32 %v4975_v39, %v3901_v25 }
 0x22f   : > { %v673_v16 = vadd.f32 %v672_v45, %v671_v49  ;;  %v633_v49 = vmul.f32 %v4106_v5, %v4106_v5  ;;  %v635_v36 = vmul.f32 %v4122_v46, %v4122_v46 }
 0x231   : > { %v675_v1 = vadd.f32 %v674_v30, %v673_v16  ;;  %v634_v16 = vmul.f32 %v4114_v38, %v4114_v38 }
 0x233   : > { %v677_v52 = vadd.f32 %v676_v4, %v675_v1  ;;  %v4138_v1 = vsub.f32 %v3051_v51, %v3901_v25  ;;  %v690_v4 = vsel %vm354_vm1, %v633_v49, 0.0  ;;  %v692_v60 = vsel %vm354_vm1, %v634_v16, 0.0  ;;  %v1236_v16 = vld [vmem:[#allocation2 + $0x18] sm:$0x80] }
 0x235   : > { %v679_v10 = vadd.f32 %v678_v21, %v677_v52  ;;  %v637_v51 = vmul.f32 %v4138_v1, %v4138_v1 }
 0x237   : > { %v681_v59 = vadd.f32 %v680_v63, %v679_v10  ;;  %v694_v10 = vsel %vm354_vm1, %v635_v36, 0.0  ;;  %v696_v63 = vsel %vm354_vm1, %v636_v42, 0.0  ;;  %v698_v61 = vsel %vm354_vm1, %v637_v51, 0.0  ;;  %v1179_v36 = vld [vmem:[#allocation2 + $0x8] sm:$0x1] }
 0x238   : > { %v1180_v42 = vsel %vm4161_vm6, 0, %v1179_v36 }
 0x239   : > { %v683_v14 = vadd.f32 %v682_v13, %v681_v59  ;;  %v700_v59 = vsel %vm354_vm1, %v638_v31, 0.0  ;;  %1181 = vst [vmem:[#allocation2 + $0x8] sm:$0x1] %v1180_v42  ;;  %v4202_v42 = vld [vmem:[%s4963_s5] sm:$0xff]  }
 0x23a   : > { %3242 = vmatprep.subr.bf16.mxu0 %v4202_v42 }
 0x23b   : > { %v685_v17 = vadd.f32 %v684_v15, %v683_v14 }
 0x23d   : > { %v687_v45 = vadd.f32 %v686_v23, %v685_v17 }
 0x23f   : > { %v689_v30 = vadd.f32 %v688_v24, %v687_v45  ;;  %v1185_v45 = vld [vmem:[#allocation2 + $0x18] sm:$0x1] }
 0x240   : > { %v1186_v24 = vsel %vm4161_vm6, 0, %v1185_v45 }
 0x241   : > { %v691_v52 = vadd.f32 %v690_v4, %v689_v30  ;;  %v1230_v4 = vld [vmem:[#allocation2 + $0x8] sm:$0x80]  ;;  %1187 = vst [vmem:[#allocation2 + $0x18] sm:$0x1] %v1186_v24 }
 0x243   : > { %v693_v21 = vadd.f32 %v692_v60, %v691_v52  ;;  %v1237_v52 = vsel %vm4167_vm7, 0, %v1236_v16  ;;  %v1231_v60 = vsel %vm4167_vm7, 0, %v1230_v4 }
 0x244   : > { %1238 = vst [vmem:[#allocation2 + $0x18] sm:$0x80] %v1237_v52  ;;  %1232 = vst [vmem:[#allocation2 + $0x8] sm:$0x80] %v1231_v60  ;;  %v1251_v52 = vld [vmem:[#allocation2 + $0x40] sm:$0x80] }
 0x245   : > { %v695_v32 = vadd.f32 %v694_v10, %v693_v21  ;;  %v1182_v21 = vld [vmem:[#allocation2 + $0x10] sm:$0x1]  ;;  %v1233_v10 = vld [vmem:[#allocation2 + $0x10] sm:$0x80] }
 0x246   : > { %v1183_v51 = vsel %vm4161_vm6, 0, %v1182_v21  ;;  %v1234_v31 = vsel %vm4167_vm7, 0, %v1233_v10  ;;  %v3445_v60 = vld [vmem:[%s4963_s5 + $0x30] sm:$0xff]   ;;  %v3446_v21 = vld [vmem:[%s4963_s5 + $0x8] sm:$0xff]  }
 0x247   : > { %v697_v37 = vadd.f32 %v696_v63, %v695_v32  ;;  %v1188_v32 = vld [vmem:[#allocation2 + $0x20] sm:$0x1]  ;;  %1184 = vst [vmem:[#allocation2 + $0x10] sm:$0x1] %v1183_v51  ;;  %1235 = vst [vmem:[#allocation2 + $0x10] sm:$0x80] %v1234_v31  ;;  %3198 = vmatprep.subr.bf16.mxu1 %v3445_v60 }
 0x248   : > { %v1189_v63 = vsel %vm4161_vm6, 0, %v1188_v32  ;;  %v1252_v51 = vsel %vm4167_vm7, 0, %v1251_v52  ;;  %v1203_v10 = vld [vmem:[#allocation2 + $0x48] sm:$0x1]  ;;  %v1254_v31 = vld [vmem:[#allocation2 + $0x48] sm:$0x80] }
 0x249   : > { %v699_v25 = vadd.f32 %v698_v61, %v697_v37  ;;  %v1239_v37 = vld [vmem:[#allocation2 + $0x20] sm:$0x80]  ;;  %v1191_v61 = vld [vmem:[#allocation2 + $0x28] sm:$0x1]  ;;  %1190 = vst [vmem:[#allocation2 + $0x20] sm:$0x1] %v1189_v63 }
 0x24a   : > { %1253 = vst [vmem:[#allocation2 + $0x40] sm:$0x80] %v1252_v51  ;;  %v1204_v32 = vsel %vm4161_vm6, 0, %v1203_v10  ;;  %v1206_v63 = vld [vmem:[#allocation2 + $0x50] sm:$0x1] }
 0x24b   : > { %v701_v53 = vadd.f32 %v700_v59, %v699_v25  ;;  %v1240_v25 = vsel %vm4167_vm7, 0, %v1239_v37  ;;  %v1192_v59 = vsel %vm4161_vm6, 0, %v1191_v61  ;;  %1205 = vst [vmem:[#allocation2 + $0x48] sm:$0x1] %v1204_v32  ;;  %v1255_v37 = vsel %vm4167_vm7, 0, %v1254_v31 }
 0x24c   : > { %1241 = vst [vmem:[#allocation2 + $0x20] sm:$0x80] %v1240_v25  ;;  %1193 = vst [vmem:[#allocation2 + $0x28] sm:$0x1] %v1192_v59  ;;  %v1207_v61 = vsel %vm4161_vm6, 0, %v1206_v63 }
 0x24d   : > { %v702_v33 = vrot.slane %v701_v53, 4  ;;  %v1257_v25 = vld [vmem:[#allocation2 + $0x50] sm:$0x80]  ;;  %1256 = vst [vmem:[#allocation2 + $0x48] sm:$0x80] %v1255_v37 }
 0x24e   : > { %1208 = vst [vmem:[#allocation2 + $0x50] sm:$0x1] %v1207_v61  ;;  %v1258_v59 = vsel %vm4167_vm7, 0, %v1257_v25  ;;  %v1269_v52 = vld [vmem:[#allocation2 + $0x70] sm:$0x80] }
 0x24f   : > { %v703_v13 = vadd.f32 %v702_v33, %v701_v53  ;;  %v1242_v53 = vld [vmem:[#allocation2 + $0x28] sm:$0x80]  ;;  %v1194_v33 = vld [vmem:[#allocation2 + $0x30] sm:$0x1]  ;;  %1259 = vst [vmem:[#allocation2 + $0x50] sm:$0x80] %v1258_v59 }
 0x250   : > { %v1272_v51 = vld [vmem:[#allocation2 + $0x78] sm:$0x80]  ;;  %v1224_v31 = vld [vmem:[#allocation2 + $0x80] sm:$0x1]  ;;  %v1275_v63 = vld [vmem:[#allocation2 + $0x80] sm:$0x80] }
 0x251   : > { %v704_v14 = vrot.slane %v703_v13, 2  ;;  %v1273_v32 = vsel %vm4167_vm7, 0, %v1272_v51  ;;  %v1225_v61 = vsel %vm4161_vm6, 0, %v1224_v31  ;;  %v1276_v25 = vsel %vm4167_vm7, 0, %v1275_v63 }
 0x252   : > { %1274 = vst [vmem:[#allocation2 + $0x78] sm:$0x80] %v1273_v32  ;;  %1226 = vst [vmem:[#allocation2 + $0x80] sm:$0x1] %v1225_v61 }
 0x253   : > { %v705_v44 = vadd.f32 %v704_v14, %v703_v13  ;;  %v1243_v13 = vsel %vm4167_vm7, 0, %v1242_v53  ;;  %v1195_v14 = vsel %vm4161_vm6, 0, %v1194_v33  ;;  %v1209_v53 = vld [vmem:[#allocation2 + $0x58] sm:$0x1]  ;;  %v1260_v33 = vld [vmem:[#allocation2 + $0x58] sm:$0x80] }
 0x254   : > { %1244 = vst [vmem:[#allocation2 + $0x28] sm:$0x80] %v1243_v13  ;;  %1196 = vst [vmem:[#allocation2 + $0x30] sm:$0x1] %v1195_v14  ;;  %v1210_v13 = vsel %vm4161_vm6, 0, %v1209_v53  ;;  %v1261_v14 = vsel %vm4167_vm7, 0, %v1260_v33 }
 0x255   : > { %v706_v2 = vrot.slane %v705_v44, 1  ;;  %1211 = vst [vmem:[#allocation2 + $0x58] sm:$0x1] %v1210_v13  ;;  %1262 = vst [vmem:[#allocation2 + $0x58] sm:$0x80] %v1261_v14 }
 0x256   : > { %1277 = vst [vmem:[#allocation2 + $0x80] sm:$0x80] %v1276_v25  ;;  %v4256_v33 = vld [vmem:[%s4960_s2] ss:$0 sm:$0xff] }
 0x257   : > { %v707_v15 = vadd.f32 %v706_v2, %v705_v44  ;;  %v1245_v44 = vld [vmem:[#allocation2 + $0x30] sm:$0x80]  ;;  %v1197_v2 = vld [vmem:[#allocation2 + $0x38] sm:$0x1] }
 0x259   : > { %3185 = vmatmul.mubr.msk.f32.vlgmr.msra.gmra.mrb[2].mxu0 %vm354_vm1, %v707_v15  ;;  %v1246_v15 = vsel %vm4167_vm7, 0, %v1245_v44  ;;  %v1212_v44 = vld [vmem:[#allocation2 + $0x60] sm:$0x1] }
 0x25a   : > { %1247 = vst [vmem:[#allocation2 + $0x30] sm:$0x80] %v1246_v15  ;;  %3243 = vmatpush3.bf16.msra.mxu0 %v4202_v42  ;;  %v1263_v15 = vld [vmem:[#allocation2 + $0x60] sm:$0x80] }
 0x25b   : > { %3244 = vmatprep.subr.bf16.mxu0 %v3446_v21 }
 0x25e   : > { %3245 = vmatpush3.bf16.msra.mxu0 %v3446_v21  ;;  %v1221_v21 = vld [vmem:[#allocation2 + $0x78] sm:$0x1] }
 0x25f   : > { %v1222_v10 = vsel %vm4161_vm6, 0, %v1221_v21 }
 0x260   : > { %1223 = vst [vmem:[#allocation2 + $0x78] sm:$0x1] %v1222_v10 }
 0x32c   : > { %v777_v17 = vpop.f32.mrb[2].mxu0 }
 0x32d   : > { %v781_v39 = vmul.f32 0.00390625, %v777_v17  ;;  %v3186_v49 = vpop.f32.mrb[3].mxu0  ;;  %v1198_v17 = vsel %vm4161_vm6, 0, %v1197_v2  ;;  %v1213_v2 = vsel %vm4161_vm6, 0, %v1212_v44 }
 0x32e   : > { %v1200_v49 = vld [vmem:[#allocation2 + $0x40] sm:$0x1]  ;;  %1199 = vst [vmem:[#allocation2 + $0x38] sm:$0x1] %v1198_v17  ;;  %v1215_v17 = vld [vmem:[#allocation2 + $0x68] sm:$0x1] }
 0x32f   : > { %3196 = vmatmul.mubr.msk.f32.vlgmr.msra.gmra.mrb[2].mxu1 %vm354_vm1, %v781_v39  ;;  %v1248_v39 = vld [vmem:[#allocation2 + $0x38] sm:$0x80]  ;;  %v1201_v24 = vsel %vm4161_vm6, 0, %v1200_v49  ;;  %1214 = vst [vmem:[#allocation2 + $0x60] sm:$0x1] %v1213_v2  ;;  %v1216_v49 = vsel %vm4161_vm6, 0, %v1215_v17 }
 0x330   : > { %v1249_v16 = vsel %vm4167_vm7, 0, %v1248_v39  ;;  %1202 = vst [vmem:[#allocation2 + $0x40] sm:$0x1] %v1201_v24  ;;  %3199 = vmatpush3.bf16.msra.mxu1 %v3445_v60  ;;  %v1264_v39 = vsel %vm4167_vm7, 0, %v1263_v15  ;;  %v344_v24 = vld [vmem:[%s4959_s1] sm:$0x1] }
 0x331   : > { %1250 = vst [vmem:[#allocation2 + $0x38] sm:$0x80] %v1249_v16  ;;  %v1218_v16 = vld [vmem:[#allocation2 + $0x70] sm:$0x1]  ;;  %1265 = vst [vmem:[#allocation2 + $0x60] sm:$0x80] %v1264_v39 }
 0x332   : > { %1217 = vst [vmem:[#allocation2 + $0x68] sm:$0x1] %v1216_v49  ;;  %v1270_v60 = vsel %vm4167_vm7, 0, %v1269_v52 }
 0x333   : > { %1271 = vst [vmem:[#allocation2 + $0x70] sm:$0x80] %v1270_v60 }
 0x402   : > { %v851_v45 = vpop.f32.mrb[2].mxu1 }
 0x403   : > { %v852_v36 = vadd.f32 1e-05, %v851_v45  ;;  %v3197_v4 = vpop.f32.mrb[3].mxu1  ;;  %v1266_v45 = vld [vmem:[#allocation2 + $0x68] sm:$0x80] }
 0x404   : > { %v1219_v4 = vsel %vm4161_vm6, 0, %v1218_v16 }
 0x405   : > { %3462 = vrsqrt.f32 %v852_v36  ;;  %v1267_v36 = vsel %vm4167_vm7, 0, %v1266_v45  ;;  %1220 = vst [vmem:[#allocation2 + $0x70] sm:$0x1] %v1219_v4 }
 0x406   : > { %1268 = vst [vmem:[#allocation2 + $0x68] sm:$0x80] %v1267_v36 }
 0x40f   : > { %v3463_v37 = vpop.eup %3462 }
 0x410   : > { %v856_v59 = vmul.f32 %v3463_v37, %v344_v24 }
 0x412   : > { %v4251_v53 = vrot.slane %v856_v59, %v573_v19 }
 0x414   : > { %v865_v13 = vmul.f32 %v4251_v53, %v3930_v11  ;;  %v866_v23 = vmul.f32 %v4251_v53, %v3937_v12  ;;  %v861_v30 = vmul.f32 %v4251_v53, %v3906_v9  ;;  %v862_v14 = vmul.f32 %v4251_v53, %v3911_v3 }
 0x415   : > { %v863_v58 = vmul.f32 %v4251_v53, %v3916_v6  ;;  %v864_v19 = vmul.f32 %v4251_v53, %v3921_v26  ;;  %v867_v44 = vmul.f32 %v4251_v53, %v3946_v18  ;;  %v868_v11 = vmul.f32 %v4251_v53, %v3954_v54 }
 0x416   : > { %v4275_v12 = vadd.f32 %v4256_v33, %v865_v13  ;;  %v4278_v9 = vadd.f32 %v4256_v33, %v866_v23  ;;  %v4281_v3 = vadd.f32 %v4256_v33, %v861_v30  ;;  %v4284_v6 = vadd.f32 %v4256_v33, %v862_v14 }
 0x417   : > { %v4287_v26 = vadd.f32 %v4256_v33, %v863_v58  ;;  %v4290_v18 = vadd.f32 %v4256_v33, %v864_v19  ;;  %v4293_v54 = vadd.f32 %v4256_v33, %v867_v44  ;;  %v4296_v2 = vadd.f32 %v4256_v33, %v868_v11 }
 0x418   : > { %v2826_v15 = vmul.f32 -1.442695, %v4275_v12  ;;  %v2827_v17 = vmul.f32 -1.442695, %v4278_v9  ;;  %v2822_v39 = vmul.f32 -1.442695, %v4281_v3  ;;  %v869_v49 = vmul.f32 %v4251_v53, %v3962_v27 }
 0x419   : > { %v2823_v45 = vmul.f32 -1.442695, %v4284_v6  ;;  %v870_v16 = vmul.f32 %v4251_v53, %v3970_v22  ;;  %v2824_v24 = vmul.f32 -1.442695, %v4287_v26  ;;  %v2825_v36 = vmul.f32 -1.442695, %v4290_v18 }
 0x41a   : > { %3464 = vpow2.f32 %v2826_v15  ;;  %v4309_v4 = vadd.f32 %v4256_v33, %v869_v49  ;;  %v871_v27 = vmul.f32 %v4251_v53, %v3978_v34  ;;  %v872_v60 = vmul.f32 %v4251_v53, %v3986_v29 }
 0x41b   : > { %3466 = vpow2.f32 %v2827_v17  ;;  %v4312_v52 = vadd.f32 %v4256_v33, %v870_v16  ;;  %v2828_v22 = vmul.f32 -1.442695, %v4293_v54  ;;  %v2829_v21 = vmul.f32 -1.442695, %v4296_v2 }
 0x41c   : > { %3468 = vpow2.f32 %v2822_v39  ;;  %v873_v51 = vmul.f32 %v4251_v53, %v3994_v41  ;;  %v4323_v10 = vadd.f32 %v4256_v33, %v871_v27  ;;  %v4326_v32 = vadd.f32 %v4256_v33, %v872_v60 }
 0x41d   : > { %3470 = vpow2.f32 %v2823_v45  ;;  %v874_v34 = vmul.f32 %v4251_v53, %v4002_v35  ;;  %v2830_v29 = vmul.f32 -1.442695, %v4309_v4  ;;  %v875_v63 = vmul.f32 %v4251_v53, %v4010_v48 }
 0x41e   : > { %3472 = vpow2.f32 %v2824_v24  ;;  %v4332_v31 = vadd.f32 %v4256_v33, %v873_v51  ;;  %v2831_v41 = vmul.f32 -1.442695, %v4312_v52  ;;  %v2832_v37 = vmul.f32 -1.442695, %v4323_v10 }
 0x41f   : > { %3474 = vpow2.f32 %v2825_v36  ;;  %v876_v61 = vmul.f32 %v4251_v53, %v4018_v43  ;;  %v2833_v35 = vmul.f32 -1.442695, %v4326_v32  ;;  %v4342_v25 = vadd.f32 %v4256_v33, %v874_v34 }
 0x420   : > { %3476 = vpow2.f32 %v2828_v22  ;;  %v2834_v59 = vmul.f32 -1.442695, %v4332_v31  ;;  %v4346_v48 = vadd.f32 %v4256_v33, %v875_v63  ;;  %v877_v43 = vmul.f32 %v4251_v53, %v4026_v55 }
 0x421   : > { %3478 = vpow2.f32 %v2829_v21  ;;  %v4349_v23 = vadd.f32 %v4256_v33, %v876_v61  ;;  %v4354_v58 = vmul.f32 -1.442695, %v4342_v25  ;;  %v878_v15 = vmul.f32 %v4251_v53, %v4034_v50 }
 0x422   : > { %3480 = vpow2.f32 %v2830_v29  ;;  %v4357_v11 = vmul.f32 -1.442695, %v4346_v48  ;;  %v879_v55 = vmul.f32 %v4251_v53, %v4042_v62  ;;  %v880_v49 = vmul.f32 %v4251_v53, %v4050_v57 }
 0x423   : > { %3482 = vpow2.f32 %v2831_v41  ;;  %v4366_v24 = vmul.f32 -1.442695, %v4349_v23  ;;  %v4369_v36 = vadd.f32 %v4256_v33, %v877_v43  ;;  %v881_v60 = vmul.f32 %v4251_v53, %v4058_v8  ;;  %v4403_v43 = vld [vmem:[%s4963_s5 + $0x10] sm:$0xff]  }
 0x424   : > { %v3465_v13 = vpop.eup %3464  ;;  %3484 = vpow2.f32 %v2832_v37  ;;  %v882_v62 = vmul.f32 %v4251_v53, %v4066_v0  ;;  %v4376_v21 = vadd.f32 %v4256_v33, %v878_v15  ;;  %v883_v51 = vmul.f32 %v4251_v53, %v4074_v28  ;;  %v3447_v28 = vld [vmem:[%s4963_s5 + $0x38] sm:$0xff]   ;;  %3246 = vmatprep.subr.bf16.mxu0 %v4403_v43 }
 0x425   : > { %v3467_v30 = vpop.eup %3466  ;;  %v1031_v14 = vadd.f32 1.0, %v3465_v13  ;;  %3486 = vpow2.f32 %v2833_v35  ;;  %v4381_v63 = vadd.f32 %v4256_v33, %v879_v55  ;;  %v884_v8 = vmul.f32 %v4251_v53, %v4082_v20  ;;  %3200 = vmatprep.subr.bf16.mxu1 %v3447_v28  ;;  %3247 = vmatpush3.bf16.msra.mxu0 %v4403_v43 }
 0x426   : > { %v3469_v19 = vpop.eup %3468  ;;  %v1032_v44 = vadd.f32 1.0, %v3467_v30  ;;  %3488 = vpow2.f32 %v2834_v59  ;;  %v4386_v37 = vmul.f32 -1.442695, %v4369_v36  ;;  %v4389_v61 = vadd.f32 %v4256_v33, %v880_v49  ;;  %3201 = vmatpush3.bf16.msra.mxu1 %v3447_v28 }
 0x427   : > { %v3471_v17 = vpop.eup %3470  ;;  %3490 = vrcp.f32 %v1031_v14  ;;  %v1027_v39 = vadd.f32 1.0, %v3469_v19  ;;  %v4395_v13 = vadd.f32 %v4256_v33, %v881_v60  ;;  %v4398_v20 = vadd.f32 %v4256_v33, %v882_v62 }
 0x428   : > { %v3473_v45 = vpop.eup %3472  ;;  %3492 = vrcp.f32 %v1032_v44  ;;  %v1028_v16 = vadd.f32 1.0, %v3471_v17  ;;  %v4406_v19 = vmul.f32 -1.442695, %v4376_v21  ;;  %v4409_v44 = vadd.f32 %v4256_v33, %v883_v51 }
 0x429   : > { %v3475_v27 = vpop.eup %3474  ;;  %3494 = vrcp.f32 %v1027_v39  ;;  %v1029_v50 = vadd.f32 1.0, %v3473_v45  ;;  %v4412_v39 = vadd.f32 %v4256_v33, %v884_v8  ;;  %v885_v55 = vmul.f32 %v4251_v53, %v4090_v40 }
 0x42a   : > { %v3477_v22 = vpop.eup %3476  ;;  %3496 = vrcp.f32 %v1028_v16  ;;  %v1030_v57 = vadd.f32 1.0, %v3475_v27  ;;  %v4418_v16 = vmul.f32 -1.442695, %v4381_v63  ;;  %v3449_v27 = vld [vmem:[%s4963_s5 + $0x40] sm:$0xff]   ;;  %v4430_v60 = vmul.f32 -1.442695, %v4389_v61 }
 0x42b   : > { %v3479_v34 = vpop.eup %3478  ;;  %3498 = vrcp.f32 %v1029_v50  ;;  %v1033_v29 = vadd.f32 1.0, %v3477_v22  ;;  %v4427_v50 = vld [vmem:[%s4963_s5 + $0x18] sm:$0xff]   ;;  %v4433_v62 = vmul.f32 -1.442695, %v4395_v13  ;;  %v4436_v22 = vmul.f32 -1.442695, %v4398_v20  ;;  %3202 = vmatprep.subr.bf16.mxu1 %v3449_v27 }
 0x42c   : > { %v3481_v41 = vpop.eup %3480  ;;  %3500 = vrcp.f32 %v1030_v57  ;;  %v1034_v0 = vadd.f32 1.0, %v3479_v34  ;;  %v4440_v34 = vmul.f32 -1.442695, %v4409_v44  ;;  %3248 = vmatprep.subr.bf16.mxu0 %v4427_v50  ;;  %3203 = vmatpush3.bf16.msra.mxu1 %v3449_v27 }
 0x42d   : > { %v3483_v35 = vpop.eup %3482  ;;  %3502 = vrcp.f32 %v1033_v29  ;;  %v1035_v59 = vadd.f32 1.0, %v3481_v41  ;;  %v886_v29 = vmul.f32 %v4251_v53, %v4098_v47  ;;  %v887_v47 = vmul.f32 %v4251_v53, %v4106_v5  ;;  %3249 = vmatpush3.bf16.msra.mxu0 %v4427_v50  ;;  %v3451_v5 = vld [vmem:[%s4963_s5 + $0x48] sm:$0xff]  }
 0x42e   : > { %v3485_v30 = vpop.eup %3484  ;;  %3504 = vrcp.f32 %v1034_v0  ;;  %v1036_v14 = vadd.f32 1.0, %v3483_v35  ;;  %v4448_v0 = vmul.f32 -1.442695, %v4412_v39  ;;  %3204 = vmatprep.subr.bf16.mxu1 %v3451_v5 }
 0x42f   : > { %v3487_v15 = vpop.eup %3486  ;;  %3506 = vrcp.f32 %v1035_v59  ;;  %v1037_v17 = vadd.f32 1.0, %v3485_v30  ;;  %v891_v59 = vmul.f32 %v4251_v53, %v4138_v1  ;;  %v4473_v1 = vld [vmem:[%s4963_s5 + $0x20] sm:$0xff]  }
 0x430   : > { %v3489_v49 = vpop.eup %3488  ;;  %3508 = vrcp.f32 %v1036_v14  ;;  %v1038_v45 = vadd.f32 1.0, %v3487_v15  ;;  %3205 = vmatpush3.bf16.msra.mxu1 %v3451_v5  ;;  %3250 = vmatprep.subr.bf16.mxu0 %v4473_v1 }
 0x431   : > { %v3491_v40 = vpop.eup %3490  ;;  %3510 = vrcp.f32 %v1037_v17  ;;  %3251 = vmatpush3.bf16.msra.mxu0 %v4473_v1 }
 0x432   : > { %v3493_v57 = vpop.eup %3492  ;;  %v1127_v51 = vmul.f32 %v3491_v40, %v4275_v12  ;;  %3512 = vrcp.f32 %v1038_v45  ;;  %v4451_v12 = vadd.f32 %v4256_v33, %v885_v55 }
 0x433   : > { %v3495_v8 = vpop.eup %3494  ;;  %v1128_v41 = vmul.f32 %v3493_v57, %v4278_v9  ;;  %3514 = vpow2.f32 %v4354_v58  ;;  %v892_v9 = vmul.f32 %v4251_v53, %v4146_v7 }
 0x434   : > { %v3497_v28 = vpop.eup %3496  ;;  %v1123_v35 = vmul.f32 %v3495_v8, %v4281_v3  ;;  %3516 = vpow2.f32 %v4357_v11  ;;  %v888_v3 = vmul.f32 %v4251_v53, %v4114_v38  ;;  %v4481_v11 = vadd.f32 %v4256_v33, %v891_v59  ;;  %v4510_v8 = vld [vmem:[%s4963_s5 + $0x28] sm:$0xff]  }
 0x435   : > { %v3499_v58 = vpop.eup %3498  ;;  %v4461_v30 = vpack.c.bf16 %v1128_v41, %v1127_v51  ;;  %v1124_v14 = vmul.f32 %v3497_v28, %v4284_v6  ;;  %3518 = vpow2.f32 %v4366_v24  ;;  %v4478_v6 = vadd.f32 %v4256_v33, %v886_v29  ;;  %3252 = vmatprep.subr.bf16.mxu0 %v4510_v8 }
 0x436   : > { %v3501_v7 = vpop.eup %3500  ;;  %v1125_v15 = vmul.f32 %v3499_v58, %v4287_v26  ;;  %v1039_v26 = vadd.f32 1.0, %v3489_v49  ;;  %3520 = vpow2.f32 %v4386_v37  ;;  %v4493_v57 = vadd.f32 %v4256_v33, %v892_v9  ;;  %v3453_v37 = vld [vmem:[%s4963_s5 + $0x50] sm:$0xff]   ;;  %3253 = vmatpush3.bf16.msra.mxu0 %v4510_v8 }
 0x437   : > { %v3503_v38 = vpop.eup %3502  ;;  %1477 = vrot.lane.b32.xlu1 %v4461_v30, %s3605_s27  ;;  %v4485_v17 = vpack.c.bf16 %v1124_v14, %v1123_v35  ;;  %v1126_v55 = vmul.f32 %v3501_v7, %v4290_v18  ;;  %v1293_v45 = vshrl.u32 %v4461_v30, 16  ;;  %v1296_v40 = vshll.u32 %v4461_v30, 16  ;;  %3206 = vmatprep.subr.bf16.mxu1 %v3453_v37 }
 0x438   : > { %v3505_v24 = vpop.eup %3504  ;;  %v1129_v27 = vmul.f32 %v3503_v38, %v4293_v54  ;;  %3522 = vpow2.f32 %v4406_v19  ;;  %v4515_v35 = vmul.f32 -1.442695, %v4451_v12  ;;  %v4524_v14 = vadd.f32 %v4256_v33, %v888_v3  ;;  %3207 = vmatpush3.bf16.msra.mxu1 %v3453_v37 }
 0x439   : > { %v3507_v51 = vpop.eup %3506  ;;  %1473 = vrot.lane.b32.xlu0 %v4485_v17, %s3605_s27  ;;  %v4498_v18 = vpack.c.bf16 %v1126_v55, %v1125_v15  ;;  %v1279_v49 = vshrl.u32 %v4485_v17, 16  ;;  %v1282_v54 = vshll.u32 %v4485_v17, 16  ;;  %v1130_v29 = vmul.f32 %v3505_v24, %v4296_v2  ;;  %v3455_v15 = vld [vmem:[%s4963_s5 + $0x58] sm:$0xff]  }
 0x43a   : > { %v3509_v41 = vpop.eup %3508  ;;  %v1131_v28 = vmul.f32 %v3507_v51, %v4309_v4  ;;  %v4518_v2 = vadd.f32 %v4256_v33, %v887_v47  ;;  %v1295_v7 = vrot.slane %v1293_v45, 7  ;;  %v1542_v47 = vrot.slane %v1296_v40, 1  ;;  %3208 = vmatprep.subr.bf16.mxu1 %v3455_v15 }
 0x43b   : > { %v3511_v59 = vpop.eup %3510  ;;  %v1538_v9 = vrot.slane %v1282_v54, 1  ;;  %v4520_v58 = vpack.c.bf16 %v1130_v29, %v1129_v27  ;;  %v1286_v30 = vshrl.u32 %v4498_v18, 16  ;;  %v1289_v19 = vshll.u32 %v4498_v18, 16 }
 0x43c   : > { %v3513_v4 = vpop.eup %3512  ;;  %v1132_v5 = vmul.f32 %v3509_v41, %v4312_v52  ;;  %v1281_v17 = vrot.slane %v1279_v49, 7  ;;  %v1133_v55 = vmul.f32 %v3511_v59, %v4323_v10  ;;  %3524 = vrcp.f32 %v1039_v26  ;;  %3209 = vmatpush3.bf16.msra.mxu1 %v3455_v15 }
 0x43d   : > { %v3515_v38 = vpop.eup %3514  ;;  %1475 = vrot.lane.b32.xlu0 %v4498_v18, %s3605_s27  ;;  %v1539_v3 = vor.u32 %v1538_v9, %v1279_v49  ;;  %v1540_v24 = vrot.slane %v1289_v19, 1  ;;  %v1134_v27 = vmul.f32 %v3513_v4, %v4326_v32  ;;  %v1300_v51 = vshrl.u32 %v4520_v58, 16  ;;  %3354 = vmatprep.subr.bf16.mxu1 %v4202_v42 }
 0x43e   : > { %v4536_v52 = vpack.c.bf16 %v1132_v5, %v1131_v28  ;;  %v3517_v29 = vpop.eup %3516  ;;  %v1288_v18 = vrot.slane %v1286_v30, 7  ;;  %v1303_v49 = vshll.u32 %v4520_v58, 16  ;;  %v1040_v37 = vadd.f32 1.0, %v3515_v38 }
 0x43f   : > { %1570 = vrot.lane.b32.xlu1 %v1539_v3, %s3606_s11  ;;  %v889_v10 = vmul.f32 %v4251_v53, %v4122_v46  ;;  %v3519_v26 = vpop.eup %3518  ;;  %v1298_v41 = vor.u32 %v1296_v40, %v1295_v7  ;;  %v1543_v28 = vor.u32 %v1542_v47, %v1293_v45  ;;  %v4544_v59 = vpack.c.bf16 %v1134_v27, %v1133_v55  ;;  %v1415_v55 = vld [vmem:[#allocation2 + $0x18] sm:$0xff] }
 0x440   : > { %v4971_v32 = vshrl.u32 %v4536_v52, 16  ;;  %v1541_v9 = vor.u32 %v1540_v24, %v1286_v30  ;;  %v1302_v4 = vrot.slane %v1300_v51, 7  ;;  %3526 = vrcp.f32 %v1040_v37  ;;  %v3521_v38 = vpop.eup %3520  ;;  %v4558_v30 = vld [vmem:[%s4963_s5 + $0x60] sm:$0xff]   ;;  %v1409_v24 = vld [vmem:[#allocation2 + $0x8] sm:$0xff]  ;;  %v1412_v37 = vld [vmem:[#allocation2 + $0x10] sm:$0xff] }
 0x441   : > { %1479 = vrot.lane.b32.xlu0 %v4520_v58, %s3605_s27  ;;  %v1041_v5 = vadd.f32 1.0, %v3517_v29  ;;  %v1284_v3 = vor.u32 %v1282_v54, %v1281_v17  ;;  %v1042_v45 = vadd.f32 1.0, %v3519_v26  ;;  %v4970_v40 = vshrl.u32 %v4544_v59, 16  ;;  %3286 = vmatprep.subr.bf16.mxu0 %v4558_v30 }
 0x442   : > { %v1309_v46 = vrot.slane %v4971_v32, 7  ;;  %v1291_v7 = vor.u32 %v1289_v19, %v1288_v18  ;;  %v1544_v47 = vrot.slane %v1303_v49, 1  ;;  %v1310_v58 = vshll.u32 %v4536_v52, 16  ;;  %v3523_v42 = vpop.eup %3522 }
 0x443   : > { %1572 = vrot.lane.b32.xlu1 %v1541_v9, %s3606_s11  ;;  %3528 = vrcp.f32 %v1041_v5  ;;  %v1316_v54 = vrot.slane %v4970_v40, 7  ;;  %v1317_v15 = vshll.u32 %v4544_v59, 16  ;;  %v1043_v17 = vadd.f32 1.0, %v3521_v38  ;;  %v1418_v38 = vld [vmem:[#allocation2 + $0x20] sm:$0xff]  ;;  %v1424_v40 = vld [vmem:[#allocation2 + $0x30] sm:$0xff] }
 0x444   : > { %3530 = vrcp.f32 %v1042_v45  ;;  %v1305_v27 = vor.u32 %v1303_v49, %v1302_v4  ;;  %v1312_v29 = vor.u32 %v1310_v58, %v1309_v46  ;;  %v1044_v18 = vadd.f32 1.0, %v3523_v42  ;;  %v1421_v45 = vld [vmem:[#allocation2 + $0x28] sm:$0xff] }
 0x445   : > { %1481 = vrot.lane.b32.xlu0 %v4536_v52, %s3605_s27  ;;  %3532 = vpow2.f32 %v4418_v16  ;;  %v1319_v26 = vor.u32 %v1317_v15, %v1316_v54  ;;  %v2847_v9 = vmul.f32 -1.442695, %v4478_v6  ;;  %v890_v5 = vmul.f32 %v4251_v53, %v4130_v56 }
 0x446   : > { %3534 = vrcp.f32 %v1043_v17  ;;  %v3525_v32 = vpop.eup %3524  ;;  %v4578_v49 = vadd.f32 %v4256_v33, %v889_v10  ;;  %v1416_v16 = vsel %vm4565_vm9, %v1298_v41, %v1415_v55  ;;  %v1410_v4 = vsel %vm4565_vm9, %v1284_v3, %v1409_v24 }
 0x447   : > { %1574 = vrot.lane.b32.xlu1 %v1543_v28, %s3606_s11  ;;  %3536 = vrcp.f32 %v1044_v18  ;;  %v1545_v46 = vor.u32 %v1544_v47, %v1300_v51  ;;  %v1546_v42 = vrot.slane %v1310_v58, 1  ;;  %1417 = vst [vmem:[#allocation2 + $0x18] sm:$0xff] %v1416_v16  ;;  %1411 = vst [vmem:[#allocation2 + $0x8] sm:$0xff] %v1410_v4  ;;  %v1413_v56 = vsel %vm4565_vm9, %v1291_v7, %v1412_v37 }
 0x448   : > { %3538 = vpow2.f32 %v4430_v60  ;;  %1414 = vst [vmem:[#allocation2 + $0x10] sm:$0xff] %v1413_v56  ;;  %v1419_v53 = vsel %vm4565_vm9, %v1305_v27, %v1418_v38  ;;  %v1422_v51 = vsel %vm4565_vm9, %v1312_v29, %v1421_v45  ;;  %v1425_v60 = vsel %vm4565_vm9, %v1319_v26, %v1424_v40 }
 0x449   : > { %1483 = vrot.lane.b32.xlu0 %v4544_v59, %s3605_s27  ;;  %3540 = vpow2.f32 %v4433_v62  ;;  %v1135_v10 = vmul.f32 %v3525_v32, %v4332_v31  ;;  %1420 = vst [vmem:[#allocation2 + $0x20] sm:$0xff] %v1419_v53  ;;  %1423 = vst [vmem:[#allocation2 + $0x28] sm:$0xff] %v1422_v51  ;;  %v2848_v62 = vmul.f32 -1.442695, %v4518_v2  ;;  %v4602_v28 = vadd.f32 %v4256_v33, %v890_v5 }
 0x44a   : > { %3542 = vpow2.f32 %v4436_v22  ;;  %1426 = vst [vmem:[#allocation2 + $0x30] sm:$0xff] %v1425_v60  ;;  %v3527_v41 = vpop.eup %3526  ;;  %v3607_v3 = vmov 0   ;;  %v2849_v22 = vmul.f32 -1.442695, %v4524_v14  ;;  %v4982_v40 = vshrl.u32 %v4536_v52, 16 }
 0x44b   : > { %1576 = vrot.lane.b32.xlu1 %v1545_v46, %s3606_s11  ;;  %3544 = vpow2.f32 %v4440_v34  ;;  %1172 = vst.msk [vmem:[#allocation2] sm:$0xff] %vm1171_vm10, %v3607_v3  ;;  %1174 = vst.msk [vmem:[#allocation2 + $0x88] sm:$0xff] %vm1171_vm10, %v3607_v3  ;;  %v1136_v31 = vmul.f32 %v3527_v41, %v4342_v25  ;;  %v1548_v7 = vrot.slane %v1317_v15, 1  ;;  %v2850_v33 = vmul.f32 -1.442695, %v4578_v49 }
 0x44c   : > { %3546 = vpow2.f32 %v4448_v0  ;;  %v1547_v34 = vor.u32 %v1546_v42, %v4982_v40  ;;  %v2851_v0 = vmul.f32 -1.442695, %v4602_v28 }
 0x44d   : > { %v3529_v32 = vpop.eup %3528  ;;  %3548 = vpow2.f32 %v4515_v35  ;;  %v1161_v58 = vpack.c.bf16 %v1136_v31, %v1135_v10  ;;  %v1427_v31 = vld [vmem:[#allocation2 + $0x38] sm:$0xff] }
 0x44e   : > { %v3531_v47 = vpop.eup %3530  ;;  %v1137_v54 = vmul.f32 %v3529_v32, %v4346_v48  ;;  %3550 = vpow2.f32 %v2847_v9  ;;  %v4983_v48 = vshrl.u32 %v4544_v59, 16 }
 0x44f   : > { %v3533_v17 = vpop.eup %3532  ;;  %1578 = vrot.lane.b32.xlu1 %v1547_v34, %s3606_s11  ;;  %v1138_v25 = vmul.f32 %v3531_v47, %v4349_v23  ;;  %3552 = vpow2.f32 %v2848_v62  ;;  %1485 = vrot.lane.b32.xlu0 %v1161_v58, %s3605_s27  ;;  %v1321_v15 = vshrl.u32 %v1161_v58, 16  ;;  %v1324_v35 = vshll.u32 %v1161_v58, 16 }
 0x450   : > { %v3535_v52 = vpop.eup %3534  ;;  %v1045_v55 = vadd.f32 1.0, %v3533_v17  ;;  %3554 = vpow2.f32 %v2849_v22  ;;  %v1549_v29 = vor.u32 %v1548_v7, %v4983_v48  ;;  %v1430_v22 = vld [vmem:[#allocation2 + $0x40] sm:$0xff] }
 0x451   : > { %v3537_v24 = vpop.eup %3536  ;;  %v1162_v27 = vpack.c.bf16 %v1138_v25, %v1137_v54  ;;  %v1139_v18 = vmul.f32 %v3535_v52, %v4369_v36  ;;  %3556 = vpow2.f32 %v2850_v33  ;;  %v1323_v26 = vrot.slane %v1321_v15, 7 }
 0x452   : > { %v3539_v37 = vpop.eup %3538  ;;  %v1140_v23 = vmul.f32 %v3537_v24, %v4376_v21  ;;  %v1550_v9 = vrot.slane %v1324_v35, 1  ;;  %3558 = vrcp.f32 %v1045_v55  ;;  %v1669_v5 = vld [vmem:[#allocation2] sm:$0xff] }
 0x453   : > { %v3541_v38 = vpop.eup %3540  ;;  %1580 = vrot.lane.b32.xlu1 %v1549_v29, %s3606_s11  ;;  %v1046_v45 = vadd.f32 1.0, %v3539_v37  ;;  %v1328_v16 = vshrl.u32 %v1162_v27, 16  ;;  %v1331_v4 = vshll.u32 %v1162_v27, 16  ;;  %3560 = vpow2.f32 %v2851_v0  ;;  %3254 = vmatprep.mubr.msk.bf16.mxu0 %vm1171_vm10, %v1669_v5 }
 0x454   : > { %v3543_v59 = vpop.eup %3542  ;;  %1487 = vrot.lane.b32.xlu0 %v1162_v27, %s3605_s27  ;;  %v1163_v36 = vpack.c.bf16 %v1140_v23, %v1139_v18  ;;  %v1326_v46 = vor.u32 %v1324_v35, %v1323_v26  ;;  %v1551_v42 = vor.u32 %v1550_v9, %v1321_v15  ;;  %v1047_v21 = vadd.f32 1.0, %v3541_v38  ;;  %v1433_v15 = vld [vmem:[#allocation2 + $0x48] sm:$0xff] }
 0x455   : > { %v3545_v56 = vpop.eup %3544  ;;  %3562 = vrcp.f32 %v1046_v45  ;;  %v1330_v53 = vrot.slane %v1328_v16, 7  ;;  %v1552_v51 = vrot.slane %v1331_v4, 1  ;;  %v1048_v60 = vadd.f32 1.0, %v3543_v59 }
 0x456   : > { %v3547_v10 = vpop.eup %3546  ;;  %3564 = vrcp.f32 %v1047_v21  ;;  %v1335_v41 = vshrl.u32 %v1163_v36, 16  ;;  %v1338_v62 = vshll.u32 %v1163_v36, 16  ;;  %v1049_v3 = vadd.f32 1.0, %v3545_v56 }
 0x457   : > { %v3549_v32 = vpop.eup %3548  ;;  %1582 = vrot.lane.b32.xlu1 %v1551_v42, %s3606_s11  ;;  %v1333_v40 = vor.u32 %v1331_v4, %v1330_v53  ;;  %v1553_v34 = vor.u32 %v1552_v51, %v1328_v16  ;;  %3566 = vrcp.f32 %v1048_v60  ;;  %v1050_v7 = vadd.f32 1.0, %v3547_v10 }
 0x458   : > { %v3551_v33 = vpop.eup %3550  ;;  %1489 = vrot.lane.b32.xlu0 %v1163_v36, %s3605_s27  ;;  %v1337_v47 = vrot.slane %v1335_v41, 7  ;;  %v1554_v58 = vrot.slane %v1338_v62, 1  ;;  %3568 = vrcp.f32 %v1049_v3  ;;  %v1051_v54 = vadd.f32 1.0, %v3549_v32 }
 0x459   : > { %v3553_v17 = vpop.eup %3552  ;;  %3570 = vrcp.f32 %v1050_v7  ;;  %v1052_v25 = vadd.f32 1.0, %v3551_v33  ;;  %v1428_v0 = vsel %vm4565_vm9, %v1326_v46, %v1427_v31  ;;  %v1431_v52 = vsel %vm4565_vm9, %v1333_v40, %v1430_v22 }
 0x45a   : > { %v3555_v35 = vpop.eup %3554  ;;  %v1340_v55 = vor.u32 %v1338_v62, %v1337_v47  ;;  %3572 = vrcp.f32 %v1051_v54  ;;  %v1053_v24 = vadd.f32 1.0, %v3553_v17  ;;  %1429 = vst [vmem:[#allocation2 + $0x38] sm:$0xff] %v1428_v0  ;;  %1432 = vst [vmem:[#allocation2 + $0x40] sm:$0xff] %v1431_v52  ;;  %v2852_v29 = vmul.f32 -1.442695, %v4481_v11 }
 0x45b   : > { %v3557_v27 = vpop.eup %3556  ;;  %1584 = vrot.lane.b32.xlu1 %v1553_v34, %s3606_s11  ;;  %3574 = vrcp.f32 %v1052_v25  ;;  %v1054_v48 = vadd.f32 1.0, %v3555_v35  ;;  %v1555_v9 = vor.u32 %v1554_v58, %v1335_v41  ;;  %v2853_v5 = vmul.f32 -1.442695, %v4493_v57 }
 0x45c   : > { %v3559_v18 = vpop.eup %3558  ;;  %3576 = vrcp.f32 %v1053_v24  ;;  %v1055_v37 = vadd.f32 1.0, %v3557_v27  ;;  %v1434_v23 = vsel %vm4565_vm9, %v1340_v55, %v1433_v15 }
 0x45d   : > { %v3561_v26 = vpop.eup %3560  ;;  %3578 = vrcp.f32 %v1054_v48  ;;  %1435 = vst [vmem:[#allocation2 + $0x48] sm:$0xff] %v1434_v23  ;;  %v1141_v38 = vmul.f32 %v3559_v18, %v4381_v63 }
 0x45e   : > { %v1056_v45 = vadd.f32 1.0, %v3561_v26  ;;  %3580 = vrcp.f32 %v1055_v37  ;;  %v1436_v26 = vld [vmem:[#allocation2 + $0x50] sm:$0xff] }
 0x45f   : > { %v3563_v16 = vpop.eup %3562  ;;  %1586 = vrot.lane.b32.xlu1 %v1555_v9, %s3606_s11  ;;  %3582 = vpow2.f32 %v2852_v29 }
 0x460   : > { %v3565_v4 = vpop.eup %3564  ;;  %v1142_v59 = vmul.f32 %v3563_v16, %v4389_v61  ;;  %3584 = vrcp.f32 %v1056_v45  ;;  %v1439_v45 = vld [vmem:[#allocation2 + $0x58] sm:$0xff] }
 0x461   : > { %v3567_v36 = vpop.eup %3566  ;;  %v1143_v46 = vmul.f32 %v3565_v4, %v4395_v13  ;;  %3586 = vpow2.f32 %v2853_v5 }
 0x462   : > { %v3569_v42 = vpop.eup %3568  ;;  %v1164_v21 = vpack.c.bf16 %v1142_v59, %v1141_v38  ;;  %v1144_v56 = vmul.f32 %v3567_v36, %v4398_v20  ;;  %v1445_v36 = vld [vmem:[#allocation2 + $0x68] sm:$0xff] }
 0x463   : > { %v3571_v53 = vpop.eup %3570  ;;  %v1145_v63 = vmul.f32 %v3569_v42, %v4409_v44 }
 0x464   : > { %v3573_v51 = vpop.eup %3572  ;;  %1491 = vrot.lane.b32.xlu0 %v1164_v21, %s3605_s27  ;;  %v1165_v60 = vpack.c.bf16 %v1144_v56, %v1143_v46  ;;  %v1146_v10 = vmul.f32 %v3571_v53, %v4412_v39  ;;  %v1342_v41 = vshrl.u32 %v1164_v21, 16  ;;  %v1345_v61 = vshll.u32 %v1164_v21, 16 }
 0x465   : > { %v3575_v62 = vpop.eup %3574  ;;  %v1147_v3 = vmul.f32 %v3573_v51, %v4451_v12  ;;  %v1448_v51 = vld [vmem:[#allocation2 + $0x70] sm:$0xff] }
 0x466   : > { %v3577_v13 = vpop.eup %3576  ;;  %v1166_v31 = vpack.c.bf16 %v1146_v10, %v1145_v63  ;;  %v1556_v22 = vrot.slane %v1345_v61, 1  ;;  %v1148_v32 = vmul.f32 %v3575_v62, %v4478_v6  ;;  %v1344_v40 = vrot.slane %v1342_v41, 7 }
 0x467   : > { %v3579_v20 = vpop.eup %3578  ;;  %v1349_v34 = vshrl.u32 %v1165_v60, 16  ;;  %v1352_v44 = vshll.u32 %v1165_v60, 16  ;;  %v1149_v7 = vmul.f32 %v3577_v13, %v4518_v2 }
 0x468   : > { %v3581_v33 = vpop.eup %3580  ;;  %1493 = vrot.lane.b32.xlu0 %v1165_v60, %s3605_s27  ;;  %v1557_v39 = vor.u32 %v1556_v22, %v1342_v41  ;;  %v1167_v47 = vpack.c.bf16 %v1148_v32, %v1147_v3  ;;  %v1150_v58 = vmul.f32 %v3579_v20, %v4524_v14  ;;  %v1356_v25 = vshrl.u32 %v1166_v31, 16  ;;  %v1451_v3 = vld [vmem:[#allocation2 + $0x78] sm:$0xff] }
 0x469   : > { %v3583_v54 = vpop.eup %3582  ;;  %v1351_v12 = vrot.slane %v1349_v34, 7  ;;  %v1558_v17 = vrot.slane %v1352_v44, 1  ;;  %v1359_v0 = vshll.u32 %v1166_v31, 16  ;;  %v1151_v15 = vmul.f32 %v3581_v33, %v4578_v49  ;;  %v1442_v49 = vld [vmem:[#allocation2 + $0x60] sm:$0xff] }
 0x46a   : > { %v3585_v52 = vpop.eup %3584  ;;  %1588 = vrot.lane.b32.xlu1 %v1557_v39, %s3606_s11  ;;  %v1168_v6 = vpack.c.bf16 %v1150_v58, %v1149_v7  ;;  %v1363_v35 = vshrl.u32 %v1167_v47, 16  ;;  %v1366_v2 = vshll.u32 %v1167_v47, 16  ;;  %v1347_v24 = vor.u32 %v1345_v61, %v1344_v40 }
 0x46b   : > { %v3587_v55 = vpop.eup %3586  ;;  %v1354_v27 = vor.u32 %v1352_v44, %v1351_v12  ;;  %v1559_v48 = vor.u32 %v1558_v17, %v1349_v34  ;;  %v1358_v29 = vrot.slane %v1356_v25, 7  ;;  %v1560_v14 = vrot.slane %v1359_v0, 1 }
 0x46c   : > { %1495 = vrot.lane.b32.xlu0 %v1166_v31, %s3605_s27  ;;  %v1152_v18 = vmul.f32 %v3585_v52, %v4602_v28  ;;  %v1365_v37 = vrot.slane %v1363_v35, 7  ;;  %v1057_v23 = vadd.f32 1.0, %v3583_v54  ;;  %v1058_v5 = vadd.f32 1.0, %v3587_v55 }
 0x46d   : > { %v1361_v9 = vor.u32 %v1359_v0, %v1358_v29  ;;  %v1370_v38 = vshrl.u32 %v1168_v6, 16  ;;  %v1562_v59 = vrot.slane %v1366_v2, 1  ;;  %v1373_v42 = vshll.u32 %v1168_v6, 16 }
 0x46e   : > { %1590 = vrot.lane.b32.xlu1 %v1559_v48, %s3606_s11  ;;  %v1169_v16 = vpack.c.bf16 %v1152_v18, %v1151_v15  ;;  %v1368_v4 = vor.u32 %v1366_v2, %v1365_v37  ;;  %3588 = vrcp.f32 %v1057_v23  ;;  %v1437_v28 = vsel %vm4565_vm9, %v1347_v24, %v1436_v26  ;;  %v3457_v24 = vld [vmem:[%s4963_s5 + $0x68] sm:$0xff]   ;;  %v3458_v37 = vld [vmem:[%s4963_s5 + $0x70] sm:$0xff]  }
 0x46f   : > { %3590 = vrcp.f32 %v1058_v5  ;;  %v1372_v46 = vrot.slane %v1370_v38, 7  ;;  %v1561_v21 = vor.u32 %v1560_v14, %v1356_v25  ;;  %1438 = vst [vmem:[#allocation2 + $0x50] sm:$0xff] %v1437_v28  ;;  %v1440_v53 = vsel %vm4565_vm9, %v1354_v27, %v1439_v45  ;;  %v1454_v25 = vld [vmem:[#allocation2 + $0x80] sm:$0xff]  ;;  %v3459_v45 = vld [vmem:[%s4963_s5 + $0x78] sm:$0xff]  }
 0x470   : > { %1497 = vrot.lane.b32.xlu0 %v1167_v47, %s3605_s27  ;;  %v1377_v56 = vshrl.u32 %v1169_v16, 16  ;;  %v1443_v63 = vsel %vm4565_vm9, %v1361_v9, %v1442_v49  ;;  %1441 = vst [vmem:[#allocation2 + $0x58] sm:$0xff] %v1440_v53  ;;  %v1446_v10 = vsel %vm4565_vm9, %v1368_v4, %v1445_v36  ;;  %v1380_v61 = vshll.u32 %v1169_v16, 16  ;;  %v3592_v9 = vld [vmem:[%s4963_s5] sm:$0xff]  }
 0x471   : > { %v1375_v60 = vor.u32 %v1373_v42, %v1372_v46  ;;  %1444 = vst [vmem:[#allocation2 + $0x60] sm:$0xff] %v1443_v63  ;;  %1447 = vst [vmem:[#allocation2 + $0x68] sm:$0xff] %v1446_v10  ;;  %v1563_v13 = vor.u32 %v1562_v59, %v1363_v35  ;;  %v1564_v31 = vrot.slane %v1373_v42, 1  ;;  %v3460_v59 = vld [vmem:[%s4963_s5 + $0x80] sm:$0xff]   ;;  %v2231_v35 = vld [vmem:[#allocation2 + $0x88] sm:$0xff] }
 0x472   : > { %1592 = vrot.lane.b32.xlu1 %v1561_v21, %s3606_s11  ;;  %v1379_v41 = vrot.slane %v1377_v56, 7  ;;  %v1566_v39 = vrot.slane %v1380_v61, 1  ;;  %v3461_v21 = vld [vmem:[%s4963_s5 + $0x88] sm:$0xff]  }
 0x473   : > { %v1449_v62 = vsel %vm4565_vm9, %v1375_v60, %v1448_v51  ;;  %v1565_v40 = vor.u32 %v1564_v31, %v1370_v38  ;;  %v3593_v38 = vld [vmem:[%s4963_s5 + $0x8] sm:$0xff]  }
 0x474   : > { %1499 = vrot.lane.b32.xlu0 %v1168_v6, %s3605_s27  ;;  %v1382_v22 = vor.u32 %v1380_v61, %v1379_v41  ;;  %1450 = vst [vmem:[#allocation2 + $0x70] sm:$0xff] %v1449_v62  ;;  %v1567_v54 = vor.u32 %v1566_v39, %v1377_v56 }
 0x476   : > { %1594 = vrot.lane.b32.xlu1 %v1563_v13, %s3606_s11  ;;  %v1452_v32 = vsel %vm4565_vm9, %v1382_v22, %v1451_v3 }
 0x477   : > { %1453 = vst [vmem:[#allocation2 + $0x78] sm:$0xff] %v1452_v32 }
 0x478   : > { %v3589_v20 = vpop.eup %3588  ;;  %1501 = vrot.lane.b32.xlu0 %v1169_v16, %s3605_s27 }
 0x479   : > { %v3591_v34 = vpop.eup %3590  ;;  %v1153_v44 = vmul.f32 %v3589_v20, %v4481_v11 }
 0x47a   : > { %v1154_v7 = vmul.f32 %v3591_v34, %v4493_v57  ;;  %1596 = vrot.lane.b32.xlu1 %v1565_v40, %s3606_s11 }
 0x47c   : > { %v1170_v33 = vpack.c.bf16 %v1154_v7, %v1153_v44 }
 0x47e   : > { %1503 = vrot.lane.b32.xlu0 %v1170_v33, %s3605_s27  ;;  %v1384_v47 = vshrl.u32 %v1170_v33, 16  ;;  %v1387_v58 = vshll.u32 %v1170_v33, 16 }
 0x480   : > { %v1386_v12 = vrot.slane %v1384_v47, 7  ;;  %v1568_v17 = vrot.slane %v1387_v58, 1 }
 0x482   : > { %1598 = vrot.lane.b32.xlu0 %v1567_v54, %s3606_s11  ;;  %v1389_v0 = vor.u32 %v1387_v58, %v1386_v12  ;;  %v1569_v52 = vor.u32 %v1568_v17, %v1384_v47 }
 0x484   : > { %1600 = vrot.lane.b32.xlu1 %v1569_v52, %s3606_s11  ;;  %v1455_v11 = vsel %vm4565_vm9, %v1389_v0, %v1454_v25 }
 0x485   : > { %1456 = vst [vmem:[#allocation2 + $0x80] sm:$0xff] %v1455_v11 }
 0x4a9   : > { %v1478_v57 = vpop.permute.xlu1 %1477 }
 0x4aa   : > { %1524 = vst.msk [vmem:[#allocation2 + $0x18] sm:$0xff] %vm1521_vm11, %v1478_v57 }
 0x4ab   : > { %v1474_v6 = vpop.permute.xlu0 %1473 }
 0x4ac   : > { %1522 = vst.msk [vmem:[#allocation2 + $0x8] sm:$0xff] %vm1521_vm11, %v1474_v6 }
 0x4af   : > { %v1476_v15 = vpop.permute.xlu0 %1475 }
 0x4b0   : > { %1523 = vst.msk [vmem:[#allocation2 + $0x10] sm:$0xff] %vm1521_vm11, %v1476_v15 }
 0x4b1   : > { %v1571_v2 = vpop.permute.xlu1 %1570  ;;  %v1627_v23 = vld [vmem:[#allocation2 + $0x18] sm:$0xff] }
 0x4b3   : > { %v1621_v19 = vld [vmem:[#allocation2 + $0x8] sm:$0xff]  ;;  %v1480_v55 = vpop.permute.xlu0 %1479 }
 0x4b4   : > { %v1622_v27 = vsel %vm4682_vm14, %v1571_v2, %v1621_v19  ;;  %1525 = vst.msk [vmem:[#allocation2 + $0x20] sm:$0xff] %vm1521_vm11, %v1480_v55 }
 0x4b5   : > { %1623 = vst [vmem:[#allocation2 + $0x8] sm:$0xff] %v1622_v27  ;;  %v1573_v48 = vpop.permute.xlu1 %1572  ;;  %3210 = vmatprep.mubr.msk.bf16.mxu1 %vm1171_vm10, %v1622_v27  ;;  %3255 = vmatmul.mubr.msk.bf16.vlgmr.msra.gmra.mrb[4].mxu0 %vm1171_vm10, %v1622_v27 }
 0x4b6   : > { %3287 = vmatpush3.bf16.msra.mxu0 %v4558_v30 }
 0x4b7   : > { %v1624_v29 = vld [vmem:[#allocation2 + $0x10] sm:$0xff]  ;;  %v1482_v14 = vpop.permute.xlu0 %1481  ;;  %3288 = vmatprep.subr.bf16.mxu0 %v3457_v24 }
 0x4b8   : > { %v4697_v18 = vsel %vm4682_vm14, %v1573_v48, %v1624_v29  ;;  %1526 = vst.msk [vmem:[#allocation2 + $0x28] sm:$0xff] %vm1521_vm11, %v1482_v14 }
 0x4b9   : > { %1626 = vst [vmem:[#allocation2 + $0x10] sm:$0xff] %v4697_v18  ;;  %v1575_v26 = vpop.permute.xlu1 %1574  ;;  %3211 = vmatmul.mubr.msk.bf16.vlgmr.msra.gmra.mrb[4].mxu1 %vm1171_vm10, %v4697_v18  ;;  %3258 = vmatprep.mubr.msk.bf16.mxu0 %vm1171_vm10, %v4697_v18 }
 0x4ba   : > { %v4710_v30 = vsel %vm4682_vm14, %v1575_v26, %v1627_v23  ;;  %3360 = vmatpush3.bf16.msra.mxu1 %v3592_v9  ;;  %3289 = vmatpush3.bf16.msra.mxu0 %v3457_v24 }
 0x4bb   : > { %1629 = vst [vmem:[#allocation2 + $0x18] sm:$0xff] %v4710_v30  ;;  %v1484_v5 = vpop.permute.xlu0 %1483  ;;  %3214 = vmatprep.mubr.msk.bf16.mxu1 %vm1171_vm10, %v4710_v30  ;;  %3355 = vmatprep.subr.bf16.mxu1 %v3593_v38  ;;  %v1630_v49 = vld [vmem:[#allocation2 + $0x20] sm:$0xff] }
 0x4bc   : > { %1527 = vst.msk [vmem:[#allocation2 + $0x30] sm:$0xff] %vm1521_vm11, %v1484_v5  ;;  %3290 = vmatprep.subr.bf16.mxu0 %v3458_v37 }
 0x4bd   : > { %v1577_v16 = vpop.permute.xlu1 %1576  ;;  %3259 = vmatmul.mubr.msk.bf16.gmra.mrb[8].mxu0 %vm1171_vm10, %v4710_v30 }
 0x4be   : > { %v1631_v4 = vsel %vm4682_vm14, %v1577_v16, %v1630_v49  ;;  %3361 = vmatpush3.bf16.msra.mxu1 %v3593_v38  ;;  %3291 = vmatpush3.bf16.msra.mxu0 %v3458_v37 }
 0x4bf   : > { %1632 = vst [vmem:[#allocation2 + $0x20] sm:$0xff] %v1631_v4  ;;  %3262 = vmatprep.mubr.msk.bf16.mxu0 %vm1171_vm10, %v1631_v4  ;;  %3292 = vmatprep.subr.bf16.mxu0 %v3459_v45  ;;  %v1633_v36 = vld [vmem:[#allocation2 + $0x28] sm:$0xff] }
 0x4c0   : > { %3356 = vmatprep.subr.bf16.mxu1 %v4403_v43 }
 0x4c1   : > { %v1579_v46 = vpop.permute.xlu1 %1578  ;;  %3215 = vmatmul.mubr.msk.bf16.gmra.mrb[8].mxu1 %vm1171_vm10, %v1631_v4  ;;  %v1486_v42 = vpop.permute.xlu0 %1485 }
 0x4c2   : > { %v1634_v28 = vsel %vm4682_vm14, %v1579_v46, %v1633_v36  ;;  %3293 = vmatpush3.bf16.msra.mxu0 %v3459_v45  ;;  %3362 = vmatpush3.bf16.msra.mxu1 %v4403_v43  ;;  %1528 = vst.msk [vmem:[#allocation2 + $0x38] sm:$0xff] %vm1521_vm11, %v1486_v42  ;;  %v4845_v46 = vld [vmem:[%s4964_s6] ss:$0 sm:$0xff] }
 0x4c3   : > { %1635 = vst [vmem:[#allocation2 + $0x28] sm:$0xff] %v1634_v28  ;;  %3218 = vmatprep.mubr.msk.bf16.mxu1 %vm1171_vm10, %v1634_v28  ;;  %3294 = vmatprep.subr.bf16.mxu0 %v3460_v59  ;;  %v1636_v56 = vld [vmem:[#allocation2 + $0x30] sm:$0xff] }
 0x4c4   : > { %3357 = vmatprep.subr.bf16.mxu1 %v4427_v50 }
 0x4c5   : > { %v1581_v53 = vpop.permute.xlu1 %1580  ;;  %3263 = vmatmul.mubr.msk.bf16.gmra.mrb[12].mxu0 %vm1171_vm10, %v1634_v28 }
 0x4c6   : > { %v1488_v63 = vpop.permute.xlu0 %1487  ;;  %v1637_v43 = vsel %vm4682_vm14, %v1581_v53, %v1636_v56  ;;  %3295 = vmatpush3.bf16.msra.mxu0 %v3460_v59  ;;  %3363 = vmatpush3.bf16.msra.mxu1 %v4427_v50 }
 0x4c7   : > { %1529 = vst.msk [vmem:[#allocation2 + $0x40] sm:$0xff] %vm1521_vm11, %v1488_v63  ;;  %1638 = vst [vmem:[#allocation2 + $0x30] sm:$0xff] %v1637_v43  ;;  %3266 = vmatprep.mubr.msk.bf16.mxu0 %vm1171_vm10, %v1637_v43  ;;  %3296 = vmatprep.subr.bf16.mxu0 %v3461_v21 }
 0x4c8   : > { %3358 = vmatprep.subr.bf16.mxu1 %v4473_v1 }
 0x4c9   : > { %v1583_v51 = vpop.permute.xlu1 %1582  ;;  %3219 = vmatmul.mubr.msk.bf16.gmra.mrb[12].mxu1 %vm1171_vm10, %v1637_v43  ;;  %v1639_v10 = vld [vmem:[#allocation2 + $0x38] sm:$0xff] }
 0x4ca   : > { %v1490_v60 = vpop.permute.xlu0 %1489  ;;  %3297 = vmatpush3.bf16.msra.mxu0 %v3461_v21  ;;  %3364 = vmatpush3.bf16.msra.mxu1 %v4473_v1  ;;  %v1640_v50 = vsel %vm4682_vm14, %v1583_v51, %v1639_v10 }
 0x4cb   : > { %1530 = vst.msk [vmem:[#allocation2 + $0x48] sm:$0xff] %vm1521_vm11, %v1490_v60  ;;  %3359 = vmatprep.subr.bf16.mxu1 %v4510_v8  ;;  %1641 = vst [vmem:[#allocation2 + $0x38] sm:$0xff] %v1640_v50  ;;  %3222 = vmatprep.mubr.msk.bf16.mxu1 %vm1171_vm10, %v1640_v50 }
 0x4cd   : > { %v1585_v41 = vpop.permute.xlu1 %1584  ;;  %3267 = vmatmul.mubr.msk.bf16.gmra.mrb[16].mxu0 %vm1171_vm10, %v1640_v50 }
 0x4ce   : > { %v1642_v61 = vld [vmem:[#allocation2 + $0x40] sm:$0xff]  ;;  %3298 = vmatprep.mubr.msk.bf16.mxu0 %vm1171_vm10, %v4697_v18  ;;  %3365 = vmatpush3.bf16.msra.mxu1 %v4510_v8 }
 0x4cf   : > { %v4764_v1 = vsel %vm4682_vm14, %v1585_v41, %v1642_v61 }
 0x4d0   : > { %1644 = vst [vmem:[#allocation2 + $0x40] sm:$0xff] %v4764_v1 }
 0x4d1   : > { %v1587_v62 = vpop.permute.xlu1 %1586  ;;  %3223 = vmatmul.mubr.msk.bf16.gmra.mrb[16].mxu1 %vm1171_vm10, %v4764_v1 }
 0x4d2   : > { %v1645_v3 = vld [vmem:[#allocation2 + $0x48] sm:$0xff] }
 0x4d3   : > { %v4771_v13 = vsel %vm4682_vm14, %v1587_v62, %v1645_v3 }
 0x4d4   : > { %1647 = vst [vmem:[#allocation2 + $0x48] sm:$0xff] %v4771_v13  ;;  %3226 = vmatprep.mubr.msk.bf16.mxu1 %vm1171_vm10, %v4771_v13 }
 0x4d5   : > { %3299 = vmatmul.mubr.msk.bf16.vlgmr.msra.gmra.mrb[4].mxu0 %vm1171_vm10, %v4710_v30 }
 0x4d6   : > { %v1492_v8 = vpop.permute.xlu0 %1491  ;;  %3302 = vmatprep.mubr.msk.bf16.mxu0 %vm1171_vm10, %v1631_v4 }
 0x4d7   : > { %1531 = vst.msk [vmem:[#allocation2 + $0x50] sm:$0xff] %vm1521_vm11, %v1492_v8 }
 0x4da   : > { %v1494_v31 = vpop.permute.xlu0 %1493 }
 0x4db   : > { %1532 = vst.msk [vmem:[#allocation2 + $0x58] sm:$0xff] %vm1521_vm11, %v1494_v31 }
 0x4dc   : > { %v1589_v22 = vpop.permute.xlu1 %1588 }
 0x4dd   : > { %3303 = vmatmul.mubr.msk.bf16.gmra.mrb[8].mxu0 %vm1171_vm10, %v1634_v28 }
 0x4de   : > { %v1496_v32 = vpop.permute.xlu0 %1495  ;;  %v1648_v20 = vld [vmem:[#allocation2 + $0x50] sm:$0xff]  ;;  %3306 = vmatprep.mubr.msk.bf16.mxu0 %vm1171_vm10, %v1637_v43 }
 0x4df   : > { %1533 = vst.msk [vmem:[#allocation2 + $0x60] sm:$0xff] %vm1521_vm11, %v1496_v32  ;;  %v1649_v40 = vsel %vm4682_vm14, %v1589_v22, %v1648_v20 }
 0x4e0   : > { %1650 = vst [vmem:[#allocation2 + $0x50] sm:$0xff] %v1649_v40  ;;  %v1591_v34 = vpop.permute.xlu1 %1590  ;;  %3227 = vmatmul.mubr.msk.bf16.gmra.mrb[20].mxu1 %vm1171_vm10, %v1649_v40 }
 0x4e2   : > { %v1498_v44 = vpop.permute.xlu0 %1497  ;;  %v1651_v7 = vld [vmem:[#allocation2 + $0x58] sm:$0xff] }
 0x4e3   : > { %1534 = vst.msk [vmem:[#allocation2 + $0x68] sm:$0xff] %vm1521_vm11, %v1498_v44  ;;  %v1652_v33 = vsel %vm4682_vm14, %v1591_v34, %v1651_v7 }
 0x4e4   : > { %1653 = vst [vmem:[#allocation2 + $0x58] sm:$0xff] %v1652_v33  ;;  %v1593_v39 = vpop.permute.xlu1 %1592  ;;  %3230 = vmatprep.mubr.msk.bf16.mxu1 %vm1171_vm10, %v1652_v33 }
 0x4e5   : > { %3307 = vmatmul.mubr.msk.bf16.gmra.mrb[12].mxu0 %vm1171_vm10, %v1640_v50 }
 0x4e6   : > { %v1500_v47 = vpop.permute.xlu0 %1499  ;;  %v1654_v58 = vld [vmem:[#allocation2 + $0x60] sm:$0xff]  ;;  %3310 = vmatprep.mubr.msk.bf16.mxu0 %vm1171_vm10, %v4764_v1 }
 0x4e7   : > { %1535 = vst.msk [vmem:[#allocation2 + $0x70] sm:$0xff] %vm1521_vm11, %v1500_v47  ;;  %v1655_v54 = vsel %vm4682_vm14, %v1593_v39, %v1654_v58 }
 0x4e8   : > { %1656 = vst [vmem:[#allocation2 + $0x60] sm:$0xff] %v1655_v54  ;;  %v1595_v12 = vpop.permute.xlu1 %1594  ;;  %3231 = vmatmul.mubr.msk.bf16.gmra.mrb[24].mxu1 %vm1171_vm10, %v1655_v54 }
 0x4ea   : > { %v1502_v17 = vpop.permute.xlu0 %1501  ;;  %v1657_v25 = vld [vmem:[#allocation2 + $0x68] sm:$0xff] }
 0x4eb   : > { %1536 = vst.msk [vmem:[#allocation2 + $0x78] sm:$0xff] %vm1521_vm11, %v1502_v17  ;;  %v1658_v0 = vsel %vm4682_vm14, %v1595_v12, %v1657_v25 }
 0x4ec   : > { %1659 = vst [vmem:[#allocation2 + $0x68] sm:$0xff] %v1658_v0  ;;  %v1597_v52 = vpop.permute.xlu1 %1596  ;;  %3234 = vmatprep.mubr.msk.bf16.mxu1 %vm1171_vm10, %v1658_v0 }
 0x4ed   : > { %3311 = vmatmul.mubr.msk.bf16.gmra.mrb[16].mxu0 %vm1171_vm10, %v4771_v13 }
 0x4ee   : > { %v1660_v11 = vld [vmem:[#allocation2 + $0x70] sm:$0xff]  ;;  %3314 = vmatprep.mubr.msk.bf16.mxu0 %vm1171_vm10, %v1649_v40 }
 0x4ef   : > { %v1661_v57 = vsel %vm4682_vm14, %v1597_v52, %v1660_v11 }
 0x4f0   : > { %v1504_v6 = vpop.permute.xlu0 %1503  ;;  %1662 = vst [vmem:[#allocation2 + $0x70] sm:$0xff] %v1661_v57  ;;  %3235 = vmatmul.mubr.msk.bf16.gmra.mrb[28].mxu1 %vm1171_vm10, %v1661_v57 }
 0x4f1   : > { %1537 = vst.msk [vmem:[#allocation2 + $0x80] sm:$0xff] %vm1521_vm11, %v1504_v6 }
 0x4f2   : > { %v1663_v15 = vld [vmem:[#allocation2 + $0x78] sm:$0xff] }
 0x4f4   : > { %v1599_v2 = vpop.permute.xlu0 %1598 }
 0x4f5   : > { %v1664_v19 = vsel %vm4682_vm14, %v1599_v2, %v1663_v15  ;;  %3315 = vmatmul.mubr.msk.bf16.gmra.mrb[20].mxu0 %vm1171_vm10, %v1652_v33 }
 0x4f6   : > { %1665 = vst [vmem:[#allocation2 + $0x78] sm:$0xff] %v1664_v19  ;;  %3238 = vmatprep.mubr.msk.bf16.mxu1 %vm1171_vm10, %v1664_v19  ;;  %3318 = vmatprep.mubr.msk.bf16.mxu0 %vm1171_vm10, %v1655_v54  ;;  %v1601_v24 = vpop.permute.xlu1 %1600 }
 0x4f8   : > { %v1666_v55 = vld [vmem:[#allocation2 + $0x80] sm:$0xff] }
 0x4f9   : > { %v1667_v27 = vsel %vm4682_vm14, %v1601_v24, %v1666_v55 }
 0x4fa   : > { %1668 = vst [vmem:[#allocation2 + $0x80] sm:$0xff] %v1667_v27  ;;  %3239 = vmatmul.mubr.msk.bf16.gmra.mrb[32].mxu1 %vm1171_vm10, %v1667_v27 }
 0x4fb   : > { %3270 = vmatprep.mubr.msk.bf16.mxu1 %vm1171_vm10, %v4764_v1 }
 0x4fd   : > { %3319 = vmatmul.mubr.msk.bf16.gmra.mrb[24].mxu0 %vm1171_vm10, %v1658_v0 }
 0x4fe   : > { %3322 = vmatprep.mubr.msk.bf16.mxu0 %vm1171_vm10, %v1661_v57 }
 0x502   : > { %3271 = vmatmul.mubr.msk.bf16.vlgmr.msra.gmra.mrb[20].mxu1 %vm1171_vm10, %v4771_v13 }
 0x503   : > { %3274 = vmatprep.mubr.msk.bf16.mxu1 %vm1171_vm10, %v1649_v40 }
 0x505   : > { %3323 = vmatmul.mubr.msk.bf16.gmra.mrb[28].mxu0 %vm1171_vm10, %v1664_v19 }
 0x506   : > { %3326 = vmatprep.mubr.msk.bf16.mxu0 %vm1171_vm10, %v1667_v27 }
 0x50a   : > { %3275 = vmatmul.mubr.msk.bf16.gmra.mrb[24].mxu1 %vm1171_vm10, %v1652_v33 }
 0x50b   : > { %3278 = vmatprep.mubr.msk.bf16.mxu1 %vm1171_vm10, %v1655_v54 }
 0x50d   : > { %3327 = vmatmul.mubr.msk.bf16.gmra.mrb[32].mxu0 %vm1171_vm10, %v2231_v35 }
 0x512   : > { %3279 = vmatmul.mubr.msk.bf16.gmra.mrb[28].mxu1 %vm1171_vm10, %v1658_v0 }
 0x513   : > { %3282 = vmatprep.mubr.msk.bf16.mxu1 %vm1171_vm10, %v1661_v57 }
 0x51a   : > { %3283 = vmatmul.mubr.msk.bf16.gmra.mrb[32].mxu1 %vm1171_vm10, %v1664_v19 }
 0x58c   : > { %v3212_v48 = vpop.f32.mrb[4].mxu1 }
 0x58d   : > { %v1843_v29 = vpop.f32.mrb[5].mxu1 }
 0x58e   : > { %v3213_v14 = vpop.f32.mrb[6].mxu1 }
 0x58f   : > { %v1846_v18 = vpop.f32.mrb[7].mxu1 }
 0x594   : > { %v3216_v37 = vpop.f32.mrb[8].mxu1 }
 0x595   : > { %v1859_v23 = vpop.f32.mrb[9].mxu1 }
 0x596   : > { %v3217_v26 = vpop.f32.mrb[10].mxu1 }
 0x597   : > { %v1862_v30 = vpop.f32.mrb[11].mxu1 }
 0x59c   : > { %v3220_v9 = vpop.f32.mrb[12].mxu1 }
 0x59d   : > { %v1875_v5 = vpop.f32.mrb[13].mxu1 }
 0x59e   : > { %v3221_v38 = vpop.f32.mrb[14].mxu1 }
 0x59f   : > { %v4832_v45 = vpop.f32.mrb[15].mxu1 }
 0x5a4   : > { %v4834_v49 = vpop.f32.mrb[16].mxu1 }
 0x5a5   : > { %v4836_v16 = vpop.f32.mrb[17].mxu1 }
 0x5a6   : > { %v4838_v4 = vpop.f32.mrb[18].mxu1 }
 0x5a7   : > { %v4840_v59 = vpop.f32.mrb[19].mxu1 }
 0x5a8   : > { %v3300_v36 = vpop.f32.mrb[4].mxu0 }
 0x5a9   : > { %v3366_v42 = vadd.f32 %v3300_v36, %v3212_v48  ;;  %v2362_v28 = vpop.f32.mrb[5].mxu0 }
 0x5aa   : > { %v3367_v21 = vadd.f32 %v2362_v28, %v1843_v29  ;;  %v3301_v56 = vpop.f32.mrb[6].mxu0 }
 0x5ab   : > { %v2530_v53 = vadd.f32 %v3366_v42, %v4845_v46  ;;  %v3368_v63 = vadd.f32 %v3301_v56, %v3213_v14  ;;  %v2365_v43 = vpop.f32.mrb[7].mxu0 }
 0x5ac   : > { %v2528_v51 = vadd.f32 %v3367_v21, %v4845_v46  ;;  %v3369_v60 = vadd.f32 %v2365_v43, %v1846_v18 }
 0x5ad   : > { %v2562_v10 = vmul.f32 2.0, %v2530_v53  ;;  %v2531_v50 = vadd.f32 %v3368_v63, %v4845_v46 }
 0x5ae   : > { %v2560_v41 = vmul.f32 2.0, %v2528_v51  ;;  %v2529_v61 = vadd.f32 %v3369_v60, %v4845_v46 }
 0x5af   : > { %v2959_v1 = vpack.c.bf16 %v2562_v10, %v2562_v10  ;;  %v2563_v62 = vmul.f32 2.0, %v2531_v50 }
 0x5b0   : > { %v2957_v3 = vpack.c.bf16 %v2560_v41, %v2560_v41  ;;  %v2561_v13 = vmul.f32 2.0, %v2529_v61  ;;  %v3304_v8 = vpop.f32.mrb[8].mxu0 }
 0x5b1   : > { %2723 = vst.msk [vmem:[%s4855_s12 + $0x8] sm:$0xf] %vm2720_vm15, %v2959_v1  ;;  %v2960_v31 = vpack.c.bf16 %v2563_v62, %v2563_v62  ;;  %v3370_v22 = vadd.f32 %v3304_v8, %v3216_v37  ;;  %v2378_v32 = vpop.f32.mrb[9].mxu0 }
 0x5b2   : > { %2721 = vst.msk [vmem:[%s4855_s12] sm:$0xf] %vm2720_vm15, %v2957_v3  ;;  %v2958_v20 = vpack.c.bf16 %v2561_v13, %v2561_v13  ;;  %v3371_v40 = vadd.f32 %v2378_v32, %v1859_v23  ;;  %v3305_v34 = vpop.f32.mrb[10].mxu0 }
 0x5b3   : > { %2724 = vst.msk [vmem:[%s4855_s12 + $0xc] sm:$0xf] %vm2720_vm15, %v2960_v31  ;;  %v2534_v44 = vadd.f32 %v3370_v22, %v4845_v46  ;;  %v3372_v7 = vadd.f32 %v3305_v34, %v3217_v26  ;;  %v2381_v33 = vpop.f32.mrb[11].mxu0 }
 0x5b4   : > { %2722 = vst.msk [vmem:[%s4855_s12 + $0x4] sm:$0xf] %vm2720_vm15, %v2958_v20  ;;  %v2532_v39 = vadd.f32 %v3371_v40, %v4845_v46  ;;  %v3373_v47 = vadd.f32 %v2381_v33, %v1862_v30 }
 0x5b5   : > { %v2566_v58 = vmul.f32 2.0, %v2534_v44  ;;  %v2535_v54 = vadd.f32 %v3372_v7, %v4845_v46 }
 0x5b6   : > { %v2564_v12 = vmul.f32 2.0, %v2532_v39  ;;  %v2533_v17 = vadd.f32 %v3373_v47, %v4845_v46 }
 0x5b7   : > { %v2963_v25 = vpack.c.bf16 %v2566_v58, %v2566_v58  ;;  %v2567_v0 = vmul.f32 2.0, %v2535_v54 }
 0x5b8   : > { %v2961_v52 = vpack.c.bf16 %v2564_v12, %v2564_v12  ;;  %v2565_v11 = vmul.f32 2.0, %v2533_v17  ;;  %v3308_v57 = vpop.f32.mrb[12].mxu0 }
 0x5b9   : > { %2727 = vst.msk [vmem:[%s4855_s12 + $0x18] sm:$0xf] %vm2720_vm15, %v2963_v25  ;;  %v2964_v6 = vpack.c.bf16 %v2567_v0, %v2567_v0  ;;  %v3374_v15 = vadd.f32 %v3308_v57, %v3220_v9  ;;  %v2394_v2 = vpop.f32.mrb[13].mxu0 }
 0x5ba   : > { %2725 = vst.msk [vmem:[%s4855_s12 + $0x10] sm:$0xf] %vm2720_vm15, %v2961_v52  ;;  %v2962_v19 = vpack.c.bf16 %v2565_v11, %v2565_v11  ;;  %v3375_v55 = vadd.f32 %v2394_v2, %v1875_v5  ;;  %v3309_v24 = vpop.f32.mrb[14].mxu0 }
 0x5bb   : > { %2728 = vst.msk [vmem:[%s4855_s12 + $0x1c] sm:$0xf] %vm2720_vm15, %v2964_v6  ;;  %v2538_v27 = vadd.f32 %v3374_v15, %v4845_v46  ;;  %v3376_v35 = vadd.f32 %v3309_v24, %v3221_v38  ;;  %v2397_v48 = vpop.f32.mrb[15].mxu0 }
 0x5bc   : > { %2726 = vst.msk [vmem:[%s4855_s12 + $0x14] sm:$0xf] %vm2720_vm15, %v2962_v19  ;;  %v2536_v29 = vadd.f32 %v3375_v55, %v4845_v46  ;;  %v3377_v14 = vadd.f32 %v2397_v48, %v4832_v45 }
 0x5bd   : > { %v2570_v18 = vmul.f32 2.0, %v2538_v27  ;;  %v2539_v37 = vadd.f32 %v3376_v35, %v4845_v46 }
 0x5be   : > { %v2568_v23 = vmul.f32 2.0, %v2536_v29  ;;  %v2537_v26 = vadd.f32 %v3377_v14, %v4845_v46 }
 0x5bf   : > { %v2967_v30 = vpack.c.bf16 %v2570_v18, %v2570_v18  ;;  %v2571_v9 = vmul.f32 2.0, %v2539_v37 }
 0x5c0   : > { %v2965_v5 = vpack.c.bf16 %v2568_v23, %v2568_v23  ;;  %v2569_v38 = vmul.f32 2.0, %v2537_v26  ;;  %v3312_v36 = vpop.f32.mrb[16].mxu0 }
 0x5c1   : > { %2731 = vst.msk [vmem:[%s4855_s12 + $0x28] sm:$0xf] %vm2720_vm15, %v2967_v30  ;;  %v2968_v42 = vpack.c.bf16 %v2571_v9, %v2571_v9  ;;  %v3378_v28 = vadd.f32 %v3312_v36, %v4834_v49  ;;  %v2410_v21 = vpop.f32.mrb[17].mxu0 }
 0x5c2   : > { %2729 = vst.msk [vmem:[%s4855_s12 + $0x20] sm:$0xf] %vm2720_vm15, %v2965_v5  ;;  %v2966_v45 = vpack.c.bf16 %v2569_v38, %v2569_v38  ;;  %v3379_v56 = vadd.f32 %v2410_v21, %v4836_v16  ;;  %v3313_v53 = vpop.f32.mrb[18].mxu0 }
 0x5c3   : > { %2732 = vst.msk [vmem:[%s4855_s12 + $0x2c] sm:$0xf] %vm2720_vm15, %v2968_v42  ;;  %v2542_v63 = vadd.f32 %v3378_v28, %v4845_v46  ;;  %v3380_v43 = vadd.f32 %v3313_v53, %v4838_v4  ;;  %v2413_v51 = vpop.f32.mrb[19].mxu0 }
 0x5c4   : > { %2730 = vst.msk [vmem:[%s4855_s12 + $0x24] sm:$0xf] %vm2720_vm15, %v2966_v45  ;;  %v2540_v49 = vadd.f32 %v3379_v56, %v4845_v46  ;;  %v3381_v60 = vadd.f32 %v2413_v51, %v4840_v59 }
 0x5c5   : > { %v2574_v10 = vmul.f32 2.0, %v2542_v63  ;;  %v2543_v16 = vadd.f32 %v3380_v43, %v4845_v46 }
 0x5c6   : > { %v2572_v50 = vmul.f32 2.0, %v2540_v49  ;;  %v2541_v41 = vadd.f32 %v3381_v60, %v4845_v46 }
 0x5c7   : > { %v2971_v61 = vpack.c.bf16 %v2574_v10, %v2574_v10  ;;  %v2575_v1 = vmul.f32 2.0, %v2543_v16 }
 0x5c8   : > { %v2969_v62 = vpack.c.bf16 %v2572_v50, %v2572_v50  ;;  %v2573_v4 = vmul.f32 2.0, %v2541_v41  ;;  %v3316_v3 = vpop.f32.mrb[20].mxu0 }
 0x5c9   : > { %2735 = vst.msk [vmem:[%s4855_s12 + $0x38] sm:$0xf] %vm2720_vm15, %v2971_v61  ;;  %v2972_v13 = vpack.c.bf16 %v2575_v1, %v2575_v1  ;;  %v2426_v8 = vpop.f32.mrb[21].mxu0 }
 0x5ca   : > { %2733 = vst.msk [vmem:[%s4855_s12 + $0x30] sm:$0xf] %vm2720_vm15, %v2969_v62  ;;  %v2970_v59 = vpack.c.bf16 %v2573_v4, %v2573_v4  ;;  %v3317_v31 = vpop.f32.mrb[22].mxu0 }
 0x5cb   : > { %2736 = vst.msk [vmem:[%s4855_s12 + $0x3c] sm:$0xf] %vm2720_vm15, %v2972_v13  ;;  %v2429_v22 = vpop.f32.mrb[23].mxu0 }
 0x5cc   : > { %2734 = vst.msk [vmem:[%s4855_s12 + $0x34] sm:$0xf] %vm2720_vm15, %v2970_v59 }
 0x5d0   : > { %v3320_v32 = vpop.f32.mrb[24].mxu0 }
 0x5d1   : > { %v2442_v20 = vpop.f32.mrb[25].mxu0 }
 0x5d2   : > { %v3321_v40 = vpop.f32.mrb[26].mxu0 }
 0x5d3   : > { %v2445_v34 = vpop.f32.mrb[27].mxu0 }
 0x5d5   : > { %v3272_v44 = vpop.f32.mrb[20].mxu1 }
 0x5d6   : > { %v3382_v7 = vadd.f32 %v3316_v3, %v3272_v44  ;;  %v2152_v33 = vpop.f32.mrb[21].mxu1 }
 0x5d7   : > { %v3383_v39 = vadd.f32 %v2426_v8, %v2152_v33  ;;  %v3273_v47 = vpop.f32.mrb[22].mxu1 }
 0x5d8   : > { %v2546_v58 = vadd.f32 %v3382_v7, %v4845_v46  ;;  %v3384_v54 = vadd.f32 %v3317_v31, %v3273_v47  ;;  %v2155_v12 = vpop.f32.mrb[23].mxu1  ;;  %v3324_v17 = vpop.f32.mrb[28].mxu0 }
 0x5d9   : > { %v2544_v25 = vadd.f32 %v3383_v39, %v4845_v46  ;;  %v3385_v0 = vadd.f32 %v2429_v22, %v2155_v12  ;;  %v2458_v52 = vpop.f32.mrb[29].mxu0 }
 0x5da   : > { %v2578_v11 = vmul.f32 2.0, %v2546_v58  ;;  %v2547_v57 = vadd.f32 %v3384_v54, %v4845_v46  ;;  %v3325_v6 = vpop.f32.mrb[30].mxu0 }
 0x5db   : > { %v2576_v15 = vmul.f32 2.0, %v2544_v25  ;;  %v2545_v2 = vadd.f32 %v3385_v0, %v4845_v46  ;;  %v2461_v19 = vpop.f32.mrb[31].mxu0 }
 0x5dc   : > { %v2975_v55 = vpack.c.bf16 %v2578_v11, %v2578_v11  ;;  %v2579_v24 = vmul.f32 2.0, %v2547_v57 }
 0x5dd   : > { %v2973_v27 = vpack.c.bf16 %v2576_v15, %v2576_v15  ;;  %v2577_v35 = vmul.f32 2.0, %v2545_v2  ;;  %v3276_v48 = vpop.f32.mrb[24].mxu1 }
 0x5de   : > { %2739 = vst.msk [vmem:[%s4855_s12 + $0x48] sm:$0xf] %vm2720_vm15, %v2975_v55  ;;  %v2976_v29 = vpack.c.bf16 %v2579_v24, %v2579_v24  ;;  %v3386_v14 = vadd.f32 %v3320_v32, %v3276_v48  ;;  %v2168_v18 = vpop.f32.mrb[25].mxu1 }
 0x5df   : > { %2737 = vst.msk [vmem:[%s4855_s12 + $0x40] sm:$0xf] %vm2720_vm15, %v2973_v27  ;;  %v2974_v37 = vpack.c.bf16 %v2577_v35, %v2577_v35  ;;  %v3387_v23 = vadd.f32 %v2442_v20, %v2168_v18  ;;  %v3277_v26 = vpop.f32.mrb[26].mxu1 }
 0x5e0   : > { %2740 = vst.msk [vmem:[%s4855_s12 + $0x4c] sm:$0xf] %vm2720_vm15, %v2976_v29  ;;  %v2550_v30 = vadd.f32 %v3386_v14, %v4845_v46  ;;  %v3388_v9 = vadd.f32 %v3321_v40, %v3277_v26  ;;  %v2171_v5 = vpop.f32.mrb[27].mxu1  ;;  %v3328_v38 = vpop.f32.mrb[32].mxu0 }
 0x5e1   : > { %2738 = vst.msk [vmem:[%s4855_s12 + $0x44] sm:$0xf] %vm2720_vm15, %v2974_v37  ;;  %v2548_v36 = vadd.f32 %v3387_v23, %v4845_v46  ;;  %v3389_v42 = vadd.f32 %v2445_v34, %v2171_v5  ;;  %v2474_v28 = vpop.f32.mrb[33].mxu0 }
 0x5e2   : > { %v2582_v21 = vmul.f32 2.0, %v2550_v30  ;;  %v2551_v45 = vadd.f32 %v3388_v9, %v4845_v46  ;;  %v3329_v56 = vpop.f32.mrb[34].mxu0 }
 0x5e3   : > { %v2580_v53 = vmul.f32 2.0, %v2548_v36  ;;  %v2549_v63 = vadd.f32 %v3389_v42, %v4845_v46  ;;  %v2477_v43 = vpop.f32.mrb[35].mxu0 }
 0x5e4   : > { %v2979_v51 = vpack.c.bf16 %v2582_v21, %v2582_v21  ;;  %v2583_v49 = vmul.f32 2.0, %v2551_v45 }
 0x5e5   : > { %v2977_v60 = vpack.c.bf16 %v2580_v53, %v2580_v53  ;;  %v2581_v10 = vmul.f32 2.0, %v2549_v63  ;;  %v3280_v16 = vpop.f32.mrb[28].mxu1 }
 0x5e6   : > { %2743 = vst.msk [vmem:[%s4855_s12 + $0x58] sm:$0xf] %vm2720_vm15, %v2979_v51  ;;  %v2980_v50 = vpack.c.bf16 %v2583_v49, %v2583_v49  ;;  %v3390_v41 = vadd.f32 %v3324_v17, %v3280_v16  ;;  %v2184_v61 = vpop.f32.mrb[29].mxu1 }
 0x5e7   : > { %2741 = vst.msk [vmem:[%s4855_s12 + $0x50] sm:$0xf] %vm2720_vm15, %v2977_v60  ;;  %v2978_v1 = vpack.c.bf16 %v2581_v10, %v2581_v10  ;;  %v3391_v62 = vadd.f32 %v2458_v52, %v2184_v61  ;;  %v3281_v4 = vpop.f32.mrb[30].mxu1 }
 0x5e8   : > { %2744 = vst.msk [vmem:[%s4855_s12 + $0x5c] sm:$0xf] %vm2720_vm15, %v2980_v50  ;;  %v2554_v3 = vadd.f32 %v3390_v41, %v4845_v46  ;;  %v3392_v13 = vadd.f32 %v3325_v6, %v3281_v4  ;;  %v2187_v8 = vpop.f32.mrb[31].mxu1 }
 0x5e9   : > { %2742 = vst.msk [vmem:[%s4855_s12 + $0x54] sm:$0xf] %vm2720_vm15, %v2978_v1  ;;  %v2552_v59 = vadd.f32 %v3391_v62, %v4845_v46  ;;  %v3393_v31 = vadd.f32 %v2461_v19, %v2187_v8 }
 0x5ea   : > { %v2586_v22 = vmul.f32 2.0, %v2554_v3  ;;  %v2555_v32 = vadd.f32 %v3392_v13, %v4845_v46 }
 0x5eb   : > { %v2584_v20 = vmul.f32 2.0, %v2552_v59  ;;  %v2553_v40 = vadd.f32 %v3393_v31, %v4845_v46 }
 0x5ec   : > { %v2983_v34 = vpack.c.bf16 %v2586_v22, %v2586_v22  ;;  %v2587_v44 = vmul.f32 2.0, %v2555_v32 }
 0x5ed   : > { %v2981_v7 = vpack.c.bf16 %v2584_v20, %v2584_v20  ;;  %v2585_v33 = vmul.f32 2.0, %v2553_v40  ;;  %v3284_v39 = vpop.f32.mrb[32].mxu1 }
 0x5ee   : > { %2747 = vst.msk [vmem:[%s4855_s12 + $0x68] sm:$0xf] %vm2720_vm15, %v2983_v34  ;;  %v2984_v47 = vpack.c.bf16 %v2587_v44, %v2587_v44  ;;  %v3394_v58 = vadd.f32 %v3328_v38, %v3284_v39  ;;  %v2200_v54 = vpop.f32.mrb[33].mxu1 }
 0x5ef   : > { %2745 = vst.msk [vmem:[%s4855_s12 + $0x60] sm:$0xf] %vm2720_vm15, %v2981_v7  ;;  %v2982_v12 = vpack.c.bf16 %v2585_v33, %v2585_v33  ;;  %v3395_v17 = vadd.f32 %v2474_v28, %v2200_v54  ;;  %v3285_v25 = vpop.f32.mrb[34].mxu1 }
 0x5f0   : > { %2748 = vst.msk [vmem:[%s4855_s12 + $0x6c] sm:$0xf] %vm2720_vm15, %v2984_v47  ;;  %v2558_v0 = vadd.f32 %v3394_v58, %v4845_v46  ;;  %v3396_v52 = vadd.f32 %v3329_v56, %v3285_v25  ;;  %v2203_v11 = vpop.f32.mrb[35].mxu1 }
 0x5f1   : > { %2746 = vst.msk [vmem:[%s4855_s12 + $0x64] sm:$0xf] %vm2720_vm15, %v2982_v12  ;;  %v2556_v57 = vadd.f32 %v3395_v17, %v4845_v46  ;;  %v3397_v6 = vadd.f32 %v2477_v43, %v2203_v11 }
 0x5f2   : > { %v2590_v15 = vmul.f32 2.0, %v2558_v0  ;;  %v2559_v2 = vadd.f32 %v3396_v52, %v4845_v46 }
 0x5f3   : > { %v2588_v19 = vmul.f32 2.0, %v2556_v57  ;;  %v2557_v55 = vadd.f32 %v3397_v6, %v4845_v46 }
 0x5f4   : > { %v2987_v24 = vpack.c.bf16 %v2590_v15, %v2590_v15  ;;  %v2591_v27 = vmul.f32 2.0, %v2559_v2 }
 0x5f5   : > { %v2985_v35 = vpack.c.bf16 %v2588_v19, %v2588_v19  ;;  %v2589_v48 = vmul.f32 2.0, %v2557_v55 }
 0x5f6   : > { %2751 = vst.msk [vmem:[%s4855_s12 + $0x78] sm:$0xf] %vm2720_vm15, %v2987_v24  ;;  %v2988_v29 = vpack.c.bf16 %v2591_v27, %v2591_v27 }
 0x5f7   : > { %2749 = vst.msk [vmem:[%s4855_s12 + $0x70] sm:$0xf] %vm2720_vm15, %v2985_v35  ;;  %v2986_v14 = vpack.c.bf16 %v2589_v48, %v2589_v48 }
 0x5f8   : > { %2752 = vst.msk [vmem:[%s4855_s12 + $0x7c] sm:$0xf] %vm2720_vm15, %v2988_v29 }
 0x5f9   : > { %2750 = vst.msk [vmem:[%s4855_s12 + $0x74] sm:$0xf] %vm2720_vm15, %v2986_v14 }
 0x5fa PF: > { %s17_s24 = sadd.s32 1, %s3600_s24  }
 0x5fb   : > { %p14_p4 = scmp.ge.s32.totalorder %s17_s24, 4  }
 0x5fd   :  { %16 = sbr.rel (!%p14_p4) target bundleno = 1 (0x1), region = 81 }

// kernel: unet_block_forward.3
= control target key start
LH: loop header
LB: loop body
LE: loop exit
PB: predicated region body
PF: predicated region fallthrough
CT: control target
= control target key end

     0   :  { %s3688_s27 = smov 0   ;;  %s5043_s0 = inlined_call_operand.vmem [shape: bf16[2,16,16,32], index: 0, kind: input, shape index: {}]   ;;  %s5044_s1 = inlined_call_operand.vmem [shape: f32[1,32], index: 1, kind: input, shape index: {}]   ;;  %s5045_s2 = inlined_call_operand.vmem [shape: f32[1,32], index: 2, kind: input, shape index: {}]   ;;  %s5046_s3 = inlined_call_operand.vmem [shape: f32[32,32], index: 3, kind: input, shape index: {}]   ;;  %s5047_s4 = inlined_call_operand.vmem [shape: f32[32,32], index: 4, kind: input, shape index: {}]   ;;  %s5048_s5 = inlined_call_operand.vmem [shape: bf16[288,32], index: 5, kind: input, shape index: {}]   ;;  %s5049_s6 = inlined_call_operand.vmem [shape: f32[1,32], index: 6, kind: input, shape index: {}]   ;;  %s5050_s7 = inlined_call_operand.vmem [shape: f32[2,32], index: 7, kind: input, shape index: {}]   ;;  %s5051_s8 = inlined_call_operand.vmem [shape: bf16[2,16,16,32], index: 8, kind: output, shape index: {}]  }
   0x1 LB: > { %s3694_s28 = sadd.s32 4294967295, %s3635_s27   ;;  %p2846_p0 = scmp.ge.s32.totalorder %s3635_s27, 1  ;;  %s3635_s27 = sphi %s3688_s27, %s18_s27  }
   0x2   : > { %p262_p1 = scmp.lt.s32.totalorder %s3635_s27, 3 }
   0x4   : > { %p263_p2 = pnand %p2846_p0, %p262_p1 }
   0x5   : > { %v375_v0 = vld [vmem:[%s5046_s3] sm:$0xff] (!%p263_p2)  ;;  %v376_v1 = vld [vmem:[%s5046_s3 + $0x8] sm:$0xff] (!%p263_p2)  ;;  %v377_v2 = vld [vmem:[%s5046_s3 + $0x10] sm:$0xff] (!%p263_p2)  ;;  %v3637_v3 = vmov (!%p263_p2), 0.0|0.0   ;;  %vm3638_vm0 = vmmov (!%p263_p2), 0   ;;  %v3639_v6 = vmov (!%p263_p2), 0.0   ;;  %s307_s22 = scalar_lea.vmem (!%p263_p2), %s5050_s7, %s3694_s28 }
   0x6   : > { %266 = sbr.rel (%p263_p2) target bundleno = 1531 (0x5fb), region = 52  ;;  %3365 = vmatprep.subr.bf16.mxu0 (!%p263_p2), %v3637_v3  ;;  %v3708_v4 = vpack.c.bf16 (!%p263_p2), %v376_v1, %v375_v0  ;;  %v378_v5 = vld [vmem:[%s5046_s3 + $0x18] sm:$0xff] (!%p263_p2)  ;;  %3197 = vmatprep.mubr.msk.f32.mxu0 (!%p263_p2), %vm3638_vm0, %v3639_v6  ;;  %p296_p3 = scmp.lt.s32.totalorder (!%p263_p2), %s3694_s28, 1  ;;  %v379_v7 = vld [vmem:[%s5047_s4] sm:$0xff] (!%p263_p2)  ;;  %v380_v8 = vld [vmem:[%s5047_s4 + $0x8] sm:$0xff] (!%p263_p2)  ;;  %vm383_vm1 = vcmask (!%p263_p2), 261120  }
   0x7   : > { %3371 = vmatprep.subr.bf16.mxu1 (!%p263_p2), %v3637_v3  ;;  %v3723_v9 = vpack.c.bf16 (!%p263_p2), %v380_v8, %v379_v7  ;;  %3208 = vmatprep.mubr.msk.f32.mxu1 (!%p263_p2), %vm3638_vm0, %v3639_v6  ;;  %v3728_v10 = vpack.c.bf16 (!%p263_p2), %v378_v5, %v377_v2  ;;  %vm1205_vm2 = vcmask (!%p263_p2), 253952   ;;  %vm1206_vm3 = vsmask.f32 (!%p263_p2), 256  ;;  %s3640_s12 = smov (!%p263_p2), 32   ;;  %s3641_s21 = smov (!%p263_p2), 64  }
   0x8   : > { %3367 = vmatpush3.bf16.msra.mxu0 (!%p263_p2), %v3708_v4  ;;  %vm1256_vm4 = vcmask (!%p263_p2), 785927   ;;  %vm1257_vm5 = vsmask.f32 (!%p263_p2), 7966  ;;  %vm4205_vm6 = vmand (!%p263_p2), %vm1205_vm2, %vm1206_vm3  ;;  %vm1436_vm8 = vsmask.f32 (!%p263_p2), 7938  ;;  %vm1200_vm10 = vcmask (!%p263_p2), 785408  }
   0x9   : > { %3368 = vmatprep.subr.bf16.mxu0 (!%p263_p2), %v3637_v3  ;;  %3373 = vmatpush3.bf16.msra.mxu1 (!%p263_p2), %v3723_v9  ;;  %vm4211_vm7 = vmand (!%p263_p2), %vm1256_vm4, %vm1257_vm5  ;;  %vm1550_vm11 = vcmask (!%p263_p2), 523520   ;;  %vm1647_vm12 = vcmask (!%p263_p2), 785920   ;;  %vm1648_vm13 = vsmask.f32 (!%p263_p2), 7424  ;;  %vm2753_vm15 = vcmask (!%p263_p2), 257024  }
   0xa   : > { %3374 = vmatprep.subr.bf16.mxu1 (!%p263_p2), %v3637_v3  ;;  %vm4609_vm9 = vmand (!%p263_p2), %vm383_vm1, %vm1436_vm8 }
   0xb   : > { %vm4726_vm14 = vmand (!%p263_p2), %vm1647_vm12, %vm1648_vm13 }
   0xc   : > { %3370 = vmatpush3.bf16.msra.mxu0 (!%p263_p2), %v3728_v10 }
   0xd   : > { %s3731_s19 = scalar_select %p296_p3, %s3694_s28, 1  ;;  %3377 = vmatprep.subr.bf16.mxu0 %v3637_v3 }
   0xf   : > { %s2990_s20 = sshll.u32 %s3731_s19, 7 }
  0x10   : > { %s3742_s23 = scalar_lea.vmem %s5043_s0, %s2990_s20  ;;  %s4908_s26 = scalar_lea.vmem %s5051_s8, %s2990_s20 }
  0x11   : > { %v3747_v11 = vld [vmem:[%s3742_s23] sm:$0xff]   ;;  %v3750_v12 = vld [vmem:[%s3742_s23 + $0x8] sm:$0xff]   ;;  %v3756_v16 = vld [vmem:[%s3742_s23 + $0x10] sm:$0xff]  }
  0x12   : > { %v3026_v13 = vunpack.c.l.bf16 %v3747_v11  ;;  %v3027_v14 = vunpack.c.h.bf16 %v3747_v11  ;;  %v3030_v15 = vunpack.c.l.bf16 %v3750_v12  ;;  %v3031_v17 = vunpack.c.h.bf16 %v3750_v12  ;;  %v3770_v22 = vld [vmem:[%s3742_s23 + $0x18] sm:$0xff]   ;;  %v3781_v29 = vld [vmem:[%s3742_s23 + $0x20] sm:$0xff]   ;;  %v3789_v35 = vld [vmem:[%s3742_s23 + $0x28] sm:$0xff]  }
  0x13   : > { %v3034_v18 = vunpack.c.l.bf16 %v3756_v16  ;;  %v3035_v24 = vunpack.c.h.bf16 %v3756_v16  ;;  %v3038_v27 = vunpack.c.l.bf16 %v3770_v22  ;;  %v3039_v31 = vunpack.c.h.bf16 %v3770_v22  ;;  %v3803_v43 = vld [vmem:[%s3742_s23 + $0x30] sm:$0xff]   ;;  %v3814_v50 = vld [vmem:[%s3742_s23 + $0x38] sm:$0xff]   ;;  %v3825_v57 = vld [vmem:[%s3742_s23 + $0x40] sm:$0xff]  }
  0x14   : > { %v384_v19 = vsel %vm383_vm1, %v3026_v13, 0.0  ;;  %v385_v20 = vsel %vm383_vm1, %v3027_v14, 0.0  ;;  %v387_v21 = vsel %vm383_vm1, %v3030_v15, 0.0  ;;  %v389_v25 = vsel %vm383_vm1, %v3031_v17, 0.0  ;;  %v3836_v0 = vld [vmem:[%s3742_s23 + $0x48] sm:$0xff]  }
  0x15   : > { %v386_v23 = vadd.f32 %v385_v20, %v384_v19  ;;  %v391_v28 = vsel %vm383_vm1, %v3034_v18, 0.0  ;;  %v393_v32 = vsel %vm383_vm1, %v3035_v24, 0.0  ;;  %v3042_v34 = vunpack.c.l.bf16 %v3781_v29  ;;  %v3847_v20 = vld [vmem:[%s3742_s23 + $0x50] sm:$0xff]  }
  0x16   : > { %v395_v36 = vsel %vm383_vm1, %v3038_v27, 0.0  ;;  %v3043_v38 = vunpack.c.h.bf16 %v3781_v29  ;;  %v397_v39 = vsel %vm383_vm1, %v3039_v31, 0.0  ;;  %v3046_v41 = vunpack.c.l.bf16 %v3789_v35 }
  0x17   : > { %v388_v26 = vadd.f32 %v387_v21, %v386_v23  ;;  %v399_v42 = vsel %vm383_vm1, %v3042_v34, 0.0  ;;  %v3047_v45 = vunpack.c.h.bf16 %v3789_v35  ;;  %v3050_v48 = vunpack.c.l.bf16 %v3803_v43 }
  0x18   : > { %v401_v46 = vsel %vm383_vm1, %v3043_v38, 0.0  ;;  %v403_v49 = vsel %vm383_vm1, %v3046_v41, 0.0  ;;  %v3051_v52 = vunpack.c.h.bf16 %v3803_v43  ;;  %v3054_v55 = vunpack.c.l.bf16 %v3814_v50 }
  0x19   : > { %v390_v30 = vadd.f32 %v389_v25, %v388_v26  ;;  %v405_v53 = vsel %vm383_vm1, %v3047_v45, 0.0  ;;  %v407_v56 = vsel %vm383_vm1, %v3050_v48, 0.0  ;;  %v3055_v59 = vunpack.c.h.bf16 %v3814_v50 }
  0x1a   : > { %v409_v60 = vsel %vm383_vm1, %v3051_v52, 0.0  ;;  %v3058_v62 = vunpack.c.l.bf16 %v3825_v57  ;;  %v411_v63 = vsel %vm383_vm1, %v3054_v55, 0.0  ;;  %v3059_v2 = vunpack.c.h.bf16 %v3825_v57 }
  0x1b   : > { %v392_v33 = vadd.f32 %v391_v28, %v390_v30  ;;  %v413_v5 = vsel %vm383_vm1, %v3055_v59, 0.0  ;;  %v3062_v8 = vunpack.c.l.bf16 %v3836_v0  ;;  %v3063_v23 = vunpack.c.h.bf16 %v3836_v0 }
  0x1c   : > { %v415_v19 = vsel %vm383_vm1, %v3058_v62, 0.0  ;;  %v417_v25 = vsel %vm383_vm1, %v3059_v2, 0.0  ;;  %v3066_v28 = vunpack.c.l.bf16 %v3847_v20 }
  0x1d   : > { %v394_v37 = vadd.f32 %v393_v32, %v392_v33  ;;  %v419_v30 = vsel %vm383_vm1, %v3062_v8, 0.0  ;;  %v3858_v32 = vld [vmem:[%s3742_s23 + $0x58] sm:$0xff]  }
  0x1f   : > { %v396_v40 = vadd.f32 %v395_v36, %v394_v37  ;;  %v3067_v36 = vunpack.c.h.bf16 %v3847_v20  ;;  %v421_v37 = vsel %vm383_vm1, %v3063_v23, 0.0 }
  0x21   : > { %v398_v44 = vadd.f32 %v397_v39, %v396_v40  ;;  %v3070_v40 = vunpack.c.l.bf16 %v3858_v32 }
  0x23   : > { %v400_v47 = vadd.f32 %v399_v42, %v398_v44  ;;  %v423_v42 = vsel %vm383_vm1, %v3066_v28, 0.0  ;;  %v3869_v44 = vld [vmem:[%s3742_s23 + $0x60] sm:$0xff]  }
  0x25   : > { %v402_v51 = vadd.f32 %v401_v46, %v400_v47  ;;  %v3071_v47 = vunpack.c.h.bf16 %v3858_v32  ;;  %v5058_v32 = vunpack.c.h.bf16 %v3869_v44 }
  0x27   : > { %v404_v54 = vadd.f32 %v403_v49, %v402_v51  ;;  %v425_v49 = vsel %vm383_vm1, %v3067_v36, 0.0 }
  0x29   : > { %v406_v58 = vadd.f32 %v405_v53, %v404_v54  ;;  %v3074_v53 = vunpack.c.l.bf16 %v3869_v44  ;;  %v427_v54 = vsel %vm383_vm1, %v3070_v40, 0.0 }
  0x2b   : > { %v408_v61 = vadd.f32 %v407_v56, %v406_v58  ;;  %v3880_v56 = vld [vmem:[%s3742_s23 + $0x68] sm:$0xff]  }
  0x2d   : > { %v410_v1 = vadd.f32 %v409_v60, %v408_v61  ;;  %v5055_v60 = vunpack.c.h.bf16 %v3869_v44  ;;  %v429_v61 = vsel %vm383_vm1, %v3071_v47, 0.0  ;;  %v5060_v44 = vunpack.c.h.bf16 %v3880_v56 }
  0x2f   : > { %v412_v7 = vadd.f32 %v411_v63, %v410_v1  ;;  %v5054_v1 = vunpack.c.l.bf16 %v3880_v56 }
  0x31   : > { %v414_v21 = vadd.f32 %v413_v5, %v412_v7  ;;  %v431_v5 = vsel %vm383_vm1, %v3074_v53, 0.0  ;;  %v3891_v7 = vld [vmem:[%s3742_s23 + $0x70] sm:$0xff]  }
  0x33   : > { %v416_v26 = vadd.f32 %v415_v19, %v414_v21  ;;  %v5053_v21 = vunpack.c.h.bf16 %v3880_v56 }
  0x35   : > { %v418_v33 = vadd.f32 %v417_v25, %v416_v26  ;;  %v433_v25 = vsel %vm383_vm1, %v5055_v60, 0.0 }
  0x37   : > { %v420_v39 = vadd.f32 %v419_v30, %v418_v33  ;;  %v5052_v30 = vunpack.c.l.bf16 %v3891_v7  ;;  %v435_v33 = vsel %vm383_vm1, %v5054_v1, 0.0 }
  0x39   : > { %v422_v46 = vadd.f32 %v421_v37, %v420_v39  ;;  %v3902_v37 = vld [vmem:[%s3742_s23 + $0x78] sm:$0xff]  }
  0x3b   : > { %v424_v51 = vadd.f32 %v423_v42, %v422_v46  ;;  %v3083_v42 = vunpack.c.h.bf16 %v3891_v7  ;;  %v437_v46 = vsel %vm383_vm1, %v5053_v21, 0.0 }
  0x3d   : > { %v426_v58 = vadd.f32 %v425_v49, %v424_v51  ;;  %v3086_v51 = vunpack.c.l.bf16 %v3902_v37 }
  0x3f   : > { %v428_v63 = vadd.f32 %v427_v54, %v426_v58  ;;  %v439_v54 = vsel %vm383_vm1, %v5052_v30, 0.0 }
  0x41   : > { %v430_v19 = vadd.f32 %v429_v61, %v428_v63  ;;  %v3087_v61 = vunpack.c.h.bf16 %v3902_v37  ;;  %v441_v63 = vsel %vm383_vm1, %v3083_v42, 0.0 }
  0x43   : > { %v432_v26 = vadd.f32 %v431_v5, %v430_v19  ;;  %v443_v19 = vsel %vm383_vm1, %v3086_v51, 0.0 }
  0x45   : > { %v434_v39 = vadd.f32 %v433_v25, %v432_v26  ;;  %v445_v26 = vsel %vm383_vm1, %v3087_v61, 0.0 }
  0x47   : > { %v436_v49 = vadd.f32 %v435_v33, %v434_v39 }
  0x49   : > { %v438_v58 = vadd.f32 %v437_v46, %v436_v49 }
  0x4b   : > { %v440_v5 = vadd.f32 %v439_v54, %v438_v58  ;;  %v381_v54 = vld [vmem:[%s5047_s4 + $0x10] sm:$0xff] }
  0x4d   : > { %v442_v25 = vadd.f32 %v441_v63, %v440_v5 }
  0x4f   : > { %v444_v33 = vadd.f32 %v443_v19, %v442_v25 }
  0x51   : > { %v446_v39 = vadd.f32 %v445_v26, %v444_v33 }
  0x53   : > { %v447_v30 = vrot.slane %v446_v39, 4 }
  0x55   : > { %v448_v46 = vadd.f32 %v447_v30, %v446_v39  ;;  %v382_v30 = vld [vmem:[%s5047_s4 + $0x18] sm:$0xff] }
  0x57   : > { %v449_v49 = vrot.slane %v448_v46, 2 }
  0x59   : > { %v450_v21 = vadd.f32 %v449_v49, %v448_v46 }
  0x5b   : > { %v451_v1 = vrot.slane %v450_v21, 1 }
  0x5d   : > { %v452_v60 = vadd.f32 %v451_v1, %v450_v21  ;;  %v3375_v1 = vpack.c.bf16 %v382_v30, %v381_v54 }
  0x5f   : > { %3198 = vmatmul.mubr.msk.f32.vlgmr.msra.gmra.mrb[0].mxu0 %vm383_vm1, %v452_v60  ;;  %3376 = vmatpush3.bf16.msra.mxu1 %v3375_v1 }
  0x60   : > { %3379 = vmatpush3.bf16.msra.mxu0 %v3708_v4  ;;  %3219 = vmatprep.mubr.msk.f32.mxu0 %vm3638_vm0, %v3639_v6 }
  0x61   : > { %3380 = vmatprep.subr.bf16.mxu0 %v3637_v3  ;;  %3383 = vmatprep.subr.bf16.mxu1 %v3637_v3 }
  0x64   : > { %3382 = vmatpush3.bf16.msra.mxu0 %v3728_v10  ;;  %v600_v10 = vlaneseq }
  0x66   : > { %v3940_v58 = vshrl.u32 %v600_v10, 7 }
  0x68   : > { %v602_v19 = vsub.s32 0, %v3940_v58 }
 0x132   : > { %v522_v4 = vpop.f32.mrb[0].mxu0 }
 0x133   : > { %v526_v60 = vmul.f32 0.00390625, %v522_v4  ;;  %v3199_v21 = vpop.f32.mrb[1].mxu0 }
 0x135   : > { %3209 = vmatmul.mubr.msk.f32.vlgmr.msra.gmra.mrb[0].mxu1 %vm383_vm1, %v526_v60 }
 0x136   : > { %3385 = vmatpush3.bf16.msra.mxu1 %v3723_v9  ;;  %3230 = vmatprep.mubr.msk.f32.mxu1 %vm3638_vm0, %v3639_v6 }
 0x137   : > { %3386 = vmatprep.subr.bf16.mxu1 %v3637_v3 }
 0x13a   : > { %3388 = vmatpush3.bf16.msra.mxu1 %v3375_v1 }
 0x208   : > { %v596_v63 = vpop.f32.mrb[0].mxu1 }
 0x209   : > { %v3210_v5 = vpop.f32.mrb[1].mxu1  ;;  %v3945_v25 = vrot.slane %v596_v63, %v602_v19 }
 0x20b   : > { %v3950_v9 = vsub.f32 %v3026_v13, %v3945_v25  ;;  %v3955_v3 = vsub.f32 %v3027_v14, %v3945_v25  ;;  %v3960_v6 = vsub.f32 %v3030_v15, %v3945_v25  ;;  %v3965_v26 = vsub.f32 %v3031_v17, %v3945_v25 }
 0x20c   : > { %v3974_v11 = vsub.f32 %v3034_v18, %v3945_v25  ;;  %v3981_v12 = vsub.f32 %v3035_v24, %v3945_v25  ;;  %v3990_v18 = vsub.f32 %v3038_v27, %v3945_v25  ;;  %v3998_v54 = vsub.f32 %v3039_v31, %v3945_v25 }
 0x20d   : > { %v636_v33 = vmul.f32 %v3950_v9, %v3950_v9  ;;  %v637_v13 = vmul.f32 %v3955_v3, %v3955_v3  ;;  %v638_v14 = vmul.f32 %v3960_v6, %v3960_v6  ;;  %v639_v15 = vmul.f32 %v3965_v26, %v3965_v26 }
 0x20e   : > { %v640_v49 = vmul.f32 %v3974_v11, %v3974_v11  ;;  %v641_v30 = vmul.f32 %v3981_v12, %v3981_v12  ;;  %v4006_v27 = vsub.f32 %v3042_v34, %v3945_v25  ;;  %v642_v60 = vmul.f32 %v3990_v18, %v3990_v18 }
 0x20f   : > { %v668_v17 = vsel %vm383_vm1, %v636_v33, 0.0  ;;  %v669_v39 = vsel %vm383_vm1, %v637_v13, 0.0  ;;  %v671_v16 = vsel %vm383_vm1, %v638_v14, 0.0  ;;  %v673_v1 = vsel %vm383_vm1, %v639_v15, 0.0 }
 0x210   : > { %v670_v46 = vadd.f32 %v669_v39, %v668_v17  ;;  %v675_v21 = vsel %vm383_vm1, %v640_v49, 0.0  ;;  %v4014_v22 = vsub.f32 %v3043_v38, %v3945_v25  ;;  %v643_v31 = vmul.f32 %v3998_v54, %v3998_v54 }
 0x211   : > { %v677_v63 = vsel %vm383_vm1, %v641_v30, 0.0  ;;  %v4022_v34 = vsub.f32 %v3046_v41, %v3945_v25  ;;  %v644_v33 = vmul.f32 %v4006_v27, %v4006_v27  ;;  %v679_v13 = vsel %vm383_vm1, %v642_v60, 0.0 }
 0x212   : > { %v672_v24 = vadd.f32 %v671_v16, %v670_v46  ;;  %v4030_v29 = vsub.f32 %v3047_v45, %v3945_v25  ;;  %v645_v38 = vmul.f32 %v4014_v22, %v4014_v22  ;;  %v681_v15 = vsel %vm383_vm1, %v643_v31, 0.0 }
 0x213   : > { %v4038_v41 = vsub.f32 %v3050_v48, %v3945_v25  ;;  %v646_v39 = vmul.f32 %v4022_v34, %v4022_v34  ;;  %v683_v46 = vsel %vm383_vm1, %v644_v33, 0.0  ;;  %v4046_v35 = vsub.f32 %v3051_v52, %v3945_v25 }
 0x214   : > { %v674_v4 = vadd.f32 %v673_v1, %v672_v24  ;;  %v647_v45 = vmul.f32 %v4030_v29, %v4030_v29  ;;  %v685_v16 = vsel %vm383_vm1, %v645_v38, 0.0  ;;  %v4054_v48 = vsub.f32 %v3054_v55, %v3945_v25 }
 0x215   : > { %v648_v30 = vmul.f32 %v4038_v41, %v4038_v41  ;;  %v687_v1 = vsel %vm383_vm1, %v646_v39, 0.0  ;;  %v4062_v43 = vsub.f32 %v3055_v59, %v3945_v25  ;;  %v649_v52 = vmul.f32 %v4046_v35, %v4046_v35 }
 0x216   : > { %v676_v10 = vadd.f32 %v675_v21, %v674_v4  ;;  %v689_v60 = vsel %vm383_vm1, %v647_v45, 0.0  ;;  %v4070_v55 = vsub.f32 %v3058_v62, %v3945_v25  ;;  %v4078_v50 = vsub.f32 %v3059_v2, %v3945_v25 }
 0x217   : > { %v691_v31 = vsel %vm383_vm1, %v648_v30, 0.0  ;;  %v651_v59 = vmul.f32 %v4062_v43, %v4062_v43  ;;  %v4086_v62 = vsub.f32 %v3062_v8, %v3945_v25  ;;  %v4094_v57 = vsub.f32 %v3063_v23, %v3945_v25 }
 0x218   : > { %v678_v5 = vadd.f32 %v677_v63, %v676_v10  ;;  %v650_v10 = vmul.f32 %v4054_v48, %v4054_v48  ;;  %v653_v2 = vmul.f32 %v4078_v50, %v4078_v50  ;;  %v4102_v8 = vsub.f32 %v3066_v28, %v3945_v25 }
 0x219   : > { %v654_v39 = vmul.f32 %v4086_v62, %v4086_v62  ;;  %v4110_v0 = vsub.f32 %v3067_v36, %v3945_v25  ;;  %v655_v23 = vmul.f32 %v4094_v57, %v4094_v57  ;;  %v4118_v28 = vsub.f32 %v3070_v40, %v3945_v25 }
 0x21a   : > { %v680_v14 = vadd.f32 %v679_v13, %v678_v5  ;;  %v693_v5 = vsel %vm383_vm1, %v649_v52, 0.0  ;;  %v652_v13 = vmul.f32 %v4070_v55, %v4070_v55  ;;  %v701_v45 = vsel %vm383_vm1, %v653_v2, 0.0 }
 0x21b   : > { %v703_v30 = vsel %vm383_vm1, %v654_v39, 0.0  ;;  %v4126_v20 = vsub.f32 %v3071_v47, %v3945_v25  ;;  %v657_v36 = vmul.f32 %v4110_v0, %v4110_v0  ;;  %v4134_v40 = vsub.f32 %v3074_v53, %v3945_v25 }
 0x21c   : > { %v682_v17 = vadd.f32 %v681_v15, %v680_v14  ;;  %v695_v14 = vsel %vm383_vm1, %v650_v10, 0.0  ;;  %v697_v15 = vsel %vm383_vm1, %v651_v59, 0.0  ;;  %v4142_v47 = vsub.f32 %v5058_v32, %v3945_v25 }
 0x21d   : > { %v5059_v53 = vunpack.c.l.bf16 %v3880_v56  ;;  %v5061_v39 = vunpack.c.l.bf16 %v3891_v7  ;;  %v4174_v56 = vsub.f32 %v3083_v42, %v3945_v25  ;;  %v4190_v7 = vsub.f32 %v3087_v61, %v3945_v25 }
 0x21e   : > { %v684_v49 = vadd.f32 %v683_v46, %v682_v17  ;;  %v699_v46 = vsel %vm383_vm1, %v652_v13, 0.0  ;;  %v661_v2 = vmul.f32 %v4142_v47, %v4142_v47 }
 0x21f   : > { %v665_v42 = vmul.f32 %v4174_v56, %v4174_v56 }
 0x220   : > { %v686_v24 = vadd.f32 %v685_v16, %v684_v49 }
 0x222   : > { %v688_v4 = vadd.f32 %v687_v1, %v686_v24  ;;  %v656_v24 = vmul.f32 %v4102_v8, %v4102_v8 }
 0x224   : > { %v690_v21 = vadd.f32 %v689_v60, %v688_v4  ;;  %v705_v4 = vsel %vm383_vm1, %v655_v23, 0.0  ;;  %v658_v60 = vmul.f32 %v4118_v28, %v4118_v28 }
 0x226   : > { %v692_v63 = vadd.f32 %v691_v31, %v690_v21  ;;  %v707_v21 = vsel %vm383_vm1, %v656_v24, 0.0  ;;  %v659_v31 = vmul.f32 %v4126_v20, %v4126_v20  ;;  %v711_v13 = vsel %vm383_vm1, %v658_v60, 0.0 }
 0x227   : > { %v717_v24 = vsel %vm383_vm1, %v661_v2, 0.0 }
 0x228   : > { %v694_v33 = vadd.f32 %v693_v5, %v692_v63  ;;  %v709_v63 = vsel %vm383_vm1, %v657_v36, 0.0  ;;  %v4150_v5 = vsub.f32 %v5059_v53, %v3945_v25 }
 0x22a   : > { %v696_v38 = vadd.f32 %v695_v14, %v694_v33  ;;  %v660_v33 = vmul.f32 %v4134_v40, %v4134_v40 }
 0x22c   : > { %v698_v17 = vadd.f32 %v697_v15, %v696_v38  ;;  %v4158_v38 = vsub.f32 %v5060_v44, %v3945_v25  ;;  %v713_v15 = vsel %vm383_vm1, %v659_v31, 0.0  ;;  %v715_v23 = vsel %vm383_vm1, %v660_v33, 0.0 }
 0x22d   : > { %v667_v31 = vmul.f32 %v4190_v7, %v4190_v7 }
 0x22e   : > { %v700_v49 = vadd.f32 %v699_v46, %v698_v17  ;;  %v4166_v46 = vsub.f32 %v5061_v39, %v3945_v25 }
 0x230   : > { %v702_v16 = vadd.f32 %v701_v45, %v700_v49  ;;  %v662_v49 = vmul.f32 %v4150_v5, %v4150_v5  ;;  %v664_v36 = vmul.f32 %v4166_v46, %v4166_v46 }
 0x232   : > { %v704_v1 = vadd.f32 %v703_v30, %v702_v16  ;;  %v663_v16 = vmul.f32 %v4158_v38, %v4158_v38 }
 0x234   : > { %v706_v52 = vadd.f32 %v705_v4, %v704_v1  ;;  %v4182_v1 = vsub.f32 %v3086_v51, %v3945_v25  ;;  %v719_v4 = vsel %vm383_vm1, %v662_v49, 0.0  ;;  %v721_v60 = vsel %vm383_vm1, %v663_v16, 0.0  ;;  %v1265_v16 = vld [vmem:[#allocation2 + $0x18] sm:$0x80] }
 0x236   : > { %v708_v10 = vadd.f32 %v707_v21, %v706_v52  ;;  %v666_v51 = vmul.f32 %v4182_v1, %v4182_v1 }
 0x238   : > { %v710_v59 = vadd.f32 %v709_v63, %v708_v10  ;;  %v723_v10 = vsel %vm383_vm1, %v664_v36, 0.0  ;;  %v725_v63 = vsel %vm383_vm1, %v665_v42, 0.0  ;;  %v727_v61 = vsel %vm383_vm1, %v666_v51, 0.0  ;;  %v1208_v36 = vld [vmem:[#allocation2 + $0x8] sm:$0x1] }
 0x239   : > { %v1209_v42 = vsel %vm4205_vm6, 0, %v1208_v36 }
 0x23a   : > { %v712_v14 = vadd.f32 %v711_v13, %v710_v59  ;;  %v729_v59 = vsel %vm383_vm1, %v667_v31, 0.0  ;;  %1210 = vst [vmem:[#allocation2 + $0x8] sm:$0x1] %v1209_v42  ;;  %v4246_v42 = vld [vmem:[%s5048_s5] sm:$0xff]  }
 0x23b   : > { %3277 = vmatprep.subr.bf16.mxu0 %v4246_v42 }
 0x23c   : > { %v714_v17 = vadd.f32 %v713_v15, %v712_v14 }
 0x23e   : > { %v716_v45 = vadd.f32 %v715_v23, %v714_v17 }
 0x240   : > { %v718_v30 = vadd.f32 %v717_v24, %v716_v45  ;;  %v1214_v45 = vld [vmem:[#allocation2 + $0x18] sm:$0x1] }
 0x241   : > { %v1215_v24 = vsel %vm4205_vm6, 0, %v1214_v45 }
 0x242   : > { %v720_v52 = vadd.f32 %v719_v4, %v718_v30  ;;  %v1259_v4 = vld [vmem:[#allocation2 + $0x8] sm:$0x80]  ;;  %1216 = vst [vmem:[#allocation2 + $0x18] sm:$0x1] %v1215_v24 }
 0x244   : > { %v722_v21 = vadd.f32 %v721_v60, %v720_v52  ;;  %v1266_v52 = vsel %vm4211_vm7, 0, %v1265_v16  ;;  %v1260_v60 = vsel %vm4211_vm7, 0, %v1259_v4 }
 0x245   : > { %1267 = vst [vmem:[#allocation2 + $0x18] sm:$0x80] %v1266_v52  ;;  %1261 = vst [vmem:[#allocation2 + $0x8] sm:$0x80] %v1260_v60  ;;  %v1280_v52 = vld [vmem:[#allocation2 + $0x40] sm:$0x80] }
 0x246   : > { %v724_v32 = vadd.f32 %v723_v10, %v722_v21  ;;  %v1211_v21 = vld [vmem:[#allocation2 + $0x10] sm:$0x1]  ;;  %v1262_v10 = vld [vmem:[#allocation2 + $0x10] sm:$0x80] }
 0x247   : > { %v1212_v51 = vsel %vm4205_vm6, 0, %v1211_v21  ;;  %v1263_v31 = vsel %vm4211_vm7, 0, %v1262_v10  ;;  %v3480_v60 = vld [vmem:[%s5048_s5 + $0x30] sm:$0xff]   ;;  %v3481_v21 = vld [vmem:[%s5048_s5 + $0x8] sm:$0xff]  }
 0x248   : > { %v726_v37 = vadd.f32 %v725_v63, %v724_v32  ;;  %v1217_v32 = vld [vmem:[#allocation2 + $0x20] sm:$0x1]  ;;  %1213 = vst [vmem:[#allocation2 + $0x10] sm:$0x1] %v1212_v51  ;;  %1264 = vst [vmem:[#allocation2 + $0x10] sm:$0x80] %v1263_v31  ;;  %3233 = vmatprep.subr.bf16.mxu1 %v3480_v60 }
 0x249   : > { %v1218_v63 = vsel %vm4205_vm6, 0, %v1217_v32  ;;  %v1281_v51 = vsel %vm4211_vm7, 0, %v1280_v52  ;;  %v1232_v10 = vld [vmem:[#allocation2 + $0x48] sm:$0x1]  ;;  %v1283_v31 = vld [vmem:[#allocation2 + $0x48] sm:$0x80] }
 0x24a   : > { %v728_v25 = vadd.f32 %v727_v61, %v726_v37  ;;  %v1268_v37 = vld [vmem:[#allocation2 + $0x20] sm:$0x80]  ;;  %v1220_v61 = vld [vmem:[#allocation2 + $0x28] sm:$0x1]  ;;  %1219 = vst [vmem:[#allocation2 + $0x20] sm:$0x1] %v1218_v63 }
 0x24b   : > { %1282 = vst [vmem:[#allocation2 + $0x40] sm:$0x80] %v1281_v51  ;;  %v1233_v32 = vsel %vm4205_vm6, 0, %v1232_v10  ;;  %v1235_v63 = vld [vmem:[#allocation2 + $0x50] sm:$0x1] }
 0x24c   : > { %v730_v53 = vadd.f32 %v729_v59, %v728_v25  ;;  %v1269_v25 = vsel %vm4211_vm7, 0, %v1268_v37  ;;  %v1221_v59 = vsel %vm4205_vm6, 0, %v1220_v61  ;;  %1234 = vst [vmem:[#allocation2 + $0x48] sm:$0x1] %v1233_v32  ;;  %v1284_v37 = vsel %vm4211_vm7, 0, %v1283_v31 }
 0x24d   : > { %1270 = vst [vmem:[#allocation2 + $0x20] sm:$0x80] %v1269_v25  ;;  %1222 = vst [vmem:[#allocation2 + $0x28] sm:$0x1] %v1221_v59  ;;  %v1236_v61 = vsel %vm4205_vm6, 0, %v1235_v63 }
 0x24e   : > { %v731_v33 = vrot.slane %v730_v53, 4  ;;  %v1286_v25 = vld [vmem:[#allocation2 + $0x50] sm:$0x80]  ;;  %1285 = vst [vmem:[#allocation2 + $0x48] sm:$0x80] %v1284_v37 }
 0x24f   : > { %1237 = vst [vmem:[#allocation2 + $0x50] sm:$0x1] %v1236_v61  ;;  %v1287_v59 = vsel %vm4211_vm7, 0, %v1286_v25  ;;  %v1298_v52 = vld [vmem:[#allocation2 + $0x70] sm:$0x80] }
 0x250   : > { %v732_v13 = vadd.f32 %v731_v33, %v730_v53  ;;  %v1271_v53 = vld [vmem:[#allocation2 + $0x28] sm:$0x80]  ;;  %v1223_v33 = vld [vmem:[#allocation2 + $0x30] sm:$0x1]  ;;  %1288 = vst [vmem:[#allocation2 + $0x50] sm:$0x80] %v1287_v59 }
 0x251   : > { %v1301_v51 = vld [vmem:[#allocation2 + $0x78] sm:$0x80]  ;;  %v1253_v31 = vld [vmem:[#allocation2 + $0x80] sm:$0x1]  ;;  %v1304_v63 = vld [vmem:[#allocation2 + $0x80] sm:$0x80] }
 0x252   : > { %v733_v14 = vrot.slane %v732_v13, 2  ;;  %v1302_v32 = vsel %vm4211_vm7, 0, %v1301_v51  ;;  %v1254_v61 = vsel %vm4205_vm6, 0, %v1253_v31  ;;  %v1305_v25 = vsel %vm4211_vm7, 0, %v1304_v63 }
 0x253   : > { %1303 = vst [vmem:[#allocation2 + $0x78] sm:$0x80] %v1302_v32  ;;  %1255 = vst [vmem:[#allocation2 + $0x80] sm:$0x1] %v1254_v61 }
 0x254   : > { %v734_v44 = vadd.f32 %v733_v14, %v732_v13  ;;  %v1272_v13 = vsel %vm4211_vm7, 0, %v1271_v53  ;;  %v1224_v14 = vsel %vm4205_vm6, 0, %v1223_v33  ;;  %v1238_v53 = vld [vmem:[#allocation2 + $0x58] sm:$0x1]  ;;  %v1289_v33 = vld [vmem:[#allocation2 + $0x58] sm:$0x80] }
 0x255   : > { %1273 = vst [vmem:[#allocation2 + $0x28] sm:$0x80] %v1272_v13  ;;  %1225 = vst [vmem:[#allocation2 + $0x30] sm:$0x1] %v1224_v14  ;;  %v1239_v13 = vsel %vm4205_vm6, 0, %v1238_v53  ;;  %v1290_v14 = vsel %vm4211_vm7, 0, %v1289_v33 }
 0x256   : > { %v735_v2 = vrot.slane %v734_v44, 1  ;;  %1240 = vst [vmem:[#allocation2 + $0x58] sm:$0x1] %v1239_v13  ;;  %1291 = vst [vmem:[#allocation2 + $0x58] sm:$0x80] %v1290_v14 }
 0x257   : > { %1306 = vst [vmem:[#allocation2 + $0x80] sm:$0x80] %v1305_v25  ;;  %v4300_v33 = vld [vmem:[%s5045_s2] ss:$0 sm:$0xff] }
 0x258   : > { %v736_v15 = vadd.f32 %v735_v2, %v734_v44  ;;  %v1274_v44 = vld [vmem:[#allocation2 + $0x30] sm:$0x80]  ;;  %v1226_v2 = vld [vmem:[#allocation2 + $0x38] sm:$0x1] }
 0x25a   : > { %3220 = vmatmul.mubr.msk.f32.vlgmr.msra.gmra.mrb[2].mxu0 %vm383_vm1, %v736_v15  ;;  %v1275_v15 = vsel %vm4211_vm7, 0, %v1274_v44  ;;  %v1241_v44 = vld [vmem:[#allocation2 + $0x60] sm:$0x1] }
 0x25b   : > { %1276 = vst [vmem:[#allocation2 + $0x30] sm:$0x80] %v1275_v15  ;;  %3278 = vmatpush3.bf16.msra.mxu0 %v4246_v42  ;;  %v1292_v15 = vld [vmem:[#allocation2 + $0x60] sm:$0x80] }
 0x25c   : > { %3279 = vmatprep.subr.bf16.mxu0 %v3481_v21 }
 0x25f   : > { %3280 = vmatpush3.bf16.msra.mxu0 %v3481_v21  ;;  %v1250_v21 = vld [vmem:[#allocation2 + $0x78] sm:$0x1] }
 0x260   : > { %v1251_v10 = vsel %vm4205_vm6, 0, %v1250_v21 }
 0x261   : > { %1252 = vst [vmem:[#allocation2 + $0x78] sm:$0x1] %v1251_v10 }
 0x32d   : > { %v806_v17 = vpop.f32.mrb[2].mxu0 }
 0x32e   : > { %v810_v39 = vmul.f32 0.00390625, %v806_v17  ;;  %v3221_v49 = vpop.f32.mrb[3].mxu0  ;;  %v1227_v17 = vsel %vm4205_vm6, 0, %v1226_v2  ;;  %v1242_v2 = vsel %vm4205_vm6, 0, %v1241_v44 }
 0x32f   : > { %v1229_v49 = vld [vmem:[#allocation2 + $0x40] sm:$0x1]  ;;  %1228 = vst [vmem:[#allocation2 + $0x38] sm:$0x1] %v1227_v17  ;;  %v1244_v17 = vld [vmem:[#allocation2 + $0x68] sm:$0x1] }
 0x330   : > { %3231 = vmatmul.mubr.msk.f32.vlgmr.msra.gmra.mrb[2].mxu1 %vm383_vm1, %v810_v39  ;;  %v1277_v39 = vld [vmem:[#allocation2 + $0x38] sm:$0x80]  ;;  %v1230_v24 = vsel %vm4205_vm6, 0, %v1229_v49  ;;  %1243 = vst [vmem:[#allocation2 + $0x60] sm:$0x1] %v1242_v2  ;;  %v1245_v49 = vsel %vm4205_vm6, 0, %v1244_v17 }
 0x331   : > { %v1278_v16 = vsel %vm4211_vm7, 0, %v1277_v39  ;;  %1231 = vst [vmem:[#allocation2 + $0x40] sm:$0x1] %v1230_v24  ;;  %3234 = vmatpush3.bf16.msra.mxu1 %v3480_v60  ;;  %v1293_v39 = vsel %vm4211_vm7, 0, %v1292_v15  ;;  %v373_v24 = vld [vmem:[%s5044_s1] sm:$0x1] }
 0x332   : > { %1279 = vst [vmem:[#allocation2 + $0x38] sm:$0x80] %v1278_v16  ;;  %v1247_v16 = vld [vmem:[#allocation2 + $0x70] sm:$0x1]  ;;  %1294 = vst [vmem:[#allocation2 + $0x60] sm:$0x80] %v1293_v39 }
 0x333   : > { %1246 = vst [vmem:[#allocation2 + $0x68] sm:$0x1] %v1245_v49  ;;  %v1299_v60 = vsel %vm4211_vm7, 0, %v1298_v52 }
 0x334   : > { %1300 = vst [vmem:[#allocation2 + $0x70] sm:$0x80] %v1299_v60 }
 0x403   : > { %v880_v45 = vpop.f32.mrb[2].mxu1 }
 0x404   : > { %v881_v36 = vadd.f32 1e-05, %v880_v45  ;;  %v3232_v4 = vpop.f32.mrb[3].mxu1  ;;  %v1295_v45 = vld [vmem:[#allocation2 + $0x68] sm:$0x80] }
 0x405   : > { %v1248_v4 = vsel %vm4205_vm6, 0, %v1247_v16 }
 0x406   : > { %3497 = vrsqrt.f32 %v881_v36  ;;  %v1296_v36 = vsel %vm4211_vm7, 0, %v1295_v45  ;;  %1249 = vst [vmem:[#allocation2 + $0x70] sm:$0x1] %v1248_v4 }
 0x407   : > { %1297 = vst [vmem:[#allocation2 + $0x68] sm:$0x80] %v1296_v36 }
 0x410   : > { %v3498_v37 = vpop.eup %3497 }
 0x411   : > { %v885_v59 = vmul.f32 %v3498_v37, %v373_v24 }
 0x413   : > { %v4295_v53 = vrot.slane %v885_v59, %v602_v19 }
 0x415   : > { %v894_v13 = vmul.f32 %v4295_v53, %v3974_v11  ;;  %v895_v23 = vmul.f32 %v4295_v53, %v3981_v12  ;;  %v890_v30 = vmul.f32 %v4295_v53, %v3950_v9  ;;  %v891_v14 = vmul.f32 %v4295_v53, %v3955_v3 }
 0x416   : > { %v892_v58 = vmul.f32 %v4295_v53, %v3960_v6  ;;  %v893_v19 = vmul.f32 %v4295_v53, %v3965_v26  ;;  %v896_v44 = vmul.f32 %v4295_v53, %v3990_v18  ;;  %v897_v11 = vmul.f32 %v4295_v53, %v3998_v54 }
 0x417   : > { %v4319_v12 = vadd.f32 %v4300_v33, %v894_v13  ;;  %v4322_v9 = vadd.f32 %v4300_v33, %v895_v23  ;;  %v4325_v3 = vadd.f32 %v4300_v33, %v890_v30  ;;  %v4328_v6 = vadd.f32 %v4300_v33, %v891_v14 }
 0x418   : > { %v4331_v26 = vadd.f32 %v4300_v33, %v892_v58  ;;  %v4334_v18 = vadd.f32 %v4300_v33, %v893_v19  ;;  %v4337_v54 = vadd.f32 %v4300_v33, %v896_v44  ;;  %v4340_v2 = vadd.f32 %v4300_v33, %v897_v11 }
 0x419   : > { %v2860_v15 = vmul.f32 -1.442695, %v4319_v12  ;;  %v2861_v17 = vmul.f32 -1.442695, %v4322_v9  ;;  %v2856_v39 = vmul.f32 -1.442695, %v4325_v3  ;;  %v898_v49 = vmul.f32 %v4295_v53, %v4006_v27 }
 0x41a   : > { %v2857_v45 = vmul.f32 -1.442695, %v4328_v6  ;;  %v899_v16 = vmul.f32 %v4295_v53, %v4014_v22  ;;  %v2858_v24 = vmul.f32 -1.442695, %v4331_v26  ;;  %v2859_v36 = vmul.f32 -1.442695, %v4334_v18 }
 0x41b   : > { %3499 = vpow2.f32 %v2860_v15  ;;  %v4353_v4 = vadd.f32 %v4300_v33, %v898_v49  ;;  %v900_v27 = vmul.f32 %v4295_v53, %v4022_v34  ;;  %v901_v60 = vmul.f32 %v4295_v53, %v4030_v29 }
 0x41c   : > { %3501 = vpow2.f32 %v2861_v17  ;;  %v4356_v52 = vadd.f32 %v4300_v33, %v899_v16  ;;  %v2862_v22 = vmul.f32 -1.442695, %v4337_v54  ;;  %v2863_v21 = vmul.f32 -1.442695, %v4340_v2 }
 0x41d   : > { %3503 = vpow2.f32 %v2856_v39  ;;  %v902_v51 = vmul.f32 %v4295_v53, %v4038_v41  ;;  %v4367_v10 = vadd.f32 %v4300_v33, %v900_v27  ;;  %v4370_v32 = vadd.f32 %v4300_v33, %v901_v60 }
 0x41e   : > { %3505 = vpow2.f32 %v2857_v45  ;;  %v903_v34 = vmul.f32 %v4295_v53, %v4046_v35  ;;  %v2864_v29 = vmul.f32 -1.442695, %v4353_v4  ;;  %v904_v63 = vmul.f32 %v4295_v53, %v4054_v48 }
 0x41f   : > { %3507 = vpow2.f32 %v2858_v24  ;;  %v4376_v31 = vadd.f32 %v4300_v33, %v902_v51  ;;  %v2865_v41 = vmul.f32 -1.442695, %v4356_v52  ;;  %v2866_v37 = vmul.f32 -1.442695, %v4367_v10 }
 0x420   : > { %3509 = vpow2.f32 %v2859_v36  ;;  %v905_v61 = vmul.f32 %v4295_v53, %v4062_v43  ;;  %v2867_v35 = vmul.f32 -1.442695, %v4370_v32  ;;  %v4386_v25 = vadd.f32 %v4300_v33, %v903_v34 }
 0x421   : > { %3511 = vpow2.f32 %v2862_v22  ;;  %v2868_v59 = vmul.f32 -1.442695, %v4376_v31  ;;  %v4390_v48 = vadd.f32 %v4300_v33, %v904_v63  ;;  %v906_v43 = vmul.f32 %v4295_v53, %v4070_v55 }
 0x422   : > { %3513 = vpow2.f32 %v2863_v21  ;;  %v4393_v23 = vadd.f32 %v4300_v33, %v905_v61  ;;  %v4398_v58 = vmul.f32 -1.442695, %v4386_v25  ;;  %v907_v15 = vmul.f32 %v4295_v53, %v4078_v50 }
 0x423   : > { %3515 = vpow2.f32 %v2864_v29  ;;  %v4401_v11 = vmul.f32 -1.442695, %v4390_v48  ;;  %v908_v55 = vmul.f32 %v4295_v53, %v4086_v62  ;;  %v909_v49 = vmul.f32 %v4295_v53, %v4094_v57 }
 0x424   : > { %3517 = vpow2.f32 %v2865_v41  ;;  %v4410_v24 = vmul.f32 -1.442695, %v4393_v23  ;;  %v4413_v36 = vadd.f32 %v4300_v33, %v906_v43  ;;  %v910_v60 = vmul.f32 %v4295_v53, %v4102_v8  ;;  %v4447_v43 = vld [vmem:[%s5048_s5 + $0x10] sm:$0xff]  }
 0x425   : > { %v3500_v13 = vpop.eup %3499  ;;  %3519 = vpow2.f32 %v2866_v37  ;;  %v911_v62 = vmul.f32 %v4295_v53, %v4110_v0  ;;  %v4420_v21 = vadd.f32 %v4300_v33, %v907_v15  ;;  %v912_v51 = vmul.f32 %v4295_v53, %v4118_v28  ;;  %v3482_v28 = vld [vmem:[%s5048_s5 + $0x38] sm:$0xff]   ;;  %3281 = vmatprep.subr.bf16.mxu0 %v4447_v43 }
 0x426   : > { %v3502_v30 = vpop.eup %3501  ;;  %v1060_v14 = vadd.f32 1.0, %v3500_v13  ;;  %3521 = vpow2.f32 %v2867_v35  ;;  %v4425_v63 = vadd.f32 %v4300_v33, %v908_v55  ;;  %v913_v8 = vmul.f32 %v4295_v53, %v4126_v20  ;;  %3235 = vmatprep.subr.bf16.mxu1 %v3482_v28  ;;  %3282 = vmatpush3.bf16.msra.mxu0 %v4447_v43 }
 0x427   : > { %v3504_v19 = vpop.eup %3503  ;;  %v1061_v44 = vadd.f32 1.0, %v3502_v30  ;;  %3523 = vpow2.f32 %v2868_v59  ;;  %v4430_v37 = vmul.f32 -1.442695, %v4413_v36  ;;  %v4433_v61 = vadd.f32 %v4300_v33, %v909_v49  ;;  %3236 = vmatpush3.bf16.msra.mxu1 %v3482_v28 }
 0x428   : > { %v3506_v17 = vpop.eup %3505  ;;  %3525 = vrcp.f32 %v1060_v14  ;;  %v1056_v39 = vadd.f32 1.0, %v3504_v19  ;;  %v4439_v13 = vadd.f32 %v4300_v33, %v910_v60  ;;  %v4442_v20 = vadd.f32 %v4300_v33, %v911_v62 }
 0x429   : > { %v3508_v45 = vpop.eup %3507  ;;  %3527 = vrcp.f32 %v1061_v44  ;;  %v1057_v16 = vadd.f32 1.0, %v3506_v17  ;;  %v4450_v19 = vmul.f32 -1.442695, %v4420_v21  ;;  %v4453_v44 = vadd.f32 %v4300_v33, %v912_v51 }
 0x42a   : > { %v3510_v27 = vpop.eup %3509  ;;  %3529 = vrcp.f32 %v1056_v39  ;;  %v1058_v50 = vadd.f32 1.0, %v3508_v45  ;;  %v4456_v39 = vadd.f32 %v4300_v33, %v913_v8  ;;  %v914_v55 = vmul.f32 %v4295_v53, %v4134_v40 }
 0x42b   : > { %v3512_v22 = vpop.eup %3511  ;;  %3531 = vrcp.f32 %v1057_v16  ;;  %v1059_v57 = vadd.f32 1.0, %v3510_v27  ;;  %v4462_v16 = vmul.f32 -1.442695, %v4425_v63  ;;  %v3484_v27 = vld [vmem:[%s5048_s5 + $0x40] sm:$0xff]   ;;  %v4474_v60 = vmul.f32 -1.442695, %v4433_v61 }
 0x42c   : > { %v3514_v34 = vpop.eup %3513  ;;  %3533 = vrcp.f32 %v1058_v50  ;;  %v1062_v29 = vadd.f32 1.0, %v3512_v22  ;;  %v4471_v50 = vld [vmem:[%s5048_s5 + $0x18] sm:$0xff]   ;;  %v4477_v62 = vmul.f32 -1.442695, %v4439_v13  ;;  %v4480_v22 = vmul.f32 -1.442695, %v4442_v20  ;;  %3237 = vmatprep.subr.bf16.mxu1 %v3484_v27 }
 0x42d   : > { %v3516_v41 = vpop.eup %3515  ;;  %3535 = vrcp.f32 %v1059_v57  ;;  %v1063_v0 = vadd.f32 1.0, %v3514_v34  ;;  %v4484_v34 = vmul.f32 -1.442695, %v4453_v44  ;;  %3283 = vmatprep.subr.bf16.mxu0 %v4471_v50  ;;  %3238 = vmatpush3.bf16.msra.mxu1 %v3484_v27 }
 0x42e   : > { %v3518_v35 = vpop.eup %3517  ;;  %3537 = vrcp.f32 %v1062_v29  ;;  %v1064_v59 = vadd.f32 1.0, %v3516_v41  ;;  %v915_v29 = vmul.f32 %v4295_v53, %v4142_v47  ;;  %v916_v47 = vmul.f32 %v4295_v53, %v4150_v5  ;;  %3284 = vmatpush3.bf16.msra.mxu0 %v4471_v50  ;;  %v3486_v5 = vld [vmem:[%s5048_s5 + $0x48] sm:$0xff]  }
 0x42f   : > { %v3520_v30 = vpop.eup %3519  ;;  %3539 = vrcp.f32 %v1063_v0  ;;  %v1065_v14 = vadd.f32 1.0, %v3518_v35  ;;  %v4492_v0 = vmul.f32 -1.442695, %v4456_v39  ;;  %3239 = vmatprep.subr.bf16.mxu1 %v3486_v5 }
 0x430   : > { %v3522_v15 = vpop.eup %3521  ;;  %3541 = vrcp.f32 %v1064_v59  ;;  %v1066_v17 = vadd.f32 1.0, %v3520_v30  ;;  %v920_v59 = vmul.f32 %v4295_v53, %v4182_v1  ;;  %v4517_v1 = vld [vmem:[%s5048_s5 + $0x20] sm:$0xff]  }
 0x431   : > { %v3524_v49 = vpop.eup %3523  ;;  %3543 = vrcp.f32 %v1065_v14  ;;  %v1067_v45 = vadd.f32 1.0, %v3522_v15  ;;  %3240 = vmatpush3.bf16.msra.mxu1 %v3486_v5  ;;  %3285 = vmatprep.subr.bf16.mxu0 %v4517_v1 }
 0x432   : > { %v3526_v40 = vpop.eup %3525  ;;  %3545 = vrcp.f32 %v1066_v17  ;;  %3286 = vmatpush3.bf16.msra.mxu0 %v4517_v1 }
 0x433   : > { %v3528_v57 = vpop.eup %3527  ;;  %v1156_v51 = vmul.f32 %v3526_v40, %v4319_v12  ;;  %3547 = vrcp.f32 %v1067_v45  ;;  %v4495_v12 = vadd.f32 %v4300_v33, %v914_v55 }
 0x434   : > { %v3530_v8 = vpop.eup %3529  ;;  %v1157_v41 = vmul.f32 %v3528_v57, %v4322_v9  ;;  %3549 = vpow2.f32 %v4398_v58  ;;  %v921_v9 = vmul.f32 %v4295_v53, %v4190_v7 }
 0x435   : > { %v3532_v28 = vpop.eup %3531  ;;  %v1152_v35 = vmul.f32 %v3530_v8, %v4325_v3  ;;  %3551 = vpow2.f32 %v4401_v11  ;;  %v917_v3 = vmul.f32 %v4295_v53, %v4158_v38  ;;  %v4525_v11 = vadd.f32 %v4300_v33, %v920_v59  ;;  %v4554_v8 = vld [vmem:[%s5048_s5 + $0x28] sm:$0xff]  }
 0x436   : > { %v3534_v58 = vpop.eup %3533  ;;  %v4505_v30 = vpack.c.bf16 %v1157_v41, %v1156_v51  ;;  %v1153_v14 = vmul.f32 %v3532_v28, %v4328_v6  ;;  %3553 = vpow2.f32 %v4410_v24  ;;  %v4522_v6 = vadd.f32 %v4300_v33, %v915_v29  ;;  %3287 = vmatprep.subr.bf16.mxu0 %v4554_v8 }
 0x437   : > { %v3536_v7 = vpop.eup %3535  ;;  %v1154_v15 = vmul.f32 %v3534_v58, %v4331_v26  ;;  %v1068_v26 = vadd.f32 1.0, %v3524_v49  ;;  %3555 = vpow2.f32 %v4430_v37  ;;  %v4537_v57 = vadd.f32 %v4300_v33, %v921_v9  ;;  %v3488_v37 = vld [vmem:[%s5048_s5 + $0x50] sm:$0xff]   ;;  %3288 = vmatpush3.bf16.msra.mxu0 %v4554_v8 }
 0x438   : > { %v3538_v38 = vpop.eup %3537  ;;  %1506 = vrot.lane.b32.xlu1 %v4505_v30, %s3640_s12  ;;  %v4529_v17 = vpack.c.bf16 %v1153_v14, %v1152_v35  ;;  %v1155_v55 = vmul.f32 %v3536_v7, %v4334_v18  ;;  %v1322_v45 = vshrl.u32 %v4505_v30, 16  ;;  %v1325_v40 = vshll.u32 %v4505_v30, 16  ;;  %3241 = vmatprep.subr.bf16.mxu1 %v3488_v37 }
 0x439   : > { %v3540_v24 = vpop.eup %3539  ;;  %v1158_v27 = vmul.f32 %v3538_v38, %v4337_v54  ;;  %3557 = vpow2.f32 %v4450_v19  ;;  %v4559_v35 = vmul.f32 -1.442695, %v4495_v12  ;;  %v4568_v14 = vadd.f32 %v4300_v33, %v917_v3  ;;  %3242 = vmatpush3.bf16.msra.mxu1 %v3488_v37 }
 0x43a   : > { %v3542_v51 = vpop.eup %3541  ;;  %1502 = vrot.lane.b32.xlu0 %v4529_v17, %s3640_s12  ;;  %v4542_v18 = vpack.c.bf16 %v1155_v55, %v1154_v15  ;;  %v1308_v49 = vshrl.u32 %v4529_v17, 16  ;;  %v1311_v54 = vshll.u32 %v4529_v17, 16  ;;  %v1159_v29 = vmul.f32 %v3540_v24, %v4340_v2  ;;  %v3490_v15 = vld [vmem:[%s5048_s5 + $0x58] sm:$0xff]  }
 0x43b   : > { %v3544_v41 = vpop.eup %3543  ;;  %v1160_v28 = vmul.f32 %v3542_v51, %v4353_v4  ;;  %v4562_v2 = vadd.f32 %v4300_v33, %v916_v47  ;;  %v1324_v7 = vrot.slane %v1322_v45, 7  ;;  %v1571_v47 = vrot.slane %v1325_v40, 1  ;;  %3243 = vmatprep.subr.bf16.mxu1 %v3490_v15 }
 0x43c   : > { %v3546_v59 = vpop.eup %3545  ;;  %v1567_v9 = vrot.slane %v1311_v54, 1  ;;  %v4564_v58 = vpack.c.bf16 %v1159_v29, %v1158_v27  ;;  %v1315_v30 = vshrl.u32 %v4542_v18, 16  ;;  %v1318_v19 = vshll.u32 %v4542_v18, 16 }
 0x43d   : > { %v3548_v4 = vpop.eup %3547  ;;  %v1161_v5 = vmul.f32 %v3544_v41, %v4356_v52  ;;  %v1310_v17 = vrot.slane %v1308_v49, 7  ;;  %v1162_v55 = vmul.f32 %v3546_v59, %v4367_v10  ;;  %3559 = vrcp.f32 %v1068_v26  ;;  %3244 = vmatpush3.bf16.msra.mxu1 %v3490_v15 }
 0x43e   : > { %v3550_v38 = vpop.eup %3549  ;;  %1504 = vrot.lane.b32.xlu0 %v4542_v18, %s3640_s12  ;;  %v1568_v3 = vor.u32 %v1567_v9, %v1308_v49  ;;  %v1569_v24 = vrot.slane %v1318_v19, 1  ;;  %v1163_v27 = vmul.f32 %v3548_v4, %v4370_v32  ;;  %v1329_v51 = vshrl.u32 %v4564_v58, 16  ;;  %3389 = vmatprep.subr.bf16.mxu1 %v4246_v42 }
 0x43f   : > { %v4580_v52 = vpack.c.bf16 %v1161_v5, %v1160_v28  ;;  %v3552_v29 = vpop.eup %3551  ;;  %v1317_v18 = vrot.slane %v1315_v30, 7  ;;  %v1332_v49 = vshll.u32 %v4564_v58, 16  ;;  %v1069_v37 = vadd.f32 1.0, %v3550_v38 }
 0x440   : > { %1599 = vrot.lane.b32.xlu1 %v1568_v3, %s3641_s21  ;;  %v918_v10 = vmul.f32 %v4295_v53, %v4166_v46  ;;  %v3554_v26 = vpop.eup %3553  ;;  %v1327_v41 = vor.u32 %v1325_v40, %v1324_v7  ;;  %v1572_v28 = vor.u32 %v1571_v47, %v1322_v45  ;;  %v4588_v59 = vpack.c.bf16 %v1163_v27, %v1162_v55  ;;  %v1444_v55 = vld [vmem:[#allocation2 + $0x18] sm:$0xff] }
 0x441   : > { %v5057_v32 = vshrl.u32 %v4580_v52, 16  ;;  %v1570_v9 = vor.u32 %v1569_v24, %v1315_v30  ;;  %v1331_v4 = vrot.slane %v1329_v51, 7  ;;  %3561 = vrcp.f32 %v1069_v37  ;;  %v3556_v38 = vpop.eup %3555  ;;  %v4602_v30 = vld [vmem:[%s5048_s5 + $0x60] sm:$0xff]   ;;  %v1438_v24 = vld [vmem:[#allocation2 + $0x8] sm:$0xff]  ;;  %v1441_v37 = vld [vmem:[#allocation2 + $0x10] sm:$0xff] }
 0x442   : > { %1508 = vrot.lane.b32.xlu0 %v4564_v58, %s3640_s12  ;;  %v1070_v5 = vadd.f32 1.0, %v3552_v29  ;;  %v1313_v3 = vor.u32 %v1311_v54, %v1310_v17  ;;  %v1071_v45 = vadd.f32 1.0, %v3554_v26  ;;  %v5056_v40 = vshrl.u32 %v4588_v59, 16  ;;  %3321 = vmatprep.subr.bf16.mxu0 %v4602_v30 }
 0x443   : > { %v1338_v46 = vrot.slane %v5057_v32, 7  ;;  %v1320_v7 = vor.u32 %v1318_v19, %v1317_v18  ;;  %v1573_v47 = vrot.slane %v1332_v49, 1  ;;  %v1339_v58 = vshll.u32 %v4580_v52, 16  ;;  %v3558_v42 = vpop.eup %3557 }
 0x444   : > { %1601 = vrot.lane.b32.xlu1 %v1570_v9, %s3641_s21  ;;  %3563 = vrcp.f32 %v1070_v5  ;;  %v1345_v54 = vrot.slane %v5056_v40, 7  ;;  %v1346_v15 = vshll.u32 %v4588_v59, 16  ;;  %v1072_v17 = vadd.f32 1.0, %v3556_v38  ;;  %v1447_v38 = vld [vmem:[#allocation2 + $0x20] sm:$0xff]  ;;  %v1453_v40 = vld [vmem:[#allocation2 + $0x30] sm:$0xff] }
 0x445   : > { %3565 = vrcp.f32 %v1071_v45  ;;  %v1334_v27 = vor.u32 %v1332_v49, %v1331_v4  ;;  %v1341_v29 = vor.u32 %v1339_v58, %v1338_v46  ;;  %v1073_v18 = vadd.f32 1.0, %v3558_v42  ;;  %v1450_v45 = vld [vmem:[#allocation2 + $0x28] sm:$0xff] }
 0x446   : > { %1510 = vrot.lane.b32.xlu0 %v4580_v52, %s3640_s12  ;;  %3567 = vpow2.f32 %v4462_v16  ;;  %v1348_v26 = vor.u32 %v1346_v15, %v1345_v54  ;;  %v2881_v9 = vmul.f32 -1.442695, %v4522_v6  ;;  %v919_v5 = vmul.f32 %v4295_v53, %v4174_v56 }
 0x447   : > { %3569 = vrcp.f32 %v1072_v17  ;;  %v3560_v32 = vpop.eup %3559  ;;  %v4622_v49 = vadd.f32 %v4300_v33, %v918_v10  ;;  %v1445_v16 = vsel %vm4609_vm9, %v1327_v41, %v1444_v55  ;;  %v1439_v4 = vsel %vm4609_vm9, %v1313_v3, %v1438_v24 }
 0x448   : > { %1603 = vrot.lane.b32.xlu1 %v1572_v28, %s3641_s21  ;;  %3571 = vrcp.f32 %v1073_v18  ;;  %v1574_v46 = vor.u32 %v1573_v47, %v1329_v51  ;;  %v1575_v42 = vrot.slane %v1339_v58, 1  ;;  %1446 = vst [vmem:[#allocation2 + $0x18] sm:$0xff] %v1445_v16  ;;  %1440 = vst [vmem:[#allocation2 + $0x8] sm:$0xff] %v1439_v4  ;;  %v1442_v56 = vsel %vm4609_vm9, %v1320_v7, %v1441_v37 }
 0x449   : > { %3573 = vpow2.f32 %v4474_v60  ;;  %1443 = vst [vmem:[#allocation2 + $0x10] sm:$0xff] %v1442_v56  ;;  %v1448_v53 = vsel %vm4609_vm9, %v1334_v27, %v1447_v38  ;;  %v1451_v51 = vsel %vm4609_vm9, %v1341_v29, %v1450_v45  ;;  %v1454_v60 = vsel %vm4609_vm9, %v1348_v26, %v1453_v40 }
 0x44a   : > { %1512 = vrot.lane.b32.xlu0 %v4588_v59, %s3640_s12  ;;  %3575 = vpow2.f32 %v4477_v62  ;;  %v1164_v10 = vmul.f32 %v3560_v32, %v4376_v31  ;;  %1449 = vst [vmem:[#allocation2 + $0x20] sm:$0xff] %v1448_v53  ;;  %1452 = vst [vmem:[#allocation2 + $0x28] sm:$0xff] %v1451_v51  ;;  %v2882_v62 = vmul.f32 -1.442695, %v4562_v2  ;;  %v4646_v28 = vadd.f32 %v4300_v33, %v919_v5 }
 0x44b   : > { %3577 = vpow2.f32 %v4480_v22  ;;  %1455 = vst [vmem:[#allocation2 + $0x30] sm:$0xff] %v1454_v60  ;;  %v3562_v41 = vpop.eup %3561  ;;  %v3642_v3 = vmov 0   ;;  %v2883_v22 = vmul.f32 -1.442695, %v4568_v14  ;;  %v5068_v40 = vshrl.u32 %v4580_v52, 16 }
 0x44c   : > { %1605 = vrot.lane.b32.xlu1 %v1574_v46, %s3641_s21  ;;  %3579 = vpow2.f32 %v4484_v34  ;;  %1201 = vst.msk [vmem:[#allocation2] sm:$0xff] %vm1200_vm10, %v3642_v3  ;;  %1203 = vst.msk [vmem:[#allocation2 + $0x88] sm:$0xff] %vm1200_vm10, %v3642_v3  ;;  %v1165_v31 = vmul.f32 %v3562_v41, %v4386_v25  ;;  %v1577_v7 = vrot.slane %v1346_v15, 1  ;;  %v2884_v33 = vmul.f32 -1.442695, %v4622_v49 }
 0x44d   : > { %3581 = vpow2.f32 %v4492_v0  ;;  %v1576_v34 = vor.u32 %v1575_v42, %v5068_v40  ;;  %v2885_v0 = vmul.f32 -1.442695, %v4646_v28 }
 0x44e   : > { %v3564_v32 = vpop.eup %3563  ;;  %3583 = vpow2.f32 %v4559_v35  ;;  %v1190_v58 = vpack.c.bf16 %v1165_v31, %v1164_v10  ;;  %v1456_v31 = vld [vmem:[#allocation2 + $0x38] sm:$0xff] }
 0x44f   : > { %v3566_v47 = vpop.eup %3565  ;;  %v1166_v54 = vmul.f32 %v3564_v32, %v4390_v48  ;;  %3585 = vpow2.f32 %v2881_v9  ;;  %v5069_v48 = vshrl.u32 %v4588_v59, 16 }
 0x450   : > { %v3568_v17 = vpop.eup %3567  ;;  %1607 = vrot.lane.b32.xlu1 %v1576_v34, %s3641_s21  ;;  %v1167_v25 = vmul.f32 %v3566_v47, %v4393_v23  ;;  %3587 = vpow2.f32 %v2882_v62  ;;  %1514 = vrot.lane.b32.xlu0 %v1190_v58, %s3640_s12  ;;  %v1350_v15 = vshrl.u32 %v1190_v58, 16  ;;  %v1353_v35 = vshll.u32 %v1190_v58, 16 }
 0x451   : > { %v3570_v52 = vpop.eup %3569  ;;  %v1074_v55 = vadd.f32 1.0, %v3568_v17  ;;  %3589 = vpow2.f32 %v2883_v22  ;;  %v1578_v29 = vor.u32 %v1577_v7, %v5069_v48  ;;  %v1459_v22 = vld [vmem:[#allocation2 + $0x40] sm:$0xff] }
 0x452   : > { %v3572_v24 = vpop.eup %3571  ;;  %v1191_v27 = vpack.c.bf16 %v1167_v25, %v1166_v54  ;;  %v1168_v18 = vmul.f32 %v3570_v52, %v4413_v36  ;;  %3591 = vpow2.f32 %v2884_v33  ;;  %v1352_v26 = vrot.slane %v1350_v15, 7 }
 0x453   : > { %v3574_v37 = vpop.eup %3573  ;;  %v1169_v23 = vmul.f32 %v3572_v24, %v4420_v21  ;;  %v1579_v9 = vrot.slane %v1353_v35, 1  ;;  %3593 = vrcp.f32 %v1074_v55  ;;  %v1698_v5 = vld [vmem:[#allocation2] sm:$0xff] }
 0x454   : > { %v3576_v38 = vpop.eup %3575  ;;  %1609 = vrot.lane.b32.xlu1 %v1578_v29, %s3641_s21  ;;  %v1075_v45 = vadd.f32 1.0, %v3574_v37  ;;  %v1357_v16 = vshrl.u32 %v1191_v27, 16  ;;  %v1360_v4 = vshll.u32 %v1191_v27, 16  ;;  %3595 = vpow2.f32 %v2885_v0  ;;  %3289 = vmatprep.mubr.msk.bf16.mxu0 %vm1200_vm10, %v1698_v5 }
 0x455   : > { %v3578_v59 = vpop.eup %3577  ;;  %1516 = vrot.lane.b32.xlu0 %v1191_v27, %s3640_s12  ;;  %v1192_v36 = vpack.c.bf16 %v1169_v23, %v1168_v18  ;;  %v1355_v46 = vor.u32 %v1353_v35, %v1352_v26  ;;  %v1580_v42 = vor.u32 %v1579_v9, %v1350_v15  ;;  %v1076_v21 = vadd.f32 1.0, %v3576_v38  ;;  %v1462_v15 = vld [vmem:[#allocation2 + $0x48] sm:$0xff] }
 0x456   : > { %v3580_v56 = vpop.eup %3579  ;;  %3597 = vrcp.f32 %v1075_v45  ;;  %v1359_v53 = vrot.slane %v1357_v16, 7  ;;  %v1581_v51 = vrot.slane %v1360_v4, 1  ;;  %v1077_v60 = vadd.f32 1.0, %v3578_v59 }
 0x457   : > { %v3582_v10 = vpop.eup %3581  ;;  %3599 = vrcp.f32 %v1076_v21  ;;  %v1364_v41 = vshrl.u32 %v1192_v36, 16  ;;  %v1367_v62 = vshll.u32 %v1192_v36, 16  ;;  %v1078_v3 = vadd.f32 1.0, %v3580_v56 }
 0x458   : > { %v3584_v32 = vpop.eup %3583  ;;  %1611 = vrot.lane.b32.xlu1 %v1580_v42, %s3641_s21  ;;  %v1362_v40 = vor.u32 %v1360_v4, %v1359_v53  ;;  %v1582_v34 = vor.u32 %v1581_v51, %v1357_v16  ;;  %3601 = vrcp.f32 %v1077_v60  ;;  %v1079_v7 = vadd.f32 1.0, %v3582_v10 }
 0x459   : > { %v3586_v33 = vpop.eup %3585  ;;  %1518 = vrot.lane.b32.xlu0 %v1192_v36, %s3640_s12  ;;  %v1366_v47 = vrot.slane %v1364_v41, 7  ;;  %v1583_v58 = vrot.slane %v1367_v62, 1  ;;  %3603 = vrcp.f32 %v1078_v3  ;;  %v1080_v54 = vadd.f32 1.0, %v3584_v32 }
 0x45a   : > { %v3588_v17 = vpop.eup %3587  ;;  %3605 = vrcp.f32 %v1079_v7  ;;  %v1081_v25 = vadd.f32 1.0, %v3586_v33  ;;  %v1457_v0 = vsel %vm4609_vm9, %v1355_v46, %v1456_v31  ;;  %v1460_v52 = vsel %vm4609_vm9, %v1362_v40, %v1459_v22 }
 0x45b   : > { %v3590_v35 = vpop.eup %3589  ;;  %v1369_v55 = vor.u32 %v1367_v62, %v1366_v47  ;;  %3607 = vrcp.f32 %v1080_v54  ;;  %v1082_v24 = vadd.f32 1.0, %v3588_v17  ;;  %1458 = vst [vmem:[#allocation2 + $0x38] sm:$0xff] %v1457_v0  ;;  %1461 = vst [vmem:[#allocation2 + $0x40] sm:$0xff] %v1460_v52  ;;  %v2886_v29 = vmul.f32 -1.442695, %v4525_v11 }
 0x45c   : > { %v3592_v27 = vpop.eup %3591  ;;  %1613 = vrot.lane.b32.xlu1 %v1582_v34, %s3641_s21  ;;  %3609 = vrcp.f32 %v1081_v25  ;;  %v1083_v48 = vadd.f32 1.0, %v3590_v35  ;;  %v1584_v9 = vor.u32 %v1583_v58, %v1364_v41  ;;  %v2887_v5 = vmul.f32 -1.442695, %v4537_v57 }
 0x45d   : > { %v3594_v18 = vpop.eup %3593  ;;  %3611 = vrcp.f32 %v1082_v24  ;;  %v1084_v37 = vadd.f32 1.0, %v3592_v27  ;;  %v1463_v23 = vsel %vm4609_vm9, %v1369_v55, %v1462_v15 }
 0x45e   : > { %v3596_v26 = vpop.eup %3595  ;;  %3613 = vrcp.f32 %v1083_v48  ;;  %1464 = vst [vmem:[#allocation2 + $0x48] sm:$0xff] %v1463_v23  ;;  %v1170_v38 = vmul.f32 %v3594_v18, %v4425_v63 }
 0x45f   : > { %v1085_v45 = vadd.f32 1.0, %v3596_v26  ;;  %3615 = vrcp.f32 %v1084_v37  ;;  %v1465_v26 = vld [vmem:[#allocation2 + $0x50] sm:$0xff] }
 0x460   : > { %v3598_v16 = vpop.eup %3597  ;;  %1615 = vrot.lane.b32.xlu1 %v1584_v9, %s3641_s21  ;;  %3617 = vpow2.f32 %v2886_v29 }
 0x461   : > { %v3600_v4 = vpop.eup %3599  ;;  %v1171_v59 = vmul.f32 %v3598_v16, %v4433_v61  ;;  %3619 = vrcp.f32 %v1085_v45  ;;  %v1468_v45 = vld [vmem:[#allocation2 + $0x58] sm:$0xff] }
 0x462   : > { %v3602_v36 = vpop.eup %3601  ;;  %v1172_v46 = vmul.f32 %v3600_v4, %v4439_v13  ;;  %3621 = vpow2.f32 %v2887_v5 }
 0x463   : > { %v3604_v42 = vpop.eup %3603  ;;  %v1193_v21 = vpack.c.bf16 %v1171_v59, %v1170_v38  ;;  %v1173_v56 = vmul.f32 %v3602_v36, %v4442_v20  ;;  %v1474_v36 = vld [vmem:[#allocation2 + $0x68] sm:$0xff] }
 0x464   : > { %v3606_v53 = vpop.eup %3605  ;;  %v1174_v63 = vmul.f32 %v3604_v42, %v4453_v44 }
 0x465   : > { %v3608_v51 = vpop.eup %3607  ;;  %1520 = vrot.lane.b32.xlu0 %v1193_v21, %s3640_s12  ;;  %v1194_v60 = vpack.c.bf16 %v1173_v56, %v1172_v46  ;;  %v1175_v10 = vmul.f32 %v3606_v53, %v4456_v39  ;;  %v1371_v41 = vshrl.u32 %v1193_v21, 16  ;;  %v1374_v61 = vshll.u32 %v1193_v21, 16 }
 0x466   : > { %v3610_v62 = vpop.eup %3609  ;;  %v1176_v3 = vmul.f32 %v3608_v51, %v4495_v12  ;;  %v1477_v51 = vld [vmem:[#allocation2 + $0x70] sm:$0xff] }
 0x467   : > { %v3612_v13 = vpop.eup %3611  ;;  %v1195_v31 = vpack.c.bf16 %v1175_v10, %v1174_v63  ;;  %v1585_v22 = vrot.slane %v1374_v61, 1  ;;  %v1177_v32 = vmul.f32 %v3610_v62, %v4522_v6  ;;  %v1373_v40 = vrot.slane %v1371_v41, 7 }
 0x468   : > { %v3614_v20 = vpop.eup %3613  ;;  %v1378_v34 = vshrl.u32 %v1194_v60, 16  ;;  %v1381_v44 = vshll.u32 %v1194_v60, 16  ;;  %v1178_v7 = vmul.f32 %v3612_v13, %v4562_v2 }
 0x469   : > { %v3616_v33 = vpop.eup %3615  ;;  %1522 = vrot.lane.b32.xlu0 %v1194_v60, %s3640_s12  ;;  %v1586_v39 = vor.u32 %v1585_v22, %v1371_v41  ;;  %v1196_v47 = vpack.c.bf16 %v1177_v32, %v1176_v3  ;;  %v1179_v58 = vmul.f32 %v3614_v20, %v4568_v14  ;;  %v1385_v25 = vshrl.u32 %v1195_v31, 16  ;;  %v1480_v3 = vld [vmem:[#allocation2 + $0x78] sm:$0xff] }
 0x46a   : > { %v3618_v54 = vpop.eup %3617  ;;  %v1380_v12 = vrot.slane %v1378_v34, 7  ;;  %v1587_v17 = vrot.slane %v1381_v44, 1  ;;  %v1388_v0 = vshll.u32 %v1195_v31, 16  ;;  %v1180_v15 = vmul.f32 %v3616_v33, %v4622_v49  ;;  %v1471_v49 = vld [vmem:[#allocation2 + $0x60] sm:$0xff] }
 0x46b   : > { %v3620_v52 = vpop.eup %3619  ;;  %1617 = vrot.lane.b32.xlu1 %v1586_v39, %s3641_s21  ;;  %v1197_v6 = vpack.c.bf16 %v1179_v58, %v1178_v7  ;;  %v1392_v35 = vshrl.u32 %v1196_v47, 16  ;;  %v1395_v2 = vshll.u32 %v1196_v47, 16  ;;  %v1376_v24 = vor.u32 %v1374_v61, %v1373_v40 }
 0x46c   : > { %v3622_v55 = vpop.eup %3621  ;;  %v1383_v27 = vor.u32 %v1381_v44, %v1380_v12  ;;  %v1588_v48 = vor.u32 %v1587_v17, %v1378_v34  ;;  %v1387_v29 = vrot.slane %v1385_v25, 7  ;;  %v1589_v14 = vrot.slane %v1388_v0, 1 }
 0x46d   : > { %1524 = vrot.lane.b32.xlu0 %v1195_v31, %s3640_s12  ;;  %v1181_v18 = vmul.f32 %v3620_v52, %v4646_v28  ;;  %v1394_v37 = vrot.slane %v1392_v35, 7  ;;  %v1086_v23 = vadd.f32 1.0, %v3618_v54  ;;  %v1087_v5 = vadd.f32 1.0, %v3622_v55 }
 0x46e   : > { %v1390_v9 = vor.u32 %v1388_v0, %v1387_v29  ;;  %v1399_v38 = vshrl.u32 %v1197_v6, 16  ;;  %v1591_v59 = vrot.slane %v1395_v2, 1  ;;  %v1402_v42 = vshll.u32 %v1197_v6, 16 }
 0x46f   : > { %1619 = vrot.lane.b32.xlu1 %v1588_v48, %s3641_s21  ;;  %v1198_v16 = vpack.c.bf16 %v1181_v18, %v1180_v15  ;;  %v1397_v4 = vor.u32 %v1395_v2, %v1394_v37  ;;  %3623 = vrcp.f32 %v1086_v23  ;;  %v1466_v28 = vsel %vm4609_vm9, %v1376_v24, %v1465_v26  ;;  %v3492_v24 = vld [vmem:[%s5048_s5 + $0x68] sm:$0xff]   ;;  %v3493_v37 = vld [vmem:[%s5048_s5 + $0x70] sm:$0xff]  }
 0x470   : > { %3625 = vrcp.f32 %v1087_v5  ;;  %v1401_v46 = vrot.slane %v1399_v38, 7  ;;  %v1590_v21 = vor.u32 %v1589_v14, %v1385_v25  ;;  %1467 = vst [vmem:[#allocation2 + $0x50] sm:$0xff] %v1466_v28  ;;  %v1469_v53 = vsel %vm4609_vm9, %v1383_v27, %v1468_v45  ;;  %v1483_v25 = vld [vmem:[#allocation2 + $0x80] sm:$0xff]  ;;  %v3494_v45 = vld [vmem:[%s5048_s5 + $0x78] sm:$0xff]  }
 0x471   : > { %1526 = vrot.lane.b32.xlu0 %v1196_v47, %s3640_s12  ;;  %v1406_v56 = vshrl.u32 %v1198_v16, 16  ;;  %v1472_v63 = vsel %vm4609_vm9, %v1390_v9, %v1471_v49  ;;  %1470 = vst [vmem:[#allocation2 + $0x58] sm:$0xff] %v1469_v53  ;;  %v1475_v10 = vsel %vm4609_vm9, %v1397_v4, %v1474_v36  ;;  %v1409_v61 = vshll.u32 %v1198_v16, 16  ;;  %v3627_v9 = vld [vmem:[%s5048_s5] sm:$0xff]  }
 0x472   : > { %v1404_v60 = vor.u32 %v1402_v42, %v1401_v46  ;;  %1473 = vst [vmem:[#allocation2 + $0x60] sm:$0xff] %v1472_v63  ;;  %1476 = vst [vmem:[#allocation2 + $0x68] sm:$0xff] %v1475_v10  ;;  %v1592_v13 = vor.u32 %v1591_v59, %v1392_v35  ;;  %v1593_v31 = vrot.slane %v1402_v42, 1  ;;  %v3495_v59 = vld [vmem:[%s5048_s5 + $0x80] sm:$0xff]   ;;  %v2260_v35 = vld [vmem:[#allocation2 + $0x88] sm:$0xff] }
 0x473   : > { %1621 = vrot.lane.b32.xlu1 %v1590_v21, %s3641_s21  ;;  %v1408_v41 = vrot.slane %v1406_v56, 7  ;;  %v1595_v39 = vrot.slane %v1409_v61, 1  ;;  %v3496_v21 = vld [vmem:[%s5048_s5 + $0x88] sm:$0xff]  }
 0x474   : > { %v1478_v62 = vsel %vm4609_vm9, %v1404_v60, %v1477_v51  ;;  %v1594_v40 = vor.u32 %v1593_v31, %v1399_v38  ;;  %v3628_v38 = vld [vmem:[%s5048_s5 + $0x8] sm:$0xff]  }
 0x475   : > { %1528 = vrot.lane.b32.xlu0 %v1197_v6, %s3640_s12  ;;  %v1411_v22 = vor.u32 %v1409_v61, %v1408_v41  ;;  %1479 = vst [vmem:[#allocation2 + $0x70] sm:$0xff] %v1478_v62  ;;  %v1596_v54 = vor.u32 %v1595_v39, %v1406_v56 }
 0x477   : > { %1623 = vrot.lane.b32.xlu1 %v1592_v13, %s3641_s21  ;;  %v1481_v32 = vsel %vm4609_vm9, %v1411_v22, %v1480_v3 }
 0x478   : > { %1482 = vst [vmem:[#allocation2 + $0x78] sm:$0xff] %v1481_v32 }
 0x479   : > { %v3624_v20 = vpop.eup %3623  ;;  %1530 = vrot.lane.b32.xlu0 %v1198_v16, %s3640_s12 }
 0x47a   : > { %v3626_v34 = vpop.eup %3625  ;;  %v1182_v44 = vmul.f32 %v3624_v20, %v4525_v11 }
 0x47b   : > { %v1183_v7 = vmul.f32 %v3626_v34, %v4537_v57  ;;  %1625 = vrot.lane.b32.xlu1 %v1594_v40, %s3641_s21 }
 0x47d   : > { %v1199_v33 = vpack.c.bf16 %v1183_v7, %v1182_v44 }
 0x47f   : > { %1532 = vrot.lane.b32.xlu0 %v1199_v33, %s3640_s12  ;;  %v1413_v47 = vshrl.u32 %v1199_v33, 16  ;;  %v1416_v58 = vshll.u32 %v1199_v33, 16 }
 0x481   : > { %v1415_v12 = vrot.slane %v1413_v47, 7  ;;  %v1597_v17 = vrot.slane %v1416_v58, 1 }
 0x483   : > { %1627 = vrot.lane.b32.xlu0 %v1596_v54, %s3641_s21  ;;  %v1418_v0 = vor.u32 %v1416_v58, %v1415_v12  ;;  %v1598_v52 = vor.u32 %v1597_v17, %v1413_v47 }
 0x485   : > { %1629 = vrot.lane.b32.xlu1 %v1598_v52, %s3641_s21  ;;  %v1484_v11 = vsel %vm4609_vm9, %v1418_v0, %v1483_v25 }
 0x486   : > { %1485 = vst [vmem:[#allocation2 + $0x80] sm:$0xff] %v1484_v11 }
 0x4aa   : > { %v1507_v57 = vpop.permute.xlu1 %1506 }
 0x4ab   : > { %1553 = vst.msk [vmem:[#allocation2 + $0x18] sm:$0xff] %vm1550_vm11, %v1507_v57 }
 0x4ac   : > { %v1503_v6 = vpop.permute.xlu0 %1502 }
 0x4ad   : > { %1551 = vst.msk [vmem:[#allocation2 + $0x8] sm:$0xff] %vm1550_vm11, %v1503_v6 }
 0x4b0   : > { %v1505_v15 = vpop.permute.xlu0 %1504 }
 0x4b1   : > { %1552 = vst.msk [vmem:[#allocation2 + $0x10] sm:$0xff] %vm1550_vm11, %v1505_v15 }
 0x4b2   : > { %v1600_v2 = vpop.permute.xlu1 %1599  ;;  %v1656_v23 = vld [vmem:[#allocation2 + $0x18] sm:$0xff] }
 0x4b4   : > { %v1650_v19 = vld [vmem:[#allocation2 + $0x8] sm:$0xff]  ;;  %v1509_v55 = vpop.permute.xlu0 %1508 }
 0x4b5   : > { %v1651_v27 = vsel %vm4726_vm14, %v1600_v2, %v1650_v19  ;;  %1554 = vst.msk [vmem:[#allocation2 + $0x20] sm:$0xff] %vm1550_vm11, %v1509_v55 }
 0x4b6   : > { %1652 = vst [vmem:[#allocation2 + $0x8] sm:$0xff] %v1651_v27  ;;  %v1602_v48 = vpop.permute.xlu1 %1601  ;;  %3245 = vmatprep.mubr.msk.bf16.mxu1 %vm1200_vm10, %v1651_v27  ;;  %3290 = vmatmul.mubr.msk.bf16.vlgmr.msra.gmra.mrb[4].mxu0 %vm1200_vm10, %v1651_v27 }
 0x4b7   : > { %3322 = vmatpush3.bf16.msra.mxu0 %v4602_v30 }
 0x4b8   : > { %v1653_v29 = vld [vmem:[#allocation2 + $0x10] sm:$0xff]  ;;  %v1511_v14 = vpop.permute.xlu0 %1510  ;;  %3323 = vmatprep.subr.bf16.mxu0 %v3492_v24 }
 0x4b9   : > { %v4741_v18 = vsel %vm4726_vm14, %v1602_v48, %v1653_v29  ;;  %1555 = vst.msk [vmem:[#allocation2 + $0x28] sm:$0xff] %vm1550_vm11, %v1511_v14 }
 0x4ba   : > { %1655 = vst [vmem:[#allocation2 + $0x10] sm:$0xff] %v4741_v18  ;;  %v1604_v26 = vpop.permute.xlu1 %1603  ;;  %3246 = vmatmul.mubr.msk.bf16.vlgmr.msra.gmra.mrb[4].mxu1 %vm1200_vm10, %v4741_v18  ;;  %3293 = vmatprep.mubr.msk.bf16.mxu0 %vm1200_vm10, %v4741_v18 }
 0x4bb   : > { %v4754_v30 = vsel %vm4726_vm14, %v1604_v26, %v1656_v23  ;;  %3395 = vmatpush3.bf16.msra.mxu1 %v3627_v9  ;;  %3324 = vmatpush3.bf16.msra.mxu0 %v3492_v24 }
 0x4bc   : > { %1658 = vst [vmem:[#allocation2 + $0x18] sm:$0xff] %v4754_v30  ;;  %v1513_v5 = vpop.permute.xlu0 %1512  ;;  %3249 = vmatprep.mubr.msk.bf16.mxu1 %vm1200_vm10, %v4754_v30  ;;  %3390 = vmatprep.subr.bf16.mxu1 %v3628_v38  ;;  %v1659_v49 = vld [vmem:[#allocation2 + $0x20] sm:$0xff] }
 0x4bd   : > { %1556 = vst.msk [vmem:[#allocation2 + $0x30] sm:$0xff] %vm1550_vm11, %v1513_v5  ;;  %3325 = vmatprep.subr.bf16.mxu0 %v3493_v37 }
 0x4be   : > { %v1606_v16 = vpop.permute.xlu1 %1605  ;;  %3294 = vmatmul.mubr.msk.bf16.gmra.mrb[8].mxu0 %vm1200_vm10, %v4754_v30 }
 0x4bf   : > { %v1660_v4 = vsel %vm4726_vm14, %v1606_v16, %v1659_v49  ;;  %3396 = vmatpush3.bf16.msra.mxu1 %v3628_v38  ;;  %3326 = vmatpush3.bf16.msra.mxu0 %v3493_v37 }
 0x4c0   : > { %1661 = vst [vmem:[#allocation2 + $0x20] sm:$0xff] %v1660_v4  ;;  %3297 = vmatprep.mubr.msk.bf16.mxu0 %vm1200_vm10, %v1660_v4  ;;  %3327 = vmatprep.subr.bf16.mxu0 %v3494_v45  ;;  %v1662_v36 = vld [vmem:[#allocation2 + $0x28] sm:$0xff] }
 0x4c1   : > { %3391 = vmatprep.subr.bf16.mxu1 %v4447_v43 }
 0x4c2   : > { %v1608_v46 = vpop.permute.xlu1 %1607  ;;  %3250 = vmatmul.mubr.msk.bf16.gmra.mrb[8].mxu1 %vm1200_vm10, %v1660_v4  ;;  %v1515_v42 = vpop.permute.xlu0 %1514 }
 0x4c3   : > { %v1663_v28 = vsel %vm4726_vm14, %v1608_v46, %v1662_v36  ;;  %3328 = vmatpush3.bf16.msra.mxu0 %v3494_v45  ;;  %3397 = vmatpush3.bf16.msra.mxu1 %v4447_v43  ;;  %1557 = vst.msk [vmem:[#allocation2 + $0x38] sm:$0xff] %vm1550_vm11, %v1515_v42  ;;  %v4895_v46 = vld [vmem:[%s5049_s6] ss:$0 sm:$0xff] }
 0x4c4   : > { %1664 = vst [vmem:[#allocation2 + $0x28] sm:$0xff] %v1663_v28  ;;  %3253 = vmatprep.mubr.msk.bf16.mxu1 %vm1200_vm10, %v1663_v28  ;;  %3329 = vmatprep.subr.bf16.mxu0 %v3495_v59  ;;  %v1665_v56 = vld [vmem:[#allocation2 + $0x30] sm:$0xff] }
 0x4c5   : > { %3392 = vmatprep.subr.bf16.mxu1 %v4471_v50 }
 0x4c6   : > { %v1610_v53 = vpop.permute.xlu1 %1609  ;;  %3298 = vmatmul.mubr.msk.bf16.gmra.mrb[12].mxu0 %vm1200_vm10, %v1663_v28 }
 0x4c7   : > { %v1517_v63 = vpop.permute.xlu0 %1516  ;;  %v1666_v43 = vsel %vm4726_vm14, %v1610_v53, %v1665_v56  ;;  %3330 = vmatpush3.bf16.msra.mxu0 %v3495_v59  ;;  %3398 = vmatpush3.bf16.msra.mxu1 %v4471_v50 }
 0x4c8   : > { %1558 = vst.msk [vmem:[#allocation2 + $0x40] sm:$0xff] %vm1550_vm11, %v1517_v63  ;;  %1667 = vst [vmem:[#allocation2 + $0x30] sm:$0xff] %v1666_v43  ;;  %3301 = vmatprep.mubr.msk.bf16.mxu0 %vm1200_vm10, %v1666_v43  ;;  %3331 = vmatprep.subr.bf16.mxu0 %v3496_v21 }
 0x4c9   : > { %3393 = vmatprep.subr.bf16.mxu1 %v4517_v1 }
 0x4ca   : > { %v1612_v51 = vpop.permute.xlu1 %1611  ;;  %3254 = vmatmul.mubr.msk.bf16.gmra.mrb[12].mxu1 %vm1200_vm10, %v1666_v43  ;;  %v1668_v10 = vld [vmem:[#allocation2 + $0x38] sm:$0xff] }
 0x4cb   : > { %v1519_v60 = vpop.permute.xlu0 %1518  ;;  %3332 = vmatpush3.bf16.msra.mxu0 %v3496_v21  ;;  %3399 = vmatpush3.bf16.msra.mxu1 %v4517_v1  ;;  %v1669_v50 = vsel %vm4726_vm14, %v1612_v51, %v1668_v10  ;;  %v4897_v21 = vld [vmem:[%s307_s22] ss:$0 sm:$0xff] }
 0x4cc   : > { %1559 = vst.msk [vmem:[#allocation2 + $0x48] sm:$0xff] %vm1550_vm11, %v1519_v60  ;;  %3394 = vmatprep.subr.bf16.mxu1 %v4554_v8  ;;  %1670 = vst [vmem:[#allocation2 + $0x38] sm:$0xff] %v1669_v50  ;;  %3257 = vmatprep.mubr.msk.bf16.mxu1 %vm1200_vm10, %v1669_v50 }
 0x4ce   : > { %v1614_v41 = vpop.permute.xlu1 %1613  ;;  %3302 = vmatmul.mubr.msk.bf16.gmra.mrb[16].mxu0 %vm1200_vm10, %v1669_v50 }
 0x4cf   : > { %v1671_v61 = vld [vmem:[#allocation2 + $0x40] sm:$0xff]  ;;  %3333 = vmatprep.mubr.msk.bf16.mxu0 %vm1200_vm10, %v4741_v18  ;;  %3400 = vmatpush3.bf16.msra.mxu1 %v4554_v8 }
 0x4d0   : > { %v4808_v1 = vsel %vm4726_vm14, %v1614_v41, %v1671_v61 }
 0x4d1   : > { %1673 = vst [vmem:[#allocation2 + $0x40] sm:$0xff] %v4808_v1 }
 0x4d2   : > { %v1616_v62 = vpop.permute.xlu1 %1615  ;;  %3258 = vmatmul.mubr.msk.bf16.gmra.mrb[16].mxu1 %vm1200_vm10, %v4808_v1 }
 0x4d3   : > { %v1674_v3 = vld [vmem:[#allocation2 + $0x48] sm:$0xff] }
 0x4d4   : > { %v4815_v13 = vsel %vm4726_vm14, %v1616_v62, %v1674_v3 }
 0x4d5   : > { %1676 = vst [vmem:[#allocation2 + $0x48] sm:$0xff] %v4815_v13  ;;  %3261 = vmatprep.mubr.msk.bf16.mxu1 %vm1200_vm10, %v4815_v13 }
 0x4d6   : > { %3334 = vmatmul.mubr.msk.bf16.vlgmr.msra.gmra.mrb[4].mxu0 %vm1200_vm10, %v4754_v30 }
 0x4d7   : > { %v1521_v8 = vpop.permute.xlu0 %1520  ;;  %3337 = vmatprep.mubr.msk.bf16.mxu0 %vm1200_vm10, %v1660_v4 }
 0x4d8   : > { %1560 = vst.msk [vmem:[#allocation2 + $0x50] sm:$0xff] %vm1550_vm11, %v1521_v8 }
 0x4db   : > { %v1523_v31 = vpop.permute.xlu0 %1522 }
 0x4dc   : > { %1561 = vst.msk [vmem:[#allocation2 + $0x58] sm:$0xff] %vm1550_vm11, %v1523_v31 }
 0x4dd   : > { %v1618_v22 = vpop.permute.xlu1 %1617 }
 0x4de   : > { %3338 = vmatmul.mubr.msk.bf16.gmra.mrb[8].mxu0 %vm1200_vm10, %v1663_v28 }
 0x4df   : > { %v1525_v32 = vpop.permute.xlu0 %1524  ;;  %v1677_v20 = vld [vmem:[#allocation2 + $0x50] sm:$0xff]  ;;  %3341 = vmatprep.mubr.msk.bf16.mxu0 %vm1200_vm10, %v1666_v43 }
 0x4e0   : > { %1562 = vst.msk [vmem:[#allocation2 + $0x60] sm:$0xff] %vm1550_vm11, %v1525_v32  ;;  %v1678_v40 = vsel %vm4726_vm14, %v1618_v22, %v1677_v20 }
 0x4e1   : > { %1679 = vst [vmem:[#allocation2 + $0x50] sm:$0xff] %v1678_v40  ;;  %v1620_v34 = vpop.permute.xlu1 %1619  ;;  %3262 = vmatmul.mubr.msk.bf16.gmra.mrb[20].mxu1 %vm1200_vm10, %v1678_v40 }
 0x4e3   : > { %v1527_v44 = vpop.permute.xlu0 %1526  ;;  %v1680_v7 = vld [vmem:[#allocation2 + $0x58] sm:$0xff] }
 0x4e4   : > { %1563 = vst.msk [vmem:[#allocation2 + $0x68] sm:$0xff] %vm1550_vm11, %v1527_v44  ;;  %v1681_v33 = vsel %vm4726_vm14, %v1620_v34, %v1680_v7 }
 0x4e5   : > { %1682 = vst [vmem:[#allocation2 + $0x58] sm:$0xff] %v1681_v33  ;;  %v1622_v39 = vpop.permute.xlu1 %1621  ;;  %3265 = vmatprep.mubr.msk.bf16.mxu1 %vm1200_vm10, %v1681_v33 }
 0x4e6   : > { %3342 = vmatmul.mubr.msk.bf16.gmra.mrb[12].mxu0 %vm1200_vm10, %v1669_v50 }
 0x4e7   : > { %v1529_v47 = vpop.permute.xlu0 %1528  ;;  %v1683_v58 = vld [vmem:[#allocation2 + $0x60] sm:$0xff]  ;;  %3345 = vmatprep.mubr.msk.bf16.mxu0 %vm1200_vm10, %v4808_v1 }
 0x4e8   : > { %1564 = vst.msk [vmem:[#allocation2 + $0x70] sm:$0xff] %vm1550_vm11, %v1529_v47  ;;  %v1684_v54 = vsel %vm4726_vm14, %v1622_v39, %v1683_v58 }
 0x4e9   : > { %1685 = vst [vmem:[#allocation2 + $0x60] sm:$0xff] %v1684_v54  ;;  %v1624_v12 = vpop.permute.xlu1 %1623  ;;  %3266 = vmatmul.mubr.msk.bf16.gmra.mrb[24].mxu1 %vm1200_vm10, %v1684_v54 }
 0x4eb   : > { %v1531_v17 = vpop.permute.xlu0 %1530  ;;  %v1686_v25 = vld [vmem:[#allocation2 + $0x68] sm:$0xff] }
 0x4ec   : > { %1565 = vst.msk [vmem:[#allocation2 + $0x78] sm:$0xff] %vm1550_vm11, %v1531_v17  ;;  %v1687_v0 = vsel %vm4726_vm14, %v1624_v12, %v1686_v25 }
 0x4ed   : > { %1688 = vst [vmem:[#allocation2 + $0x68] sm:$0xff] %v1687_v0  ;;  %v1626_v52 = vpop.permute.xlu1 %1625  ;;  %3269 = vmatprep.mubr.msk.bf16.mxu1 %vm1200_vm10, %v1687_v0 }
 0x4ee   : > { %3346 = vmatmul.mubr.msk.bf16.gmra.mrb[16].mxu0 %vm1200_vm10, %v4815_v13 }
 0x4ef   : > { %v1689_v11 = vld [vmem:[#allocation2 + $0x70] sm:$0xff]  ;;  %3349 = vmatprep.mubr.msk.bf16.mxu0 %vm1200_vm10, %v1678_v40 }
 0x4f0   : > { %v1690_v57 = vsel %vm4726_vm14, %v1626_v52, %v1689_v11 }
 0x4f1   : > { %v1533_v6 = vpop.permute.xlu0 %1532  ;;  %1691 = vst [vmem:[#allocation2 + $0x70] sm:$0xff] %v1690_v57  ;;  %3270 = vmatmul.mubr.msk.bf16.gmra.mrb[28].mxu1 %vm1200_vm10, %v1690_v57 }
 0x4f2   : > { %1566 = vst.msk [vmem:[#allocation2 + $0x80] sm:$0xff] %vm1550_vm11, %v1533_v6 }
 0x4f3   : > { %v1692_v15 = vld [vmem:[#allocation2 + $0x78] sm:$0xff] }
 0x4f5   : > { %v1628_v2 = vpop.permute.xlu0 %1627 }
 0x4f6   : > { %v1693_v19 = vsel %vm4726_vm14, %v1628_v2, %v1692_v15  ;;  %3350 = vmatmul.mubr.msk.bf16.gmra.mrb[20].mxu0 %vm1200_vm10, %v1681_v33 }
 0x4f7   : > { %1694 = vst [vmem:[#allocation2 + $0x78] sm:$0xff] %v1693_v19  ;;  %3273 = vmatprep.mubr.msk.bf16.mxu1 %vm1200_vm10, %v1693_v19  ;;  %3353 = vmatprep.mubr.msk.bf16.mxu0 %vm1200_vm10, %v1684_v54  ;;  %v1630_v24 = vpop.permute.xlu1 %1629 }
 0x4f9   : > { %v1695_v55 = vld [vmem:[#allocation2 + $0x80] sm:$0xff] }
 0x4fa   : > { %v1696_v27 = vsel %vm4726_vm14, %v1630_v24, %v1695_v55 }
 0x4fb   : > { %1697 = vst [vmem:[#allocation2 + $0x80] sm:$0xff] %v1696_v27  ;;  %3274 = vmatmul.mubr.msk.bf16.gmra.mrb[32].mxu1 %vm1200_vm10, %v1696_v27 }
 0x4fc   : > { %3305 = vmatprep.mubr.msk.bf16.mxu1 %vm1200_vm10, %v4808_v1 }
 0x4fe   : > { %3354 = vmatmul.mubr.msk.bf16.gmra.mrb[24].mxu0 %vm1200_vm10, %v1687_v0 }
 0x4ff   : > { %3357 = vmatprep.mubr.msk.bf16.mxu0 %vm1200_vm10, %v1690_v57 }
 0x503   : > { %3306 = vmatmul.mubr.msk.bf16.vlgmr.msra.gmra.mrb[20].mxu1 %vm1200_vm10, %v4815_v13 }
 0x504   : > { %3309 = vmatprep.mubr.msk.bf16.mxu1 %vm1200_vm10, %v1678_v40 }
 0x506   : > { %3358 = vmatmul.mubr.msk.bf16.gmra.mrb[28].mxu0 %vm1200_vm10, %v1693_v19 }
 0x507   : > { %3361 = vmatprep.mubr.msk.bf16.mxu0 %vm1200_vm10, %v1696_v27 }
 0x50b   : > { %3310 = vmatmul.mubr.msk.bf16.gmra.mrb[24].mxu1 %vm1200_vm10, %v1681_v33 }
 0x50c   : > { %3313 = vmatprep.mubr.msk.bf16.mxu1 %vm1200_vm10, %v1684_v54 }
 0x50e   : > { %3362 = vmatmul.mubr.msk.bf16.gmra.mrb[32].mxu0 %vm1200_vm10, %v2260_v35 }
 0x513   : > { %3314 = vmatmul.mubr.msk.bf16.gmra.mrb[28].mxu1 %vm1200_vm10, %v1687_v0 }
 0x514   : > { %3317 = vmatprep.mubr.msk.bf16.mxu1 %vm1200_vm10, %v1690_v57 }
 0x51b   : > { %3318 = vmatmul.mubr.msk.bf16.gmra.mrb[32].mxu1 %vm1200_vm10, %v1693_v19 }
 0x58d   : > { %v3247_v48 = vpop.f32.mrb[4].mxu1 }
 0x58e   : > { %v1872_v29 = vpop.f32.mrb[5].mxu1 }
 0x58f   : > { %v3248_v14 = vpop.f32.mrb[6].mxu1 }
 0x590   : > { %v1875_v18 = vpop.f32.mrb[7].mxu1 }
 0x595   : > { %v3251_v37 = vpop.f32.mrb[8].mxu1 }
 0x596   : > { %v1888_v23 = vpop.f32.mrb[9].mxu1 }
 0x597   : > { %v3252_v26 = vpop.f32.mrb[10].mxu1 }
 0x598   : > { %v1891_v30 = vpop.f32.mrb[11].mxu1 }
 0x59d   : > { %v3255_v9 = vpop.f32.mrb[12].mxu1 }
 0x59e   : > { %v1904_v5 = vpop.f32.mrb[13].mxu1 }
 0x59f   : > { %v4876_v38 = vpop.f32.mrb[14].mxu1 }
 0x5a0   : > { %v4878_v45 = vpop.f32.mrb[15].mxu1 }
 0x5a5   : > { %v4880_v49 = vpop.f32.mrb[16].mxu1 }
 0x5a6   : > { %v4882_v16 = vpop.f32.mrb[17].mxu1 }
 0x5a7   : > { %v4884_v4 = vpop.f32.mrb[18].mxu1 }
 0x5a8   : > { %v4886_v59 = vpop.f32.mrb[19].mxu1 }
 0x5a9   : > { %v3335_v36 = vpop.f32.mrb[4].mxu0 }
 0x5aa   : > { %v3401_v42 = vadd.f32 %v3335_v36, %v3247_v48  ;;  %v2391_v28 = vpop.f32.mrb[5].mxu0 }
 0x5ab   : > { %v3402_v56 = vadd.f32 %v2391_v28, %v1872_v29  ;;  %v3336_v53 = vpop.f32.mrb[6].mxu0 }
 0x5ac   : > { %v2559_v63 = vadd.f32 %v3401_v42, %v4895_v46  ;;  %v3403_v43 = vadd.f32 %v3336_v53, %v3248_v14  ;;  %v2394_v51 = vpop.f32.mrb[7].mxu0 }
 0x5ad   : > { %v2557_v60 = vadd.f32 %v3402_v56, %v4895_v46  ;;  %v3404_v10 = vadd.f32 %v2394_v51, %v1875_v18 }
 0x5ae   : > { %v2595_v50 = vadd.f32 %v4897_v21, %v2559_v63  ;;  %v2560_v41 = vadd.f32 %v3403_v43, %v4895_v46 }
 0x5af   : > { %v2593_v61 = vadd.f32 %v4897_v21, %v2557_v60  ;;  %v2558_v1 = vadd.f32 %v3404_v10, %v4895_v46 }
 0x5b0   : > { %v2994_v62 = vpack.c.bf16 %v2595_v50, %v2595_v50  ;;  %v2596_v3 = vadd.f32 %v4897_v21, %v2560_v41 }
 0x5b1   : > { %v2992_v13 = vpack.c.bf16 %v2593_v61, %v2593_v61  ;;  %v2594_v8 = vadd.f32 %v4897_v21, %v2558_v1  ;;  %v3339_v31 = vpop.f32.mrb[8].mxu0 }
 0x5b2   : > { %2756 = vst.msk [vmem:[%s4908_s26 + $0x8] sm:$0xf] %vm2753_vm15, %v2994_v62  ;;  %v2995_v22 = vpack.c.bf16 %v2596_v3, %v2596_v3  ;;  %v3405_v32 = vadd.f32 %v3339_v31, %v3251_v37  ;;  %v2407_v20 = vpop.f32.mrb[9].mxu0 }
 0x5b3   : > { %2754 = vst.msk [vmem:[%s4908_s26] sm:$0xf] %vm2753_vm15, %v2992_v13  ;;  %v2993_v40 = vpack.c.bf16 %v2594_v8, %v2594_v8  ;;  %v3406_v34 = vadd.f32 %v2407_v20, %v1888_v23  ;;  %v3340_v44 = vpop.f32.mrb[10].mxu0 }
 0x5b4   : > { %2757 = vst.msk [vmem:[%s4908_s26 + $0xc] sm:$0xf] %vm2753_vm15, %v2995_v22  ;;  %v2563_v7 = vadd.f32 %v3405_v32, %v4895_v46  ;;  %v3407_v33 = vadd.f32 %v3340_v44, %v3252_v26  ;;  %v2410_v39 = vpop.f32.mrb[11].mxu0 }
 0x5b5   : > { %2755 = vst.msk [vmem:[%s4908_s26 + $0x4] sm:$0xf] %vm2753_vm15, %v2993_v40  ;;  %v2561_v47 = vadd.f32 %v3406_v34, %v4895_v46  ;;  %v3408_v58 = vadd.f32 %v2410_v39, %v1891_v30 }
 0x5b6   : > { %v2599_v54 = vadd.f32 %v4897_v21, %v2563_v7  ;;  %v2564_v12 = vadd.f32 %v3407_v33, %v4895_v46 }
 0x5b7   : > { %v2597_v17 = vadd.f32 %v4897_v21, %v2561_v47  ;;  %v2562_v25 = vadd.f32 %v3408_v58, %v4895_v46 }
 0x5b8   : > { %v2998_v0 = vpack.c.bf16 %v2599_v54, %v2599_v54  ;;  %v2600_v52 = vadd.f32 %v4897_v21, %v2564_v12 }
 0x5b9   : > { %v2996_v11 = vpack.c.bf16 %v2597_v17, %v2597_v17  ;;  %v2598_v57 = vadd.f32 %v4897_v21, %v2562_v25  ;;  %v3343_v6 = vpop.f32.mrb[12].mxu0 }
 0x5ba   : > { %2760 = vst.msk [vmem:[%s4908_s26 + $0x18] sm:$0xf] %vm2753_vm15, %v2998_v0  ;;  %v2999_v15 = vpack.c.bf16 %v2600_v52, %v2600_v52  ;;  %v3409_v2 = vadd.f32 %v3343_v6, %v3255_v9  ;;  %v2423_v19 = vpop.f32.mrb[13].mxu0 }
 0x5bb   : > { %2758 = vst.msk [vmem:[%s4908_s26 + $0x10] sm:$0xf] %vm2753_vm15, %v2996_v11  ;;  %v2997_v55 = vpack.c.bf16 %v2598_v57, %v2598_v57  ;;  %v3410_v24 = vadd.f32 %v2423_v19, %v1904_v5  ;;  %v3344_v27 = vpop.f32.mrb[14].mxu0 }
 0x5bc   : > { %2761 = vst.msk [vmem:[%s4908_s26 + $0x1c] sm:$0xf] %vm2753_vm15, %v2999_v15  ;;  %v2567_v35 = vadd.f32 %v3409_v2, %v4895_v46  ;;  %v3411_v48 = vadd.f32 %v3344_v27, %v4876_v38  ;;  %v2426_v29 = vpop.f32.mrb[15].mxu0 }
 0x5bd   : > { %2759 = vst.msk [vmem:[%s4908_s26 + $0x14] sm:$0xf] %vm2753_vm15, %v2997_v55  ;;  %v2565_v14 = vadd.f32 %v3410_v24, %v4895_v46  ;;  %v3412_v18 = vadd.f32 %v2426_v29, %v4878_v45 }
 0x5be   : > { %v2603_v37 = vadd.f32 %v4897_v21, %v2567_v35  ;;  %v2568_v23 = vadd.f32 %v3411_v48, %v4895_v46 }
 0x5bf   : > { %v2601_v26 = vadd.f32 %v4897_v21, %v2565_v14  ;;  %v2566_v30 = vadd.f32 %v3412_v18, %v4895_v46 }
 0x5c0   : > { %v3002_v9 = vpack.c.bf16 %v2603_v37, %v2603_v37  ;;  %v2604_v5 = vadd.f32 %v4897_v21, %v2568_v23 }
 0x5c1   : > { %v3000_v38 = vpack.c.bf16 %v2601_v26, %v2601_v26  ;;  %v2602_v36 = vadd.f32 %v4897_v21, %v2566_v30  ;;  %v3347_v42 = vpop.f32.mrb[16].mxu0 }
 0x5c2   : > { %2764 = vst.msk [vmem:[%s4908_s26 + $0x28] sm:$0xf] %vm2753_vm15, %v3002_v9  ;;  %v3003_v45 = vpack.c.bf16 %v2604_v5, %v2604_v5  ;;  %v3413_v28 = vadd.f32 %v3347_v42, %v4880_v49  ;;  %v2439_v56 = vpop.f32.mrb[17].mxu0 }
 0x5c3   : > { %2762 = vst.msk [vmem:[%s4908_s26 + $0x20] sm:$0xf] %vm2753_vm15, %v3000_v38  ;;  %v3001_v53 = vpack.c.bf16 %v2602_v36, %v2602_v36  ;;  %v3414_v63 = vadd.f32 %v2439_v56, %v4882_v16  ;;  %v3348_v43 = vpop.f32.mrb[18].mxu0 }
 0x5c4   : > { %2765 = vst.msk [vmem:[%s4908_s26 + $0x2c] sm:$0xf] %vm2753_vm15, %v3003_v45  ;;  %v2571_v51 = vadd.f32 %v3413_v28, %v4895_v46  ;;  %v3415_v60 = vadd.f32 %v3348_v43, %v4884_v4  ;;  %v2442_v10 = vpop.f32.mrb[19].mxu0 }
 0x5c5   : > { %2763 = vst.msk [vmem:[%s4908_s26 + $0x24] sm:$0xf] %vm2753_vm15, %v3001_v53  ;;  %v2569_v49 = vadd.f32 %v3414_v63, %v4895_v46  ;;  %v3416_v50 = vadd.f32 %v2442_v10, %v4886_v59 }
 0x5c6   : > { %v2607_v41 = vadd.f32 %v4897_v21, %v2571_v51  ;;  %v2572_v16 = vadd.f32 %v3415_v60, %v4895_v46 }
 0x5c7   : > { %v2605_v61 = vadd.f32 %v4897_v21, %v2569_v49  ;;  %v2570_v1 = vadd.f32 %v3416_v50, %v4895_v46 }
 0x5c8   : > { %v3006_v62 = vpack.c.bf16 %v2607_v41, %v2607_v41  ;;  %v2608_v4 = vadd.f32 %v4897_v21, %v2572_v16 }
 0x5c9   : > { %v3004_v3 = vpack.c.bf16 %v2605_v61, %v2605_v61  ;;  %v2606_v13 = vadd.f32 %v4897_v21, %v2570_v1  ;;  %v3351_v8 = vpop.f32.mrb[20].mxu0 }
 0x5ca   : > { %2768 = vst.msk [vmem:[%s4908_s26 + $0x38] sm:$0xf] %vm2753_vm15, %v3006_v62  ;;  %v3007_v59 = vpack.c.bf16 %v2608_v4, %v2608_v4  ;;  %v2455_v31 = vpop.f32.mrb[21].mxu0 }
 0x5cb   : > { %2766 = vst.msk [vmem:[%s4908_s26 + $0x30] sm:$0xf] %vm2753_vm15, %v3004_v3  ;;  %v3005_v22 = vpack.c.bf16 %v2606_v13, %v2606_v13  ;;  %v3352_v32 = vpop.f32.mrb[22].mxu0 }
 0x5cc   : > { %2769 = vst.msk [vmem:[%s4908_s26 + $0x3c] sm:$0xf] %vm2753_vm15, %v3007_v59  ;;  %v2458_v20 = vpop.f32.mrb[23].mxu0 }
 0x5cd   : > { %2767 = vst.msk [vmem:[%s4908_s26 + $0x34] sm:$0xf] %vm2753_vm15, %v3005_v22 }
 0x5d1   : > { %v3355_v40 = vpop.f32.mrb[24].mxu0 }
 0x5d2   : > { %v2471_v34 = vpop.f32.mrb[25].mxu0 }
 0x5d3   : > { %v3356_v44 = vpop.f32.mrb[26].mxu0 }
 0x5d4   : > { %v2474_v7 = vpop.f32.mrb[27].mxu0 }
 0x5d6   : > { %v3307_v33 = vpop.f32.mrb[20].mxu1 }
 0x5d7   : > { %v3417_v39 = vadd.f32 %v3351_v8, %v3307_v33  ;;  %v2181_v47 = vpop.f32.mrb[21].mxu1 }
 0x5d8   : > { %v3418_v58 = vadd.f32 %v2455_v31, %v2181_v47  ;;  %v3308_v54 = vpop.f32.mrb[22].mxu1 }
 0x5d9   : > { %v2575_v12 = vadd.f32 %v3417_v39, %v4895_v46  ;;  %v3419_v17 = vadd.f32 %v3352_v32, %v3308_v54  ;;  %v2184_v25 = vpop.f32.mrb[23].mxu1  ;;  %v3359_v0 = vpop.f32.mrb[28].mxu0 }
 0x5da   : > { %v2573_v52 = vadd.f32 %v3418_v58, %v4895_v46  ;;  %v3420_v11 = vadd.f32 %v2458_v20, %v2184_v25  ;;  %v2487_v57 = vpop.f32.mrb[29].mxu0 }
 0x5db   : > { %v2611_v6 = vadd.f32 %v4897_v21, %v2575_v12  ;;  %v2576_v15 = vadd.f32 %v3419_v17, %v4895_v46  ;;  %v3360_v2 = vpop.f32.mrb[30].mxu0 }
 0x5dc   : > { %v2609_v19 = vadd.f32 %v4897_v21, %v2573_v52  ;;  %v2574_v55 = vadd.f32 %v3420_v11, %v4895_v46  ;;  %v2490_v24 = vpop.f32.mrb[31].mxu0 }
 0x5dd   : > { %v3010_v27 = vpack.c.bf16 %v2611_v6, %v2611_v6  ;;  %v2612_v35 = vadd.f32 %v4897_v21, %v2576_v15 }
 0x5de   : > { %v3008_v48 = vpack.c.bf16 %v2609_v19, %v2609_v19  ;;  %v2610_v29 = vadd.f32 %v4897_v21, %v2574_v55  ;;  %v3311_v14 = vpop.f32.mrb[24].mxu1 }
 0x5df   : > { %2772 = vst.msk [vmem:[%s4908_s26 + $0x48] sm:$0xf] %vm2753_vm15, %v3010_v27  ;;  %v3011_v18 = vpack.c.bf16 %v2612_v35, %v2612_v35  ;;  %v3421_v37 = vadd.f32 %v3355_v40, %v3311_v14  ;;  %v2197_v23 = vpop.f32.mrb[25].mxu1 }
 0x5e0   : > { %2770 = vst.msk [vmem:[%s4908_s26 + $0x40] sm:$0xf] %vm2753_vm15, %v3008_v48  ;;  %v3009_v26 = vpack.c.bf16 %v2610_v29, %v2610_v29  ;;  %v3422_v30 = vadd.f32 %v2471_v34, %v2197_v23  ;;  %v3312_v9 = vpop.f32.mrb[26].mxu1 }
 0x5e1   : > { %2773 = vst.msk [vmem:[%s4908_s26 + $0x4c] sm:$0xf] %vm2753_vm15, %v3011_v18  ;;  %v2579_v5 = vadd.f32 %v3421_v37, %v4895_v46  ;;  %v3423_v38 = vadd.f32 %v3356_v44, %v3312_v9  ;;  %v2200_v36 = vpop.f32.mrb[27].mxu1  ;;  %v3363_v42 = vpop.f32.mrb[32].mxu0 }
 0x5e2   : > { %2771 = vst.msk [vmem:[%s4908_s26 + $0x44] sm:$0xf] %vm2753_vm15, %v3009_v26  ;;  %v2577_v45 = vadd.f32 %v3422_v30, %v4895_v46  ;;  %v3424_v28 = vadd.f32 %v2474_v7, %v2200_v36  ;;  %v2503_v56 = vpop.f32.mrb[33].mxu0 }
 0x5e3   : > { %v2615_v53 = vadd.f32 %v4897_v21, %v2579_v5  ;;  %v2580_v63 = vadd.f32 %v3423_v38, %v4895_v46  ;;  %v3364_v43 = vpop.f32.mrb[34].mxu0 }
 0x5e4   : > { %v2613_v51 = vadd.f32 %v4897_v21, %v2577_v45  ;;  %v2578_v60 = vadd.f32 %v3424_v28, %v4895_v46  ;;  %v2506_v10 = vpop.f32.mrb[35].mxu0 }
 0x5e5   : > { %v3014_v49 = vpack.c.bf16 %v2615_v53, %v2615_v53  ;;  %v2616_v50 = vadd.f32 %v4897_v21, %v2580_v63 }
 0x5e6   : > { %v3012_v41 = vpack.c.bf16 %v2613_v51, %v2613_v51  ;;  %v2614_v16 = vadd.f32 %v4897_v21, %v2578_v60  ;;  %v3315_v61 = vpop.f32.mrb[28].mxu1 }
 0x5e7   : > { %2776 = vst.msk [vmem:[%s4908_s26 + $0x58] sm:$0xf] %vm2753_vm15, %v3014_v49  ;;  %v3015_v1 = vpack.c.bf16 %v2616_v50, %v2616_v50  ;;  %v3425_v62 = vadd.f32 %v3359_v0, %v3315_v61  ;;  %v2213_v4 = vpop.f32.mrb[29].mxu1 }
 0x5e8   : > { %2774 = vst.msk [vmem:[%s4908_s26 + $0x50] sm:$0xf] %vm2753_vm15, %v3012_v41  ;;  %v3013_v3 = vpack.c.bf16 %v2614_v16, %v2614_v16  ;;  %v3426_v13 = vadd.f32 %v2487_v57, %v2213_v4  ;;  %v3316_v8 = vpop.f32.mrb[30].mxu1 }
 0x5e9   : > { %2777 = vst.msk [vmem:[%s4908_s26 + $0x5c] sm:$0xf] %vm2753_vm15, %v3015_v1  ;;  %v2583_v59 = vadd.f32 %v3425_v62, %v4895_v46  ;;  %v3427_v31 = vadd.f32 %v3360_v2, %v3316_v8  ;;  %v2216_v22 = vpop.f32.mrb[31].mxu1 }
 0x5ea   : > { %2775 = vst.msk [vmem:[%s4908_s26 + $0x54] sm:$0xf] %vm2753_vm15, %v3013_v3  ;;  %v2581_v32 = vadd.f32 %v3426_v13, %v4895_v46  ;;  %v3428_v20 = vadd.f32 %v2490_v24, %v2216_v22 }
 0x5eb   : > { %v2619_v40 = vadd.f32 %v4897_v21, %v2583_v59  ;;  %v2584_v34 = vadd.f32 %v3427_v31, %v4895_v46 }
 0x5ec   : > { %v2617_v44 = vadd.f32 %v4897_v21, %v2581_v32  ;;  %v2582_v7 = vadd.f32 %v3428_v20, %v4895_v46 }
 0x5ed   : > { %v3018_v33 = vpack.c.bf16 %v2619_v40, %v2619_v40  ;;  %v2620_v39 = vadd.f32 %v4897_v21, %v2584_v34 }
 0x5ee   : > { %v3016_v47 = vpack.c.bf16 %v2617_v44, %v2617_v44  ;;  %v2618_v58 = vadd.f32 %v4897_v21, %v2582_v7  ;;  %v3319_v54 = vpop.f32.mrb[32].mxu1 }
 0x5ef   : > { %2780 = vst.msk [vmem:[%s4908_s26 + $0x68] sm:$0xf] %vm2753_vm15, %v3018_v33  ;;  %v3019_v12 = vpack.c.bf16 %v2620_v39, %v2620_v39  ;;  %v3429_v17 = vadd.f32 %v3363_v42, %v3319_v54  ;;  %v2229_v25 = vpop.f32.mrb[33].mxu1 }
 0x5f0   : > { %2778 = vst.msk [vmem:[%s4908_s26 + $0x60] sm:$0xf] %vm2753_vm15, %v3016_v47  ;;  %v3017_v0 = vpack.c.bf16 %v2618_v58, %v2618_v58  ;;  %v3430_v52 = vadd.f32 %v2503_v56, %v2229_v25  ;;  %v3320_v11 = vpop.f32.mrb[34].mxu1 }
 0x5f1   : > { %2781 = vst.msk [vmem:[%s4908_s26 + $0x6c] sm:$0xf] %vm2753_vm15, %v3019_v12  ;;  %v2587_v57 = vadd.f32 %v3429_v17, %v4895_v46  ;;  %v3431_v6 = vadd.f32 %v3364_v43, %v3320_v11  ;;  %v2232_v15 = vpop.f32.mrb[35].mxu1 }
 0x5f2   : > { %2779 = vst.msk [vmem:[%s4908_s26 + $0x64] sm:$0xf] %vm2753_vm15, %v3017_v0  ;;  %v2585_v2 = vadd.f32 %v3430_v52, %v4895_v46  ;;  %v3432_v19 = vadd.f32 %v2506_v10, %v2232_v15 }
 0x5f3   : > { %v2623_v55 = vadd.f32 %v4897_v21, %v2587_v57  ;;  %v2588_v24 = vadd.f32 %v3431_v6, %v4895_v46 }
 0x5f4   : > { %v2621_v27 = vadd.f32 %v4897_v21, %v2585_v2  ;;  %v2586_v35 = vadd.f32 %v3432_v19, %v4895_v46 }
 0x5f5   : > { %v3022_v48 = vpack.c.bf16 %v2623_v55, %v2623_v55  ;;  %v2624_v29 = vadd.f32 %v4897_v21, %v2588_v24 }
 0x5f6   : > { %v3020_v14 = vpack.c.bf16 %v2621_v27, %v2621_v27  ;;  %v2622_v18 = vadd.f32 %v4897_v21, %v2586_v35 }
 0x5f7   : > { %2784 = vst.msk [vmem:[%s4908_s26 + $0x78] sm:$0xf] %vm2753_vm15, %v3022_v48  ;;  %v3023_v37 = vpack.c.bf16 %v2624_v29, %v2624_v29 }
 0x5f8   : > { %2782 = vst.msk [vmem:[%s4908_s26 + $0x70] sm:$0xf] %vm2753_vm15, %v3020_v14  ;;  %v3021_v23 = vpack.c.bf16 %v2622_v18, %v2622_v18 }
 0x5f9   : > { %2785 = vst.msk [vmem:[%s4908_s26 + $0x7c] sm:$0xf] %vm2753_vm15, %v3023_v37 }
 0x5fa   : > { %2783 = vst.msk [vmem:[%s4908_s26 + $0x74] sm:$0xf] %vm2753_vm15, %v3021_v23 }
 0x5fb PF: > { %s18_s27 = sadd.s32 1, %s3635_s27  }
 0x5fc   : > { %p15_p4 = scmp.ge.s32.totalorder %s18_s27, 4  }
 0x5fe   :  { %17 = sbr.rel (!%p15_p4) target bundleno = 1 (0x1), region = 86 }

</bundles_post_ra>
